<compile_context>
chip_gen: v7x
topology: tpu7x:2x2x1
jax: 0.10.0
libtpu: 0.0.40
codegen_flags: <defaults>
</compile_context>

<pallas_src>
import functools
import math

import jax
import jax.numpy as jnp
from jax.experimental import pallas as pl
from jax.experimental.pallas import tpu as pltpu

SQRT_HALF = 0.7071067811865476
MATMUL_DTYPE = jnp.bfloat16   # jnp.float32 => exact-f32 matmuls (slower MXU path)

# Zero padding applied before conv2..conv10 (conv2's own padding=15; rest F.pad).
_PADS = (15, 1, 1, 3, 1, 1, 0, 0, 1)
_POINTWISE = ("conv2", "conv3", "conv4", "conv5",
              "conv6", "conv7", "conv8", "conv9", "conv10")


def _erf(x):
    # Abramowitz & Stegun 7.1.26 polynomial (max abs err ~1.5e-7); f32 math.
    a1, a2, a3 = 0.254829592, -0.284496736, 1.421413741
    a4, a5, p = -1.453152027, 1.061405429, 0.3275911
    sign = jnp.where(x >= 0.0, 1.0, -1.0)
    ax = jnp.abs(x)
    t = pl.reciprocal(1.0 + p * ax, approx=True)   # EUP slot, not a VALU divide
    poly = ((((a5 * t + a4) * t + a3) * t + a2) * t + a1) * t
    return sign * (1.0 - poly * jnp.exp(-ax * ax))


def _gelu(y):
    # Exactly the op sequence in the PyTorch graph: y*0.5*(erf(y*sqrt(1/2))+1).
    return (y * 0.5) * (_erf(y * SQRT_HALF) + 1.0)


def _band_mask(lane, off, length):
    # f32 {0,1} mask over lanes [off, off+length); broadcasts over channels.
    return ((lane >= off) & (lane < off + length)).astype(jnp.float32)


def _fused_kernel(xe_ref, xo_ref, *refs, l1, off1, w_lanes, schedule):
    """conv1..conv10 + GELUs on a single lane-dense (C, w_lanes) canvas."""
    o_ref = refs[-1]
    prm = refs[:-1]                         # w1,b1, w2,b2, ..., w10,b10
    lane = jax.lax.broadcasted_iota(jnp.int32, (1, w_lanes), 1)

    # ---- conv1: Conv1d(32,32,k=6,stride=2) as 6 accumulated MXU matmuls over
    #      even/odd deinterleaved input (in-kernel im2col), computed full-width.
    w1_ref, b1_ref = prm[0], prm[1]
    cout1 = b1_ref.shape[0]
    xe = xe_ref[...]                        # (32, src_w) f32, data at lane off1
    xo = xo_ref[...]
    acc = jnp.zeros((cout1, w_lanes), jnp.float32)
    for k in range(6):
        src = xe if k % 2 == 0 else xo
        s = k // 2
        tap = src[:, s:s + w_lanes].astype(MATMUL_DTYPE)          # (32, W)
        wk = w1_ref[k * cout1:(k + 1) * cout1, :]                 # (32, 32)
        acc = acc + jnp.dot(wk, tap, preferred_element_type=jnp.float32)
    v = _gelu(acc + b1_ref[...])
    v = v * _band_mask(lane, off1, l1)      # zero outside valid region => pads

    # ---- conv2..conv10: 1x1 convs. Padding is implicit: valid data sits at a
    #      fixed global lane offset, everything outside is already zero.
    n = len(schedule)
    for i, (off, length, use_gelu) in enumerate(schedule):
        w_ref, b_ref = prm[2 + 2 * i], prm[3 + 2 * i]
        y = jnp.dot(w_ref[...], v.astype(MATMUL_DTYPE),
                    preferred_element_type=jnp.float32) + b_ref[...]
        if use_gelu:
            y = _gelu(y)
        if i + 1 < n:
            v = y * _band_mask(lane, off, length)
        else:
            v = y                           # last stage: wrapper slices to length
    o_ref[...] = v                          # full-width, lane-dense store


def init_conv(key, cout, cin, k):
    # PyTorch default Conv1d init: U(-1/sqrt(cin*k), 1/sqrt(cin*k)).
    kw, kb = jax.random.split(key)
    bound = 1.0 / math.sqrt(cin * k)
    w = jax.random.uniform(kw, (cout, cin, k), jnp.float32, -bound, bound)
    b = jax.random.uniform(kb, (cout,), jnp.float32, -bound, bound)
    return w, b


def make_params(key):
    # TODO(synk): the original module declares conv3 = Conv1d(496, 16, 1) but the
    # tensor reaching it only has 16 channels, so the PyTorch forward would raise;
    # conv3 is instantiated with 16 input channels to keep the chain runnable.
    specs = [
        ("conv1", 32, 32, 6),
        ("conv2", 16, 32, 1),
        ("conv3", 16, 16, 1),
        ("conv4", 128, 16, 1),
        ("conv5", 32, 128, 1),
        ("conv6", 64, 32, 1),
        ("conv7", 128, 64, 1),
        ("conv8", 64, 128, 1),
        ("conv9", 16, 64, 1),
        ("conv10", 16, 16, 1),
    ]
    params = {}
    for name, cout, cin, k in specs:
        key, sub = jax.random.split(key)
        params[name] = init_conv(sub, cout, cin, k)
    return params


def model_forward(x1, params):
    # x1: (1, 32, L) float32
    x = x1[0]
    cin1, L = x.shape
    l1 = (L - 6) // 2 + 1                       # conv1 output length (stride 2)

    # Global lane offsets: stage k's valid output lives at [off_k, off_k+len_k),
    # off_k = sum of all downstream pads; the final output starts at lane 0.
    off1 = sum(_PADS)
    schedule = []
    off, length = off1, l1
    for i, p in enumerate(_PADS):
        off -= p
        length += 2 * p
        schedule.append((off, length, i + 1 < len(_PADS)))   # conv10: no GELU
    assert off == 0
    l_final = length

    w_lanes = -(-max(l_final, off1 + l1) // 128) * 128       # lane-dense canvas
    src_w = w_lanes + 128                                    # room for tap shifts

    # Even/odd lane de-interleave (replaces the advanced-index im2col gather);
    # data is placed at lane offset off1 so conv1's full-width matmul lands its
    # valid output at the right global lanes automatically.
    x_even, x_odd = x[:, 0::2], x[:, 1::2]
    xe = jnp.zeros((cin1, src_w), jnp.float32)
    xe = xe.at[:, off1:off1 + x_even.shape[1]].set(x_even)
    xo = jnp.zeros((cin1, src_w), jnp.float32)
    xo = xo.at[:, off1:off1 + x_odd.shape[1]].set(x_odd)

    w1, b1 = params["conv1"]                                 # (32,32,6), (32,)
    w1_stk = jnp.transpose(w1, (2, 0, 1)).reshape(-1, w1.shape[1])   # (6*32, 32)
    inputs = [xe, xo, w1_stk.astype(MATMUL_DTYPE), b1.reshape(-1, 1)]

    flops = 2 * w1.shape[0] * w1.shape[1] * 6 * w_lanes
    trans = w1.shape[0] * w_lanes
    for name, (_, _ln, g) in zip(_POINTWISE, schedule):
        w, b = params[name]
        inputs.append(w[:, :, 0].astype(MATMUL_DTYPE))
        inputs.append(b.reshape(-1, 1))
        flops += 2 * w.shape[0] * w.shape[1] * w_lanes
        trans += w.shape[0] * w_lanes if g else 0
    cout_last = params["conv10"][0].shape[0]
    bytes_acc = sum(a.size * a.dtype.itemsize for a in inputs) + cout_last * w_lanes * 4

    kern = functools.partial(_fused_kernel, l1=l1, off1=off1,
                             w_lanes=w_lanes, schedule=tuple(schedule))
    vmem = pl.BlockSpec(memory_space=pltpu.MemorySpace.VMEM)
    out = pl.pallas_call(
        kern,
        out_shape=jax.ShapeDtypeStruct((cout_last, w_lanes), jnp.float32),
        in_specs=[vmem] * len(inputs),
        out_specs=vmem,
        cost_estimate=pl.CostEstimate(flops=int(flops),
                                      transcendentals=int(trans),
                                      bytes_accessed=int(bytes_acc)),
    )(*inputs)
    return out[None, :, :l_final]            # (1, 16, 358)


if __name__ == "__main__":
    key = jax.random.PRNGKey(0)
    kx, kp = jax.random.split(key)
    x1 = jax.random.normal(kx, (1, 32, 629), jnp.float32)
    params = make_params(kp)

    fwd = jax.jit(model_forward)
    out = jax.block_until_ready(fwd(x1, params))

    assert out.shape == (1, 16, 358), out.shape
    assert out.dtype == jnp.float32
    assert bool(jnp.all(jnp.isfinite(out)))
    print("KERNEL_OK")
</pallas_src>

<mosaic_0001>
module attributes {stable_mosaic.version = 11 : i64} {
  func.func @_fused_kernel(%arg0: memref<32x512xf32, #tpu.memory_space<vmem>>, %arg1: memref<32x512xf32, #tpu.memory_space<vmem>>, %arg2: memref<192x32xbf16, #tpu.memory_space<vmem>>, %arg3: memref<32x1xf32, #tpu.memory_space<vmem>>, %arg4: memref<16x32xbf16, #tpu.memory_space<vmem>>, %arg5: memref<16x1xf32, #tpu.memory_space<vmem>>, %arg6: memref<16x16xbf16, #tpu.memory_space<vmem>>, %arg7: memref<16x1xf32, #tpu.memory_space<vmem>>, %arg8: memref<128x16xbf16, #tpu.memory_space<vmem>>, %arg9: memref<128x1xf32, #tpu.memory_space<vmem>>, %arg10: memref<32x128xbf16, #tpu.memory_space<vmem>>, %arg11: memref<32x1xf32, #tpu.memory_space<vmem>>, %arg12: memref<64x32xbf16, #tpu.memory_space<vmem>>, %arg13: memref<64x1xf32, #tpu.memory_space<vmem>>, %arg14: memref<128x64xbf16, #tpu.memory_space<vmem>>, %arg15: memref<128x1xf32, #tpu.memory_space<vmem>>, %arg16: memref<64x128xbf16, #tpu.memory_space<vmem>>, %arg17: memref<64x1xf32, #tpu.memory_space<vmem>>, %arg18: memref<16x64xbf16, #tpu.memory_space<vmem>>, %arg19: memref<16x1xf32, #tpu.memory_space<vmem>>, %arg20: memref<16x16xbf16, #tpu.memory_space<vmem>>, %arg21: memref<16x1xf32, #tpu.memory_space<vmem>>, %arg22: memref<16x384xf32, #tpu.memory_space<vmem>>) attributes {dimension_semantics = [], scalar_prefetch = 0 : i64, scratch_operands = 0 : i64, tpu.core_type = #tpu.core_type<tc>} {
    %0 = tpu.iota {dimensions = array<i32: 1>} : vector<1x384xi32>
    %c0 = arith.constant 0 : index
    %c0_0 = arith.constant 0 : index
    %1 = vector.load %arg0[%c0, %c0_0] : memref<32x512xf32, #tpu.memory_space<vmem>>, vector<32x512xf32>
    %c0_1 = arith.constant 0 : index
    %c0_2 = arith.constant 0 : index
    %2 = vector.load %arg1[%c0_1, %c0_2] : memref<32x512xf32, #tpu.memory_space<vmem>>, vector<32x512xf32>
    %cst = arith.constant 0.000000e+00 : f32
    %3 = vector.broadcast %cst : f32 to vector<32x384xf32>
    %4 = vector.extract_strided_slice %1 {offsets = [0, 0], sizes = [32, 384], strides = [1, 1]} : vector<32x512xf32> to vector<32x384xf32>
    %5 = arith.truncf %4 : vector<32x384xf32> to vector<32x384xbf16>
    %c0_3 = arith.constant 0 : index
    %c0_4 = arith.constant 0 : index
    %6 = vector.load %arg2[%c0_3, %c0_4] : memref<192x32xbf16, #tpu.memory_space<vmem>>, vector<32x32xbf16>
    %cst_5 = arith.constant dense<0.000000e+00> : vector<32x384xf32>
    %7 = tpu.matmul %6, %5, %cst_5 {dimension_numbers = #tpu.dot_dimension_numbers<[1], [0], [0], [1], [0, 0, 1, 1], [], []>} : vector<32x32xbf16>, vector<32x384xbf16>, vector<32x384xf32> -> vector<32x384xf32>
    %8 = arith.addf %3, %7 : vector<32x384xf32>
    %9 = vector.extract_strided_slice %2 {offsets = [0, 0], sizes = [32, 384], strides = [1, 1]} : vector<32x512xf32> to vector<32x384xf32>
    %10 = arith.truncf %9 : vector<32x384xf32> to vector<32x384xbf16>
    %c32 = arith.constant 32 : index
    %c0_6 = arith.constant 0 : index
    %11 = vector.load %arg2[%c32, %c0_6] : memref<192x32xbf16, #tpu.memory_space<vmem>>, vector<32x32xbf16>
    %cst_7 = arith.constant dense<0.000000e+00> : vector<32x384xf32>
    %12 = tpu.matmul %11, %10, %cst_7 {dimension_numbers = #tpu.dot_dimension_numbers<[1], [0], [0], [1], [0, 0, 1, 1], [], []>} : vector<32x32xbf16>, vector<32x384xbf16>, vector<32x384xf32> -> vector<32x384xf32>
    %13 = arith.addf %8, %12 : vector<32x384xf32>
    %14 = vector.extract_strided_slice %1 {offsets = [0, 1], sizes = [32, 384], strides = [1, 1]} : vector<32x512xf32> to vector<32x384xf32>
    %15 = arith.truncf %14 : vector<32x384xf32> to vector<32x384xbf16>
    %c64 = arith.constant 64 : index
    %c0_8 = arith.constant 0 : index
    %16 = vector.load %arg2[%c64, %c0_8] : memref<192x32xbf16, #tpu.memory_space<vmem>>, vector<32x32xbf16>
    %cst_9 = arith.constant dense<0.000000e+00> : vector<32x384xf32>
    %17 = tpu.matmul %16, %15, %cst_9 {dimension_numbers = #tpu.dot_dimension_numbers<[1], [0], [0], [1], [0, 0, 1, 1], [], []>} : vector<32x32xbf16>, vector<32x384xbf16>, vector<32x384xf32> -> vector<32x384xf32>
    %18 = arith.addf %13, %17 : vector<32x384xf32>
    %19 = vector.extract_strided_slice %2 {offsets = [0, 1], sizes = [32, 384], strides = [1, 1]} : vector<32x512xf32> to vector<32x384xf32>
    %20 = arith.truncf %19 : vector<32x384xf32> to vector<32x384xbf16>
    %c96 = arith.constant 96 : index
    %c0_10 = arith.constant 0 : index
    %21 = vector.load %arg2[%c96, %c0_10] : memref<192x32xbf16, #tpu.memory_space<vmem>>, vector<32x32xbf16>
    %cst_11 = arith.constant dense<0.000000e+00> : vector<32x384xf32>
    %22 = tpu.matmul %21, %20, %cst_11 {dimension_numbers = #tpu.dot_dimension_numbers<[1], [0], [0], [1], [0, 0, 1, 1], [], []>} : vector<32x32xbf16>, vector<32x384xbf16>, vector<32x384xf32> -> vector<32x384xf32>
    %23 = arith.addf %18, %22 : vector<32x384xf32>
    %24 = vector.extract_strided_slice %1 {offsets = [0, 2], sizes = [32, 384], strides = [1, 1]} : vector<32x512xf32> to vector<32x384xf32>
    %25 = arith.truncf %24 : vector<32x384xf32> to vector<32x384xbf16>
    %c128 = arith.constant 128 : index
    %c0_12 = arith.constant 0 : index
    %26 = vector.load %arg2[%c128, %c0_12] : memref<192x32xbf16, #tpu.memory_space<vmem>>, vector<32x32xbf16>
    %cst_13 = arith.constant dense<0.000000e+00> : vector<32x384xf32>
    %27 = tpu.matmul %26, %25, %cst_13 {dimension_numbers = #tpu.dot_dimension_numbers<[1], [0], [0], [1], [0, 0, 1, 1], [], []>} : vector<32x32xbf16>, vector<32x384xbf16>, vector<32x384xf32> -> vector<32x384xf32>
    %28 = arith.addf %23, %27 : vector<32x384xf32>
    %29 = vector.extract_strided_slice %2 {offsets = [0, 2], sizes = [32, 384], strides = [1, 1]} : vector<32x512xf32> to vector<32x384xf32>
    %30 = arith.truncf %29 : vector<32x384xf32> to vector<32x384xbf16>
    %c160 = arith.constant 160 : index
    %c0_14 = arith.constant 0 : index
    %31 = vector.load %arg2[%c160, %c0_14] : memref<192x32xbf16, #tpu.memory_space<vmem>>, vector<32x32xbf16>
    %cst_15 = arith.constant dense<0.000000e+00> : vector<32x384xf32>
    %32 = tpu.matmul %31, %30, %cst_15 {dimension_numbers = #tpu.dot_dimension_numbers<[1], [0], [0], [1], [0, 0, 1, 1], [], []>} : vector<32x32xbf16>, vector<32x384xbf16>, vector<32x384xf32> -> vector<32x384xf32>
    %33 = arith.addf %28, %32 : vector<32x384xf32>
    %c0_16 = arith.constant 0 : index
    %c0_17 = arith.constant 0 : index
    %34 = vector.load %arg3[%c0_16, %c0_17] : memref<32x1xf32, #tpu.memory_space<vmem>>, vector<32x1xf32>
    %35 = vector.broadcast %34 : vector<32x1xf32> to vector<32x384xf32>
    %36 = arith.addf %33, %35 : vector<32x384xf32>
    %cst_18 = arith.constant 5.000000e-01 : f32
    %37 = vector.broadcast %cst_18 : f32 to vector<32x384xf32>
    %38 = arith.mulf %36, %37 : vector<32x384xf32>
    %cst_19 = arith.constant 0.707106769 : f32
    %39 = vector.broadcast %cst_19 : f32 to vector<32x384xf32>
    %40 = arith.mulf %36, %39 : vector<32x384xf32>
    %cst_20 = arith.constant 0.000000e+00 : f32
    %41 = vector.broadcast %cst_20 : f32 to vector<32x384xf32>
    %42 = arith.cmpf oge, %40, %41 : vector<32x384xf32>
    %cst_21 = arith.constant 1.000000e+00 : f32
    %cst_22 = arith.constant -1.000000e+00 : f32
    %43 = vector.broadcast %cst_21 : f32 to vector<32x384xf32>
    %44 = vector.broadcast %cst_22 : f32 to vector<32x384xf32>
    %45 = arith.select %42, %43, %44 : vector<32x384xi1>, vector<32x384xf32>
    %46 = math.absf %40 : vector<32x384xf32>
    %cst_23 = arith.constant 0.327591091 : f32
    %47 = vector.broadcast %cst_23 : f32 to vector<32x384xf32>
    %48 = arith.mulf %47, %46 : vector<32x384xf32>
    %cst_24 = arith.constant 1.000000e+00 : f32
    %49 = vector.broadcast %cst_24 : f32 to vector<32x384xf32>
    %50 = arith.addf %49, %48 : vector<32x384xf32>
    %51 = tpu.reciprocal %50 {approx = true} : vector<32x384xf32> -> vector<32x384xf32>
    %cst_25 = arith.constant 1.06140542 : f32
    %52 = vector.broadcast %cst_25 : f32 to vector<32x384xf32>
    %53 = arith.mulf %52, %51 : vector<32x384xf32>
    %cst_26 = arith.constant -1.45315206 : f32
    %54 = vector.broadcast %cst_26 : f32 to vector<32x384xf32>
    %55 = arith.addf %53, %54 : vector<32x384xf32>
    %56 = arith.mulf %55, %51 : vector<32x384xf32>
    %cst_27 = arith.constant 1.42141378 : f32
    %57 = vector.broadcast %cst_27 : f32 to vector<32x384xf32>
    %58 = arith.addf %56, %57 : vector<32x384xf32>
    %59 = arith.mulf %58, %51 : vector<32x384xf32>
    %cst_28 = arith.constant -0.284496725 : f32
    %60 = vector.broadcast %cst_28 : f32 to vector<32x384xf32>
    %61 = arith.addf %59, %60 : vector<32x384xf32>
    %62 = arith.mulf %61, %51 : vector<32x384xf32>
    %cst_29 = arith.constant 0.254829586 : f32
    %63 = vector.broadcast %cst_29 : f32 to vector<32x384xf32>
    %64 = arith.addf %62, %63 : vector<32x384xf32>
    %65 = arith.mulf %64, %51 : vector<32x384xf32>
    %cst_30 = arith.constant 0.000000e+00 : f32
    %66 = vector.broadcast %cst_30 : f32 to vector<32x384xf32>
    %67 = arith.subf %66, %46 : vector<32x384xf32>
    %68 = arith.mulf %67, %46 : vector<32x384xf32>
    %69 = math.exp %68 : vector<32x384xf32>
    %70 = arith.mulf %65, %69 : vector<32x384xf32>
    %cst_31 = arith.constant 1.000000e+00 : f32
    %71 = vector.broadcast %cst_31 : f32 to vector<32x384xf32>
    %72 = arith.subf %71, %70 : vector<32x384xf32>
    %73 = arith.mulf %45, %72 : vector<32x384xf32>
    %cst_32 = arith.constant 1.000000e+00 : f32
    %74 = vector.broadcast %cst_32 : f32 to vector<32x384xf32>
    %75 = arith.addf %73, %74 : vector<32x384xf32>
    %76 = arith.mulf %38, %75 : vector<32x384xf32>
    %c23_i32 = arith.constant 23 : i32
    %77 = vector.broadcast %c23_i32 : i32 to vector<1x384xi32>
    %78 = arith.cmpi sge, %0, %77 : vector<1x384xi32>
    %c335_i32 = arith.constant 335 : i32
    %79 = vector.broadcast %c335_i32 : i32 to vector<1x384xi32>
    %80 = arith.cmpi slt, %0, %79 : vector<1x384xi32>
    %81 = arith.andi %78, %80 : vector<1x384xi1>
    %82 = arith.extui %81 : vector<1x384xi1> to vector<1x384xi32>
    %83 = arith.sitofp %82 : vector<1x384xi32> to vector<1x384xf32>
    %84 = vector.broadcast %83 : vector<1x384xf32> to vector<32x384xf32>
    %85 = arith.mulf %76, %84 : vector<32x384xf32>
    %c0_33 = arith.constant 0 : index
    %c0_34 = arith.constant 0 : index
    %86 = vector.load %arg4[%c0_33, %c0_34] : memref<16x32xbf16, #tpu.memory_space<vmem>>, vector<16x32xbf16>
    %87 = arith.truncf %85 : vector<32x384xf32> to vector<32x384xbf16>
    %cst_35 = arith.constant dense<0.000000e+00> : vector<16x384xf32>
    %88 = tpu.matmul %86, %87, %cst_35 {dimension_numbers = #tpu.dot_dimension_numbers<[1], [0], [0], [1], [0, 0, 1, 1], [], []>} : vector<16x32xbf16>, vector<32x384xbf16>, vector<16x384xf32> -> vector<16x384xf32>
    %c0_36 = arith.constant 0 : index
    %c0_37 = arith.constant 0 : index
    %89 = vector.load %arg5[%c0_36, %c0_37] : memref<16x1xf32, #tpu.memory_space<vmem>>, vector<16x1xf32>
    %90 = vector.broadcast %89 : vector<16x1xf32> to vector<16x384xf32>
    %91 = arith.addf %88, %90 : vector<16x384xf32>
    %cst_38 = arith.constant 5.000000e-01 : f32
    %92 = vector.broadcast %cst_38 : f32 to vector<16x384xf32>
    %93 = arith.mulf %91, %92 : vector<16x384xf32>
    %cst_39 = arith.constant 0.707106769 : f32
    %94 = vector.broadcast %cst_39 : f32 to vector<16x384xf32>
    %95 = arith.mulf %91, %94 : vector<16x384xf32>
    %cst_40 = arith.constant 0.000000e+00 : f32
    %96 = vector.broadcast %cst_40 : f32 to vector<16x384xf32>
    %97 = arith.cmpf oge, %95, %96 : vector<16x384xf32>
    %cst_41 = arith.constant 1.000000e+00 : f32
    %cst_42 = arith.constant -1.000000e+00 : f32
    %98 = vector.broadcast %cst_41 : f32 to vector<16x384xf32>
    %99 = vector.broadcast %cst_42 : f32 to vector<16x384xf32>
    %100 = arith.select %97, %98, %99 : vector<16x384xi1>, vector<16x384xf32>
    %101 = math.absf %95 : vector<16x384xf32>
    %cst_43 = arith.constant 0.327591091 : f32
    %102 = vector.broadcast %cst_43 : f32 to vector<16x384xf32>
    %103 = arith.mulf %102, %101 : vector<16x384xf32>
    %cst_44 = arith.constant 1.000000e+00 : f32
    %104 = vector.broadcast %cst_44 : f32 to vector<16x384xf32>
    %105 = arith.addf %104, %103 : vector<16x384xf32>
    %106 = tpu.reciprocal %105 {approx = true} : vector<16x384xf32> -> vector<16x384xf32>
    %cst_45 = arith.constant 1.06140542 : f32
    %107 = vector.broadcast %cst_45 : f32 to vector<16x384xf32>
    %108 = arith.mulf %107, %106 : vector<16x384xf32>
    %cst_46 = arith.constant -1.45315206 : f32
    %109 = vector.broadcast %cst_46 : f32 to vector<16x384xf32>
    %110 = arith.addf %108, %109 : vector<16x384xf32>
    %111 = arith.mulf %110, %106 : vector<16x384xf32>
    %cst_47 = arith.constant 1.42141378 : f32
    %112 = vector.broadcast %cst_47 : f32 to vector<16x384xf32>
    %113 = arith.addf %111, %112 : vector<16x384xf32>
    %114 = arith.mulf %113, %106 : vector<16x384xf32>
    %cst_48 = arith.constant -0.284496725 : f32
    %115 = vector.broadcast %cst_48 : f32 to vector<16x384xf32>
    %116 = arith.addf %114, %115 : vector<16x384xf32>
    %117 = arith.mulf %116, %106 : vector<16x384xf32>
    %cst_49 = arith.constant 0.254829586 : f32
    %118 = vector.broadcast %cst_49 : f32 to vector<16x384xf32>
    %119 = arith.addf %117, %118 : vector<16x384xf32>
    %120 = arith.mulf %119, %106 : vector<16x384xf32>
    %cst_50 = arith.constant 0.000000e+00 : f32
    %121 = vector.broadcast %cst_50 : f32 to vector<16x384xf32>
    %122 = arith.subf %121, %101 : vector<16x384xf32>
    %123 = arith.mulf %122, %101 : vector<16x384xf32>
    %124 = math.exp %123 : vector<16x384xf32>
    %125 = arith.mulf %120, %124 : vector<16x384xf32>
    %cst_51 = arith.constant 1.000000e+00 : f32
    %126 = vector.broadcast %cst_51 : f32 to vector<16x384xf32>
    %127 = arith.subf %126, %125 : vector<16x384xf32>
    %128 = arith.mulf %100, %127 : vector<16x384xf32>
    %cst_52 = arith.constant 1.000000e+00 : f32
    %129 = vector.broadcast %cst_52 : f32 to vector<16x384xf32>
    %130 = arith.addf %128, %129 : vector<16x384xf32>
    %131 = arith.mulf %93, %130 : vector<16x384xf32>
    %c8_i32 = arith.constant 8 : i32
    %132 = vector.broadcast %c8_i32 : i32 to vector<1x384xi32>
    %133 = arith.cmpi sge, %0, %132 : vector<1x384xi32>
    %c350_i32 = arith.constant 350 : i32
    %134 = vector.broadcast %c350_i32 : i32 to vector<1x384xi32>
    %135 = arith.cmpi slt, %0, %134 : vector<1x384xi32>
    %136 = arith.andi %133, %135 : vector<1x384xi1>
    %137 = arith.extui %136 : vector<1x384xi1> to vector<1x384xi32>
    %138 = arith.sitofp %137 : vector<1x384xi32> to vector<1x384xf32>
    %139 = vector.broadcast %138 : vector<1x384xf32> to vector<16x384xf32>
    %140 = arith.mulf %131, %139 : vector<16x384xf32>
    %c0_53 = arith.constant 0 : index
    %c0_54 = arith.constant 0 : index
    %141 = vector.load %arg6[%c0_53, %c0_54] : memref<16x16xbf16, #tpu.memory_space<vmem>>, vector<16x16xbf16>
    %142 = arith.truncf %140 : vector<16x384xf32> to vector<16x384xbf16>
    %cst_55 = arith.constant dense<0.000000e+00> : vector<16x384xf32>
    %143 = tpu.matmul %141, %142, %cst_55 {dimension_numbers = #tpu.dot_dimension_numbers<[1], [0], [0], [1], [0, 0, 1, 1], [], []>} : vector<16x16xbf16>, vector<16x384xbf16>, vector<16x384xf32> -> vector<16x384xf32>
    %c0_56 = arith.constant 0 : index
    %c0_57 = arith.constant 0 : index
    %144 = vector.load %arg7[%c0_56, %c0_57] : memref<16x1xf32, #tpu.memory_space<vmem>>, vector<16x1xf32>
    %145 = vector.broadcast %144 : vector<16x1xf32> to vector<16x384xf32>
    %146 = arith.addf %143, %145 : vector<16x384xf32>
    %cst_58 = arith.constant 5.000000e-01 : f32
    %147 = vector.broadcast %cst_58 : f32 to vector<16x384xf32>
    %148 = arith.mulf %146, %147 : vector<16x384xf32>
    %cst_59 = arith.constant 0.707106769 : f32
    %149 = vector.broadcast %cst_59 : f32 to vector<16x384xf32>
    %150 = arith.mulf %146, %149 : vector<16x384xf32>
    %cst_60 = arith.constant 0.000000e+00 : f32
    %151 = vector.broadcast %cst_60 : f32 to vector<16x384xf32>
    %152 = arith.cmpf oge, %150, %151 : vector<16x384xf32>
    %cst_61 = arith.constant 1.000000e+00 : f32
    %cst_62 = arith.constant -1.000000e+00 : f32
    %153 = vector.broadcast %cst_61 : f32 to vector<16x384xf32>
    %154 = vector.broadcast %cst_62 : f32 to vector<16x384xf32>
    %155 = arith.select %152, %153, %154 : vector<16x384xi1>, vector<16x384xf32>
    %156 = math.absf %150 : vector<16x384xf32>
    %cst_63 = arith.constant 0.327591091 : f32
    %157 = vector.broadcast %cst_63 : f32 to vector<16x384xf32>
    %158 = arith.mulf %157, %156 : vector<16x384xf32>
    %cst_64 = arith.constant 1.000000e+00 : f32
    %159 = vector.broadcast %cst_64 : f32 to vector<16x384xf32>
    %160 = arith.addf %159, %158 : vector<16x384xf32>
    %161 = tpu.reciprocal %160 {approx = true} : vector<16x384xf32> -> vector<16x384xf32>
    %cst_65 = arith.constant 1.06140542 : f32
    %162 = vector.broadcast %cst_65 : f32 to vector<16x384xf32>
    %163 = arith.mulf %162, %161 : vector<16x384xf32>
    %cst_66 = arith.constant -1.45315206 : f32
    %164 = vector.broadcast %cst_66 : f32 to vector<16x384xf32>
    %165 = arith.addf %163, %164 : vector<16x384xf32>
    %166 = arith.mulf %165, %161 : vector<16x384xf32>
    %cst_67 = arith.constant 1.42141378 : f32
    %167 = vector.broadcast %cst_67 : f32 to vector<16x384xf32>
    %168 = arith.addf %166, %167 : vector<16x384xf32>
    %169 = arith.mulf %168, %161 : vector<16x384xf32>
    %cst_68 = arith.constant -0.284496725 : f32
    %170 = vector.broadcast %cst_68 : f32 to vector<16x384xf32>
    %171 = arith.addf %169, %170 : vector<16x384xf32>
    %172 = arith.mulf %171, %161 : vector<16x384xf32>
    %cst_69 = arith.constant 0.254829586 : f32
    %173 = vector.broadcast %cst_69 : f32 to vector<16x384xf32>
    %174 = arith.addf %172, %173 : vector<16x384xf32>
    %175 = arith.mulf %174, %161 : vector<16x384xf32>
    %cst_70 = arith.constant 0.000000e+00 : f32
    %176 = vector.broadcast %cst_70 : f32 to vector<16x384xf32>
    %177 = arith.subf %176, %156 : vector<16x384xf32>
    %178 = arith.mulf %177, %156 : vector<16x384xf32>
    %179 = math.exp %178 : vector<16x384xf32>
    %180 = arith.mulf %175, %179 : vector<16x384xf32>
    %cst_71 = arith.constant 1.000000e+00 : f32
    %181 = vector.broadcast %cst_71 : f32 to vector<16x384xf32>
    %182 = arith.subf %181, %180 : vector<16x384xf32>
    %183 = arith.mulf %155, %182 : vector<16x384xf32>
    %cst_72 = arith.constant 1.000000e+00 : f32
    %184 = vector.broadcast %cst_72 : f32 to vector<16x384xf32>
    %185 = arith.addf %183, %184 : vector<16x384xf32>
    %186 = arith.mulf %148, %185 : vector<16x384xf32>
    %c7_i32 = arith.constant 7 : i32
    %187 = vector.broadcast %c7_i32 : i32 to vector<1x384xi32>
    %188 = arith.cmpi sge, %0, %187 : vector<1x384xi32>
    %c351_i32 = arith.constant 351 : i32
    %189 = vector.broadcast %c351_i32 : i32 to vector<1x384xi32>
    %190 = arith.cmpi slt, %0, %189 : vector<1x384xi32>
    %191 = arith.andi %188, %190 : vector<1x384xi1>
    %192 = arith.extui %191 : vector<1x384xi1> to vector<1x384xi32>
    %193 = arith.sitofp %192 : vector<1x384xi32> to vector<1x384xf32>
    %194 = vector.broadcast %193 : vector<1x384xf32> to vector<16x384xf32>
    %195 = arith.mulf %186, %194 : vector<16x384xf32>
    %c0_73 = arith.constant 0 : index
    %c0_74 = arith.constant 0 : index
    %196 = vector.load %arg8[%c0_73, %c0_74] : memref<128x16xbf16, #tpu.memory_space<vmem>>, vector<128x16xbf16>
    %197 = arith.truncf %195 : vector<16x384xf32> to vector<16x384xbf16>
    %cst_75 = arith.constant dense<0.000000e+00> : vector<128x384xf32>
    %198 = tpu.matmul %196, %197, %cst_75 {dimension_numbers = #tpu.dot_dimension_numbers<[1], [0], [0], [1], [0, 0, 1, 1], [], []>} : vector<128x16xbf16>, vector<16x384xbf16>, vector<128x384xf32> -> vector<128x384xf32>
    %c0_76 = arith.constant 0 : index
    %c0_77 = arith.constant 0 : index
    %199 = vector.load %arg9[%c0_76, %c0_77] : memref<128x1xf32, #tpu.memory_space<vmem>>, vector<128x1xf32>
    %200 = vector.broadcast %199 : vector<128x1xf32> to vector<128x384xf32>
    %201 = arith.addf %198, %200 : vector<128x384xf32>
    %cst_78 = arith.constant 5.000000e-01 : f32
    %202 = vector.broadcast %cst_78 : f32 to vector<128x384xf32>
    %203 = arith.mulf %201, %202 : vector<128x384xf32>
    %cst_79 = arith.constant 0.707106769 : f32
    %204 = vector.broadcast %cst_79 : f32 to vector<128x384xf32>
    %205 = arith.mulf %201, %204 : vector<128x384xf32>
    %cst_80 = arith.constant 0.000000e+00 : f32
    %206 = vector.broadcast %cst_80 : f32 to vector<128x384xf32>
    %207 = arith.cmpf oge, %205, %206 : vector<128x384xf32>
    %cst_81 = arith.constant 1.000000e+00 : f32
    %cst_82 = arith.constant -1.000000e+00 : f32
    %208 = vector.broadcast %cst_81 : f32 to vector<128x384xf32>
    %209 = vector.broadcast %cst_82 : f32 to vector<128x384xf32>
    %210 = arith.select %207, %208, %209 : vector<128x384xi1>, vector<128x384xf32>
    %211 = math.absf %205 : vector<128x384xf32>
    %cst_83 = arith.constant 0.327591091 : f32
    %212 = vector.broadcast %cst_83 : f32 to vector<128x384xf32>
    %213 = arith.mulf %212, %211 : vector<128x384xf32>
    %cst_84 = arith.constant 1.000000e+00 : f32
    %214 = vector.broadcast %cst_84 : f32 to vector<128x384xf32>
    %215 = arith.addf %214, %213 : vector<128x384xf32>
    %216 = tpu.reciprocal %215 {approx = true} : vector<128x384xf32> -> vector<128x384xf32>
    %cst_85 = arith.constant 1.06140542 : f32
    %217 = vector.broadcast %cst_85 : f32 to vector<128x384xf32>
    %218 = arith.mulf %217, %216 : vector<128x384xf32>
    %cst_86 = arith.constant -1.45315206 : f32
    %219 = vector.broadcast %cst_86 : f32 to vector<128x384xf32>
    %220 = arith.addf %218, %219 : vector<128x384xf32>
    %221 = arith.mulf %220, %216 : vector<128x384xf32>
    %cst_87 = arith.constant 1.42141378 : f32
    %222 = vector.broadcast %cst_87 : f32 to vector<128x384xf32>
    %223 = arith.addf %221, %222 : vector<128x384xf32>
    %224 = arith.mulf %223, %216 : vector<128x384xf32>
    %cst_88 = arith.constant -0.284496725 : f32
    %225 = vector.broadcast %cst_88 : f32 to vector<128x384xf32>
    %226 = arith.addf %224, %225 : vector<128x384xf32>
    %227 = arith.mulf %226, %216 : vector<128x384xf32>
    %cst_89 = arith.constant 0.254829586 : f32
    %228 = vector.broadcast %cst_89 : f32 to vector<128x384xf32>
    %229 = arith.addf %227, %228 : vector<128x384xf32>
    %230 = arith.mulf %229, %216 : vector<128x384xf32>
    %cst_90 = arith.constant 0.000000e+00 : f32
    %231 = vector.broadcast %cst_90 : f32 to vector<128x384xf32>
    %232 = arith.subf %231, %211 : vector<128x384xf32>
    %233 = arith.mulf %232, %211 : vector<128x384xf32>
    %234 = math.exp %233 : vector<128x384xf32>
    %235 = arith.mulf %230, %234 : vector<128x384xf32>
    %cst_91 = arith.constant 1.000000e+00 : f32
    %236 = vector.broadcast %cst_91 : f32 to vector<128x384xf32>
    %237 = arith.subf %236, %235 : vector<128x384xf32>
    %238 = arith.mulf %210, %237 : vector<128x384xf32>
    %cst_92 = arith.constant 1.000000e+00 : f32
    %239 = vector.broadcast %cst_92 : f32 to vector<128x384xf32>
    %240 = arith.addf %238, %239 : vector<128x384xf32>
    %241 = arith.mulf %203, %240 : vector<128x384xf32>
    %c6_i32 = arith.constant 6 : i32
    %242 = vector.broadcast %c6_i32 : i32 to vector<1x384xi32>
    %243 = arith.cmpi sge, %0, %242 : vector<1x384xi32>
    %c352_i32 = arith.constant 352 : i32
    %244 = vector.broadcast %c352_i32 : i32 to vector<1x384xi32>
    %245 = arith.cmpi slt, %0, %244 : vector<1x384xi32>
    %246 = arith.andi %243, %245 : vector<1x384xi1>
    %247 = arith.extui %246 : vector<1x384xi1> to vector<1x384xi32>
    %248 = arith.sitofp %247 : vector<1x384xi32> to vector<1x384xf32>
    %249 = vector.broadcast %248 : vector<1x384xf32> to vector<128x384xf32>
    %250 = arith.mulf %241, %249 : vector<128x384xf32>
    %c0_93 = arith.constant 0 : index
    %c0_94 = arith.constant 0 : index
    %251 = vector.load %arg10[%c0_93, %c0_94] : memref<32x128xbf16, #tpu.memory_space<vmem>>, vector<32x128xbf16>
    %252 = arith.truncf %250 : vector<128x384xf32> to vector<128x384xbf16>
    %cst_95 = arith.constant dense<0.000000e+00> : vector<32x384xf32>
    %253 = tpu.matmul %251, %252, %cst_95 {dimension_numbers = #tpu.dot_dimension_numbers<[1], [0], [0], [1], [0, 0, 1, 1], [], []>} : vector<32x128xbf16>, vector<128x384xbf16>, vector<32x384xf32> -> vector<32x384xf32>
    %c0_96 = arith.constant 0 : index
    %c0_97 = arith.constant 0 : index
    %254 = vector.load %arg11[%c0_96, %c0_97] : memref<32x1xf32, #tpu.memory_space<vmem>>, vector<32x1xf32>
    %255 = vector.broadcast %254 : vector<32x1xf32> to vector<32x384xf32>
    %256 = arith.addf %253, %255 : vector<32x384xf32>
    %cst_98 = arith.constant 5.000000e-01 : f32
    %257 = vector.broadcast %cst_98 : f32 to vector<32x384xf32>
    %258 = arith.mulf %256, %257 : vector<32x384xf32>
    %cst_99 = arith.constant 0.707106769 : f32
    %259 = vector.broadcast %cst_99 : f32 to vector<32x384xf32>
    %260 = arith.mulf %256, %259 : vector<32x384xf32>
    %cst_100 = arith.constant 0.000000e+00 : f32
    %261 = vector.broadcast %cst_100 : f32 to vector<32x384xf32>
    %262 = arith.cmpf oge, %260, %261 : vector<32x384xf32>
    %cst_101 = arith.constant 1.000000e+00 : f32
    %cst_102 = arith.constant -1.000000e+00 : f32
    %263 = vector.broadcast %cst_101 : f32 to vector<32x384xf32>
    %264 = vector.broadcast %cst_102 : f32 to vector<32x384xf32>
    %265 = arith.select %262, %263, %264 : vector<32x384xi1>, vector<32x384xf32>
    %266 = math.absf %260 : vector<32x384xf32>
    %cst_103 = arith.constant 0.327591091 : f32
    %267 = vector.broadcast %cst_103 : f32 to vector<32x384xf32>
    %268 = arith.mulf %267, %266 : vector<32x384xf32>
    %cst_104 = arith.constant 1.000000e+00 : f32
    %269 = vector.broadcast %cst_104 : f32 to vector<32x384xf32>
    %270 = arith.addf %269, %268 : vector<32x384xf32>
    %271 = tpu.reciprocal %270 {approx = true} : vector<32x384xf32> -> vector<32x384xf32>
    %cst_105 = arith.constant 1.06140542 : f32
    %272 = vector.broadcast %cst_105 : f32 to vector<32x384xf32>
    %273 = arith.mulf %272, %271 : vector<32x384xf32>
    %cst_106 = arith.constant -1.45315206 : f32
    %274 = vector.broadcast %cst_106 : f32 to vector<32x384xf32>
    %275 = arith.addf %273, %274 : vector<32x384xf32>
    %276 = arith.mulf %275, %271 : vector<32x384xf32>
    %cst_107 = arith.constant 1.42141378 : f32
    %277 = vector.broadcast %cst_107 : f32 to vector<32x384xf32>
    %278 = arith.addf %276, %277 : vector<32x384xf32>
    %279 = arith.mulf %278, %271 : vector<32x384xf32>
    %cst_108 = arith.constant -0.284496725 : f32
    %280 = vector.broadcast %cst_108 : f32 to vector<32x384xf32>
    %281 = arith.addf %279, %280 : vector<32x384xf32>
    %282 = arith.mulf %281, %271 : vector<32x384xf32>
    %cst_109 = arith.constant 0.254829586 : f32
    %283 = vector.broadcast %cst_109 : f32 to vector<32x384xf32>
    %284 = arith.addf %282, %283 : vector<32x384xf32>
    %285 = arith.mulf %284, %271 : vector<32x384xf32>
    %cst_110 = arith.constant 0.000000e+00 : f32
    %286 = vector.broadcast %cst_110 : f32 to vector<32x384xf32>
    %287 = arith.subf %286, %266 : vector<32x384xf32>
    %288 = arith.mulf %287, %266 : vector<32x384xf32>
    %289 = math.exp %288 : vector<32x384xf32>
    %290 = arith.mulf %285, %289 : vector<32x384xf32>
    %cst_111 = arith.constant 1.000000e+00 : f32
    %291 = vector.broadcast %cst_111 : f32 to vector<32x384xf32>
    %292 = arith.subf %291, %290 : vector<32x384xf32>
    %293 = arith.mulf %265, %292 : vector<32x384xf32>
    %cst_112 = arith.constant 1.000000e+00 : f32
    %294 = vector.broadcast %cst_112 : f32 to vector<32x384xf32>
    %295 = arith.addf %293, %294 : vector<32x384xf32>
    %296 = arith.mulf %258, %295 : vector<32x384xf32>
    %c3_i32 = arith.constant 3 : i32
    %297 = vector.broadcast %c3_i32 : i32 to vector<1x384xi32>
    %298 = arith.cmpi sge, %0, %297 : vector<1x384xi32>
    %c355_i32 = arith.constant 355 : i32
    %299 = vector.broadcast %c355_i32 : i32 to vector<1x384xi32>
    %300 = arith.cmpi slt, %0, %299 : vector<1x384xi32>
    %301 = arith.andi %298, %300 : vector<1x384xi1>
    %302 = arith.extui %301 : vector<1x384xi1> to vector<1x384xi32>
    %303 = arith.sitofp %302 : vector<1x384xi32> to vector<1x384xf32>
    %304 = vector.broadcast %303 : vector<1x384xf32> to vector<32x384xf32>
    %305 = arith.mulf %296, %304 : vector<32x384xf32>
    %c0_113 = arith.constant 0 : index
    %c0_114 = arith.constant 0 : index
    %306 = vector.load %arg12[%c0_113, %c0_114] : memref<64x32xbf16, #tpu.memory_space<vmem>>, vector<64x32xbf16>
    %307 = arith.truncf %305 : vector<32x384xf32> to vector<32x384xbf16>
    %cst_115 = arith.constant dense<0.000000e+00> : vector<64x384xf32>
    %308 = tpu.matmul %306, %307, %cst_115 {dimension_numbers = #tpu.dot_dimension_numbers<[1], [0], [0], [1], [0, 0, 1, 1], [], []>} : vector<64x32xbf16>, vector<32x384xbf16>, vector<64x384xf32> -> vector<64x384xf32>
    %c0_116 = arith.constant 0 : index
    %c0_117 = arith.constant 0 : index
    %309 = vector.load %arg13[%c0_116, %c0_117] : memref<64x1xf32, #tpu.memory_space<vmem>>, vector<64x1xf32>
    %310 = vector.broadcast %309 : vector<64x1xf32> to vector<64x384xf32>
    %311 = arith.addf %308, %310 : vector<64x384xf32>
    %cst_118 = arith.constant 5.000000e-01 : f32
    %312 = vector.broadcast %cst_118 : f32 to vector<64x384xf32>
    %313 = arith.mulf %311, %312 : vector<64x384xf32>
    %cst_119 = arith.constant 0.707106769 : f32
    %314 = vector.broadcast %cst_119 : f32 to vector<64x384xf32>
    %315 = arith.mulf %311, %314 : vector<64x384xf32>
    %cst_120 = arith.constant 0.000000e+00 : f32
    %316 = vector.broadcast %cst_120 : f32 to vector<64x384xf32>
    %317 = arith.cmpf oge, %315, %316 : vector<64x384xf32>
    %cst_121 = arith.constant 1.000000e+00 : f32
    %cst_122 = arith.constant -1.000000e+00 : f32
    %318 = vector.broadcast %cst_121 : f32 to vector<64x384xf32>
    %319 = vector.broadcast %cst_122 : f32 to vector<64x384xf32>
    %320 = arith.select %317, %318, %319 : vector<64x384xi1>, vector<64x384xf32>
    %321 = math.absf %315 : vector<64x384xf32>
    %cst_123 = arith.constant 0.327591091 : f32
    %322 = vector.broadcast %cst_123 : f32 to vector<64x384xf32>
    %323 = arith.mulf %322, %321 : vector<64x384xf32>
    %cst_124 = arith.constant 1.000000e+00 : f32
    %324 = vector.broadcast %cst_124 : f32 to vector<64x384xf32>
    %325 = arith.addf %324, %323 : vector<64x384xf32>
    %326 = tpu.reciprocal %325 {approx = true} : vector<64x384xf32> -> vector<64x384xf32>
    %cst_125 = arith.constant 1.06140542 : f32
    %327 = vector.broadcast %cst_125 : f32 to vector<64x384xf32>
    %328 = arith.mulf %327, %326 : vector<64x384xf32>
    %cst_126 = arith.constant -1.45315206 : f32
    %329 = vector.broadcast %cst_126 : f32 to vector<64x384xf32>
    %330 = arith.addf %328, %329 : vector<64x384xf32>
    %331 = arith.mulf %330, %326 : vector<64x384xf32>
    %cst_127 = arith.constant 1.42141378 : f32
    %332 = vector.broadcast %cst_127 : f32 to vector<64x384xf32>
    %333 = arith.addf %331, %332 : vector<64x384xf32>
    %334 = arith.mulf %333, %326 : vector<64x384xf32>
    %cst_128 = arith.constant -0.284496725 : f32
    %335 = vector.broadcast %cst_128 : f32 to vector<64x384xf32>
    %336 = arith.addf %334, %335 : vector<64x384xf32>
    %337 = arith.mulf %336, %326 : vector<64x384xf32>
    %cst_129 = arith.constant 0.254829586 : f32
    %338 = vector.broadcast %cst_129 : f32 to vector<64x384xf32>
    %339 = arith.addf %337, %338 : vector<64x384xf32>
    %340 = arith.mulf %339, %326 : vector<64x384xf32>
    %cst_130 = arith.constant 0.000000e+00 : f32
    %341 = vector.broadcast %cst_130 : f32 to vector<64x384xf32>
    %342 = arith.subf %341, %321 : vector<64x384xf32>
    %343 = arith.mulf %342, %321 : vector<64x384xf32>
    %344 = math.exp %343 : vector<64x384xf32>
    %345 = arith.mulf %340, %344 : vector<64x384xf32>
    %cst_131 = arith.constant 1.000000e+00 : f32
    %346 = vector.broadcast %cst_131 : f32 to vector<64x384xf32>
    %347 = arith.subf %346, %345 : vector<64x384xf32>
    %348 = arith.mulf %320, %347 : vector<64x384xf32>
    %cst_132 = arith.constant 1.000000e+00 : f32
    %349 = vector.broadcast %cst_132 : f32 to vector<64x384xf32>
    %350 = arith.addf %348, %349 : vector<64x384xf32>
    %351 = arith.mulf %313, %350 : vector<64x384xf32>
    %c2_i32 = arith.constant 2 : i32
    %352 = vector.broadcast %c2_i32 : i32 to vector<1x384xi32>
    %353 = arith.cmpi sge, %0, %352 : vector<1x384xi32>
    %c356_i32 = arith.constant 356 : i32
    %354 = vector.broadcast %c356_i32 : i32 to vector<1x384xi32>
    %355 = arith.cmpi slt, %0, %354 : vector<1x384xi32>
    %356 = arith.andi %353, %355 : vector<1x384xi1>
    %357 = arith.extui %356 : vector<1x384xi1> to vector<1x384xi32>
    %358 = arith.sitofp %357 : vector<1x384xi32> to vector<1x384xf32>
    %359 = vector.broadcast %358 : vector<1x384xf32> to vector<64x384xf32>
    %360 = arith.mulf %351, %359 : vector<64x384xf32>
    %c0_133 = arith.constant 0 : index
    %c0_134 = arith.constant 0 : index
    %361 = vector.load %arg14[%c0_133, %c0_134] : memref<128x64xbf16, #tpu.memory_space<vmem>>, vector<128x64xbf16>
    %362 = arith.truncf %360 : vector<64x384xf32> to vector<64x384xbf16>
    %cst_135 = arith.constant dense<0.000000e+00> : vector<128x384xf32>
    %363 = tpu.matmul %361, %362, %cst_135 {dimension_numbers = #tpu.dot_dimension_numbers<[1], [0], [0], [1], [0, 0, 1, 1], [], []>} : vector<128x64xbf16>, vector<64x384xbf16>, vector<128x384xf32> -> vector<128x384xf32>
    %c0_136 = arith.constant 0 : index
    %c0_137 = arith.constant 0 : index
    %364 = vector.load %arg15[%c0_136, %c0_137] : memref<128x1xf32, #tpu.memory_space<vmem>>, vector<128x1xf32>
    %365 = vector.broadcast %364 : vector<128x1xf32> to vector<128x384xf32>
    %366 = arith.addf %363, %365 : vector<128x384xf32>
    %cst_138 = arith.constant 5.000000e-01 : f32
    %367 = vector.broadcast %cst_138 : f32 to vector<128x384xf32>
    %368 = arith.mulf %366, %367 : vector<128x384xf32>
    %cst_139 = arith.constant 0.707106769 : f32
    %369 = vector.broadcast %cst_139 : f32 to vector<128x384xf32>
    %370 = arith.mulf %366, %369 : vector<128x384xf32>
    %cst_140 = arith.constant 0.000000e+00 : f32
    %371 = vector.broadcast %cst_140 : f32 to vector<128x384xf32>
    %372 = arith.cmpf oge, %370, %371 : vector<128x384xf32>
    %cst_141 = arith.constant 1.000000e+00 : f32
    %cst_142 = arith.constant -1.000000e+00 : f32
    %373 = vector.broadcast %cst_141 : f32 to vector<128x384xf32>
    %374 = vector.broadcast %cst_142 : f32 to vector<128x384xf32>
    %375 = arith.select %372, %373, %374 : vector<128x384xi1>, vector<128x384xf32>
    %376 = math.absf %370 : vector<128x384xf32>
    %cst_143 = arith.constant 0.327591091 : f32
    %377 = vector.broadcast %cst_143 : f32 to vector<128x384xf32>
    %378 = arith.mulf %377, %376 : vector<128x384xf32>
    %cst_144 = arith.constant 1.000000e+00 : f32
    %379 = vector.broadcast %cst_144 : f32 to vector<128x384xf32>
    %380 = arith.addf %379, %378 : vector<128x384xf32>
    %381 = tpu.reciprocal %380 {approx = true} : vector<128x384xf32> -> vector<128x384xf32>
    %cst_145 = arith.constant 1.06140542 : f32
    %382 = vector.broadcast %cst_145 : f32 to vector<128x384xf32>
    %383 = arith.mulf %382, %381 : vector<128x384xf32>
    %cst_146 = arith.constant -1.45315206 : f32
    %384 = vector.broadcast %cst_146 : f32 to vector<128x384xf32>
    %385 = arith.addf %383, %384 : vector<128x384xf32>
    %386 = arith.mulf %385, %381 : vector<128x384xf32>
    %cst_147 = arith.constant 1.42141378 : f32
    %387 = vector.broadcast %cst_147 : f32 to vector<128x384xf32>
    %388 = arith.addf %386, %387 : vector<128x384xf32>
    %389 = arith.mulf %388, %381 : vector<128x384xf32>
    %cst_148 = arith.constant -0.284496725 : f32
    %390 = vector.broadcast %cst_148 : f32 to vector<128x384xf32>
    %391 = arith.addf %389, %390 : vector<128x384xf32>
    %392 = arith.mulf %391, %381 : vector<128x384xf32>
    %cst_149 = arith.constant 0.254829586 : f32
    %393 = vector.broadcast %cst_149 : f32 to vector<128x384xf32>
    %394 = arith.addf %392, %393 : vector<128x384xf32>
    %395 = arith.mulf %394, %381 : vector<128x384xf32>
    %cst_150 = arith.constant 0.000000e+00 : f32
    %396 = vector.broadcast %cst_150 : f32 to vector<128x384xf32>
    %397 = arith.subf %396, %376 : vector<128x384xf32>
    %398 = arith.mulf %397, %376 : vector<128x384xf32>
    %399 = math.exp %398 : vector<128x384xf32>
    %400 = arith.mulf %395, %399 : vector<128x384xf32>
    %cst_151 = arith.constant 1.000000e+00 : f32
    %401 = vector.broadcast %cst_151 : f32 to vector<128x384xf32>
    %402 = arith.subf %401, %400 : vector<128x384xf32>
    %403 = arith.mulf %375, %402 : vector<128x384xf32>
    %cst_152 = arith.constant 1.000000e+00 : f32
    %404 = vector.broadcast %cst_152 : f32 to vector<128x384xf32>
    %405 = arith.addf %403, %404 : vector<128x384xf32>
    %406 = arith.mulf %368, %405 : vector<128x384xf32>
    %c1_i32 = arith.constant 1 : i32
    %407 = vector.broadcast %c1_i32 : i32 to vector<1x384xi32>
    %408 = arith.cmpi sge, %0, %407 : vector<1x384xi32>
    %c357_i32 = arith.constant 357 : i32
    %409 = vector.broadcast %c357_i32 : i32 to vector<1x384xi32>
    %410 = arith.cmpi slt, %0, %409 : vector<1x384xi32>
    %411 = arith.andi %408, %410 : vector<1x384xi1>
    %412 = arith.extui %411 : vector<1x384xi1> to vector<1x384xi32>
    %413 = arith.sitofp %412 : vector<1x384xi32> to vector<1x384xf32>
    %414 = vector.broadcast %413 : vector<1x384xf32> to vector<128x384xf32>
    %415 = arith.mulf %406, %414 : vector<128x384xf32>
    %c0_153 = arith.constant 0 : index
    %c0_154 = arith.constant 0 : index
    %416 = vector.load %arg16[%c0_153, %c0_154] : memref<64x128xbf16, #tpu.memory_space<vmem>>, vector<64x128xbf16>
    %417 = arith.truncf %415 : vector<128x384xf32> to vector<128x384xbf16>
    %cst_155 = arith.constant dense<0.000000e+00> : vector<64x384xf32>
    %418 = tpu.matmul %416, %417, %cst_155 {dimension_numbers = #tpu.dot_dimension_numbers<[1], [0], [0], [1], [0, 0, 1, 1], [], []>} : vector<64x128xbf16>, vector<128x384xbf16>, vector<64x384xf32> -> vector<64x384xf32>
    %c0_156 = arith.constant 0 : index
    %c0_157 = arith.constant 0 : index
    %419 = vector.load %arg17[%c0_156, %c0_157] : memref<64x1xf32, #tpu.memory_space<vmem>>, vector<64x1xf32>
    %420 = vector.broadcast %419 : vector<64x1xf32> to vector<64x384xf32>
    %421 = arith.addf %418, %420 : vector<64x384xf32>
    %cst_158 = arith.constant 5.000000e-01 : f32
    %422 = vector.broadcast %cst_158 : f32 to vector<64x384xf32>
    %423 = arith.mulf %421, %422 : vector<64x384xf32>
    %cst_159 = arith.constant 0.707106769 : f32
    %424 = vector.broadcast %cst_159 : f32 to vector<64x384xf32>
    %425 = arith.mulf %421, %424 : vector<64x384xf32>
    %cst_160 = arith.constant 0.000000e+00 : f32
    %426 = vector.broadcast %cst_160 : f32 to vector<64x384xf32>
    %427 = arith.cmpf oge, %425, %426 : vector<64x384xf32>
    %cst_161 = arith.constant 1.000000e+00 : f32
    %cst_162 = arith.constant -1.000000e+00 : f32
    %428 = vector.broadcast %cst_161 : f32 to vector<64x384xf32>
    %429 = vector.broadcast %cst_162 : f32 to vector<64x384xf32>
    %430 = arith.select %427, %428, %429 : vector<64x384xi1>, vector<64x384xf32>
    %431 = math.absf %425 : vector<64x384xf32>
    %cst_163 = arith.constant 0.327591091 : f32
    %432 = vector.broadcast %cst_163 : f32 to vector<64x384xf32>
    %433 = arith.mulf %432, %431 : vector<64x384xf32>
    %cst_164 = arith.constant 1.000000e+00 : f32
    %434 = vector.broadcast %cst_164 : f32 to vector<64x384xf32>
    %435 = arith.addf %434, %433 : vector<64x384xf32>
    %436 = tpu.reciprocal %435 {approx = true} : vector<64x384xf32> -> vector<64x384xf32>
    %cst_165 = arith.constant 1.06140542 : f32
    %437 = vector.broadcast %cst_165 : f32 to vector<64x384xf32>
    %438 = arith.mulf %437, %436 : vector<64x384xf32>
    %cst_166 = arith.constant -1.45315206 : f32
    %439 = vector.broadcast %cst_166 : f32 to vector<64x384xf32>
    %440 = arith.addf %438, %439 : vector<64x384xf32>
    %441 = arith.mulf %440, %436 : vector<64x384xf32>
    %cst_167 = arith.constant 1.42141378 : f32
    %442 = vector.broadcast %cst_167 : f32 to vector<64x384xf32>
    %443 = arith.addf %441, %442 : vector<64x384xf32>
    %444 = arith.mulf %443, %436 : vector<64x384xf32>
    %cst_168 = arith.constant -0.284496725 : f32
    %445 = vector.broadcast %cst_168 : f32 to vector<64x384xf32>
    %446 = arith.addf %444, %445 : vector<64x384xf32>
    %447 = arith.mulf %446, %436 : vector<64x384xf32>
    %cst_169 = arith.constant 0.254829586 : f32
    %448 = vector.broadcast %cst_169 : f32 to vector<64x384xf32>
    %449 = arith.addf %447, %448 : vector<64x384xf32>
    %450 = arith.mulf %449, %436 : vector<64x384xf32>
    %cst_170 = arith.constant 0.000000e+00 : f32
    %451 = vector.broadcast %cst_170 : f32 to vector<64x384xf32>
    %452 = arith.subf %451, %431 : vector<64x384xf32>
    %453 = arith.mulf %452, %431 : vector<64x384xf32>
    %454 = math.exp %453 : vector<64x384xf32>
    %455 = arith.mulf %450, %454 : vector<64x384xf32>
    %cst_171 = arith.constant 1.000000e+00 : f32
    %456 = vector.broadcast %cst_171 : f32 to vector<64x384xf32>
    %457 = arith.subf %456, %455 : vector<64x384xf32>
    %458 = arith.mulf %430, %457 : vector<64x384xf32>
    %cst_172 = arith.constant 1.000000e+00 : f32
    %459 = vector.broadcast %cst_172 : f32 to vector<64x384xf32>
    %460 = arith.addf %458, %459 : vector<64x384xf32>
    %461 = arith.mulf %423, %460 : vector<64x384xf32>
    %c1_i32_173 = arith.constant 1 : i32
    %462 = vector.broadcast %c1_i32_173 : i32 to vector<1x384xi32>
    %463 = arith.cmpi sge, %0, %462 : vector<1x384xi32>
    %c357_i32_174 = arith.constant 357 : i32
    %464 = vector.broadcast %c357_i32_174 : i32 to vector<1x384xi32>
    %465 = arith.cmpi slt, %0, %464 : vector<1x384xi32>
    %466 = arith.andi %463, %465 : vector<1x384xi1>
    %467 = arith.extui %466 : vector<1x384xi1> to vector<1x384xi32>
    %468 = arith.sitofp %467 : vector<1x384xi32> to vector<1x384xf32>
    %469 = vector.broadcast %468 : vector<1x384xf32> to vector<64x384xf32>
    %470 = arith.mulf %461, %469 : vector<64x384xf32>
    %c0_175 = arith.constant 0 : index
    %c0_176 = arith.constant 0 : index
    %471 = vector.load %arg18[%c0_175, %c0_176] : memref<16x64xbf16, #tpu.memory_space<vmem>>, vector<16x64xbf16>
    %472 = arith.truncf %470 : vector<64x384xf32> to vector<64x384xbf16>
    %cst_177 = arith.constant dense<0.000000e+00> : vector<16x384xf32>
    %473 = tpu.matmul %471, %472, %cst_177 {dimension_numbers = #tpu.dot_dimension_numbers<[1], [0], [0], [1], [0, 0, 1, 1], [], []>} : vector<16x64xbf16>, vector<64x384xbf16>, vector<16x384xf32> -> vector<16x384xf32>
    %c0_178 = arith.constant 0 : index
    %c0_179 = arith.constant 0 : index
    %474 = vector.load %arg19[%c0_178, %c0_179] : memref<16x1xf32, #tpu.memory_space<vmem>>, vector<16x1xf32>
    %475 = vector.broadcast %474 : vector<16x1xf32> to vector<16x384xf32>
    %476 = arith.addf %473, %475 : vector<16x384xf32>
    %cst_180 = arith.constant 5.000000e-01 : f32
    %477 = vector.broadcast %cst_180 : f32 to vector<16x384xf32>
    %478 = arith.mulf %476, %477 : vector<16x384xf32>
    %cst_181 = arith.constant 0.707106769 : f32
    %479 = vector.broadcast %cst_181 : f32 to vector<16x384xf32>
    %480 = arith.mulf %476, %479 : vector<16x384xf32>
    %cst_182 = arith.constant 0.000000e+00 : f32
    %481 = vector.broadcast %cst_182 : f32 to vector<16x384xf32>
    %482 = arith.cmpf oge, %480, %481 : vector<16x384xf32>
    %cst_183 = arith.constant 1.000000e+00 : f32
    %cst_184 = arith.constant -1.000000e+00 : f32
    %483 = vector.broadcast %cst_183 : f32 to vector<16x384xf32>
    %484 = vector.broadcast %cst_184 : f32 to vector<16x384xf32>
    %485 = arith.select %482, %483, %484 : vector<16x384xi1>, vector<16x384xf32>
    %486 = math.absf %480 : vector<16x384xf32>
    %cst_185 = arith.constant 0.327591091 : f32
    %487 = vector.broadcast %cst_185 : f32 to vector<16x384xf32>
    %488 = arith.mulf %487, %486 : vector<16x384xf32>
    %cst_186 = arith.constant 1.000000e+00 : f32
    %489 = vector.broadcast %cst_186 : f32 to vector<16x384xf32>
    %490 = arith.addf %489, %488 : vector<16x384xf32>
    %491 = tpu.reciprocal %490 {approx = true} : vector<16x384xf32> -> vector<16x384xf32>
    %cst_187 = arith.constant 1.06140542 : f32
    %492 = vector.broadcast %cst_187 : f32 to vector<16x384xf32>
    %493 = arith.mulf %492, %491 : vector<16x384xf32>
    %cst_188 = arith.constant -1.45315206 : f32
    %494 = vector.broadcast %cst_188 : f32 to vector<16x384xf32>
    %495 = arith.addf %493, %494 : vector<16x384xf32>
    %496 = arith.mulf %495, %491 : vector<16x384xf32>
    %cst_189 = arith.constant 1.42141378 : f32
    %497 = vector.broadcast %cst_189 : f32 to vector<16x384xf32>
    %498 = arith.addf %496, %497 : vector<16x384xf32>
    %499 = arith.mulf %498, %491 : vector<16x384xf32>
    %cst_190 = arith.constant -0.284496725 : f32
    %500 = vector.broadcast %cst_190 : f32 to vector<16x384xf32>
    %501 = arith.addf %499, %500 : vector<16x384xf32>
    %502 = arith.mulf %501, %491 : vector<16x384xf32>
    %cst_191 = arith.constant 0.254829586 : f32
    %503 = vector.broadcast %cst_191 : f32 to vector<16x384xf32>
    %504 = arith.addf %502, %503 : vector<16x384xf32>
    %505 = arith.mulf %504, %491 : vector<16x384xf32>
    %cst_192 = arith.constant 0.000000e+00 : f32
    %506 = vector.broadcast %cst_192 : f32 to vector<16x384xf32>
    %507 = arith.subf %506, %486 : vector<16x384xf32>
    %508 = arith.mulf %507, %486 : vector<16x384xf32>
    %509 = math.exp %508 : vector<16x384xf32>
    %510 = arith.mulf %505, %509 : vector<16x384xf32>
    %cst_193 = arith.constant 1.000000e+00 : f32
    %511 = vector.broadcast %cst_193 : f32 to vector<16x384xf32>
    %512 = arith.subf %511, %510 : vector<16x384xf32>
    %513 = arith.mulf %485, %512 : vector<16x384xf32>
    %cst_194 = arith.constant 1.000000e+00 : f32
    %514 = vector.broadcast %cst_194 : f32 to vector<16x384xf32>
    %515 = arith.addf %513, %514 : vector<16x384xf32>
    %516 = arith.mulf %478, %515 : vector<16x384xf32>
    %c1_i32_195 = arith.constant 1 : i32
    %517 = vector.broadcast %c1_i32_195 : i32 to vector<1x384xi32>
    %518 = arith.cmpi sge, %0, %517 : vector<1x384xi32>
    %c357_i32_196 = arith.constant 357 : i32
    %519 = vector.broadcast %c357_i32_196 : i32 to vector<1x384xi32>
    %520 = arith.cmpi slt, %0, %519 : vector<1x384xi32>
    %521 = arith.andi %518, %520 : vector<1x384xi1>
    %522 = arith.extui %521 : vector<1x384xi1> to vector<1x384xi32>
    %523 = arith.sitofp %522 : vector<1x384xi32> to vector<1x384xf32>
    %524 = vector.broadcast %523 : vector<1x384xf32> to vector<16x384xf32>
    %525 = arith.mulf %516, %524 : vector<16x384xf32>
    %c0_197 = arith.constant 0 : index
    %c0_198 = arith.constant 0 : index
    %526 = vector.load %arg20[%c0_197, %c0_198] : memref<16x16xbf16, #tpu.memory_space<vmem>>, vector<16x16xbf16>
    %527 = arith.truncf %525 : vector<16x384xf32> to vector<16x384xbf16>
    %cst_199 = arith.constant dense<0.000000e+00> : vector<16x384xf32>
    %528 = tpu.matmul %526, %527, %cst_199 {dimension_numbers = #tpu.dot_dimension_numbers<[1], [0], [0], [1], [0, 0, 1, 1], [], []>} : vector<16x16xbf16>, vector<16x384xbf16>, vector<16x384xf32> -> vector<16x384xf32>
    %c0_200 = arith.constant 0 : index
    %c0_201 = arith.constant 0 : index
    %529 = vector.load %arg21[%c0_200, %c0_201] : memref<16x1xf32, #tpu.memory_space<vmem>>, vector<16x1xf32>
    %530 = vector.broadcast %529 : vector<16x1xf32> to vector<16x384xf32>
    %531 = arith.addf %528, %530 : vector<16x384xf32>
    %c0_202 = arith.constant 0 : index
    %c0_203 = arith.constant 0 : index
    %532 = vector.load %arg22[%c0_202, %c0_203] : memref<16x384xf32, #tpu.memory_space<vmem>>, vector<16x384xf32>
    tpu.vector_store %arg22[%c0_202, %c0_203], %531 {strides = array<i32>} : memref<16x384xf32, #tpu.memory_space<vmem>>, vector<16x384xf32>,
    return
  }
}

</mosaic_0001>

<bundles_post_ra>
// kernel: model_forward.1
= control target key start
LH: loop header
LB: loop body
LE: loop exit
PB: predicated region body
PF: predicated region fallthrough
CT: control target
= control target key end

     0   :  { %v15362_v3 = vmov 0   ;;  %vm138_vm0 = vcmask 261120   ;;  %vm405_vm1 = vcmask 1039360   ;;  %vm740_vm2 = vcmask 1031168   ;;  %s15330_s0 = inlined_call_operand.vmem [shape: f32[32,512], index: 0, kind: input, shape index: {}]   ;;  %s15331_s1 = inlined_call_operand.vmem [shape: f32[32,512], index: 1, kind: input, shape index: {}]   ;;  %s15332_s2 = inlined_call_operand.vmem [shape: bf16[192,32], index: 2, kind: input, shape index: {}]   ;;  %s15333_s3 = inlined_call_operand.vmem [shape: f32[32,1], index: 3, kind: input, shape index: {}]   ;;  %s15334_s5 = inlined_call_operand.vmem [shape: f32[16,1], index: 5, kind: input, shape index: {}]   ;;  %s15335_s7 = inlined_call_operand.vmem [shape: f32[16,1], index: 7, kind: input, shape index: {}]   ;;  %s15336_s9 = inlined_call_operand.vmem [shape: f32[128,1], index: 9, kind: input, shape index: {}]   ;;  %s15337_s11 = inlined_call_operand.vmem [shape: f32[32,1], index: 11, kind: input, shape index: {}]   ;;  %s15338_s13 = inlined_call_operand.vmem [shape: f32[64,1], index: 13, kind: input, shape index: {}]   ;;  %s15339_s15 = inlined_call_operand.vmem [shape: f32[128,1], index: 15, kind: input, shape index: {}]   ;;  %s15340_s17 = inlined_call_operand.vmem [shape: f32[64,1], index: 17, kind: input, shape index: {}]   ;;  %s15341_s19 = inlined_call_operand.vmem [shape: f32[16,1], index: 19, kind: input, shape index: {}]   ;;  %s15342_s21 = inlined_call_operand.vmem [shape: f32[16,1], index: 21, kind: input, shape index: {}]   ;;  %s15343_s4 = inlined_call_operand.vmem [shape: bf16[16,32], index: 4, kind: input, shape index: {}]   ;;  %s15344_s6 = inlined_call_operand.vmem [shape: bf16[16,16], index: 6, kind: input, shape index: {}]   ;;  %s15345_s8 = inlined_call_operand.vmem [shape: bf16[128,16], index: 8, kind: input, shape index: {}]   ;;  %s15346_s10 = inlined_call_operand.vmem [shape: bf16[32,128], index: 10, kind: input, shape index: {}]   ;;  %s15347_s12 = inlined_call_operand.vmem [shape: bf16[64,32], index: 12, kind: input, shape index: {}]   ;;  %s15348_s14 = inlined_call_operand.vmem [shape: bf16[128,64], index: 14, kind: input, shape index: {}]   ;;  %s15349_s16 = inlined_call_operand.vmem [shape: bf16[64,128], index: 16, kind: input, shape index: {}]   ;;  %s15350_s18 = inlined_call_operand.vmem [shape: bf16[16,64], index: 18, kind: input, shape index: {}]   ;;  %s15351_s20 = inlined_call_operand.vmem [shape: bf16[16,16], index: 20, kind: input, shape index: {}]   ;;  %s15352_s22 = inlined_call_operand.vmem [shape: f32[16,384], index: 22, kind: output, shape index: {}]  }
   0x1   :  { %15415 = sst [smem:[#allocation36_spill]] %s15330_s0  ;;  %177 = vmatprep.mubr.bf16.mxu0 %v15362_v3  ;;  %8543 = vset.pattern.permute.xlu1 %v15362_v3  ;;  %s9333_s0 = smov 127   ;;  %vm9337_vm12 = vmmov 0  }
   0x2   :  { %15416 = sst [smem:[#allocation37_spill]] %s15331_s1  ;;  %s15422_s29 = sld [smem:[#allocation36_spill]]  ;;  %8542 = vset.pattern.permute.xlu0 %v15362_v3 }
   0x3   :  { %15417 = sst [smem:[#allocation38_spill]] %s15332_s2  ;;  %s15423_s27 = sld [smem:[#allocation37_spill]] }
   0x4   :  { %15418 = sst [smem:[#allocation39_spill]] %s15333_s3  ;;  %s15424_s3 = sld [smem:[#allocation38_spill]] }
   0x5   :  { %15419 = sst [smem:[#allocation40_spill]] %s15334_s5  ;;  %s9334_s1 = smov 126  }
   0x6   :  { %15420 = sst [smem:[#allocation41_spill]] %s15335_s7  ;;  %s15425_s7 = sld [smem:[#allocation39_spill]] }
   0x7   :  { %15421 = sst [smem:[#allocation42_spill]] %s15336_s9  ;;  %s15426_s30 = sld [smem:[#allocation40_spill]] }
   0x8   :  { %v77_v0 = vld [vmem:[%s15422_s29 + $0x8] sm:$0xff]  ;;  %v76_v2 = vld [vmem:[%s15422_s29] sm:$0xff]  ;;  %v78_v6 = vld [vmem:[%s15422_s29 + $0x10] sm:$0xff]  ;;  %s15427_s24 = sld [smem:[#allocation41_spill]]  ;;  %s15428_s26 = sld [smem:[#allocation42_spill]] }
   0x9   :  { %v81_v1 = vld [vmem:[%s15422_s29 + $0x28] sm:$0xff]  ;;  %v80_v5 = vld [vmem:[%s15422_s29 + $0x20] sm:$0xff]  ;;  %v82_v7 = vld [vmem:[%s15422_s29 + $0x30] sm:$0xff] }
   0xa   :  { %v9464_v4 = vpack.c.bf16 %v81_v1, %v77_v0  ;;  %v9476_v8 = vpack.c.bf16 %v80_v5, %v76_v2  ;;  %v85_v9 = vld [vmem:[%s15422_s29 + $0x48] sm:$0xff]  ;;  %v86_v11 = vld [vmem:[%s15422_s29 + $0x50] sm:$0xff]  ;;  %v9489_v12 = vpack.c.bf16 %v82_v7, %v78_v6  ;;  %v84_v14 = vld [vmem:[%s15422_s29 + $0x40] sm:$0xff] }
   0xb   :  { %v89_v10 = vld [vmem:[%s15422_s29 + $0x68] sm:$0xff]  ;;  %v90_v13 = vld [vmem:[%s15422_s29 + $0x70] sm:$0xff]  ;;  %v88_v15 = vld [vmem:[%s15422_s29 + $0x60] sm:$0xff] }
   0xc   :  { %391 = vrot.lane.b32.xlu0 %v9464_v4, %s9333_s0  ;;  %389 = vrot.lane.b32.xlu1 %v9476_v8, %s9333_s0  ;;  %v9502_v16 = vpack.c.bf16 %v89_v10, %v85_v9  ;;  %v93_v17 = vld [vmem:[%s15423_s27 + $0x8] sm:$0xff]  ;;  %v94_v19 = vld [vmem:[%s15423_s27 + $0x10] sm:$0xff]  ;;  %v113_v28 = vpack.c.bf16 %v90_v13, %v86_v11  ;;  %v111_v34 = vpack.c.bf16 %v88_v15, %v84_v14 }
   0xd   :  { %v97_v18 = vld [vmem:[%s15423_s27 + $0x28] sm:$0xff]  ;;  %v98_v21 = vld [vmem:[%s15423_s27 + $0x30] sm:$0xff]  ;;  %v92_v22 = vld [vmem:[%s15423_s27] sm:$0xff] }
   0xe   :  { %v9513_v20 = vpack.c.bf16 %v97_v18, %v93_v17  ;;  %v96_v23 = vld [vmem:[%s15423_s27 + $0x20] sm:$0xff]  ;;  %v101_v25 = vld [vmem:[%s15423_s27 + $0x48] sm:$0xff]  ;;  %v102_v27 = vld [vmem:[%s15423_s27 + $0x50] sm:$0xff]  ;;  %v120_v29 = vpack.c.bf16 %v98_v21, %v94_v19 }
   0xf   :  { %v9524_v24 = vpack.c.bf16 %v96_v23, %v92_v22  ;;  %v105_v26 = vld [vmem:[%s15423_s27 + $0x68] sm:$0xff]  ;;  %v106_v31 = vld [vmem:[%s15423_s27 + $0x70] sm:$0xff]  ;;  %v100_v32 = vld [vmem:[%s15423_s27 + $0x40] sm:$0xff] }
  0x10   :  { %393 = vrot.lane.b32.xlu0 %v9489_v12, %s9333_s0  ;;  %v122_v30 = vpack.c.bf16 %v105_v26, %v101_v25  ;;  %v104_v33 = vld [vmem:[%s15423_s27 + $0x60] sm:$0xff]  ;;  %145 = vmatprep.subr.bf16.mxu0 %v9513_v20  ;;  %v123_v35 = vpack.c.bf16 %v106_v31, %v102_v27  ;;  %v8544_v37 = vld [vmem:[%s15424_s3 + $0x10] sm:$0xff]   ;;  %v8545_v38 = vld [vmem:[%s15424_s3 + $0x18] sm:$0xff]  }
  0x11   :  { %399 = vrot.lane.b32.xlu1 %v9502_v16, %s9333_s0  ;;  %146 = vmatpush1.bf16.msra.mxu0 %v9524_v24  ;;  %v121_v36 = vpack.c.bf16 %v104_v33, %v100_v32  ;;  %v8546_v39 = vld [vmem:[%s15424_s3] sm:$0xff]   ;;  %v8547_v40 = vld [vmem:[%s15424_s3 + $0x8] sm:$0xff]   ;;  %v79_v42 = vld [vmem:[%s15422_s29 + $0x18] sm:$0xff] }
  0x12   :  { %147 = vmatprep.subr.bf16.mxu0 %v122_v30  ;;  %8298 = vmatprep.subr.bf16.mxu1 %v120_v29  ;;  %v9591_v41 = vld [vmem:[%s15424_s3 + $0x20] sm:$0xff]   ;;  %v83_v43 = vld [vmem:[%s15422_s29 + $0x38] sm:$0xff]  ;;  %v1036_v55 = vld [vmem:[%s15425_s7 + $0x8] sm:$0xff] }
  0x13   :  { %8299 = vmatpush3.bf16.msra.mxu1 %v120_v29  ;;  %8302 = vmatprep.mubr.msk.bf16.mxu1 %vm138_vm0, %v8544_v37  ;;  %v87_v44 = vld [vmem:[%s15422_s29 + $0x58] sm:$0xff]  ;;  %v365_v46 = vpack.c.bf16 %v83_v43, %v79_v42  ;;  %v1035_v54 = vld [vmem:[%s15425_s7] sm:$0xff]  ;;  %v1037_v57 = vld [vmem:[%s15425_s7 + $0x10] sm:$0xff] }
  0x14   :  { %401 = vrot.lane.b32.xlu0 %v113_v28, %s9333_s0  ;;  %8300 = vmatprep.subr.bf16.mxu1 %v123_v35  ;;  %v91_v45 = vld [vmem:[%s15422_s29 + $0x78] sm:$0xff]  ;;  %v1419_v58 = vld [vmem:[%s15426_s30 + $0x8] sm:$0xff]  ;;  %v1418_v59 = vld [vmem:[%s15426_s30] sm:$0xff] }
  0x15   :  { %397 = vrot.lane.b32.xlu1 %v111_v34, %s9333_s0  ;;  %148 = vmatpush1.bf16.msra.mxu0 %v121_v36  ;;  %v366_v47 = vpack.c.bf16 %v91_v45, %v87_v44  ;;  %v95_v48 = vld [vmem:[%s15423_s27 + $0x18] sm:$0xff]  ;;  %v1705_v60 = vld [vmem:[%s15427_s24 + $0x8] sm:$0xff]  ;;  %v1704_v61 = vld [vmem:[%s15427_s24] sm:$0xff] }
  0x16   :  { %263 = vmatprep.subr.bf16.mxu0 %v9464_v4  ;;  %v99_v49 = vld [vmem:[%s15423_s27 + $0x38] sm:$0xff]  ;;  %v2006_v62 = vld [vmem:[%s15428_s26 + $0x8] sm:$0xff]  ;;  %v2005_v63 = vld [vmem:[%s15428_s26] sm:$0xff] }
  0x17   :  { %8301 = vmatpush3.bf16.msra.mxu1 %v123_v35  ;;  %v103_v50 = vld [vmem:[%s15423_s27 + $0x58] sm:$0xff]  ;;  %v538_v52 = vpack.c.bf16 %v99_v49, %v95_v48  ;;  %v2007_v1 = vld [vmem:[%s15428_s26 + $0x10] sm:$0xff]  ;;  %v2010_v2 = vld [vmem:[%s15428_s26 + $0x28] sm:$0xff] }
  0x18   :  { %564 = vrot.lane.b32.xlu0 %v9513_v20, %s9333_s0  ;;  %8087 = vmatmul.mubr.msk.bf16.vlgmr.msra.gmra.mrb[0].mxu0 %vm138_vm0, %v8544_v37  ;;  %v107_v51 = vld [vmem:[%s15423_s27 + $0x78] sm:$0xff]  ;;  %v2011_v6 = vld [vmem:[%s15428_s26 + $0x30] sm:$0xff]  ;;  %v2014_v7 = vld [vmem:[%s15428_s26 + $0x48] sm:$0xff] }
  0x19   :  { %566 = vrot.lane.b32.xlu1 %v120_v29, %s9333_s0  ;;  %187 = vmatprep.mubr.bf16.mxu0 %v15362_v3  ;;  %v539_v53 = vpack.c.bf16 %v107_v51, %v103_v50  ;;  %v1038_v56 = vld [vmem:[%s15425_s7 + $0x18] sm:$0xff]  ;;  %v2015_v10 = vld [vmem:[%s15428_s26 + $0x50] sm:$0xff]  ;;  %v2018_v11 = vld [vmem:[%s15428_s26 + $0x68] sm:$0xff] }
  0x1a   :  { %264 = vmatpush1.bf16.msra.mxu0 %v9476_v8  ;;  %8303 = vmatmul.mubr.msk.bf16.vlgmr.msra.gmra.mrb[0].mxu1 %vm138_vm0, %v8545_v38  ;;  %v2008_v0 = vld [vmem:[%s15428_s26 + $0x18] sm:$0xff]  ;;  %v2019_v14 = vld [vmem:[%s15428_s26 + $0x70] sm:$0xff]  ;;  %v3715_v15 = vld [vmem:[%s15337_s11 + $0x8] sm:$0xff] }
  0x1b   :  { %265 = vmatprep.subr.bf16.mxu0 %v9502_v16  ;;  %8306 = vmatprep.subr.bf16.mxu1 %v9489_v12  ;;  %v2012_v5 = vld [vmem:[%s15428_s26 + $0x38] sm:$0xff]  ;;  %v3716_v19 = vld [vmem:[%s15337_s11 + $0x10] sm:$0xff]  ;;  %v4206_v21 = vld [vmem:[%s15338_s13 + $0x8] sm:$0xff] }
  0x1c   :  { %562 = vrot.lane.b32.xlu0 %v9524_v24, %s9333_s0  ;;  %8307 = vmatpush3.bf16.msra.mxu1 %v9489_v12  ;;  %v2016_v9 = vld [vmem:[%s15428_s26 + $0x58] sm:$0xff]  ;;  %v4205_v23 = vld [vmem:[%s15338_s13] sm:$0xff]  ;;  %v4210_v33 = vld [vmem:[%s15338_s13 + $0x28] sm:$0xff] }
  0x1d   :  { %572 = vrot.lane.b32.xlu1 %v122_v30, %s9333_s0  ;;  %8308 = vmatprep.subr.bf16.mxu1 %v113_v28  ;;  %v2020_v13 = vld [vmem:[%s15428_s26 + $0x78] sm:$0xff]  ;;  %v9775_v43 = vld [vmem:[%s15424_s3 + $0x28] sm:$0xff]   ;;  %v5114_v48 = vld [vmem:[%s15339_s15] sm:$0xff] }
  0x1e   :  { %266 = vmatpush1.bf16.msra.mxu0 %v111_v34  ;;  %8310 = vmatprep.mubr.msk.bf16.mxu1 %vm138_vm0, %v8546_v39  ;;  %v3717_v17 = vld [vmem:[%s15337_s11 + $0x18] sm:$0xff] }
  0x1f   :  { %v4208_v27 = vld [vmem:[%s15338_s13 + $0x18] sm:$0xff] }
  0x20   :  { %574 = vrot.lane.b32.xlu0 %v123_v35, %s9333_s0  ;;  %8088 = vmatmul.mubr.msk.bf16.gmra.mrb[4].mxu0 %vm138_vm0, %v8545_v38  ;;  %v4212_v38 = vld [vmem:[%s15338_s13 + $0x38] sm:$0xff] }
  0x21   :  { %570 = vrot.lane.b32.xlu1 %v121_v36, %s9333_s0  ;;  %295 = vmatprep.mubr.bf16.mxu0 %v15362_v3 }
  0x22   :  { %8309 = vmatpush3.bf16.msra.mxu1 %v113_v28 }
  0x24   :  { %726 = vrot.lane.b32.xlu0 %v9464_v4, %s9334_s1  ;;  %v2009_v4 = vld [vmem:[%s15428_s26 + $0x20] sm:$0xff] }
  0x25   :  { %728 = vrot.lane.b32.xlu1 %v9489_v12, %s9334_s1  ;;  %v2017_v12 = vld [vmem:[%s15428_s26 + $0x60] sm:$0xff] }
  0x26   :  { %8311 = vmatmul.mubr.msk.bf16.vlgmr.msra.gmra.mrb[0].mxu1 %vm138_vm0, %v8547_v40 }
  0x27   :  { %8318 = vmatprep.mubr.msk.bf16.mxu1 %vm138_vm0, %v9591_v41 }
  0x28   :  { %724 = vrot.lane.b32.xlu0 %v9476_v8, %s9334_s1  ;;  %8093 = vmatmul.mubr.msk.bf16.vlgmr.msra.gmra.mrb[0].mxu0 %vm138_vm0, %v8546_v39  ;;  %v2013_v8 = vld [vmem:[%s15428_s26 + $0x40] sm:$0xff] }
  0x29   :  { %734 = vrot.lane.b32.xlu1 %v9502_v16, %s9334_s1  ;;  %305 = vmatprep.mubr.bf16.mxu0 %v15362_v3  ;;  %v3714_v16 = vld [vmem:[%s15337_s11] sm:$0xff] }
  0x2c   :  { %736 = vrot.lane.b32.xlu0 %v113_v28, %s9334_s1 }
  0x2d   :  { %732 = vrot.lane.b32.xlu1 %v111_v34, %s9334_s1 }
  0x30   :  { %889 = vrot.lane.b32.xlu0 %v9513_v20, %s9334_s1  ;;  %8094 = vmatmul.mubr.msk.bf16.gmra.mrb[4].mxu0 %vm138_vm0, %v8547_v40 }
  0x31   :  { %891 = vrot.lane.b32.xlu1 %v120_v29, %s9334_s1  ;;  %456 = vmatprep.mubr.bf16.mxu0 %v15362_v3  ;;  %v4207_v29 = vld [vmem:[%s15338_s13 + $0x10] sm:$0xff] }
  0x34   :  { %887 = vrot.lane.b32.xlu0 %v9524_v24, %s9334_s1 }
  0x35   :  { %897 = vrot.lane.b32.xlu1 %v122_v30, %s9334_s1 }
  0x38   :  { %899 = vrot.lane.b32.xlu0 %v123_v35, %s9334_s1 }
  0x39   :  { %895 = vrot.lane.b32.xlu1 %v121_v36, %s9334_s1  ;;  %v4209_v36 = vld [vmem:[%s15338_s13 + $0x20] sm:$0xff] }
  0x3c   :  { %395 = vrot.lane.b32.xlu0 %v365_v46, %s9333_s0 }
  0x3d   :  { %403 = vrot.lane.b32.xlu1 %v366_v47, %s9333_s0 }
  0x40   :  { %568 = vrot.lane.b32.xlu0 %v538_v52, %s9333_s0 }
  0x41   :  { %576 = vrot.lane.b32.xlu1 %v539_v53, %s9333_s0 }
  0x44   :  { %730 = vrot.lane.b32.xlu0 %v365_v46, %s9334_s1 }
  0x45   :  { %738 = vrot.lane.b32.xlu1 %v366_v47, %s9334_s1  ;;  %v5115_v47 = vld [vmem:[%s15339_s15 + $0x8] sm:$0xff] }
  0x48   :  { %893 = vrot.lane.b32.xlu0 %v538_v52, %s9334_s1  ;;  %v5117_v52 = vld [vmem:[%s15339_s15 + $0x18] sm:$0xff] }
  0x49   :  { %901 = vrot.lane.b32.xlu1 %v539_v53, %s9334_s1  ;;  %v5116_v53 = vld [vmem:[%s15339_s15 + $0x10] sm:$0xff] }
  0x4c   :  { %1041 = vperm.xlu0 %8542, %v1035_v54   ;;  %v9802_v54 = vld [vmem:[%s15424_s3 + $0x30] sm:$0xff]  }
  0x4d   :  { %1046 = vperm.xlu1 %8543, %v1036_v55  }
  0x50   :  { %1056 = vperm.xlu0 %8542, %v1038_v56  }
  0x51   :  { %1051 = vperm.xlu1 %8543, %v1037_v57  }
  0x54   :  { %1427 = vperm.xlu0 %8542, %v1419_v58  }
  0x55   :  { %1422 = vperm.xlu1 %8543, %v1418_v59   ;;  %v5119_v59 = vld [vmem:[%s15339_s15 + $0x28] sm:$0xff] }
  0x58   :  { %1713 = vperm.xlu0 %8542, %v1705_v60   ;;  %v5118_v60 = vld [vmem:[%s15339_s15 + $0x20] sm:$0xff] }
  0x59   :  { %1708 = vperm.xlu1 %8543, %v1704_v61  }
  0x5c   :  { %2028 = vperm.xlu0 %8542, %v2006_v62  }
  0x5d   :  { %2023 = vperm.xlu1 %8543, %v2005_v63  }
  0x60   :  { %2038 = vperm.xlu0 %8542, %v2008_v0   ;;  %v5121_v0 = vld [vmem:[%s15339_s15 + $0x38] sm:$0xff] }
  0x61   :  { %2033 = vperm.xlu1 %8543, %v2007_v1   ;;  %v5120_v1 = vld [vmem:[%s15339_s15 + $0x30] sm:$0xff] }
  0x64   :  { %2048 = vperm.xlu0 %8542, %v2010_v2  }
  0x65   :  { %2043 = vperm.xlu1 %8543, %v2009_v4   ;;  %v9830_v4 = vld [vmem:[%s15424_s3 + $0x38] sm:$0xff]  }
  0x68   :  { %2058 = vperm.xlu0 %8542, %v2012_v5  }
  0x69   :  { %2053 = vperm.xlu1 %8543, %v2011_v6  }
  0x6c   :  { %2068 = vperm.xlu0 %8542, %v2014_v7   ;;  %v5123_v7 = vld [vmem:[%s15339_s15 + $0x48] sm:$0xff] }
  0x6d   :  { %2063 = vperm.xlu1 %8543, %v2013_v8   ;;  %v5122_v8 = vld [vmem:[%s15339_s15 + $0x40] sm:$0xff] }
  0x70   :  { %2078 = vperm.xlu0 %8542, %v2016_v9  }
  0x71   :  { %2073 = vperm.xlu1 %8543, %v2015_v10  }
  0x74   :  { %2088 = vperm.xlu0 %8542, %v2018_v11  }
  0x75   :  { %2083 = vperm.xlu1 %8543, %v2017_v12   ;;  %v5125_v12 = vld [vmem:[%s15339_s15 + $0x58] sm:$0xff] }
  0x78   :  { %2098 = vperm.xlu0 %8542, %v2020_v13   ;;  %v5124_v13 = vld [vmem:[%s15339_s15 + $0x50] sm:$0xff] }
  0x79   :  { %2093 = vperm.xlu1 %8543, %v2019_v14   ;;  %v9854_v14 = vld [vmem:[%s15424_s3 + $0x40] sm:$0xff]  }
  0x7c   :  { %3725 = vperm.xlu0 %8542, %v3715_v15  }
  0x7d   :  { %3720 = vperm.xlu1 %8543, %v3714_v16  }
  0x7e   :  { %v392_v18 = vpop.permute.xlu0 %391  ;;  %v390_v20 = vpop.permute.xlu1 %389 }
  0x7f   :  { %v406_v26 = vsel %vm405_vm1, %v390_v20, %v392_v18  ;;  %v5126_v20 = vld [vmem:[%s15339_s15 + $0x60] sm:$0xff] }
  0x80   :  { %3735 = vperm.xlu0 %8542, %v3717_v17  }
  0x81   :  { %3730 = vperm.xlu1 %8543, %v3716_v19   ;;  %v5127_v19 = vld [vmem:[%s15339_s15 + $0x68] sm:$0xff] }
  0x82   :  { %v9733_v22 = vpop.permute.xlu0 %393 }
  0x83   :  { %v400_v24 = vpop.permute.xlu1 %399  ;;  %v407_v25 = vsel %vm405_vm1, %v392_v18, %v9733_v22 }
  0x84   :  { %424 = vmatprep.subr.bf16.mxu0 %v407_v25  ;;  %4220 = vperm.xlu0 %8542, %v4206_v21  }
  0x85   :  { %425 = vmatpush1.bf16.msra.mxu0 %v406_v26  ;;  %4215 = vperm.xlu1 %8543, %v4205_v23   ;;  %v5129_v26 = vld [vmem:[%s15339_s15 + $0x78] sm:$0xff] }
  0x86   :  { %v9744_v28 = vpop.permute.xlu0 %401 }
  0x87   :  { %v398_v30 = vpop.permute.xlu1 %397  ;;  %v410_v31 = vsel %vm405_vm1, %v400_v24, %v9744_v28 }
  0x88   :  { %v409_v32 = vsel %vm405_vm1, %v398_v30, %v400_v24  ;;  %426 = vmatprep.subr.bf16.mxu0 %v410_v31  ;;  %4230 = vperm.xlu0 %8542, %v4208_v27   ;;  %v9879_v27 = vld [vmem:[%s15424_s3 + $0x48] sm:$0xff]  }
  0x89   :  { %427 = vmatpush1.bf16.msra.mxu0 %v409_v32  ;;  %4225 = vperm.xlu1 %8543, %v4207_v29   ;;  %v5128_v29 = vld [vmem:[%s15339_s15 + $0x70] sm:$0xff]  ;;  %v6829_v31 = vld [vmem:[%s15340_s17 + $0x8] sm:$0xff]  ;;  %v6828_v32 = vld [vmem:[%s15340_s17] sm:$0xff] }
  0x8a   :  { %v565_v34 = vpop.permute.xlu0 %564 }
  0x8b   :  { %v9755_v35 = vpop.permute.xlu1 %566 }
  0x8c   :  { %8099 = vmatmul.mubr.msk.bf16.vlgmr.msra.gmra.mrb[0].mxu0 %vm138_vm0, %v9591_v41  ;;  %v579_v37 = vsel %vm405_vm1, %v565_v34, %v9755_v35  ;;  %4240 = vperm.xlu0 %8542, %v4210_v33   ;;  %v4211_v41 = vld [vmem:[%s15338_s13 + $0x30] sm:$0xff] }
  0x8d   :  { %596 = vmatprep.subr.bf16.mxu0 %v579_v37  ;;  %466 = vmatprep.mubr.bf16.mxu0 %v15362_v3 }
  0x8e   :  { %v563_v39 = vpop.permute.xlu0 %562  ;;  %4235 = vperm.xlu1 %8543, %v4209_v36   ;;  %v8554_v36 = vld [vmem:[%s15424_s3 + $0x50] sm:$0xff]  }
  0x8f   :  { %v578_v40 = vsel %vm405_vm1, %v563_v39, %v565_v34  ;;  %v573_v42 = vpop.permute.xlu1 %572  ;;  %v6831_v34 = vld [vmem:[%s15340_s17 + $0x18] sm:$0xff]  ;;  %v6833_v39 = vld [vmem:[%s15340_s17 + $0x28] sm:$0xff] }
  0x90   :  { %597 = vmatpush1.bf16.msra.mxu0 %v578_v40  ;;  %4250 = vperm.xlu0 %8542, %v4212_v38   ;;  %v6832_v40 = vld [vmem:[%s15340_s17 + $0x20] sm:$0xff] }
  0x92   :  { %v9777_v44 = vpop.permute.xlu0 %574  ;;  %4245 = vperm.xlu1 %8543, %v4211_v41   ;;  %v6835_v41 = vld [vmem:[%s15340_s17 + $0x38] sm:$0xff] }
  0x93   :  { %v571_v45 = vpop.permute.xlu1 %570  ;;  %v582_v46 = vsel %vm405_vm1, %v573_v42, %v9777_v44 }
  0x94   :  { %v581_v49 = vsel %vm405_vm1, %v571_v45, %v573_v42  ;;  %8100 = vmatmul.mubr.msk.bf16.gmra.mrb[4].mxu0 %vm138_vm0, %v9775_v43  ;;  %598 = vmatprep.subr.bf16.mxu0 %v582_v46  ;;  %v7701_v46 = vld [vmem:[%s15341_s19 + $0x8] sm:$0xff] }
  0x95   :  { %599 = vmatpush1.bf16.msra.mxu0 %v581_v49  ;;  %628 = vmatprep.mubr.bf16.mxu0 %v15362_v3 }
  0x96   :  { %v727_v50 = vpop.permute.xlu0 %726  ;;  %5137 = vperm.xlu0 %8542, %v5115_v47   ;;  %5132 = vperm.xlu1 %8543, %v5114_v48   ;;  %v7700_v47 = vld [vmem:[%s15341_s19] sm:$0xff] }
  0x97   :  { %v9791_v51 = vpop.permute.xlu1 %728 }
  0x98   :  { %v742_v55 = vsel %vm740_vm2, %v727_v50, %v9791_v51 }
  0x99   :  { %759 = vmatprep.subr.bf16.mxu0 %v742_v55 }
  0x9a   :  { %v725_v56 = vpop.permute.xlu0 %724  ;;  %5147 = vperm.xlu0 %8542, %v5117_v52   ;;  %5142 = vperm.xlu1 %8543, %v5116_v53  }
  0x9b   :  { %v741_v57 = vsel %vm740_vm2, %v725_v56, %v727_v50  ;;  %v735_v58 = vpop.permute.xlu1 %734  ;;  %v7972_v50 = vld [vmem:[%s15342_s21 + $0x8] sm:$0xff] }
  0x9c   :  { %8105 = vmatmul.mubr.msk.bf16.vlgmr.msra.gmra.mrb[0].mxu0 %vm138_vm0, %v9802_v54 }
  0x9d   :  { %760 = vmatpush1.bf16.msra.mxu0 %v741_v57  ;;  %638 = vmatprep.mubr.bf16.mxu0 %v15362_v3 }
  0x9e   :  { %v9816_v61 = vpop.permute.xlu0 %736  ;;  %5157 = vperm.xlu0 %8542, %v5119_v59   ;;  %5152 = vperm.xlu1 %8543, %v5118_v60  }
  0x9f   :  { %v733_v62 = vpop.permute.xlu1 %732  ;;  %v745_v63 = vsel %vm740_vm2, %v735_v58, %v9816_v61 }
  0xa0   :  { %v744_v2 = vsel %vm740_vm2, %v733_v62, %v735_v58  ;;  %761 = vmatprep.subr.bf16.mxu0 %v745_v63 }
  0xa1   :  { %762 = vmatpush1.bf16.msra.mxu0 %v744_v2  ;;  %v72_v2 = vlaneseq }
  0xa2   :  { %v890_v5 = vpop.permute.xlu0 %889  ;;  %5167 = vperm.xlu0 %8542, %v5121_v0   ;;  %5162 = vperm.xlu1 %8543, %v5120_v1  }
  0xa3   :  { %v9832_v6 = vpop.permute.xlu1 %891 }
  0xa4   :  { %8106 = vmatmul.mubr.msk.bf16.gmra.mrb[4].mxu0 %vm138_vm0, %v9830_v4  ;;  %v904_v9 = vsel %vm740_vm2, %v890_v5, %v9832_v6 }
  0xa5   :  { %791 = vmatprep.mubr.bf16.mxu0 %v15362_v3  ;;  %921 = vmatprep.subr.bf16.mxu0 %v904_v9 }
  0xa6   :  { %v888_v10 = vpop.permute.xlu0 %887  ;;  %5177 = vperm.xlu0 %8542, %v5123_v7   ;;  %5172 = vperm.xlu1 %8543, %v5122_v8  }
  0xa7   :  { %v898_v11 = vpop.permute.xlu1 %897  ;;  %v903_v15 = vsel %vm740_vm2, %v888_v10, %v890_v5 }
  0xaa   :  { %v9857_v16 = vpop.permute.xlu0 %899  ;;  %5187 = vperm.xlu0 %8542, %v5125_v12   ;;  %5182 = vperm.xlu1 %8543, %v5124_v13  }
  0xab   :  { %v896_v17 = vpop.permute.xlu1 %895  ;;  %v907_v18 = vsel %vm740_vm2, %v898_v11, %v9857_v16 }
  0xac   :  { %8111 = vmatmul.mubr.msk.bf16.vlgmr.msra.gmra.mrb[0].mxu0 %vm138_vm0, %v9854_v14  ;;  %v906_v21 = vsel %vm740_vm2, %v896_v17, %v898_v11  ;;  %v9973_v11 = vand.u32 127, %v72_v2 }
  0xad   :  { %922 = vmatpush1.bf16.msra.mxu0 %v903_v15  ;;  %801 = vmatprep.mubr.bf16.mxu0 %v15362_v3 }
  0xae   :  { %v396_v23 = vpop.permute.xlu0 %395  ;;  %923 = vmatprep.subr.bf16.mxu0 %v907_v18  ;;  %5197 = vperm.xlu0 %8542, %v5127_v19   ;;  %15429 = vst [vmem:[#allocation2_spill] sm:$0xff] %v9973_v11  ;;  %vm1383_vm3 = vcmp.ge.s32.totalorder %v9973_v11, 23 }
  0xaf   :  { %v404_v24 = vpop.permute.xlu1 %403  ;;  %v408_v25 = vsel %vm405_vm1, %v9733_v22, %v396_v23  ;;  %5192 = vperm.xlu1 %8543, %v5126_v20  }
  0xb0   :  { %8314 = vmatprep.subr.bf16.mxu1 %v408_v25  ;;  %v411_v30 = vsel %vm405_vm1, %v9744_v28, %v404_v24 }
  0xb1   :  { %8315 = vmatpush3.bf16.msra.mxu1 %v408_v25  ;;  %924 = vmatpush1.bf16.msra.mxu0 %v906_v21 }
  0xb2   :  { %v569_v22 = vpop.permute.xlu0 %568  ;;  %8316 = vmatprep.subr.bf16.mxu1 %v411_v30  ;;  %5207 = vperm.xlu0 %8542, %v5129_v26  }
  0xb3   :  { %5202 = vperm.xlu1 %8543, %v5128_v29   ;;  %v580_v28 = vsel %vm405_vm1, %v9755_v35, %v569_v22  ;;  %v577_v33 = vpop.permute.xlu1 %576  ;;  %v6830_v35 = vld [vmem:[%s15340_s17 + $0x10] sm:$0xff] }
  0xb4   :  { %8112 = vmatmul.mubr.msk.bf16.gmra.mrb[4].mxu0 %vm138_vm0, %v9879_v27  ;;  %v583_v37 = vsel %vm405_vm1, %v9777_v44, %v577_v33  ;;  %v6834_v44 = vld [vmem:[%s15340_s17 + $0x30] sm:$0xff] }
  0xb5   :  { %8317 = vmatpush3.bf16.msra.mxu1 %v411_v30  ;;  %953 = vmatprep.mubr.bf16.mxu0 %v15362_v3 }
  0xb6   :  { %8322 = vmatprep.subr.bf16.mxu1 %v580_v28  ;;  %6843 = vperm.xlu0 %8542, %v6829_v31   ;;  %v731_v38 = vpop.permute.xlu0 %730  ;;  %v15360_v31 = vmov 0.0  }
  0xb7   :  { %6838 = vperm.xlu1 %8543, %v6828_v32   ;;  %v743_v42 = vsel %vm740_vm2, %v9791_v51, %v731_v38  ;;  %v739_v45 = vpop.permute.xlu1 %738  ;;  %v7971_v51 = vld [vmem:[%s15342_s21] sm:$0xff]  ;;  %v9993_v32 = vsel %vm1383_vm3, 1.0, %v15360_v31 }
  0xb8   :  { %8319 = vmatmul.mubr.msk.bf16.vlgmr.msra.gmra.mrb[0].mxu1 %vm138_vm0, %v9775_v43  ;;  %v8555_v43 = vld [vmem:[%s15424_s3 + $0x58] sm:$0xff]   ;;  %v746_v48 = vsel %vm740_vm2, %v9816_v61, %v739_v45 }
  0xb9   :  { %8323 = vmatpush3.bf16.msra.mxu1 %v580_v28  ;;  %8326 = vmatprep.mubr.msk.bf16.mxu1 %vm138_vm0, %v9802_v54 }
  0xba   :  { %8324 = vmatprep.subr.bf16.mxu1 %v583_v37  ;;  %6853 = vperm.xlu0 %8542, %v6831_v34   ;;  %v894_v49 = vpop.permute.xlu0 %893 }
  0xbb   :  { %6848 = vperm.xlu1 %8543, %v6830_v35   ;;  %v905_v52 = vsel %vm740_vm2, %v9832_v6, %v894_v49  ;;  %v902_v53 = vpop.permute.xlu1 %901 }
  0xbc   :  { %8117 = vmatmul.mubr.msk.bf16.vlgmr.msra.gmra.mrb[0].mxu0 %vm138_vm0, %v8554_v36  ;;  %v908_v54 = vsel %vm740_vm2, %v9857_v16, %v902_v53 }
  0xbd   :  { %8325 = vmatpush3.bf16.msra.mxu1 %v583_v37  ;;  %963 = vmatprep.mubr.bf16.mxu0 %v15362_v3 }
  0xbe   :  { %8330 = vmatprep.subr.bf16.mxu1 %v743_v42  ;;  %6863 = vperm.xlu0 %8542, %v6833_v39  }
  0xbf   :  { %6858 = vperm.xlu1 %8543, %v6832_v40   ;;  %v15364_v40 = vmov -1.0  }
  0xc2   :  { %6873 = vperm.xlu0 %8542, %v6835_v41  }
  0xc3   :  { %6868 = vperm.xlu1 %8543, %v6834_v44  }
  0xc4   :  { %8327 = vmatmul.mubr.msk.bf16.vlgmr.msra.gmra.mrb[0].mxu1 %vm138_vm0, %v9830_v4  ;;  %8118 = vmatmul.mubr.msk.bf16.gmra.mrb[4].mxu0 %vm138_vm0, %v8555_v43 }
  0xc5   :  { %8331 = vmatpush3.bf16.msra.mxu1 %v743_v42  ;;  %8334 = vmatprep.mubr.msk.bf16.mxu1 %vm138_vm0, %v9854_v14 }
  0xc6   :  { %8332 = vmatprep.subr.bf16.mxu1 %v746_v48  ;;  %7709 = vperm.xlu0 %8542, %v7701_v46  }
  0xc7   :  { %7704 = vperm.xlu1 %8543, %v7700_v47  }
  0xc9   :  { %8333 = vmatpush3.bf16.msra.mxu1 %v746_v48 }
  0xca   :  { %8338 = vmatprep.subr.bf16.mxu1 %v905_v52  ;;  %7980 = vperm.xlu0 %8542, %v7972_v50  }
  0xcb   :  { %7975 = vperm.xlu1 %8543, %v7971_v51   ;;  %v9959_v55 = vpop.permute.xlu0 %1041 }
  0xcc   :  { %v9962_v59 = vpop.permute.xlu1 %1046 }
  0xcf   :  { %v9981_v26 = vpop.permute.xlu0 %1056 }
  0xd0   :  { %8335 = vmatmul.mubr.msk.bf16.vlgmr.msra.gmra.mrb[0].mxu1 %vm138_vm0, %v9879_v27  ;;  %v9978_v23 = vpop.permute.xlu1 %1051 }
  0xd1   :  { %8339 = vmatpush3.bf16.msra.mxu1 %v905_v52  ;;  %8342 = vmatprep.mubr.msk.bf16.mxu1 %vm138_vm0, %v8554_v36 }
  0xd2   :  { %8340 = vmatprep.subr.bf16.mxu1 %v908_v54 }
  0xd5   :  { %8341 = vmatpush3.bf16.msra.mxu1 %v908_v54 }
  0xdc   :  { %8343 = vmatmul.mubr.msk.bf16.vlgmr.msra.gmra.mrb[0].mxu1 %vm138_vm0, %v8555_v43 }
  0xdd   :  { %1470 = vmatprep.mubr.bf16.mxu1 %v15362_v3 }
 0x18f   :  { %v955_v56 = vpop.f32.mrb[0].mxu0 }
 0x190   :  { %v1059_v57 = vadd.f32 %v9959_v55, %v955_v56  ;;  %v957_v58 = vpop.f32.mrb[1].mxu0 }
 0x191   :  { %v1060_v60 = vadd.f32 %v9959_v55, %v957_v58  ;;  %v959_v61 = vpop.f32.mrb[2].mxu0 }
 0x192   :  { %v1083_v62 = vmul.f32 0.70710677, %v1059_v57  ;;  %v1062_v63 = vadd.f32 %v9962_v59, %v959_v61  ;;  %v961_v0 = vpop.f32.mrb[3].mxu0  ;;  %v10001_v35 = vmul.f32 0.5, %v1059_v57 }
 0x193   :  { %v9966_v1 = vmul.f32 0.70710677, %v1060_v60  ;;  %v1063_v6 = vadd.f32 %v9962_v59, %v961_v0  ;;  %v10012_v41 = vmul.f32 0.5, %v1060_v60 }
 0x194   :  { %v1119_v4 = vand.u32 2147483647, %v1083_v62  ;;  %v9968_v5 = vmul.f32 0.70710677, %v1062_v63  ;;  %vm1095_vm4 = vcmp.ge.f32.partialorder %v1083_v62, 0.0  ;;  %v10014_v43 = vmul.f32 0.5, %v1062_v63 }
 0x195   :  { %v1120_v7 = vand.u32 2147483647, %v9966_v1  ;;  %v9975_v13 = vmul.f32 0.70710677, %v1063_v6  ;;  %v10010_v42 = vsel %vm1095_vm4, 1.0, %v15364_v40  ;;  %vm1096_vm5 = vcmp.ge.f32.partialorder %v9966_v1, 0.0 }
 0x196   :  { %v1131_v8 = vmul.f32 0.3275911, %v1119_v4  ;;  %v1122_v10 = vand.u32 2147483647, %v9968_v5  ;;  %v1275_v24 = vsub.f32 0.0, %v1119_v4  ;;  %vm1098_vm6 = vcmp.ge.f32.partialorder %v9968_v5, 0.0 }
 0x197   :  { %v1132_v9 = vmul.f32 0.3275911, %v1120_v7  ;;  %v965_v14 = vpop.f32.mrb[4].mxu0  ;;  %v1123_v18 = vand.u32 2147483647, %v9975_v13  ;;  %v1276_v34 = vsub.f32 0.0, %v1120_v7 }
 0x198   :  { %v1143_v12 = vadd.f32 1.0, %v1131_v8  ;;  %v1134_v16 = vmul.f32 0.3275911, %v1122_v10  ;;  %v967_v17 = vpop.f32.mrb[5].mxu0  ;;  %v9984_v27 = vadd.f32 %v9978_v23, %v965_v14  ;;  %v1287_v33 = vmul.f32 %v1275_v24, %v1119_v4 }
 0x199   :  { %v1144_v15 = vadd.f32 1.0, %v1132_v9  ;;  %v969_v19 = vpop.f32.mrb[6].mxu0  ;;  %v1135_v25 = vmul.f32 0.3275911, %v1123_v18  ;;  %v9987_v29 = vadd.f32 %v9978_v23, %v967_v17  ;;  %v1278_v37 = vsub.f32 0.0, %v1122_v10 }
 0x19a   :  { %8586 = vrcp.f32 %v1143_v12  ;;  %v1146_v20 = vadd.f32 1.0, %v1134_v16  ;;  %v971_v21 = vpop.f32.mrb[7].mxu0  ;;  %v9990_v22 = vadd.f32 %v9981_v26, %v969_v19  ;;  %v9996_v28 = vmul.f32 0.70710677, %v9984_v27 }
 0x19b   :  { %8588 = vrcp.f32 %v1144_v15  ;;  %v1147_v30 = vadd.f32 1.0, %v1135_v25  ;;  %v9999_v36 = vmul.f32 0.70710677, %v9987_v29  ;;  %v10021_v45 = vmul.f32 0.5, %v1063_v6 }
 0x19c   :  { %8590 = vrcp.f32 %v1146_v20  ;;  %v10004_v38 = vand.u32 2147483647, %v9996_v28  ;;  %v10007_v39 = vmul.f32 0.70710677, %v9990_v22  ;;  %v1299_v48 = vmul.f32 1.442695, %v1287_v33 }
 0x19d   :  { %8592 = vrcp.f32 %v1147_v30  ;;  %v10017_v44 = vand.u32 2147483647, %v9999_v36  ;;  %v1288_v49 = vmul.f32 %v1276_v34, %v1120_v7  ;;  %v1290_v54 = vmul.f32 %v1278_v37, %v1122_v10 }
 0x19e   :  { %v1137_v46 = vmul.f32 0.3275911, %v10004_v38  ;;  %v10028_v51 = vand.u32 2147483647, %v10007_v39  ;;  %v1279_v56 = vsub.f32 0.0, %v1123_v18  ;;  %v10036_v62 = vadd.f32 %v9981_v26, %v971_v21 }
 0x19f   :  { %v1138_v50 = vmul.f32 0.3275911, %v10017_v44  ;;  %v10041_v0 = vsel %vm1096_vm5, 1.0, %v15364_v40  ;;  %v10046_v2 = vsel %vm1098_vm6, 1.0, %v15364_v40  ;;  %v1301_v7 = vmul.f32 1.442695, %v1288_v49 }
 0x1a0   :  { %v1149_v57 = vadd.f32 1.0, %v1137_v46  ;;  %v1140_v61 = vmul.f32 0.3275911, %v10028_v51  ;;  %vm1099_vm7 = vcmp.ge.f32.partialorder %v9975_v13, 0.0  ;;  %v1291_v1 = vmul.f32 %v1279_v56, %v1123_v18 }
 0x1a1   :  { %v1150_v60 = vadd.f32 1.0, %v1138_v50  ;;  %v1305_v14 = vmul.f32 1.442695, %v1290_v54  ;;  %v10057_v15 = vmul.f32 0.70710677, %v10036_v62  ;;  %v10061_v21 = vsel %vm1099_vm7, 1.0, %v15364_v40 }
 0x1a2   :  { %8594 = vrcp.f32 %v1149_v57  ;;  %v1152_v8 = vadd.f32 1.0, %v1140_v61  ;;  %v1281_v13 = vsub.f32 0.0, %v10004_v38  ;;  %v1307_v30 = vmul.f32 1.442695, %v1291_v1 }
 0x1a3   :  { %8596 = vrcp.f32 %v1150_v60  ;;  %v1282_v34 = vsub.f32 0.0, %v10017_v44  ;;  %v10069_v37 = vand.u32 2147483647, %v10057_v15  ;;  %v10073_v50 = vmul.f32 0.5, %v9984_v27 }
 0x1a4   :  { %v10024_v47 = vpop.eup %8586  ;;  %8598 = vpow2.f32 %v1299_v48  ;;  %v1293_v56 = vmul.f32 %v1281_v13, %v10004_v38  ;;  %v1284_v57 = vsub.f32 0.0, %v10028_v51  ;;  %vm1101_vm8 = vcmp.ge.f32.partialorder %v9996_v28, 0.0 }
 0x1a5   :  { %v10030_v52 = vpop.eup %8588  ;;  %v1167_v53 = vmul.f32 1.0614054, %v10024_v47  ;;  %8600 = vrcp.f32 %v1152_v8  ;;  %vm1102_vm9 = vcmp.ge.f32.partialorder %v9999_v36, 0.0  ;;  %vm1104_vm10 = vcmp.ge.f32.partialorder %v10007_v39, 0.0 }
 0x1a6   :  { %v1168_v58 = vmul.f32 1.0614054, %v10030_v52  ;;  %v10048_v4 = vpop.eup %8590  ;;  %8602 = vpow2.f32 %v1301_v7  ;;  %vm1105_vm11 = vcmp.ge.f32.partialorder %v10057_v15, 0.0  ;;  %v1081_v15 = vmul.f32 0.5, %v10036_v62  ;;  %v10202_v62 = vld [vmem:[%s15343_s4] sm:$0xff]  }
 0x1a7   :  { %v1179_v63 = vadd.f32 -1.4531521, %v1167_v53  ;;  %v1170_v10 = vmul.f32 1.0614054, %v10048_v4  ;;  %v10053_v12 = vpop.eup %8592  ;;  %8604 = vpow2.f32 %v1305_v14  ;;  %vm1678_vm7 = vcmp.ge.s32.totalorder %v9973_v11, 8 }
 0x1a8   :  { %v1180_v6 = vadd.f32 -1.4531521, %v1168_v58  ;;  %v1171_v19 = vmul.f32 1.0614054, %v10053_v12  ;;  %v1141_v58 = vmul.f32 0.3275911, %v10069_v37  ;;  %8606 = vpow2.f32 %v1307_v30 }
 0x1a9   :  { %v1191_v9 = vmul.f32 %v10024_v47, %v1179_v63  ;;  %v1182_v17 = vadd.f32 -1.4531521, %v1170_v10  ;;  %v1294_v10 = vmul.f32 %v1282_v34, %v10017_v44 }
 0x1aa   :  { %v1192_v5 = vmul.f32 %v10030_v52, %v1180_v6  ;;  %v1183_v25 = vadd.f32 -1.4531521, %v1171_v19  ;;  %v1153_v1 = vadd.f32 1.0, %v1141_v58 }
 0x1ab   :  { %v1203_v16 = vadd.f32 1.4214138, %v1191_v9  ;;  %v1194_v24 = vmul.f32 %v10048_v4, %v1182_v17 }
 0x1ac   :  { %v1204_v20 = vadd.f32 1.4214138, %v1192_v5  ;;  %v1195_v49 = vmul.f32 %v10053_v12, %v1183_v25  ;;  %v10080_v61 = vpop.eup %8594  ;;  %8608 = vrcp.f32 %v1153_v1 }
 0x1ad   :  { %v1215_v18 = vmul.f32 %v10024_v47, %v1203_v16  ;;  %v1206_v48 = vadd.f32 1.4214138, %v1194_v24  ;;  %v10086_v8 = vpop.eup %8596  ;;  %v1173_v9 = vmul.f32 1.0614054, %v10080_v61  ;;  %v1296_v24 = vmul.f32 %v1284_v57, %v10028_v51 }
 0x1ae   :  { %v1216_v33 = vmul.f32 %v10030_v52, %v1204_v20  ;;  %v1207_v7 = vadd.f32 1.4214138, %v1195_v49  ;;  %v1174_v19 = vmul.f32 1.0614054, %v10086_v8  ;;  %v8599_v20 = vpop.eup %8598  ;;  %v1313_v49 = vmul.f32 1.442695, %v1294_v10 }
 0x1af   :  { %v1227_v46 = vadd.f32 -0.28449672, %v1215_v18  ;;  %v8344_v53 = vpop.f32.mrb[0].mxu1  ;;  %v1218_v6 = vmul.f32 %v10048_v4, %v1206_v48  ;;  %v1185_v13 = vadd.f32 -1.4531521, %v1173_v9  ;;  %v10096_v25 = vpop.eup %8600  ;;  %v1285_v10 = vsub.f32 0.0, %v10069_v37 }
 0x1b0   :  { %v1228_v54 = vadd.f32 -0.28449672, %v1216_v33  ;;  %v10078_v60 = vpop.f32.mrb[1].mxu1  ;;  %v1219_v17 = vmul.f32 %v10053_v12, %v1207_v7  ;;  %v1311_v18 = vmul.f32 1.442695, %v1293_v56  ;;  %v8603_v34 = vpop.eup %8602 }
 0x1b1   :  { %v1239_v63 = vmul.f32 %v10024_v47, %v1227_v46  ;;  %v10084_v27 = vpop.f32.mrb[2].mxu1  ;;  %v1230_v16 = vadd.f32 -0.28449672, %v1218_v6  ;;  %v1186_v33 = vadd.f32 -1.4531521, %v1174_v19  ;;  %v1197_v48 = vmul.f32 %v10080_v61, %v1185_v13 }
 0x1b2   :  { %v1240_v38 = vmul.f32 %v10030_v52, %v1228_v54  ;;  %v10091_v5 = vpop.f32.mrb[3].mxu1  ;;  %v1231_v44 = vadd.f32 -0.28449672, %v1219_v17  ;;  %v1176_v54 = vmul.f32 1.0614054, %v10096_v25  ;;  %8610 = vpow2.f32 %v1311_v18 }
 0x1b3   :  { %v1251_v14 = vadd.f32 0.2548296, %v1239_v63  ;;  %v1242_v30 = vmul.f32 %v10048_v4, %v1230_v16  ;;  %v1198_v57 = vmul.f32 %v10086_v8, %v1186_v33  ;;  %v8605_v63 = vpop.eup %8604  ;;  %v1209_v6 = vadd.f32 1.4214138, %v1197_v48 }
 0x1b4   :  { %v1252_v46 = vadd.f32 0.2548296, %v1240_v38  ;;  %v1243_v51 = vmul.f32 %v10053_v12, %v1231_v44  ;;  %v1188_v7 = vadd.f32 -1.4531521, %v1176_v54  ;;  %v1317_v9 = vmul.f32 1.442695, %v1296_v24  ;;  %v8607_v13 = vpop.eup %8606 }
 0x1b5   :  { %v1263_v56 = vmul.f32 %v10024_v47, %v1251_v14  ;;  %v1254_v58 = vadd.f32 0.2548296, %v1242_v30  ;;  %v1210_v16 = vadd.f32 1.4214138, %v1198_v57  ;;  %v1221_v47 = vmul.f32 %v10080_v61, %v1209_v6 }
 0x1b6   :  { %v1255_v38 = vadd.f32 0.2548296, %v1243_v51  ;;  %v1264_v17 = vmul.f32 %v10030_v52, %v1252_v46  ;;  %v1200_v14 = vmul.f32 %v10096_v25, %v1188_v7  ;;  %v10111_v19 = vadd.f32 %v8344_v53, %v9978_v23  ;;  %v10119_v53 = vpop.eup %8608 }
 0x1b7   :  { %v1266_v1 = vmul.f32 %v10048_v4, %v1254_v58  ;;  %v1323_v30 = vmul.f32 %v8599_v20, %v1263_v56  ;;  %v1222_v4 = vmul.f32 %v10086_v8, %v1210_v16  ;;  %v1113_v44 = vsel %vm1101_vm8, 1.0, %v15364_v40 }
 0x1b8   :  { %v1267_v24 = vmul.f32 %v10053_v12, %v1255_v38  ;;  %v1233_v33 = vadd.f32 -0.28449672, %v1221_v47  ;;  %v1212_v52 = vadd.f32 1.4214138, %v1200_v14  ;;  %8612 = vpow2.f32 %v1317_v9 }
 0x1b9   :  { %v1326_v18 = vmul.f32 %v8605_v63, %v1266_v1  ;;  %v1234_v54 = vadd.f32 -0.28449672, %v1222_v4  ;;  %v1297_v23 = vmul.f32 %v1285_v10, %v10069_v37  ;;  %8614 = vpow2.f32 %v1313_v49 }
 0x1ba   :  { %v1327_v48 = vmul.f32 %v8607_v13, %v1267_v24  ;;  %v1245_v20 = vmul.f32 %v10080_v61, %v1233_v33  ;;  %v1224_v12 = vmul.f32 %v10096_v25, %v1212_v52  ;;  %v10124_v56 = vmul.f32 0.70710677, %v10111_v19 }
 0x1bb   :  { %v1338_v46 = vsub.f32 1.0, %v1326_v18  ;;  %v1335_v28 = vsub.f32 1.0, %v1323_v30  ;;  %v1324_v58 = vmul.f32 %v8603_v34, %v1264_v17  ;;  %v1246_v57 = vmul.f32 %v10086_v8, %v1234_v54 }
 0x1bc   :  { %v1257_v63 = vadd.f32 0.2548296, %v1245_v20  ;;  %v1236_v6 = vadd.f32 -0.28449672, %v1224_v12  ;;  %v1177_v37 = vmul.f32 1.0614054, %v10119_v53  ;;  %v8611_v1 = vpop.eup %8610  ;;  %v10138_v14 = vadd.f32 %v9959_v55, %v10078_v60 }
 0x1bd   :  { %v1350_v51 = vmul.f32 %v1338_v46, %v10046_v2  ;;  %v1339_v7 = vsub.f32 1.0, %v1327_v48  ;;  %v1258_v9 = vadd.f32 0.2548296, %v1246_v57  ;;  %v1319_v49 = vmul.f32 1.442695, %v1297_v23 }
 0x1be   :  { %v1269_v38 = vmul.f32 %v10080_v61, %v1257_v63  ;;  %v1248_v16 = vmul.f32 %v10096_v25, %v1236_v6  ;;  %v1189_v10 = vadd.f32 -1.4531521, %v1177_v37  ;;  %v10133_v34 = vand.u32 2147483647, %v10124_v56 }
 0x1bf   :  { %v1347_v2 = vmul.f32 %v1335_v28, %v10010_v42  ;;  %v1336_v17 = vsub.f32 1.0, %v1324_v58  ;;  %v1362_v47 = vadd.f32 1.0, %v1350_v51  ;;  %v1351_v24 = vmul.f32 %v1339_v7, %v10061_v21 }
 0x1c0   :  { %v1329_v13 = vmul.f32 %v8611_v1, %v1269_v38  ;;  %v1260_v30 = vadd.f32 0.2548296, %v1248_v16  ;;  %v1201_v18 = vmul.f32 %v10119_v53, %v1189_v10  ;;  %v1139_v61 = vmul.f32 0.3275911, %v10133_v34 }
 0x1c1   :  { %v1270_v4 = vmul.f32 %v10086_v8, %v1258_v9  ;;  %8616 = vpow2.f32 %v1319_v49  ;;  %v1359_v60 = vadd.f32 1.0, %v1347_v2  ;;  %v1348_v48 = vmul.f32 %v1336_v17, %v10041_v0 }
 0x1c2   :  { %v8613_v42 = vpop.eup %8612  ;;  %v1341_v33 = vsub.f32 1.0, %v1329_v13  ;;  %v1272_v52 = vmul.f32 %v10096_v25, %v1260_v30  ;;  %v1213_v46 = vadd.f32 1.4214138, %v1201_v18  ;;  %v1151_v55 = vadd.f32 1.0, %v1139_v61 }
 0x1c3   :  { %v1374_v54 = vmul.f32 %v1362_v47, %v10014_v43  ;;  %v10149_v23 = vmul.f32 0.70710677, %v10138_v14  ;;  %v8615_v21 = vpop.eup %8614  ;;  %v1080_v58 = vmul.f32 0.5, %v9990_v22  ;;  %v10158_v0 = vadd.f32 %v10084_v27, %v9981_v26 }
 0x1c4   :  { %v1353_v20 = vmul.f32 %v1341_v33, %v1113_v44  ;;  %v1332_v8 = vmul.f32 %v8613_v42, %v1272_v52  ;;  %v1225_v12 = vmul.f32 %v10119_v53, %v1213_v46  ;;  %8618 = vrcp.f32 %v1151_v55 }
 0x1c5   :  { %v1330_v28 = vmul.f32 %v8615_v21, %v1270_v4  ;;  %v10154_v25 = vand.u32 2147483647, %v10149_v23  ;;  %v1363_v43 = vadd.f32 1.0, %v1351_v24  ;;  %v1360_v6 = vadd.f32 1.0, %v1348_v48 }
 0x1c6   :  { %v1365_v51 = vadd.f32 1.0, %v1353_v20  ;;  %v1344_v57 = vsub.f32 1.0, %v1332_v8  ;;  %v1237_v63 = vadd.f32 -0.28449672, %v1225_v12  ;;  %v1114_v44 = vsel %vm1102_vm9, 1.0, %v15364_v40 }
 0x1c7   :  { %v1116_v22 = vsel %vm1104_vm10, 1.0, %v15364_v40  ;;  %v1133_v37 = vmul.f32 0.3275911, %v10154_v25  ;;  %v1371_v7 = vmul.f32 %v1359_v60, %v10001_v35  ;;  %v1401_v26 = vmul.f32 %v9993_v32, %v1374_v54 }
 0x1c8   :  { %v1356_v27 = vmul.f32 %v1344_v57, %v1116_v22  ;;  %v1249_v9 = vmul.f32 %v10119_v53, %v1237_v63  ;;  %v1377_v49 = vmul.f32 %v1365_v51, %v10073_v50  ;;  %v1342_v1 = vsub.f32 1.0, %v1330_v28 }
 0x1c9   :  { %v1145_v38 = vadd.f32 1.0, %v1133_v37  ;;  %v10172_v36 = vmul.f32 0.70710677, %v10158_v0  ;;  %v1375_v16 = vmul.f32 %v1363_v43, %v10021_v45  ;;  %v10177_v2 = vadd.f32 %v9962_v59, %v10091_v5 }
 0x1ca   :  { %v1368_v39 = vadd.f32 1.0, %v1356_v27  ;;  %v1261_v10 = vadd.f32 0.2548296, %v1249_v9  ;;  %v1372_v17 = vmul.f32 %v1360_v6, %v10012_v41  ;;  %v1398_v47 = vmul.f32 %v9993_v32, %v1371_v7 }
 0x1cb   :  { %v8617_v35 = vpop.eup %8616  ;;  %8620 = vrcp.f32 %v1145_v38  ;;  %v1130_v50 = vand.u32 2147483647, %v10172_v36  ;;  %v1283_v45 = vsub.f32 0.0, %v10133_v34  ;;  %v1404_v18 = vmul.f32 %v9993_v32, %v1377_v49 }
 0x1cc   :  { %v1380_v13 = vmul.f32 %v1368_v39, %v1080_v58  ;;  %v1273_v30 = vmul.f32 %v10119_v53, %v1261_v10  ;;  %v1354_v61 = vmul.f32 %v1342_v1, %v1114_v44  ;;  %v10187_v5 = vmul.f32 0.70710677, %v10177_v2 }
 0x1cd   :  { %v1142_v59 = vmul.f32 0.3275911, %v1130_v50  ;;  %v1413_v42 = vpack.c.bf16 %v1375_v16, %v1372_v17  ;;  %v1412_v33 = vpack.c.bf16 %v1401_v26, %v1398_v47  ;;  %v1117_v53 = vsel %vm1105_vm11, 1.0, %v15364_v40 }
 0x1ce   :  { %v8619_v41 = vpop.eup %8618  ;;  %v1407_v24 = vmul.f32 %v9993_v32, %v1380_v13  ;;  %v1333_v4 = vmul.f32 %v8617_v35, %v1273_v30  ;;  %v1124_v60 = vand.u32 2147483647, %v10187_v5  ;;  %v1366_v54 = vadd.f32 1.0, %v1354_v61 }
 0x1cf   :  { %v1175_v52 = vmul.f32 1.0614054, %v8619_v41  ;;  %v1154_v46 = vadd.f32 1.0, %v1142_v59  ;;  %1438 = vmatprep.subr.bf16.mxu1 %v1413_v42  ;;  %v1295_v20 = vmul.f32 %v1283_v45, %v10133_v34  ;;  %v1277_v8 = vsub.f32 0.0, %v10154_v25 }
 0x1d0   :  { %v1345_v55 = vsub.f32 1.0, %v1333_v4  ;;  %v1415_v48 = vpack.c.bf16 %v1407_v24, %v1404_v18  ;;  %1439 = vmatpush1.bf16.msra.mxu1 %v1412_v33  ;;  %v1136_v12 = vmul.f32 0.3275911, %v1124_v60  ;;  %v1078_v28 = vmul.f32 0.5, %v9987_v29 }
 0x1d1   :  { %v1187_v21 = vadd.f32 -1.4531521, %v1175_v52  ;;  %8622 = vrcp.f32 %v1154_v46  ;;  %v1315_v44 = vmul.f32 1.442695, %v1295_v20  ;;  %v1289_v34 = vmul.f32 %v1277_v8, %v10154_v25 }
 0x1d2   :  { %v1357_v32 = vmul.f32 %v1345_v55, %v1117_v53  ;;  %v1148_v51 = vadd.f32 1.0, %v1136_v12  ;;  %v1378_v63 = vmul.f32 %v1366_v54, %v1078_v28  ;;  %v1286_v26 = vsub.f32 0.0, %v1130_v50 }
 0x1d3   :  { %v1199_v58 = vmul.f32 %v8619_v41, %v1187_v21  ;;  %v1303_v1 = vmul.f32 1.442695, %v1289_v34  ;;  %v1280_v35 = vsub.f32 0.0, %v1124_v60  ;;  %vm1103_vm13 = vcmp.ge.f32.partialorder %v10124_v56, 0.0 }
 0x1d4   :  { %v1369_v43 = vadd.f32 1.0, %v1357_v32  ;;  %8624 = vrcp.f32 %v1148_v51  ;;  %v1298_v39 = vmul.f32 %v1286_v26, %v1130_v50  ;;  %vm1097_vm14 = vcmp.ge.f32.partialorder %v10149_v23, 0.0 }
 0x1d5   :  { %v8621_v57 = vpop.eup %8620  ;;  %v1211_v6 = vadd.f32 1.4214138, %v1199_v58  ;;  %8626 = vpow2.f32 %v1315_v44  ;;  %v1292_v59 = vmul.f32 %v1280_v35, %v1124_v60  ;;  %vm1106_vm15 = vcmp.ge.f32.partialorder %v10172_v36, 0.0 }
 0x1d6   :  { %v1381_v22 = vmul.f32 %v1369_v43, %v1081_v15  ;;  %v1169_v37 = vmul.f32 1.0614054, %v8621_v57  ;;  %8628 = vpow2.f32 %v1303_v1  ;;  %v1321_v30 = vmul.f32 1.442695, %v1298_v39 }
 0x1d7   :  { %v1223_v7 = vmul.f32 %v8619_v41, %v1211_v6  ;;  %v1115_v15 = vsel %vm1103_vm13, 1.0, %v15364_v40  ;;  %v1079_v23 = vmul.f32 0.5, %v10111_v19  ;;  %vm1100_vm2 = vcmp.ge.f32.partialorder %v10187_v5, 0.0 }
 0x1d8   :  { %v1181_v27 = vadd.f32 -1.4531521, %v1169_v37  ;;  %v1416_v9 = vpack.c.bf16 %v1381_v22, %v1378_v63  ;;  %8630 = vpow2.f32 %v1321_v30  ;;  %v10213_v22 = vadd.s32 256, %v9973_v11 }
 0x1d9   :  { %v1235_v49 = vadd.f32 -0.28449672, %v1223_v7  ;;  %v1109_v7 = vsel %vm1097_vm14, 1.0, %v15364_v40  ;;  %v1076_v5 = vmul.f32 0.5, %v10177_v2  ;;  %vm1721_vm8 = vcmask 130048  }
 0x1da   :  { %v1193_v29 = vmul.f32 %v8621_v57, %v1181_v27  ;;  %1440 = vmatprep.subr.bf16.mxu1 %v1416_v9  ;;  %15430 = vst [vmem:[#allocation3_spill] sm:$0xff] %v10213_v22  ;;  %v1118_v9 = vsel %vm1106_vm15, 1.0, %v15364_v40  ;;  %vm1388_vm1 = vcmp.lt.s32.totalorder %v10213_v22, 335  ;;  %vm1683_vm11 = vcmp.lt.s32.totalorder %v10213_v22, 350 }
 0x1db   :  { %v8623_v38 = vpop.eup %8622  ;;  %v1247_v16 = vmul.f32 %v8619_v41, %v1235_v49  ;;  %1441 = vmatpush1.bf16.msra.mxu1 %v1415_v48  ;;  %v1309_v48 = vmul.f32 1.442695, %v1292_v59 }
 0x1dc   :  { %v1205_v25 = vadd.f32 1.4214138, %v1193_v29  ;;  %v1178_v10 = vmul.f32 1.0614054, %v8623_v38  ;;  %8346 = vmatprep.subr.bf16.mxu1 %v15360_v31 }
 0x1dd   :  { %v1259_v17 = vadd.f32 0.2548296, %v1247_v16  ;;  %8632 = vpow2.f32 %v1309_v48  ;;  %v1082_v16 = vmul.f32 0.5, %v10158_v0 }
 0x1de   :  { %v1217_v47 = vmul.f32 %v8621_v57, %v1205_v25  ;;  %v1190_v13 = vadd.f32 -1.4531521, %v1178_v10  ;;  %8124 = vmatmul.mubr.msk.bf16.vlgmr.msra.gmra.mrb[4].mxu1 %vm138_vm0, %v10202_v62  ;;  %v8625_v45 = vpop.eup %8624  ;;  %v8122_v25 = vsel %vm1388_vm1, 1.0, %v15360_v31 }
 0x1df   :  { %8350 = vmatprep.mubr.msk.bf16.mxu1 %vm9337_vm12, %v15360_v31  ;;  %v1271_v50 = vmul.f32 %v8619_v41, %v1259_v17  ;;  %v1172_v24 = vmul.f32 1.0614054, %v8625_v45  ;;  %v8627_v33 = vpop.eup %8626 }
 0x1e0   :  { %v1229_v18 = vadd.f32 -0.28449672, %v1217_v47  ;;  %v1202_v61 = vmul.f32 %v8623_v38, %v1190_v13  ;;  %v8629_v8 = vpop.eup %8628  ;;  %v1112_v47 = vsel %vm1100_vm2, 1.0, %v15364_v40  ;;  %v1073_v13 = vmul.f32 0.5, %v10138_v14  ;;  %v10230_v14 = vpop.permute.xlu1 %1422 }
 0x1e1   :  { %v1184_v52 = vadd.f32 -1.4531521, %v1172_v24  ;;  %v1331_v46 = vmul.f32 %v8627_v33, %v1271_v50  ;;  %vm1965_vm2 = vcmp.ge.s32.totalorder %v9973_v11, 7 }
 0x1e2   :  { %v1241_v4 = vmul.f32 %v8621_v57, %v1229_v18  ;;  %v1214_v42 = vadd.f32 1.4214138, %v1202_v61  ;;  %v8631_v6 = vpop.eup %8630 }
 0x1e3   :  { %v1196_v54 = vmul.f32 %v8625_v45, %v1184_v52  ;;  %v1343_v41 = vsub.f32 1.0, %v1331_v46  ;;  %v10235_v52 = vpop.permute.xlu0 %1427 }
 0x1e4   :  { %v1253_v53 = vadd.f32 0.2548296, %v1241_v4  ;;  %v1226_v55 = vmul.f32 %v8623_v38, %v1214_v42 }
 0x1e5   :  { %v1208_v32 = vadd.f32 1.4214138, %v1196_v54  ;;  %v1355_v51 = vmul.f32 %v1343_v41, %v1115_v15 }
 0x1e6   :  { %v1265_v21 = vmul.f32 %v8621_v57, %v1253_v53  ;;  %v1238_v20 = vadd.f32 -0.28449672, %v1226_v55 }
 0x1e7   :  { %v1220_v28 = vmul.f32 %v8625_v45, %v1208_v32  ;;  %v1367_v34 = vadd.f32 1.0, %v1355_v51  ;;  %v8633_v29 = vpop.eup %8632 }
 0x1e8   :  { %v1250_v12 = vmul.f32 %v8623_v38, %v1238_v20  ;;  %v1325_v60 = vmul.f32 %v8629_v8, %v1265_v21 }
 0x1e9   :  { %v1232_v43 = vadd.f32 -0.28449672, %v1220_v28  ;;  %v1379_v36 = vmul.f32 %v1367_v34, %v1079_v23 }
 0x1ea   :  { %v1262_v58 = vadd.f32 0.2548296, %v1250_v12  ;;  %v1337_v57 = vsub.f32 1.0, %v1325_v60 }
 0x1eb   :  { %v1244_v44 = vmul.f32 %v8625_v45, %v1232_v43  ;;  %v1406_v30 = vmul.f32 %v8122_v25, %v1379_v36 }
 0x1ec   :  { %v1274_v63 = vmul.f32 %v8623_v38, %v1262_v58  ;;  %v1349_v27 = vmul.f32 %v1337_v57, %v1109_v7 }
 0x1ed   :  { %v1256_v37 = vadd.f32 0.2548296, %v1244_v44 }
 0x1ee   :  { %v1334_v56 = vmul.f32 %v8631_v6, %v1274_v63  ;;  %v1361_v10 = vadd.f32 1.0, %v1349_v27 }
 0x1ef   :  { %v1268_v49 = vmul.f32 %v8625_v45, %v1256_v37 }
 0x1f0   :  { %v1346_v26 = vsub.f32 1.0, %v1334_v56  ;;  %v1373_v50 = vmul.f32 %v1361_v10, %v1073_v13 }
 0x1f1   :  { %v1328_v38 = vmul.f32 %v8633_v29, %v1268_v49 }
 0x1f2   :  { %v1358_v1 = vmul.f32 %v1346_v26, %v1118_v9  ;;  %v1400_v0 = vmul.f32 %v8122_v25, %v1373_v50 }
 0x1f3   :  { %v1340_v35 = vsub.f32 1.0, %v1328_v38 }
 0x1f4   :  { %v1370_v39 = vadd.f32 1.0, %v1358_v1 }
 0x1f5   :  { %v1352_v19 = vmul.f32 %v1340_v35, %v1112_v47 }
 0x1f6   :  { %v1382_v17 = vmul.f32 %v1370_v39, %v1082_v16 }
 0x1f7   :  { %v1364_v18 = vadd.f32 1.0, %v1352_v19 }
 0x1f8   :  { %v1409_v45 = vmul.f32 %v8122_v25, %v1382_v17 }
 0x1f9   :  { %v1376_v59 = vmul.f32 %v1364_v18, %v1076_v5 }
 0x1fa   :  { %v1417_v61 = vpack.c.bf16 %v1409_v45, %v1406_v30 }
 0x1fb   :  { %v1403_v24 = vmul.f32 %v8122_v25, %v1376_v59 }
 0x1fd   :  { %v1414_v4 = vpack.c.bf16 %v1403_v24, %v1400_v0 }
 0x1ff   :  { %8347 = vmatpush3.bf16.msra.mxu1 %v1414_v4 }
 0x200   :  { %8348 = vmatprep.subr.bf16.mxu1 %v15360_v31 }
 0x203   :  { %8349 = vmatpush3.bf16.msra.mxu1 %v1417_v61 }
 0x206   :  { %8351 = vmatmul.mubr.msk.bf16.vlgmr.msra.gmra.mrb[8].mxu1 %vm138_vm0, %v10202_v62 }
 0x207   :  { %1757 = vmatprep.mubr.bf16.mxu1 %v15362_v3 }
 0x2b1   :  { %v1472_v42 = vpop.f32.mrb[4].mxu1 }
 0x2b2   :  { %v10233_v2 = vadd.f32 %v1472_v42, %v10230_v14  ;;  %v1474_v33 = vpop.f32.mrb[5].mxu1 }
 0x2b3   :  { %v10238_v46 = vadd.f32 %v1474_v33, %v10230_v14  ;;  %v1476_v53 = vpop.f32.mrb[6].mxu1 }
 0x2b4   :  { %v10241_v55 = vmul.f32 0.70710677, %v10233_v2  ;;  %v10244_v62 = vadd.f32 %v1476_v53, %v10235_v52  ;;  %v1478_v48 = vpop.f32.mrb[7].mxu1 }
 0x2b5   :  { %v10247_v54 = vmul.f32 0.70710677, %v10238_v46  ;;  %v10254_v32 = vadd.f32 %v1478_v48, %v10235_v52 }
 0x2b6   :  { %v1546_v21 = vand.u32 2147483647, %v10241_v55  ;;  %v10251_v20 = vmul.f32 0.70710677, %v10244_v62  ;;  %vm1534_vm3 = vcmp.ge.f32.partialorder %v10241_v55, 0.0 }
 0x2b7   :  { %v1547_v8 = vand.u32 2147483647, %v10247_v54  ;;  %v10259_v58 = vmul.f32 0.70710677, %v10254_v32  ;;  %vm1535_vm4 = vcmp.ge.f32.partialorder %v10247_v54, 0.0 }
 0x2b8   :  { %v1552_v41 = vmul.f32 0.3275911, %v1546_v21  ;;  %v1549_v60 = vand.u32 2147483647, %v10251_v20  ;;  %v1624_v44 = vsub.f32 0.0, %v1546_v21  ;;  %vm1537_vm5 = vcmp.ge.f32.partialorder %v10251_v20, 0.0 }
 0x2b9   :  { %v1553_v12 = vmul.f32 0.3275911, %v1547_v8  ;;  %v1550_v51 = vand.u32 2147483647, %v10259_v58  ;;  %v1625_v56 = vsub.f32 0.0, %v1547_v8  ;;  %v1541_v54 = vsel %vm1535_vm4, 1.0, %v15364_v40 }
 0x2ba   :  { %v1558_v28 = vadd.f32 1.0, %v1552_v41  ;;  %v1555_v43 = vmul.f32 0.3275911, %v1549_v60  ;;  %v1630_v34 = vmul.f32 %v1624_v44, %v1546_v21  ;;  %v1627_v7 = vsub.f32 0.0, %v1549_v60 }
 0x2bb   :  { %v1559_v15 = vadd.f32 1.0, %v1553_v12  ;;  %v1556_v6 = vmul.f32 0.3275911, %v1550_v51  ;;  %v1631_v9 = vmul.f32 %v1625_v56, %v1547_v8  ;;  %v1628_v29 = vsub.f32 0.0, %v1550_v51 }
 0x2bc   :  { %8634 = vrcp.f32 %v1558_v28  ;;  %v1561_v63 = vadd.f32 1.0, %v1555_v43  ;;  %v1636_v38 = vmul.f32 1.442695, %v1630_v34  ;;  %v1633_v16 = vmul.f32 %v1627_v7, %v1549_v60 }
 0x2bd   :  { %8636 = vrcp.f32 %v1559_v15  ;;  %v1562_v57 = vadd.f32 1.0, %v1556_v6  ;;  %v1638_v25 = vmul.f32 1.442695, %v1631_v9  ;;  %v1634_v47 = vmul.f32 %v1628_v29, %v1550_v51 }
 0x2be   :  { %8638 = vrcp.f32 %v1561_v63  ;;  %v1642_v50 = vmul.f32 1.442695, %v1633_v16  ;;  %vm1538_vm6 = vcmp.ge.f32.partialorder %v10259_v58, 0.0  ;;  %v1543_v20 = vsel %vm1537_vm5, 1.0, %v15364_v40 }
 0x2bf   :  { %8640 = vrcp.f32 %v1562_v57  ;;  %v1644_v0 = vmul.f32 1.442695, %v1634_v47  ;;  %vm1970_vm5 = vcmp.lt.s32.totalorder %v10213_v22, 351 }
 0x2c0   :  { %8642 = vpow2.f32 %v1636_v38 }
 0x2c1   :  { %8644 = vpow2.f32 %v1638_v25 }
 0x2c2   :  { %8646 = vpow2.f32 %v1642_v50 }
 0x2c3   :  { %8648 = vpow2.f32 %v1644_v0 }
 0x2c6   :  { %v8635_v37 = vpop.eup %8634 }
 0x2c7   :  { %v8637_v26 = vpop.eup %8636  ;;  %v1570_v27 = vmul.f32 1.0614054, %v8635_v37 }
 0x2c8   :  { %v1571_v49 = vmul.f32 1.0614054, %v8637_v26  ;;  %v8639_v1 = vpop.eup %8638 }
 0x2c9   :  { %v1576_v23 = vadd.f32 -1.4531521, %v1570_v27  ;;  %v1573_v10 = vmul.f32 1.0614054, %v8639_v1  ;;  %v8641_v35 = vpop.eup %8640 }
 0x2ca   :  { %v1577_v36 = vadd.f32 -1.4531521, %v1571_v49  ;;  %v1574_v30 = vmul.f32 1.0614054, %v8641_v35  ;;  %v8643_v63 = vpop.eup %8642 }
 0x2cb   :  { %v1582_v39 = vmul.f32 %v8635_v37, %v1576_v23  ;;  %v1579_v19 = vadd.f32 -1.4531521, %v1573_v10  ;;  %v8645_v57 = vpop.eup %8644 }
 0x2cc   :  { %v1583_v17 = vmul.f32 %v8637_v26, %v1577_v36  ;;  %v1580_v61 = vadd.f32 -1.4531521, %v1574_v30  ;;  %v8647_v23 = vpop.eup %8646 }
 0x2cd   :  { %v1588_v13 = vadd.f32 1.4214138, %v1582_v39  ;;  %v1585_v18 = vmul.f32 %v8639_v1, %v1579_v19  ;;  %v8649_v10 = vpop.eup %8648 }
 0x2ce   :  { %v1589_v45 = vadd.f32 1.4214138, %v1583_v17  ;;  %v1586_v42 = vmul.f32 %v8641_v35, %v1580_v61 }
 0x2cf   :  { %v1594_v5 = vmul.f32 %v8635_v37, %v1588_v13  ;;  %v1591_v4 = vadd.f32 1.4214138, %v1585_v18 }
 0x2d0   :  { %v1595_v59 = vmul.f32 %v8637_v26, %v1589_v45  ;;  %v1592_v21 = vadd.f32 1.4214138, %v1586_v42  ;;  %v1522_v45 = vmul.f32 0.5, %v10233_v2  ;;  %v8126_v42 = vsel %vm1678_vm7, 1.0, %v15360_v31 }
 0x2d1   :  { %v1600_v24 = vadd.f32 -0.28449672, %v1594_v5  ;;  %v1597_v48 = vmul.f32 %v8639_v1, %v1591_v4  ;;  %v1525_v5 = vmul.f32 0.5, %v10244_v62  ;;  %v1526_v62 = vmul.f32 0.5, %v10254_v32 }
 0x2d2   :  { %v1601_v33 = vadd.f32 -0.28449672, %v1595_v59  ;;  %v1598_v60 = vmul.f32 %v8641_v35, %v1592_v21 }
 0x2d3   :  { %v1606_v53 = vmul.f32 %v8635_v37, %v1600_v24  ;;  %v1603_v12 = vadd.f32 -0.28449672, %v1597_v48 }
 0x2d4   :  { %v1607_v8 = vmul.f32 %v8637_v26, %v1601_v33  ;;  %v1604_v51 = vadd.f32 -0.28449672, %v1598_v60 }
 0x2d5   :  { %v1612_v41 = vadd.f32 0.2548296, %v1606_v53  ;;  %v1609_v43 = vmul.f32 %v8639_v1, %v1603_v12  ;;  %v1523_v53 = vmul.f32 0.5, %v10238_v46 }
 0x2d6   :  { %v1613_v28 = vadd.f32 0.2548296, %v1607_v8  ;;  %v1610_v34 = vmul.f32 %v8641_v35, %v1604_v51 }
 0x2d7   :  { %v1618_v15 = vmul.f32 %v8635_v37, %v1612_v41  ;;  %v1615_v56 = vadd.f32 0.2548296, %v1609_v43  ;;  %v1540_v37 = vsel %vm1534_vm3, 1.0, %v15364_v40 }
 0x2d8   :  { %v1619_v6 = vmul.f32 %v8637_v26, %v1613_v28  ;;  %v1616_v49 = vadd.f32 0.2548296, %v1610_v34 }
 0x2d9   :  { %v1648_v44 = vmul.f32 %v8643_v63, %v1618_v15  ;;  %v1621_v9 = vmul.f32 %v8639_v1, %v1615_v56  ;;  %v1515_v29 = vpop.f32.mrb[8].mxu1  ;;  %v8557_v63 = vld [vmem:[%s15344_s6] sm:$0xff]  }
 0x2da   :  { %v1649_v7 = vmul.f32 %v8645_v57, %v1619_v6  ;;  %v10266_v36 = vadd.f32 %v1515_v29, %v10230_v14  ;;  %v8352_v26 = vpop.f32.mrb[9].mxu1  ;;  %v1622_v39 = vmul.f32 %v8641_v35, %v1616_v49 }
 0x2db   :  { %v1654_v27 = vsub.f32 1.0, %v1648_v44  ;;  %v1651_v55 = vmul.f32 %v8647_v23, %v1621_v9  ;;  %v1518_v25 = vpop.f32.mrb[10].mxu1 }
 0x2dc   :  { %v1655_v38 = vsub.f32 1.0, %v1649_v7  ;;  %v10272_v1 = vmul.f32 0.70710677, %v10266_v36  ;;  %v10275_v17 = vadd.f32 %v1518_v25, %v10235_v52  ;;  %v8353_v14 = vpop.f32.mrb[11].mxu1  ;;  %v1652_v30 = vmul.f32 %v8649_v10, %v1622_v39 }
 0x2dd   :  { %v1660_v16 = vmul.f32 %v1654_v27, %v1540_v37  ;;  %v1657_v19 = vsub.f32 1.0, %v1651_v55  ;;  %v1544_v52 = vsel %vm1538_vm6, 1.0, %v15364_v40  ;;  %vm3628_vm6 = vcmp.lt.s32.totalorder %v10213_v22, 352 }
 0x2de   :  { %v1661_v13 = vmul.f32 %v1655_v38, %v1541_v54  ;;  %v1548_v35 = vand.u32 2147483647, %v10272_v1  ;;  %v1658_v50 = vsub.f32 1.0, %v1652_v30  ;;  %v10284_v61 = vmul.f32 0.70710677, %v10275_v17 }
 0x2df   :  { %v1666_v47 = vadd.f32 1.0, %v1660_v16  ;;  %v1663_v58 = vmul.f32 %v1657_v19, %v1543_v20  ;;  %vm1536_vm9 = vcmp.ge.f32.partialorder %v10272_v1, 0.0 }
 0x2e0   :  { %v1554_v18 = vmul.f32 0.3275911, %v1548_v35  ;;  %v1667_v0 = vadd.f32 1.0, %v1661_v13  ;;  %v1664_v4 = vmul.f32 %v1658_v50, %v1544_v52  ;;  %v1551_v2 = vand.u32 2147483647, %v10284_v61 }
 0x2e1   :  { %v1672_v59 = vmul.f32 %v1666_v47, %v1522_v45  ;;  %v1669_v24 = vadd.f32 1.0, %v1663_v58  ;;  %v1626_v46 = vsub.f32 0.0, %v1548_v35  ;;  %v1542_v58 = vsel %vm1536_vm9, 1.0, %v15364_v40 }
 0x2e2   :  { %v1560_v33 = vadd.f32 1.0, %v1554_v18  ;;  %v1670_v21 = vadd.f32 1.0, %v1664_v4  ;;  %v1557_v8 = vmul.f32 0.3275911, %v1551_v2  ;;  %v1673_v12 = vmul.f32 %v1667_v0, %v1523_v53 }
 0x2e3   :  { %v1675_v48 = vmul.f32 %v1669_v24, %v1525_v5  ;;  %v1693_v41 = vmul.f32 %v8126_v42, %v1672_v59  ;;  %v1632_v6 = vmul.f32 %v1626_v46, %v1548_v35  ;;  %v1629_v57 = vsub.f32 0.0, %v1551_v2 }
 0x2e4   :  { %8650 = vrcp.f32 %v1560_v33  ;;  %v1676_v28 = vmul.f32 %v1670_v21, %v1526_v62  ;;  %v1563_v15 = vadd.f32 1.0, %v1557_v8  ;;  %vm1539_vm10 = vcmp.ge.f32.partialorder %v10284_v61, 0.0 }
 0x2e5   :  { %v1696_v60 = vmul.f32 %v8126_v42, %v1675_v48  ;;  %v1640_v7 = vmul.f32 1.442695, %v1632_v6  ;;  %v1635_v27 = vmul.f32 %v1629_v57, %v1551_v2  ;;  %v1545_v59 = vsel %vm1539_vm10, 1.0, %v15364_v40 }
 0x2e6   :  { %v1702_v43 = vpack.c.bf16 %v1676_v28, %v1673_v12  ;;  %8652 = vrcp.f32 %v1563_v15  ;;  %v1524_v0 = vmul.f32 0.5, %v10266_v36  ;;  %v1527_v4 = vmul.f32 0.5, %v10275_v17  ;;  %v10310_v36 = vld [vmem:[%s15345_s8] sm:$0xff]   ;;  %v10314_v17 = vpop.permute.xlu1 %1708 }
 0x2e7   :  { %v1701_v51 = vpack.c.bf16 %v1696_v60, %v1693_v41  ;;  %8654 = vpow2.f32 %v1640_v7  ;;  %v1646_v37 = vmul.f32 1.442695, %v1635_v27  ;;  %v8127_v33 = vsel %vm1683_vm11, 1.0, %v15360_v31  ;;  %8362 = vmatprep.mubr.msk.bf16.mxu0 %vm1721_vm8, %v10310_v36  ;;  %v10319_v41 = vpop.permute.xlu0 %1713 }
 0x2e8   :  { %1725 = vmatprep.subr.bf16.mxu1 %v1702_v43  ;;  %vm3623_vm9 = vcmp.ge.s32.totalorder %v9973_v11, 6 }
 0x2e9   :  { %1726 = vmatpush1.bf16.msra.mxu1 %v1701_v51  ;;  %8656 = vpow2.f32 %v1646_v37 }
 0x2ea   :  { %8354 = vmatprep.subr.bf16.mxu1 %v15360_v31 }
 0x2ec   :  { %8129 = vmatmul.mubr.msk.bf16.vlgmr.msra.gmra.mrb[12].mxu1 %vm1721_vm8, %v8557_v63 }
 0x2ed   :  { %8356 = vmatprep.mubr.msk.bf16.mxu1 %vm9337_vm12, %v15360_v31 }
 0x2ee   :  { %v8651_v32 = vpop.eup %8650 }
 0x2ef   :  { %v1572_v44 = vmul.f32 1.0614054, %v8651_v32 }
 0x2f0   :  { %v8653_v34 = vpop.eup %8652 }
 0x2f1   :  { %v1578_v56 = vadd.f32 -1.4531521, %v1572_v44  ;;  %v1575_v49 = vmul.f32 1.0614054, %v8653_v34  ;;  %v8655_v13 = vpop.eup %8654 }
 0x2f3   :  { %v1584_v9 = vmul.f32 %v8651_v32, %v1578_v56  ;;  %v1581_v23 = vadd.f32 -1.4531521, %v1575_v49  ;;  %v8657_v45 = vpop.eup %8656 }
 0x2f5   :  { %v1590_v29 = vadd.f32 1.4214138, %v1584_v9  ;;  %v1587_v26 = vmul.f32 %v8653_v34, %v1581_v23 }
 0x2f7   :  { %v1596_v38 = vmul.f32 %v8651_v32, %v1590_v29  ;;  %v1593_v55 = vadd.f32 1.4214138, %v1587_v26 }
 0x2f9   :  { %v1602_v16 = vadd.f32 -0.28449672, %v1596_v38  ;;  %v1599_v25 = vmul.f32 %v8653_v34, %v1593_v55 }
 0x2fb   :  { %v1608_v39 = vmul.f32 %v8651_v32, %v1602_v16  ;;  %v1605_v54 = vadd.f32 -0.28449672, %v1599_v25 }
 0x2fd   :  { %v1614_v10 = vadd.f32 0.2548296, %v1608_v39  ;;  %v1611_v47 = vmul.f32 %v8653_v34, %v1605_v54 }
 0x2ff   :  { %v1620_v14 = vmul.f32 %v8651_v32, %v1614_v10  ;;  %v1617_v30 = vadd.f32 0.2548296, %v1611_v47 }
 0x301   :  { %v1650_v19 = vmul.f32 %v8655_v13, %v1620_v14  ;;  %v1623_v35 = vmul.f32 %v8653_v34, %v1617_v30 }
 0x303   :  { %v1656_v20 = vsub.f32 1.0, %v1650_v19  ;;  %v1653_v5 = vmul.f32 %v8657_v45, %v1623_v35 }
 0x305   :  { %v1662_v50 = vmul.f32 %v1656_v20, %v1542_v58  ;;  %v1659_v18 = vsub.f32 1.0, %v1653_v5 }
 0x307   :  { %v1668_v52 = vadd.f32 1.0, %v1662_v50  ;;  %v1665_v1 = vmul.f32 %v1659_v18, %v1545_v59 }
 0x309   :  { %v1674_v24 = vmul.f32 %v1668_v52, %v1524_v0  ;;  %v1671_v42 = vadd.f32 1.0, %v1665_v1 }
 0x30b   :  { %v1677_v2 = vmul.f32 %v1671_v42, %v1527_v4  ;;  %v1695_v53 = vmul.f32 %v8127_v33, %v1674_v24 }
 0x30d   :  { %v1698_v48 = vmul.f32 %v8127_v33, %v1677_v2 }
 0x30f   :  { %v1703_v61 = vpack.c.bf16 %v1698_v48, %v1695_v53 }
 0x311   :  { %8355 = vmatpush3.bf16.msra.mxu1 %v1703_v61 }
 0x314   :  { %8357 = vmatmul.mubr.msk.bf16.vlgmr.msra.gmra.mrb[16].mxu1 %vm1721_vm8, %v8557_v63 }
 0x315   :  { %2197 = vmatprep.mubr.bf16.mxu1 %v15362_v3 }
 0x3bf   :  { %v1759_v62 = vpop.f32.mrb[12].mxu1 }
 0x3c0   :  { %v10317_v21 = vadd.f32 %v1759_v62, %v10314_v17  ;;  %v1761_v8 = vpop.f32.mrb[13].mxu1 }
 0x3c1   :  { %v10322_v12 = vadd.f32 %v1761_v8, %v10314_v17  ;;  %v1763_v60 = vpop.f32.mrb[14].mxu1 }
 0x3c2   :  { %v10325_v28 = vmul.f32 0.70710677, %v10317_v21  ;;  %v10328_v15 = vadd.f32 %v1763_v60, %v10319_v41  ;;  %v1765_v43 = vpop.f32.mrb[15].mxu1 }
 0x3c3   :  { %v10331_v51 = vmul.f32 0.70710677, %v10322_v12  ;;  %v10338_v32 = vadd.f32 %v1765_v43, %v10319_v41 }
 0x3c4   :  { %v1833_v63 = vand.u32 2147483647, %v10325_v28  ;;  %v10335_v46 = vmul.f32 0.70710677, %v10328_v15  ;;  %vm1821_vm13 = vcmp.ge.f32.partialorder %v10325_v28, 0.0 }
 0x3c5   :  { %v1834_v6 = vand.u32 2147483647, %v10331_v51  ;;  %v10343_v7 = vmul.f32 0.70710677, %v10338_v32  ;;  %vm1822_vm14 = vcmp.ge.f32.partialorder %v10331_v51, 0.0 }
 0x3c6   :  { %v1839_v57 = vmul.f32 0.3275911, %v1833_v63  ;;  %v1836_v56 = vand.u32 2147483647, %v10335_v46  ;;  %v1911_v38 = vsub.f32 0.0, %v1833_v63  ;;  %vm1824_vm15 = vcmp.ge.f32.partialorder %v10335_v46, 0.0 }
 0x3c7   :  { %v1840_v44 = vmul.f32 0.3275911, %v1834_v6  ;;  %v1837_v49 = vand.u32 2147483647, %v10343_v7  ;;  %v1912_v26 = vsub.f32 0.0, %v1834_v6  ;;  %vm1825_vm1 = vcmp.ge.f32.partialorder %v10343_v7, 0.0 }
 0x3c8   :  { %v1845_v34 = vadd.f32 1.0, %v1839_v57  ;;  %v1842_v9 = vmul.f32 0.3275911, %v1836_v56  ;;  %v1917_v55 = vmul.f32 %v1911_v38, %v1833_v63  ;;  %v1914_v39 = vsub.f32 0.0, %v1836_v56 }
 0x3c9   :  { %v1846_v27 = vadd.f32 1.0, %v1840_v44  ;;  %v1843_v23 = vmul.f32 0.3275911, %v1837_v49  ;;  %v1918_v54 = vmul.f32 %v1912_v26, %v1834_v6  ;;  %v1915_v47 = vsub.f32 0.0, %v1837_v49 }
 0x3ca   :  { %8658 = vrcp.f32 %v1845_v34  ;;  %v1848_v29 = vadd.f32 1.0, %v1842_v9  ;;  %v1923_v30 = vmul.f32 1.442695, %v1917_v55  ;;  %v1920_v35 = vmul.f32 %v1914_v39, %v1836_v56 }
 0x3cb   :  { %8660 = vrcp.f32 %v1846_v27  ;;  %v1849_v37 = vadd.f32 1.0, %v1843_v23  ;;  %v1925_v58 = vmul.f32 1.442695, %v1918_v54  ;;  %v1921_v18 = vmul.f32 %v1915_v47, %v1837_v49 }
 0x3cc   :  { %8662 = vrcp.f32 %v1848_v29  ;;  %v1929_v4 = vmul.f32 1.442695, %v1920_v35 }
 0x3cd   :  { %8664 = vrcp.f32 %v1849_v37  ;;  %v1931_v48 = vmul.f32 1.442695, %v1921_v18 }
 0x3ce   :  { %8666 = vpow2.f32 %v1923_v30 }
 0x3cf   :  { %8668 = vpow2.f32 %v1925_v58 }
 0x3d0   :  { %8670 = vpow2.f32 %v1929_v4 }
 0x3d1   :  { %8672 = vpow2.f32 %v1931_v48 }
 0x3d4   :  { %v8659_v16 = vpop.eup %8658 }
 0x3d5   :  { %v8661_v25 = vpop.eup %8660  ;;  %v1857_v10 = vmul.f32 1.0614054, %v8659_v16 }
 0x3d6   :  { %v1858_v14 = vmul.f32 1.0614054, %v8661_v25  ;;  %v8663_v19 = vpop.eup %8662 }
 0x3d7   :  { %v1863_v13 = vadd.f32 -1.4531521, %v1857_v10  ;;  %v1860_v50 = vmul.f32 1.0614054, %v8663_v19  ;;  %v8665_v5 = vpop.eup %8664 }
 0x3d8   :  { %v1864_v20 = vadd.f32 -1.4531521, %v1858_v14  ;;  %v1861_v1 = vmul.f32 1.0614054, %v8665_v5  ;;  %v8667_v23 = vpop.eup %8666 }
 0x3d9   :  { %v1869_v45 = vmul.f32 %v8659_v16, %v1863_v13  ;;  %v1866_v0 = vadd.f32 -1.4531521, %v1860_v50  ;;  %v8669_v38 = vpop.eup %8668 }
 0x3da   :  { %v1870_v52 = vmul.f32 %v8661_v25, %v1864_v20  ;;  %v1867_v2 = vadd.f32 -1.4531521, %v1861_v1  ;;  %v8671_v20 = vpop.eup %8670 }
 0x3db   :  { %v1875_v59 = vadd.f32 1.4214138, %v1869_v45  ;;  %v1872_v33 = vmul.f32 %v8663_v19, %v1866_v0  ;;  %v8673_v18 = vpop.eup %8672 }
 0x3dc   :  { %v1876_v24 = vadd.f32 1.4214138, %v1870_v52  ;;  %v1873_v8 = vmul.f32 %v8665_v5, %v1867_v2  ;;  %v1831_v2 = vsel %vm1825_vm1, 1.0, %v15364_v40 }
 0x3dd   :  { %v1881_v42 = vmul.f32 %v8659_v16, %v1875_v59  ;;  %v1878_v62 = vadd.f32 1.4214138, %v1872_v33  ;;  %v1812_v33 = vmul.f32 0.5, %v10328_v15  ;;  %v1813_v15 = vmul.f32 0.5, %v10338_v32 }
 0x3de   :  { %v1882_v53 = vmul.f32 %v8661_v25, %v1876_v24  ;;  %v1879_v6 = vadd.f32 1.4214138, %v1873_v8 }
 0x3df   :  { %v1887_v61 = vadd.f32 -0.28449672, %v1881_v42  ;;  %v1884_v63 = vmul.f32 %v8663_v19, %v1878_v62  ;;  %v1809_v42 = vmul.f32 0.5, %v10317_v21 }
 0x3e0   :  { %v1888_v60 = vadd.f32 -0.28449672, %v1882_v53  ;;  %v1885_v34 = vmul.f32 %v8665_v5, %v1879_v6 }
 0x3e1   :  { %v1893_v43 = vmul.f32 %v8659_v16, %v1887_v61  ;;  %v1890_v56 = vadd.f32 -0.28449672, %v1884_v63  ;;  %v1810_v63 = vmul.f32 0.5, %v10322_v12 }
 0x3e2   :  { %v1894_v57 = vmul.f32 %v8661_v25, %v1888_v60  ;;  %v1891_v29 = vadd.f32 -0.28449672, %v1885_v34  ;;  %v8131_v60 = vsel %vm1965_vm2, 1.0, %v15360_v31 }
 0x3e3   :  { %v1899_v44 = vadd.f32 0.2548296, %v1893_v43  ;;  %v1896_v49 = vmul.f32 %v8663_v19, %v1890_v56 }
 0x3e4   :  { %v1900_v27 = vadd.f32 0.2548296, %v1894_v57  ;;  %v1897_v39 = vmul.f32 %v8665_v5, %v1891_v29 }
 0x3e5   :  { %v1905_v9 = vmul.f32 %v8659_v16, %v1899_v44  ;;  %v1902_v55 = vadd.f32 0.2548296, %v1896_v49 }
 0x3e6   :  { %v1906_v37 = vmul.f32 %v8661_v25, %v1900_v27  ;;  %v1903_v13 = vadd.f32 0.2548296, %v1897_v39  ;;  %v1827_v25 = vsel %vm1821_vm13, 1.0, %v15364_v40  ;;  %v8559_v39 = vld [vmem:[%s15345_s8 + $0x8] sm:$0xff]  }
 0x3e7   :  { %v1935_v26 = vmul.f32 %v8667_v23, %v1905_v9  ;;  %v1802_v54 = vpop.f32.mrb[16].mxu1  ;;  %v1908_v47 = vmul.f32 %v8663_v19, %v1902_v55  ;;  %v1828_v19 = vsel %vm1822_vm14, 1.0, %v15364_v40 }
 0x3e8   :  { %v1936_v10 = vmul.f32 %v8669_v38, %v1906_v37  ;;  %v10349_v30 = vadd.f32 %v1802_v54, %v10314_v17  ;;  %v8358_v16 = vpop.f32.mrb[17].mxu1  ;;  %v1909_v50 = vmul.f32 %v8665_v5, %v1903_v13  ;;  %v1830_v5 = vsel %vm1824_vm15, 1.0, %v15364_v40 }
 0x3e9   :  { %v1941_v14 = vsub.f32 1.0, %v1935_v26  ;;  %v1805_v45 = vpop.f32.mrb[18].mxu1  ;;  %v1938_v58 = vmul.f32 %v8671_v20, %v1908_v47 }
 0x3ea   :  { %v1942_v35 = vsub.f32 1.0, %v1936_v10  ;;  %v8359_v52 = vpop.f32.mrb[19].mxu1  ;;  %v10358_v17 = vmul.f32 0.70710677, %v10349_v30  ;;  %v10361_v59 = vadd.f32 %v1805_v45, %v10319_v41  ;;  %v1939_v46 = vmul.f32 %v8673_v18, %v1909_v50 }
 0x3eb   :  { %v1947_v28 = vmul.f32 %v1941_v14, %v1827_v25  ;;  %v1944_v24 = vsub.f32 1.0, %v1938_v58  ;;  %v8560_v58 = vld [vmem:[%s15345_s8 + $0x10] sm:$0xff]  }
 0x3ec   :  { %v1948_v1 = vmul.f32 %v1942_v35, %v1828_v19  ;;  %v1835_v4 = vand.u32 2147483647, %v10358_v17  ;;  %v1945_v7 = vsub.f32 1.0, %v1939_v46  ;;  %v10370_v53 = vmul.f32 0.70710677, %v10361_v59 }
 0x3ed   :  { %v1953_v0 = vadd.f32 1.0, %v1947_v28  ;;  %v1950_v51 = vmul.f32 %v1944_v24, %v1830_v5  ;;  %vm1823_vm3 = vcmp.ge.f32.partialorder %v10358_v17, 0.0 }
 0x3ee   :  { %v1841_v41 = vmul.f32 0.3275911, %v1835_v4  ;;  %v1954_v61 = vadd.f32 1.0, %v1948_v1  ;;  %v1951_v8 = vmul.f32 %v1945_v7, %v1831_v2  ;;  %v1838_v21 = vand.u32 2147483647, %v10370_v53 }
 0x3ef   :  { %v1959_v48 = vmul.f32 %v1953_v0, %v1809_v42  ;;  %v1956_v62 = vadd.f32 1.0, %v1950_v51  ;;  %v1913_v37 = vsub.f32 0.0, %v1835_v4  ;;  %vm1826_vm4 = vcmp.ge.f32.partialorder %v10370_v53, 0.0 }
 0x3f0   :  { %v1847_v43 = vadd.f32 1.0, %v1841_v41  ;;  %v1957_v57 = vadd.f32 1.0, %v1951_v8  ;;  %v1844_v44 = vmul.f32 0.3275911, %v1838_v21  ;;  %v1960_v34 = vmul.f32 %v1954_v61, %v1810_v63 }
 0x3f1   :  { %v1962_v6 = vmul.f32 %v1956_v62, %v1812_v33  ;;  %v1980_v56 = vmul.f32 %v8131_v60, %v1959_v48  ;;  %v1919_v38 = vmul.f32 %v1913_v37, %v1835_v4  ;;  %v1916_v32 = vsub.f32 0.0, %v1838_v21  ;;  %v8561_v4 = vld [vmem:[%s15345_s8 + $0x18] sm:$0xff]  }
 0x3f2   :  { %8674 = vrcp.f32 %v1847_v43  ;;  %v1963_v9 = vmul.f32 %v1957_v57, %v1813_v15  ;;  %v1850_v49 = vadd.f32 1.0, %v1844_v44  ;;  %v1829_v33 = vsel %vm1823_vm3, 1.0, %v15364_v40  ;;  %v8563_v44 = vld [vmem:[%s15345_s8 + $0x28] sm:$0xff]  }
 0x3f3   :  { %v1983_v27 = vmul.f32 %v8131_v60, %v1962_v6  ;;  %v1927_v54 = vmul.f32 1.442695, %v1919_v38  ;;  %v1922_v14 = vmul.f32 %v1916_v32, %v1838_v21  ;;  %v1832_v61 = vsel %vm1826_vm4, 1.0, %v15364_v40  ;;  %v8562_v60 = vld [vmem:[%s15345_s8 + $0x20] sm:$0xff]  }
 0x3f4   :  { %v2003_v29 = vpack.c.bf16 %v1963_v9, %v1960_v34  ;;  %8676 = vrcp.f32 %v1850_v49  ;;  %v1811_v62 = vmul.f32 0.5, %v10349_v30  ;;  %v1814_v53 = vmul.f32 0.5, %v10361_v59  ;;  %v8564_v59 = vld [vmem:[%s15345_s8 + $0x30] sm:$0xff]   ;;  %v10429_v34 = vpop.permute.xlu1 %2023 }
 0x3f5   :  { %v2002_v23 = vpack.c.bf16 %v1983_v27, %v1980_v56  ;;  %8678 = vpow2.f32 %v1927_v54  ;;  %v8132_v63 = vsel %vm1970_vm5, 1.0, %v15360_v31  ;;  %v8565_v56 = vld [vmem:[%s15345_s8 + $0x38] sm:$0xff]   ;;  %15431 = vst [vmem:[#allocation4_spill] sm:$0xff] %v10429_v34 }
 0x3f6   :  { %2165 = vmatprep.subr.bf16.mxu1 %v2003_v29  ;;  %v10432_v29 = vpop.permute.xlu0 %2028 }
 0x3f7   :  { %2166 = vmatpush1.bf16.msra.mxu1 %v2002_v23  ;;  %15432 = vst [vmem:[#allocation5_spill] sm:$0xff] %v10432_v29 }
 0x3fa   :  { %8141 = vmatmul.mubr.msk.bf16.vlgmr.msra.gmra.mrb[20].mxu1 %vm1721_vm8, %v10310_v36  ;;  %v1933_v36 = vmul.f32 1.442695, %v1922_v14 }
 0x3fb   :  { %2207 = vmatprep.mubr.bf16.mxu1 %v15362_v3 }
 0x3fc   :  { %v8675_v12 = vpop.eup %8674  ;;  %8680 = vpow2.f32 %v1933_v36 }
 0x3fd   :  { %v1859_v26 = vmul.f32 1.0614054, %v8675_v12 }
 0x3fe   :  { %v8677_v10 = vpop.eup %8676 }
 0x3ff   :  { %v1865_v55 = vadd.f32 -1.4531521, %v1859_v26  ;;  %v1862_v13 = vmul.f32 1.0614054, %v8677_v10  ;;  %v8679_v24 = vpop.eup %8678 }
 0x401   :  { %v1871_v47 = vmul.f32 %v8675_v12, %v1865_v55  ;;  %v1868_v20 = vadd.f32 -1.4531521, %v1862_v13 }
 0x402   :  { %8142 = vmatmul.mubr.msk.bf16.gmra.mrb[24].mxu1 %vm1721_vm8, %v8559_v39 }
 0x403   :  { %v1877_v16 = vadd.f32 1.4214138, %v1871_v47  ;;  %2217 = vmatprep.mubr.bf16.mxu1 %v15362_v3  ;;  %v1874_v35 = vmul.f32 %v8677_v10, %v1868_v20 }
 0x405   :  { %v1883_v25 = vmul.f32 %v8675_v12, %v1877_v16  ;;  %v1880_v28 = vadd.f32 1.4214138, %v1874_v35 }
 0x406   :  { %v8681_v7 = vpop.eup %8680 }
 0x407   :  { %v1889_v45 = vadd.f32 -0.28449672, %v1883_v25  ;;  %v1886_v52 = vmul.f32 %v8677_v10, %v1880_v28 }
 0x409   :  { %v1895_v50 = vmul.f32 %v8675_v12, %v1889_v45  ;;  %v1892_v19 = vadd.f32 -0.28449672, %v1886_v52 }
 0x40a   :  { %8143 = vmatmul.mubr.msk.bf16.gmra.mrb[28].mxu1 %vm1721_vm8, %v8560_v58 }
 0x40b   :  { %v1901_v18 = vadd.f32 0.2548296, %v1895_v50  ;;  %2227 = vmatprep.mubr.bf16.mxu1 %v15362_v3  ;;  %v1898_v1 = vmul.f32 %v8677_v10, %v1892_v19 }
 0x40d   :  { %v1907_v0 = vmul.f32 %v8675_v12, %v1901_v18  ;;  %v1904_v5 = vadd.f32 0.2548296, %v1898_v1  ;;  %v10446_v18 = vpop.permute.xlu1 %2033 }
 0x40f   :  { %v1937_v46 = vmul.f32 %v8679_v24, %v1907_v0  ;;  %v1910_v51 = vmul.f32 %v8677_v10, %v1904_v5  ;;  %v10449_v0 = vpop.permute.xlu0 %2038 }
 0x410   :  { %15433 = vst [vmem:[#allocation6_spill] sm:$0xff] %v10449_v0 }
 0x411   :  { %v1943_v42 = vsub.f32 1.0, %v1937_v46  ;;  %v1940_v41 = vmul.f32 %v8681_v7, %v1910_v51  ;;  %v10458_v46 = vsel %vm3628_vm6, 1.0, %v15360_v31 }
 0x412   :  { %8144 = vmatmul.mubr.msk.bf16.gmra.mrb[32].mxu1 %vm1721_vm8, %v8561_v4  ;;  %15434 = vst [vmem:[#allocation7_spill] sm:$0xff] %v10458_v46 }
 0x413   :  { %v1949_v2 = vmul.f32 %v1943_v42, %v1829_v33  ;;  %2237 = vmatprep.mubr.bf16.mxu1 %v15362_v3  ;;  %v1946_v48 = vsub.f32 1.0, %v1940_v41 }
 0x415   :  { %v1955_v17 = vadd.f32 1.0, %v1949_v2  ;;  %v1952_v8 = vmul.f32 %v1946_v48, %v1832_v61 }
 0x417   :  { %v1961_v43 = vmul.f32 %v1955_v17, %v1811_v62  ;;  %v1958_v21 = vadd.f32 1.0, %v1952_v8 }
 0x419   :  { %v1964_v6 = vmul.f32 %v1958_v21, %v1814_v53  ;;  %v1982_v15 = vmul.f32 %v8132_v63, %v1961_v43 }
 0x41a   :  { %8145 = vmatmul.mubr.msk.bf16.gmra.mrb[36].mxu1 %vm1721_vm8, %v8562_v60 }
 0x41b   :  { %2247 = vmatprep.mubr.bf16.mxu1 %v15362_v3  ;;  %v1985_v30 = vmul.f32 %v8132_v63, %v1964_v6 }
 0x41d   :  { %v2004_v57 = vpack.c.bf16 %v1985_v30, %v1982_v15 }
 0x41f   :  { %8360 = vmatprep.subr.bf16.mxu0 %v2004_v57 }
 0x420   :  { %8361 = vmatpush3.bf16.msra.mxu0 %v2004_v57 }
 0x422   :  { %8146 = vmatmul.mubr.msk.bf16.gmra.mrb[40].mxu1 %vm1721_vm8, %v8563_v44 }
 0x423   :  { %2257 = vmatprep.mubr.bf16.mxu1 %v15362_v3  ;;  %8363 = vmatmul.mubr.msk.bf16.vlgmr.msra.gmra.mrb[8].mxu0 %vm1721_vm8, %v8559_v39 }
 0x424   :  { %8366 = vmatprep.mubr.msk.bf16.mxu0 %vm1721_vm8, %v8560_v58 }
 0x42a   :  { %8147 = vmatmul.mubr.msk.bf16.gmra.mrb[44].mxu1 %vm1721_vm8, %v8564_v59 }
 0x42b   :  { %2267 = vmatprep.mubr.bf16.mxu1 %v15362_v3  ;;  %8367 = vmatmul.mubr.msk.bf16.gmra.mrb[12].mxu0 %vm1721_vm8, %v8561_v4 }
 0x42c   :  { %8370 = vmatprep.mubr.msk.bf16.mxu0 %vm1721_vm8, %v8562_v60  ;;  %v10485_v60 = vsel %vm3623_vm9, 1.0, %v15360_v31 }
 0x432   :  { %8148 = vmatmul.mubr.msk.bf16.gmra.mrb[48].mxu1 %vm1721_vm8, %v8565_v56 }
 0x433   :  { %8371 = vmatmul.mubr.msk.bf16.gmra.mrb[16].mxu0 %vm1721_vm8, %v8563_v44 }
 0x434   :  { %8374 = vmatprep.mubr.msk.bf16.mxu0 %vm1721_vm8, %v8564_v59 }
 0x43b   :  { %8375 = vmatmul.mubr.msk.bf16.gmra.mrb[20].mxu0 %vm1721_vm8, %v8565_v56 }
 0x43c   :  { %3782 = vmatprep.mubr.bf16.mxu0 %v15362_v3 }
 0x4cd   :  { %v2199_v27 = vpop.f32.mrb[20].mxu1 }
 0x4ce   :  { %v2200_v9 = vadd.f32 %v2199_v27, %v10429_v34  ;;  %v2201_v49 = vpop.f32.mrb[21].mxu1 }
 0x4cf   :  { %v2202_v23 = vadd.f32 %v2201_v49, %v10429_v34  ;;  %v2203_v37 = vpop.f32.mrb[22].mxu1 }
 0x4d0   :  { %v2423_v12 = vmul.f32 0.70710677, %v2200_v9  ;;  %v2204_v38 = vadd.f32 %v2203_v37, %v10432_v29  ;;  %v2205_v32 = vpop.f32.mrb[23].mxu1  ;;  %v10482_v8 = vmul.f32 0.5, %v2200_v9 }
 0x4d1   :  { %v2424_v26 = vmul.f32 0.70710677, %v2202_v23  ;;  %v2206_v10 = vadd.f32 %v2205_v32, %v10432_v29  ;;  %v10487_v43 = vmul.f32 0.5, %v2202_v23 }
 0x4d2   :  { %v2567_v55 = vand.u32 2147483647, %v2423_v12  ;;  %v10436_v39 = vmul.f32 0.70710677, %v2204_v38  ;;  %vm2471_vm7 = vcmp.ge.f32.partialorder %v2423_v12, 0.0  ;;  %v10498_v15 = vmul.f32 0.5, %v2204_v38 }
 0x4d3   :  { %v2568_v54 = vand.u32 2147483647, %v2424_v26  ;;  %v10440_v20 = vmul.f32 0.70710677, %v2206_v10  ;;  %vm2472_vm10 = vcmp.ge.f32.partialorder %v2424_v26, 0.0  ;;  %v10496_v63 = vsel %vm2471_vm7, 1.0, %v15364_v40 }
 0x4d4   :  { %v2615_v14 = vmul.f32 0.3275911, %v2567_v55  ;;  %v2570_v13 = vand.u32 2147483647, %v10436_v39  ;;  %v3191_v42 = vsub.f32 0.0, %v2567_v55  ;;  %v10505_v44 = vsel %vm2472_vm10, 1.0, %v15364_v40 }
 0x4d5   :  { %v2616_v47 = vmul.f32 0.3275911, %v2568_v54  ;;  %v2209_v36 = vpop.f32.mrb[24].mxu1  ;;  %v10443_v28 = vand.u32 2147483647, %v10440_v20  ;;  %v3192_v33 = vsub.f32 0.0, %v2568_v54 }
 0x4d6   :  { %v2663_v16 = vadd.f32 1.0, %v2615_v14  ;;  %v2618_v35 = vmul.f32 0.3275911, %v2570_v13  ;;  %v2211_v45 = vpop.f32.mrb[25].mxu1  ;;  %v10452_v1 = vadd.f32 %v2209_v36, %v10446_v18  ;;  %v3194_v17 = vsub.f32 0.0, %v2570_v13 }
 0x4d7   :  { %v2664_v25 = vadd.f32 1.0, %v2616_v47  ;;  %v2213_v58 = vpop.f32.mrb[26].mxu1  ;;  %v2619_v19 = vmul.f32 0.3275911, %v10443_v28  ;;  %v10455_v24 = vadd.f32 %v2211_v45, %v10446_v18  ;;  %v3239_v6 = vmul.f32 %v3191_v42, %v2567_v55 }
 0x4d8   :  { %8682 = vrcp.f32 %v2663_v16  ;;  %v2666_v50 = vadd.f32 1.0, %v2618_v35  ;;  %v2215_v52 = vpop.f32.mrb[27].mxu1  ;;  %v10461_v4 = vadd.f32 %v2213_v58, %v10449_v0  ;;  %v10465_v51 = vmul.f32 0.70710677, %v10452_v1 }
 0x4d9   :  { %8684 = vrcp.f32 %v2664_v25  ;;  %v2667_v5 = vadd.f32 1.0, %v2619_v19  ;;  %v10470_v2 = vmul.f32 0.70710677, %v10455_v24  ;;  %v10507_v59 = vmul.f32 0.5, %v2206_v10 }
 0x4da   :  { %8686 = vrcp.f32 %v2666_v50  ;;  %v10475_v48 = vand.u32 2147483647, %v10465_v51  ;;  %v10478_v61 = vmul.f32 0.70710677, %v10461_v4  ;;  %v3240_v23 = vmul.f32 %v3192_v33, %v2568_v54 }
 0x4db   :  { %8688 = vrcp.f32 %v2667_v5  ;;  %v10490_v53 = vand.u32 2147483647, %v10470_v2  ;;  %v3242_v37 = vmul.f32 %v3194_v17, %v2570_v13  ;;  %v10519_v55 = vadd.f32 %v2215_v52, %v10449_v0 }
 0x4dc   :  { %v2621_v30 = vmul.f32 0.3275911, %v10475_v48  ;;  %v10511_v27 = vand.u32 2147483647, %v10478_v61  ;;  %v3287_v14 = vmul.f32 1.442695, %v3239_v6 }
 0x4dd   :  { %v10467_v7 = vpop.f32.mrb[28].mxu1  ;;  %v2622_v56 = vmul.f32 0.3275911, %v10490_v53  ;;  %vm2474_vm11 = vcmp.ge.f32.partialorder %v10436_v39, 0.0  ;;  %v3195_v13 = vsub.f32 0.0, %v10443_v28  ;;  %vm2475_vm13 = vcmp.ge.f32.partialorder %v10440_v20, 0.0 }
 0x4de   :  { %v10472_v41 = vpop.f32.mrb[29].mxu1  ;;  %v2669_v12 = vadd.f32 1.0, %v2621_v30  ;;  %v2624_v26 = vmul.f32 0.3275911, %v10511_v27  ;;  %v3289_v45 = vmul.f32 1.442695, %v3240_v23 }
 0x4df   :  { %v10480_v62 = vpop.f32.mrb[30].mxu1  ;;  %v2670_v32 = vadd.f32 1.0, %v2622_v56  ;;  %v10540_v5 = vsel %vm2474_vm11, 1.0, %v15364_v40  ;;  %v3293_v42 = vmul.f32 1.442695, %v3242_v37  ;;  %v3243_v39 = vmul.f32 %v3195_v13, %v10443_v28 }
 0x4e0   :  { %v10492_v21 = vpop.f32.mrb[31].mxu1  ;;  %8690 = vrcp.f32 %v2669_v12  ;;  %v2672_v36 = vadd.f32 1.0, %v2624_v26  ;;  %v10543_v33 = vmul.f32 0.70710677, %v10519_v55  ;;  %v10565_v13 = vmul.f32 0.5, %v10455_v24 }
 0x4e1   :  { %8692 = vrcp.f32 %v2670_v32  ;;  %v10556_v32 = vmul.f32 0.5, %v10452_v1  ;;  %v3197_v24 = vsub.f32 0.0, %v10475_v48  ;;  %vm2477_vm14 = vcmp.ge.f32.partialorder %v10465_v51, 0.0 }
 0x4e2   :  { %v10501_v57 = vpop.eup %8682  ;;  %8694 = vrcp.f32 %v2672_v36  ;;  %v10559_v26 = vand.u32 2147483647, %v10543_v33  ;;  %vm2478_vm15 = vcmp.ge.f32.partialorder %v10470_v2, 0.0  ;;  %vm2480_vm1 = vcmp.ge.f32.partialorder %v10478_v61, 0.0 }
 0x4e3   :  { %v10513_v9 = vpop.eup %8684  ;;  %v2759_v49 = vmul.f32 1.0614054, %v10501_v57  ;;  %8696 = vpow2.f32 %v3287_v14  ;;  %vm2481_vm2 = vcmp.ge.f32.partialorder %v10543_v33, 0.0 }
 0x4e4   :  { %v2760_v38 = vmul.f32 1.0614054, %v10513_v9  ;;  %v10524_v16 = vpop.eup %8686  ;;  %8698 = vpow2.f32 %v3289_v45  ;;  %v3295_v45 = vmul.f32 1.442695, %v3243_v39 }
 0x4e5   :  { %v2807_v10 = vadd.f32 -1.4531521, %v2759_v49  ;;  %v10522_v47 = vpop.f32.mrb[32].mxu1  ;;  %v2762_v58 = vmul.f32 1.0614054, %v10524_v16  ;;  %v10534_v52 = vpop.eup %8688  ;;  %v10549_v49 = vsel %vm2475_vm13, 1.0, %v15364_v40  ;;  %8700 = vpow2.f32 %v3293_v42 }
 0x4e6   :  { %v2808_v54 = vadd.f32 -1.4531521, %v2760_v38  ;;  %v10527_v25 = vpop.f32.mrb[33].mxu1  ;;  %v2763_v20 = vmul.f32 1.0614054, %v10534_v52 }
 0x4e7   :  { %v2855_v35 = vmul.f32 %v10501_v57, %v2807_v10  ;;  %v10532_v50 = vpop.f32.mrb[34].mxu1  ;;  %v2810_v30 = vadd.f32 -1.4531521, %v2762_v58  ;;  %v10561_v10 = vpop.permute.xlu1 %2043  ;;  %v2625_v58 = vmul.f32 0.3275911, %v10559_v26 }
 0x4e8   :  { %v2856_v19 = vmul.f32 %v10513_v9, %v2808_v54  ;;  %v10545_v17 = vpop.f32.mrb[35].mxu1  ;;  %v2811_v12 = vadd.f32 -1.4531521, %v2763_v20  ;;  %v10572_v1 = vadd.f32 %v10467_v7, %v10561_v10  ;;  %v10586_v7 = vmul.f32 0.5, %v10461_v4 }
 0x4e9   :  { %v2903_v6 = vadd.f32 1.4214138, %v2855_v35  ;;  %v2858_v37 = vmul.f32 %v10524_v16, %v2810_v30  ;;  %v10649_v2 = vadd.f32 %v10472_v41, %v10561_v10 }
 0x4ea   :  { %v2904_v56 = vadd.f32 1.4214138, %v2856_v19  ;;  %v2859_v28 = vmul.f32 %v10534_v52, %v2811_v12  ;;  %v10574_v19 = vpop.eup %8690 }
 0x4eb   :  { %v2951_v23 = vmul.f32 %v10501_v57, %v2903_v6  ;;  %v2906_v54 = vadd.f32 1.4214138, %v2858_v37  ;;  %v2673_v37 = vadd.f32 1.0, %v2625_v58  ;;  %v3245_v58 = vmul.f32 %v3197_v24, %v10475_v48 }
 0x4ec   :  { %v2952_v38 = vmul.f32 %v10513_v9, %v2904_v56  ;;  %v2907_v30 = vadd.f32 1.4214138, %v2859_v28  ;;  %v10581_v56 = vpop.eup %8692 }
 0x4ed   :  { %v2999_v14 = vadd.f32 -0.28449672, %v2951_v23  ;;  %v10567_v36 = vpop.f32.mrb[36].mxu1  ;;  %v2954_v6 = vmul.f32 %v10524_v16, %v2906_v54  ;;  %v2765_v23 = vmul.f32 1.0614054, %v10574_v19  ;;  %8702 = vrcp.f32 %v2673_v37  ;;  %v10596_v3 = vpop.eup %8694 }
 0x4ee   :  { %15435 = vst [vmem:[#allocation8_spill] sm:$0xff] %v10567_v36  ;;  %v3000_v35 = vadd.f32 -0.28449672, %v2952_v38  ;;  %v10579_v20 = vpop.f32.mrb[37].mxu1  ;;  %v2955_v54 = vmul.f32 %v10534_v52, %v2907_v30  ;;  %v2766_v28 = vmul.f32 1.0614054, %v10581_v56  ;;  %v8697_v30 = vpop.eup %8696  ;;  %8704 = vpow2.f32 %v3295_v45 }
 0x4ef   :  { %v3047_v42 = vmul.f32 %v10501_v57, %v2999_v14  ;;  %15436 = vst [vmem:[#allocation9_spill] sm:$0xff] %v10579_v20  ;;  %v10588_v12 = vpop.f32.mrb[38].mxu1  ;;  %v3002_v14 = vadd.f32 -0.28449672, %v2954_v6  ;;  %v2813_v31 = vadd.f32 -1.4531521, %v2765_v23  ;;  %v8699_v46 = vpop.eup %8698 }
 0x4f0   :  { %v3048_v39 = vmul.f32 %v10513_v9, %v3000_v35  ;;  %15437 = vst [vmem:[#allocation10_spill] sm:$0xff] %v10588_v12  ;;  %v10594_v35 = vmul.f32 0.70710677, %v10572_v1  ;;  %v2814_v40 = vadd.f32 -1.4531521, %v2766_v28  ;;  %v10601_v6 = vpop.f32.mrb[39].mxu1  ;;  %v8701_v28 = vpop.eup %8700 }
 0x4f1   :  { %v3095_v38 = vadd.f32 0.2548296, %v3047_v42  ;;  %v3050_v4 = vmul.f32 %v10524_v16, %v3002_v14  ;;  %v3198_v42 = vsub.f32 0.0, %v10490_v53  ;;  %15438 = vst [vmem:[#allocation11_spill] sm:$0xff] %v10601_v6  ;;  %v2861_v11 = vmul.f32 %v10574_v19, %v2813_v31 }
 0x4f2   :  { %v3096_v22 = vadd.f32 0.2548296, %v3048_v39  ;;  %v2768_v23 = vmul.f32 1.0614054, %v10596_v3  ;;  %v3200_v37 = vsub.f32 0.0, %v10511_v27  ;;  %v2862_v48 = vmul.f32 %v10581_v56, %v2814_v40 }
 0x4f3   :  { %v3143_v12 = vmul.f32 %v10501_v57, %v3095_v38  ;;  %v3098_v29 = vadd.f32 0.2548296, %v3050_v4  ;;  %v3003_v14 = vadd.f32 -0.28449672, %v2955_v54  ;;  %v2909_v20 = vadd.f32 1.4214138, %v2861_v11 }
 0x4f4   :  { %v2816_v6 = vadd.f32 -1.4531521, %v2768_v23  ;;  %v10611_v39 = vand.u32 2147483647, %v10594_v35  ;;  %v3299_v31 = vmul.f32 1.442695, %v3245_v58  ;;  %v3246_v36 = vmul.f32 %v3198_v42, %v10490_v53 }
 0x4f5   :  { %v10608_v24 = vpop.f32.mrb[40].mxu1  ;;  %v2910_v0 = vadd.f32 1.4214138, %v2862_v48  ;;  %v2957_v57 = vmul.f32 %v10574_v19, %v2909_v20  ;;  %v3248_v40 = vmul.f32 %v3200_v37, %v10511_v27  ;;  %v3383_v4 = vmul.f32 %v8697_v30, %v3143_v12 }
 0x4f6   :  { %15439 = vst [vmem:[#allocation12_spill] sm:$0xff] %v10608_v24  ;;  %v10614_v34 = vpop.f32.mrb[8].mxu0  ;;  %v2864_v38 = vmul.f32 %v10596_v3, %v2816_v6  ;;  %v2627_v54 = vmul.f32 0.3275911, %v10611_v39  ;;  %v3144_v23 = vmul.f32 %v10513_v9, %v3096_v22  ;;  %v3051_v45 = vmul.f32 %v10534_v52, %v3003_v14  ;;  %v10635_v12 = vpop.f32.mrb[41].mxu1 }
 0x4f7   :  { %v10620_v11 = vpop.f32.mrb[9].mxu0  ;;  %v2958_v58 = vmul.f32 %v10581_v56, %v2910_v0  ;;  %v3146_v42 = vmul.f32 %v10524_v16, %v3098_v29  ;;  %v3005_v20 = vadd.f32 -0.28449672, %v2957_v57  ;;  %v15440_v27 = vmov -1.0   ;;  %15441 = vst [vmem:[#allocation13_spill] sm:$0xff] %v10635_v12  ;;  %v10637_v0 = vpop.eup %8702 }
 0x4f8   :  { %v10625_v53 = vpop.f32.mrb[10].mxu0  ;;  %v2912_v48 = vadd.f32 1.4214138, %v2864_v38  ;;  %v2675_v6 = vadd.f32 1.0, %v2627_v54  ;;  %v10633_v37 = vsel %vm2477_vm14, 1.0, %v15440_v27  ;;  %8706 = vpow2.f32 %v3299_v31 }
 0x4f9   :  { %v10628_v24 = vpop.f32.mrb[11].mxu0  ;;  %v3006_v22 = vadd.f32 -0.28449672, %v2958_v58  ;;  %v3301_v9 = vmul.f32 1.442695, %v3246_v36  ;;  %v3053_v30 = vmul.f32 %v10574_v19, %v3005_v20  ;;  %v3431_v16 = vsub.f32 1.0, %v3383_v4 }
 0x4fa   :  { %v2960_v29 = vmul.f32 %v10596_v3, %v2912_v48  ;;  %8708 = vrcp.f32 %v2675_v6  ;;  %v3384_v14 = vmul.f32 %v8699_v46, %v3144_v23  ;;  %v3099_v57 = vadd.f32 0.2548296, %v3051_v45  ;;  %v8705_v23 = vpop.eup %8704 }
 0x4fb   :  { %v3305_v51 = vmul.f32 1.442695, %v3248_v40  ;;  %v3386_v38 = vmul.f32 %v8701_v28, %v3146_v42  ;;  %v3054_v31 = vmul.f32 %v10581_v56, %v3006_v22  ;;  %v2769_v36 = vmul.f32 1.0614054, %v10637_v0 }
 0x4fc   :  { %v3008_v54 = vadd.f32 -0.28449672, %v2960_v29  ;;  %v3101_v58 = vadd.f32 0.2548296, %v3053_v30  ;;  %v10645_v12 = vsel %vm2478_vm15, 1.0, %v15440_v27  ;;  %8710 = vpow2.f32 %v3301_v9 }
 0x4fd   :  { %v2817_v28 = vadd.f32 -1.4531521, %v2769_v36  ;;  %v3201_v40 = vsub.f32 0.0, %v10559_v26  ;;  %v3479_v45 = vmul.f32 %v3431_v16, %v10496_v63  ;;  %v3432_v42 = vsub.f32 1.0, %v3384_v14 }
 0x4fe   :  { %v10651_v20 = vpop.f32.mrb[12].mxu0  ;;  %v3056_v46 = vmul.f32 %v10596_v3, %v3008_v54  ;;  %8712 = vpow2.f32 %v3305_v51  ;;  %v3434_v48 = vsub.f32 1.0, %v3386_v38  ;;  %v3147_v6 = vmul.f32 %v10534_v52, %v3099_v57 }
 0x4ff   :  { %v10656_v4 = vpop.f32.mrb[13].mxu0  ;;  %v3102_v22 = vadd.f32 0.2548296, %v3054_v31  ;;  %v2865_v9 = vmul.f32 %v10637_v0, %v2817_v28  ;;  %v3149_v29 = vmul.f32 %v10574_v19, %v3101_v58  ;;  %v10670_v63 = vsel %vm2480_vm1, 1.0, %v15440_v27  ;;  %v10693_v58 = vpop.permute.xlu0 %2048 }
 0x500   :  { %15442 = vst [vmem:[#allocation14_spill] sm:$0xff] %v10656_v4  ;;  %v10660_v41 = vpop.f32.mrb[14].mxu0  ;;  %v10673_v16 = vmul.f32 0.5, %v10519_v55  ;;  %v10676_v14 = vmul.f32 0.70710677, %v10649_v2  ;;  %v3249_v57 = vmul.f32 %v3201_v40, %v10559_v26  ;;  %v10680_v38 = vmul.f32 0.5, %v10572_v1 }
 0x501   :  { %15443 = vst [vmem:[#allocation15_spill] sm:$0xff] %v10660_v41  ;;  %v10664_v30 = vpop.f32.mrb[15].mxu0  ;;  %v3104_v51 = vadd.f32 0.2548296, %v3056_v46  ;;  %v2913_v52 = vadd.f32 1.4214138, %v2865_v9  ;;  %v3480_v54 = vmul.f32 %v3432_v42, %v10505_v44  ;;  %v3482_v26 = vmul.f32 %v3434_v48, %v10540_v5 }
 0x502   :  { %15444 = vst [vmem:[#allocation16_spill] sm:$0xff] %v10664_v30  ;;  %v8707_v31 = vpop.eup %8706  ;;  %v3527_v19 = vadd.f32 1.0, %v3479_v45  ;;  %v10686_v61 = vsel %vm2481_vm2, 1.0, %v15440_v27  ;;  %v10689_v55 = vand.u32 2147483647, %v10676_v14  ;;  %v3387_v1 = vmul.f32 %v8705_v23, %v3147_v6  ;;  %v10707_v23 = vpop.f32.mrb[42].mxu1 }
 0x503   :  { %v3150_v46 = vmul.f32 %v10581_v56, %v3102_v22  ;;  %v2961_v28 = vmul.f32 %v10637_v0, %v2913_v52  ;;  %v3389_v44 = vmul.f32 %v8707_v31, %v3149_v29  ;;  %v10702_v45 = vadd.f32 %v10480_v62, %v10693_v58 }
 0x504   :  { %v10691_v36 = vpop.eup %8708  ;;  %v2628_v33 = vmul.f32 0.3275911, %v10689_v55  ;;  %v3152_v42 = vmul.f32 %v10596_v3, %v3104_v51  ;;  %v3307_v9 = vmul.f32 1.442695, %v3249_v57  ;;  %vm2483_vm3 = vcmp.ge.f32.partialorder %v10594_v35, 0.0 }
 0x505   :  { %v2771_v40 = vmul.f32 1.0614054, %v10691_v36  ;;  %v3203_v5 = vsub.f32 0.0, %v10611_v39  ;;  %v3528_v48 = vadd.f32 1.0, %v3480_v54  ;;  %v3009_v6 = vadd.f32 -0.28449672, %v2961_v28 }
 0x506   :  { %v8711_v56 = vpop.eup %8710  ;;  %v2676_v29 = vadd.f32 1.0, %v2628_v33  ;;  %v3575_v52 = vmul.f32 %v3527_v19, %v10482_v8  ;;  %v3530_v31 = vadd.f32 1.0, %v3482_v26  ;;  %v3435_v30 = vsub.f32 1.0, %v3387_v1 }
 0x507   :  { %v2819_v22 = vadd.f32 -1.4531521, %v2771_v40  ;;  %v3390_v62 = vmul.f32 %v8711_v56, %v3150_v46  ;;  %v3437_v4 = vsub.f32 1.0, %v3389_v44  ;;  %v10712_v51 = vmul.f32 0.70710677, %v10702_v45  ;;  %v10737_v40 = vpop.permute.xlu1 %2053 }
 0x508   :  { %v8713_v41 = vpop.eup %8712  ;;  %8714 = vrcp.f32 %v2676_v29  ;;  %v10717_v54 = vsel %vm2483_vm3, 1.0, %v15440_v27  ;;  %v3251_v8 = vmul.f32 %v3203_v5, %v10611_v39  ;;  %v3057_v19 = vmul.f32 %v10637_v0, %v3009_v6  ;;  %v10735_v39 = vpop.f32.mrb[43].mxu1 }
 0x509   :  { %v2867_v3 = vmul.f32 %v10691_v36, %v2819_v22  ;;  %v3392_v57 = vmul.f32 %v8713_v41, %v3152_v42  ;;  %8716 = vpow2.f32 %v3307_v9  ;;  %v10722_v1 = vand.u32 2147483647, %v10712_v51 }
 0x50a   :  { %v10726_v46 = vadd.f32 %v10492_v21, %v10693_v58  ;;  %v10729_v41 = vmul.f32 %v10485_v60, %v3575_v52  ;;  %v10732_v28 = vmul.f32 %v3528_v48, %v10487_v43  ;;  %v3483_v35 = vmul.f32 %v3435_v30, %v10549_v49 }
 0x50b   :  { %v2915_v26 = vadd.f32 1.4214138, %v2867_v3  ;;  %v3438_v44 = vsub.f32 1.0, %v3390_v62  ;;  %v3578_v33 = vmul.f32 %v3530_v31, %v10498_v15  ;;  %v3485_v42 = vmul.f32 %v3437_v4, %v10633_v37 }
 0x50c   :  { %15445 = vst [vmem:[#allocation17_spill] sm:$0xff] %v10729_v41  ;;  %15446 = vst [vmem:[#allocation18_spill] sm:$0xff] %v10732_v28  ;;  %v2630_v9 = vmul.f32 0.3275911, %v10722_v1  ;;  %v3311_v5 = vmul.f32 1.442695, %v3251_v8  ;;  %v10749_v49 = vadd.f32 %v10522_v47, %v10737_v40  ;;  %v10757_v29 = vadd.f32 %v10527_v25, %v10737_v40 }
 0x50d   :  { %v2963_v21 = vmul.f32 %v10691_v36, %v2915_v26  ;;  %v3204_v56 = vsub.f32 0.0, %v10689_v55  ;;  %v10745_v43 = vmul.f32 0.70710677, %v10726_v46  ;;  %v3440_v30 = vsub.f32 1.0, %v3392_v57  ;;  %v10771_v57 = vpop.f32.mrb[16].mxu0 }
 0x50e   :  { %v3105_v48 = vadd.f32 0.2548296, %v3057_v19  ;;  %v2678_v15 = vadd.f32 1.0, %v2630_v9  ;;  %v3531_v22 = vadd.f32 1.0, %v3483_v35  ;;  %v3486_v37 = vmul.f32 %v3438_v44, %v10645_v12 }
 0x50f   :  { %v3011_v6 = vadd.f32 -0.28449672, %v2963_v21  ;;  %v10753_v4 = vand.u32 2147483647, %v10745_v43  ;;  %v10760_v52 = vmul.f32 %v10485_v60, %v3578_v33  ;;  %v3533_v31 = vadd.f32 1.0, %v3485_v42 }
 0x510   :  { %v10763_v47 = vmul.f32 0.5, %v10649_v2  ;;  %8718 = vrcp.f32 %v2678_v15  ;;  %vm2484_vm4 = vcmp.ge.f32.partialorder %v10676_v14, 0.0  ;;  %v3252_v62 = vmul.f32 %v3204_v56, %v10689_v55  ;;  %v10796_v15 = vpop.f32.mrb[17].mxu0 }
 0x511   :  { %15447 = vst [vmem:[#allocation19_spill] sm:$0xff] %v10760_v52  ;;  %v2631_v12 = vmul.f32 0.3275911, %v10753_v4  ;;  %v10769_v3 = vmul.f32 0.70710677, %v10749_v49  ;;  %v3488_v8 = vmul.f32 %v3440_v30, %v10670_v63  ;;  %v3153_v19 = vmul.f32 %v10637_v0, %v3105_v48 }
 0x512   :  { %v10773_v25 = vpop.eup %8714  ;;  %v3059_v2 = vmul.f32 %v10691_v36, %v3011_v6  ;;  %8720 = vpow2.f32 %v3311_v5  ;;  %v3534_v35 = vadd.f32 1.0, %v3486_v37  ;;  %v10780_v33 = vmul.f32 0.70710677, %v10757_v29 }
 0x513   :  { %v8717_v26 = vpop.eup %8716  ;;  %v2772_v55 = vmul.f32 1.0614054, %v10773_v25  ;;  %v2679_v44 = vadd.f32 1.0, %v2631_v12  ;;  %v10783_v42 = vmul.f32 %v3531_v22, %v10507_v59  ;;  %v3581_v21 = vmul.f32 %v3533_v31, %v10556_v32  ;;  %v10798_v32 = vpop.permute.xlu0 %2058 }
 0x514   :  { %v10789_v0 = vsel %vm2484_vm4, 1.0, %v15440_v27  ;;  %v10792_v63 = vand.u32 2147483647, %v10769_v3  ;;  %v3313_v5 = vmul.f32 1.442695, %v3252_v62  ;;  %v3206_v56 = vsub.f32 0.0, %v10722_v1 }
 0x515   :  { %15448 = vst [vmem:[#allocation20_spill] sm:$0xff] %v10783_v42  ;;  %v2820_v9 = vadd.f32 -1.4531521, %v2772_v55  ;;  %8722 = vrcp.f32 %v2679_v44  ;;  %v3536_v30 = vadd.f32 1.0, %v3488_v8  ;;  %v3393_v48 = vmul.f32 %v8717_v26, %v3153_v19 }
 0x516   :  { %v3107_v6 = vadd.f32 0.2548296, %v3059_v2  ;;  %v2633_v59 = vmul.f32 0.3275911, %v10792_v63  ;;  %v10801_v14 = vmul.f32 %v3534_v35, %v10565_v13  ;;  %v10805_v37 = vmul.f32 0.5, %v10702_v45 }
 0x517   :  { %v2868_v22 = vmul.f32 %v10773_v25, %v2820_v9  ;;  %v10808_v31 = vand.u32 2147483647, %v10780_v33  ;;  %v10811_v62 = vmul.f32 %v10485_v60, %v3581_v21  ;;  %vm2486_vm5 = vcmp.ge.f32.partialorder %v10712_v51, 0.0 }
 0x518   :  { %15449 = vst [vmem:[#allocation21_spill] sm:$0xff] %v10801_v14  ;;  %v2681_v12 = vadd.f32 1.0, %v2633_v59  ;;  %v10816_v8 = vadd.f32 %v10532_v50, %v10798_v32  ;;  %8724 = vpow2.f32 %v3313_v5  ;;  %v3254_v19 = vmul.f32 %v3206_v56, %v10722_v1 }
 0x519   :  { %15450 = vst [vmem:[#allocation22_spill] sm:$0xff] %v10811_v62  ;;  %v2916_v13 = vadd.f32 1.4214138, %v2868_v22  ;;  %v2634_v45 = vmul.f32 0.3275911, %v10808_v31  ;;  %v3584_v26 = vmul.f32 %v3536_v30, %v10586_v7  ;;  %v3441_v35 = vsub.f32 1.0, %v3393_v48 }
 0x51a   :  { %v10820_v2 = vpop.eup %8718  ;;  %v3155_v55 = vmul.f32 %v10691_v36, %v3107_v6  ;;  %8726 = vrcp.f32 %v2681_v12  ;;  %v10825_v51 = vsel %vm2486_vm5, 1.0, %v15440_v27  ;;  %v10830_v21 = vadd.f32 %v10545_v17, %v10798_v32 }
 0x51b   :  { %v2774_v50 = vmul.f32 1.0614054, %v10820_v2  ;;  %v2682_v44 = vadd.f32 1.0, %v2634_v45  ;;  %v2964_v9 = vmul.f32 %v10773_v25, %v2916_v13  ;;  %vm2487_vm6 = vcmp.ge.f32.partialorder %v10745_v43, 0.0  ;;  %v10848_v43 = vpop.f32.mrb[44].mxu1 }
 0x51c   :  { %v8721_v1 = vpop.eup %8720  ;;  %v3207_v7 = vsub.f32 0.0, %v10753_v4  ;;  %v10836_v36 = vmul.f32 0.70710677, %v10816_v8  ;;  %v3317_v56 = vmul.f32 1.442695, %v3254_v19  ;;  %v10839_v30 = vmul.f32 0.5, %v10726_v46 }
 0x51d   :  { %v2822_v5 = vadd.f32 -1.4531521, %v2774_v50  ;;  %8728 = vrcp.f32 %v2682_v44  ;;  %v10842_v48 = vmul.f32 %v10485_v60, %v3584_v26  ;;  %v3489_v17 = vmul.f32 %v3441_v35, %v10686_v61 }
 0x51e   :  { %v3395_v6 = vmul.f32 %v8721_v1, %v3155_v55  ;;  %v10846_v59 = vand.u32 2147483647, %v10836_v36  ;;  %v10854_v13 = vsel %vm2487_vm6, 1.0, %v15440_v27  ;;  %v10857_v46 = vmul.f32 0.5, %v10749_v49 }
 0x51f   :  { %15451 = vst [vmem:[#allocation23_spill] sm:$0xff] %v10842_v48  ;;  %v10850_v22 = vpop.eup %8722  ;;  %v2870_v12 = vmul.f32 %v10820_v2, %v2822_v5  ;;  %v10860_v19 = vmul.f32 0.70710677, %v10830_v21  ;;  %v3012_v61 = vadd.f32 -0.28449672, %v2964_v9  ;;  %v3255_v26 = vmul.f32 %v3207_v7, %v10753_v4 }
 0x520   :  { %v2775_v45 = vmul.f32 1.0614054, %v10850_v22  ;;  %v2636_v35 = vmul.f32 0.3275911, %v10846_v59  ;;  %8730 = vpow2.f32 %v3317_v56  ;;  %v3209_v50 = vsub.f32 0.0, %v10792_v63 }
 0x521   :  { %v2918_v55 = vadd.f32 1.4214138, %v2870_v12  ;;  %v10867_v44 = vmul.f32 0.5, %v10757_v29  ;;  %v3537_v1 = vadd.f32 1.0, %v3489_v17  ;;  %v3443_v49 = vsub.f32 1.0, %v3395_v6  ;;  %v10882_v12 = vpop.f32.mrb[18].mxu0 }
 0x522   :  { %v2823_v5 = vadd.f32 -1.4531521, %v2775_v45  ;;  %v2684_v48 = vadd.f32 1.0, %v2636_v35  ;;  %v8725_v62 = vpop.eup %8724  ;;  %vm2489_vm7 = vcmp.ge.f32.partialorder %v10769_v3, 0.0  ;;  %v10872_v4 = vand.u32 2147483647, %v10860_v19 }
 0x523   :  { %v2966_v9 = vmul.f32 %v10820_v2, %v2918_v55  ;;  %v10876_v7 = vadd.f32 %v10614_v34, %v10446_v18  ;;  %v3060_v29 = vmul.f32 %v10773_v25, %v3012_v61  ;;  %v3319_v6 = vmul.f32 1.442695, %v3255_v26  ;;  %15452 = vst [vmem:[#allocation24_spill] sm:$0xff] %v10882_v12 }
 0x524   :  { %v10878_v56 = vpop.eup %8726  ;;  %v2871_v17 = vmul.f32 %v10850_v22, %v2823_v5  ;;  %8732 = vrcp.f32 %v2684_v48  ;;  %v3257_v35 = vmul.f32 %v3209_v50, %v10792_v63  ;;  %vm2490_vm9 = vcmp.ge.f32.partialorder %v10780_v33, 0.0 }
 0x525   :  { %v2777_v45 = vmul.f32 1.0614054, %v10878_v56  ;;  %v2637_v55 = vmul.f32 0.3275911, %v10872_v4  ;;  %v3491_v34 = vmul.f32 %v3443_v49, %v10717_v54  ;;  %v3014_v18 = vadd.f32 -0.28449672, %v2966_v9 }
 0x526   :  { %v2919_v14 = vadd.f32 1.4214138, %v2871_v17  ;;  %v3210_v61 = vsub.f32 0.0, %v10808_v31  ;;  %v10893_v48 = vmul.f32 %v3537_v1, %v10673_v16  ;;  %v10896_v41 = vmul.f32 0.70710677, %v10876_v7 }
 0x527   :  { %v10890_v52 = vpop.eup %8728  ;;  %v2825_v26 = vadd.f32 -1.4531521, %v2777_v45  ;;  %v2685_v5 = vadd.f32 1.0, %v2637_v55  ;;  %v3108_v63 = vadd.f32 0.2548296, %v3060_v29  ;;  %8734 = vpow2.f32 %v3319_v6 }
 0x528   :  { %15453 = vst [vmem:[#allocation25_spill] sm:$0xff] %v10893_v48  ;;  %v2967_v50 = vmul.f32 %v10850_v22, %v2919_v14  ;;  %v2778_v54 = vmul.f32 1.0614054, %v10890_v52  ;;  %v10903_v49 = vsel %vm2489_vm7, 1.0, %v15440_v27  ;;  %v3323_v16 = vmul.f32 1.442695, %v3257_v35 }
 0x529   :  { %v2873_v9 = vmul.f32 %v10878_v56, %v2825_v26  ;;  %8736 = vrcp.f32 %v2685_v5  ;;  %v3539_v1 = vadd.f32 1.0, %v3491_v34  ;;  %v3062_v17 = vmul.f32 %v10820_v2, %v3014_v18  ;;  %v15454_v5 = vld [vmem:[#allocation4_spill] sm:$0xff] }
 0x52a   :  { %v2826_v45 = vadd.f32 -1.4531521, %v2778_v54  ;;  %v3258_v29 = vmul.f32 %v3210_v61, %v10808_v31  ;;  %v8731_v55 = vpop.eup %8730  ;;  %v10911_v6 = vsel %vm2490_vm9, 1.0, %v15440_v27  ;;  %v10914_v3 = vmul.f32 0.5, %v10816_v8  ;;  %v10928_v8 = vpop.f32.mrb[45].mxu1 }
 0x52b   :  { %v2921_v14 = vadd.f32 1.4214138, %v2873_v9  ;;  %v10917_v26 = vand.u32 2147483647, %v10896_v41  ;;  %v3156_v35 = vmul.f32 %v10773_v25, %v3108_v63  ;;  %v3015_v34 = vadd.f32 -0.28449672, %v2967_v50 }
 0x52c   :  { %v2874_v18 = vmul.f32 %v10890_v52, %v2826_v45  ;;  %v3212_v31 = vsub.f32 0.0, %v10846_v59  ;;  %8738 = vpow2.f32 %v3323_v16  ;;  %v10926_v54 = vadd.f32 %v10620_v11, %v15454_v5  ;;  %15455 = vst [vmem:[#allocation4_spill] sm:$0xff] %v10928_v8 }
 0x52d   :  { %v2969_v61 = vmul.f32 %v10878_v56, %v2921_v14  ;;  %v2623_v33 = vmul.f32 0.3275911, %v10917_v26  ;;  %v3587_v25 = vmul.f32 %v3539_v1, %v10680_v38  ;;  %v3110_v63 = vadd.f32 0.2548296, %v3062_v17 }
 0x52e   :  { %v10930_v9 = vpop.eup %8732  ;;  %v2922_v50 = vadd.f32 1.4214138, %v2874_v18  ;;  %v3325_v45 = vmul.f32 1.442695, %v3258_v29  ;;  %vm2492_vm10 = vcmp.ge.f32.partialorder %v10836_v36, 0.0  ;;  %v3396_v42 = vmul.f32 %v8725_v62, %v3156_v35  ;;  %v15458_v36 = vld [vmem:[#allocation8_spill] sm:$0xff] }
 0x52f   :  { %v3017_v48 = vadd.f32 -0.28449672, %v2969_v61  ;;  %v2780_v16 = vmul.f32 1.0614054, %v10930_v9  ;;  %v2671_v14 = vadd.f32 1.0, %v2623_v33  ;;  %v3063_v28 = vmul.f32 %v10850_v22, %v3015_v34  ;;  %v10957_v61 = vpop.permute.xlu1 %2063 }
 0x530   :  { %v2970_v11 = vmul.f32 %v10890_v52, %v2922_v50  ;;  %v3260_v5 = vmul.f32 %v3212_v31, %v10846_v59  ;;  %v10940_v38 = vmul.f32 0.70710677, %v10926_v54  ;;  %v10943_v29 = vmul.f32 0.5, %v10830_v21  ;;  %v10955_v31 = vpop.f32.mrb[19].mxu0 }
 0x531   :  { %v3065_v8 = vmul.f32 %v10878_v56, %v3017_v48  ;;  %v2828_v12 = vadd.f32 -1.4531521, %v2780_v16  ;;  %8740 = vrcp.f32 %v2671_v14  ;;  %v8735_v1 = vpop.eup %8734  ;;  %v3213_v62 = vsub.f32 0.0, %v10872_v4  ;;  %15456 = vst [vmem:[#allocation26_spill] sm:$0xff] %v10955_v31 }
 0x532   :  { %v3018_v17 = vadd.f32 -0.28449672, %v2970_v11  ;;  %8742 = vpow2.f32 %v3325_v45  ;;  %v3158_v34 = vmul.f32 %v10820_v2, %v3110_v63  ;;  %v10952_v48 = vsel %vm2492_vm10, 1.0, %v15440_v27 }
 0x533   :  { %v10946_v35 = vpop.eup %8736  ;;  %v3113_v59 = vadd.f32 0.2548296, %v3065_v8  ;;  %v2876_v18 = vmul.f32 %v10930_v9, %v2828_v12  ;;  %v10960_v21 = vmul.f32 %v10485_v60, %v3587_v25  ;;  %v3444_v33 = vsub.f32 1.0, %v3396_v42 }
 0x534   :  { %v3329_v50 = vmul.f32 1.442695, %v3260_v5  ;;  %v2781_v45 = vmul.f32 1.0614054, %v10946_v35  ;;  %v3111_v2 = vadd.f32 0.2548296, %v3063_v28  ;;  %v10968_v16 = vadd.f32 %v15458_v36, %v10957_v61 }
 0x535   :  { %15457 = vst [vmem:[#allocation27_spill] sm:$0xff] %v10960_v21  ;;  %v2924_v8 = vadd.f32 1.4214138, %v2876_v18  ;;  %v10964_v63 = vand.u32 2147483647, %v10940_v38  ;;  %v3161_v12 = vmul.f32 %v10878_v56, %v3113_v59  ;;  %v3066_v14 = vmul.f32 %v10890_v52, %v3018_v17 }
 0x536   :  { %v2829_v11 = vadd.f32 -1.4531521, %v2781_v45  ;;  %v3261_v25 = vmul.f32 %v3213_v62, %v10872_v4  ;;  %v8739_v42 = vpop.eup %8738  ;;  %v3398_v5 = vmul.f32 %v8731_v55, %v3158_v34  ;;  %vm2493_vm11 = vcmp.ge.f32.partialorder %v10860_v19, 0.0 }
 0x537   :  { %v2972_v21 = vmul.f32 %v10930_v9, %v2924_v8  ;;  %v2617_v28 = vmul.f32 0.3275911, %v10964_v63  ;;  %v3492_v18 = vmul.f32 %v3444_v33, %v10789_v0  ;;  %8744 = vpow2.f32 %v3329_v50 }
 0x538   :  { %v2877_v36 = vmul.f32 %v10946_v35, %v2829_v11  ;;  %vm2479_vm13 = vcmp.ge.f32.partialorder %v10896_v41, 0.0  ;;  %v3159_v56 = vmul.f32 %v10850_v22, %v3111_v2  ;;  %v10981_v4 = vmul.f32 0.70710677, %v10968_v16  ;;  %v10993_v22 = vpop.f32.mrb[46].mxu1 }
 0x539   :  { %v3020_v17 = vadd.f32 -0.28449672, %v2972_v21  ;;  %v2665_v59 = vadd.f32 1.0, %v2617_v28  ;;  %v3401_v55 = vmul.f32 %v8739_v42, %v3161_v12  ;;  %v3114_v62 = vadd.f32 0.2548296, %v3066_v14 }
 0x53a   :  { %v2925_v34 = vadd.f32 1.4214138, %v2877_v36  ;;  %v3331_v45 = vmul.f32 1.442695, %v3261_v25  ;;  %v3446_v31 = vsub.f32 1.0, %v3398_v5  ;;  %v10988_v0 = vsel %vm2493_vm11, 1.0, %v15440_v27 }
 0x53b   :  { %v10983_v8 = vpop.eup %8740  ;;  %v10991_v33 = vmul.f32 0.5, %v10876_v7  ;;  %8746 = vrcp.f32 %v2665_v59  ;;  %v3540_v50 = vadd.f32 1.0, %v3492_v18  ;;  %v3199_v14 = vsub.f32 0.0, %v10917_v26 }
 0x53c   :  { %v8743_v21 = vpop.eup %8742  ;;  %v2973_v2 = vmul.f32 %v10946_v35, %v2925_v34  ;;  %v2767_v12 = vmul.f32 1.0614054, %v10983_v8  ;;  %v3399_v11 = vmul.f32 %v8735_v1, %v3159_v56  ;;  %v3068_v25 = vmul.f32 %v10930_v9, %v3020_v17 }
 0x53d   :  { %v11002_v19 = vsel %vm2479_vm13, 1.0, %v15440_v27  ;;  %v11005_v7 = vand.u32 2147483647, %v10981_v4  ;;  %v3449_v42 = vsub.f32 1.0, %v3401_v55  ;;  %v3162_v5 = vmul.f32 %v10890_v52, %v3114_v62  ;;  %v15460_v55 = vld [vmem:[#allocation6_spill] sm:$0xff]  ;;  %v11022_v62 = vpop.f32.mrb[47].mxu1 }
 0x53e   :  { %8748 = vpow2.f32 %v3331_v45  ;;  %v2815_v28 = vadd.f32 -1.4531521, %v2767_v12  ;;  %v3494_v18 = vmul.f32 %v3446_v31, %v10825_v51  ;;  %v3021_v36 = vadd.f32 -0.28449672, %v2973_v2  ;;  %15461 = vst [vmem:[#allocation6_spill] sm:$0xff] %v11022_v62  ;;  %v15463_v62 = vld [vmem:[#allocation5_spill] sm:$0xff] }
 0x53f   :  { %v11010_v1 = vmul.f32 0.5, %v10926_v54  ;;  %v2639_v56 = vmul.f32 0.3275911, %v11005_v7  ;;  %v11014_v41 = vmul.f32 %v3540_v50, %v10763_v47  ;;  %v3247_v59 = vmul.f32 %v3199_v14, %v10917_v26 }
 0x540   :  { %v2863_v17 = vmul.f32 %v10983_v8, %v2815_v28  ;;  %v11020_v52 = vadd.f32 %v10625_v53, %v15460_v55  ;;  %v3447_v51 = vsub.f32 1.0, %v3399_v11  ;;  %v3116_v31 = vadd.f32 0.2548296, %v3068_v25  ;;  %v15462_v25 = vld [vmem:[#allocation9_spill] sm:$0xff] }
 0x541   :  { %15459 = vst [vmem:[#allocation8_spill] sm:$0xff] %v11014_v41  ;;  %vm2473_vm14 = vcmp.ge.f32.partialorder %v10940_v38, 0.0  ;;  %v2687_v54 = vadd.f32 1.0, %v2639_v56  ;;  %v8745_v34 = vpop.eup %8744  ;;  %v3497_v45 = vmul.f32 %v3449_v42, %v10903_v49  ;;  %v3402_v47 = vmul.f32 %v8743_v21, %v3162_v5 }
 0x542   :  { %v2911_v50 = vadd.f32 1.4214138, %v2863_v17  ;;  %v3193_v2 = vsub.f32 0.0, %v10964_v63  ;;  %v3542_v12 = vadd.f32 1.0, %v3494_v18  ;;  %v3069_v26 = vmul.f32 %v10946_v35, %v3021_v36 }
 0x543   :  { %8750 = vrcp.f32 %v2687_v54  ;;  %v11029_v53 = vmul.f32 0.70710677, %v11020_v52  ;;  %v3303_v11 = vmul.f32 1.442695, %v3247_v59  ;;  %v11033_v38 = vsel %vm2473_vm14, 1.0, %v15440_v27 }
 0x544   :  { %v2959_v14 = vmul.f32 %v10983_v8, %v2911_v50  ;;  %v11037_v49 = vadd.f32 %v15462_v25, %v10957_v61  ;;  %v3495_v42 = vmul.f32 %v3447_v51, %v10854_v13  ;;  %v3164_v5 = vmul.f32 %v10930_v9, %v3116_v31  ;;  %v11054_v51 = vpop.f32.mrb[20].mxu0 }
 0x545   :  { %v11039_v21 = vpop.eup %8746  ;;  %v11044_v28 = vmul.f32 0.5, %v10968_v16  ;;  %v2578_v18 = vand.u32 2147483647, %v11029_v53  ;;  %v3545_v36 = vadd.f32 1.0, %v3497_v45  ;;  %v3450_v56 = vsub.f32 1.0, %v3402_v47 }
 0x546   :  { %v2761_v17 = vmul.f32 1.0614054, %v11039_v21  ;;  %v3241_v59 = vmul.f32 %v3193_v2, %v10964_v63  ;;  %v3590_v55 = vmul.f32 %v3542_v12, %v10805_v37  ;;  %v3117_v54 = vadd.f32 0.2548296, %v3069_v26 }
 0x547   :  { %v3007_v50 = vadd.f32 -0.28449672, %v2959_v14  ;;  %v2626_v25 = vmul.f32 0.3275911, %v2578_v18  ;;  %8752 = vpow2.f32 %v3303_v11  ;;  %v3215_v9 = vsub.f32 0.0, %v11005_v7 }
 0x548   :  { %v8749_v41 = vpop.eup %8748  ;;  %v2809_v13 = vadd.f32 -1.4531521, %v2761_v17  ;;  %v11052_v16 = vmul.f32 0.70710677, %v11037_v49  ;;  %v3543_v31 = vadd.f32 1.0, %v3495_v42  ;;  %v3404_v45 = vmul.f32 %v8745_v34, %v3164_v5  ;;  %v11086_v17 = vpop.f32.mrb[21].mxu0 }
 0x549   :  { %v2674_v47 = vadd.f32 1.0, %v2626_v25  ;;  %v11058_v63 = vadd.f32 %v10628_v24, %v15463_v62  ;;  %v3498_v37 = vmul.f32 %v3450_v56, %v10911_v6  ;;  %v3291_v12 = vmul.f32 1.442695, %v3241_v59 }
 0x54a   :  { %v2857_v2 = vmul.f32 %v11039_v21, %v2809_v13  ;;  %vm2495_vm15 = vcmp.ge.f32.partialorder %v10981_v4, 0.0  ;;  %v11064_v26 = vmul.f32 %v10485_v60, %v3590_v55  ;;  %v3593_v14 = vmul.f32 %v3545_v36, %v10857_v46 }
 0x54b   :  { %v3165_v11 = vmul.f32 %v10946_v35, %v3117_v54  ;;  %8754 = vrcp.f32 %v2674_v47  ;;  %v3055_v34 = vmul.f32 %v10983_v8, %v3007_v50  ;;  %v3263_v24 = vmul.f32 %v3215_v9, %v11005_v7  ;;  %v11092_v50 = vpop.permute.xlu0 %2068 }
 0x54c   :  { %15464 = vst [vmem:[#allocation9_spill] sm:$0xff] %v11064_v26  ;;  %v2905_v42 = vadd.f32 1.4214138, %v2857_v2  ;;  %v11071_v6 = vand.u32 2147483647, %v11052_v16  ;;  %v11076_v4 = vmul.f32 %v3543_v31, %v10839_v30  ;;  %v3452_v5 = vsub.f32 1.0, %v3404_v45 }
 0x54d   :  { %v11073_v62 = vpop.eup %8750  ;;  %v11079_v56 = vsel %vm2495_vm15, 1.0, %v15440_v27  ;;  %v11082_v46 = vmul.f32 0.70710677, %v11058_v63  ;;  %v3546_v35 = vadd.f32 1.0, %v3498_v37  ;;  %8756 = vpow2.f32 %v3291_v12 }
 0x54e   :  { %15465 = vst [vmem:[#allocation5_spill] sm:$0xff] %v11076_v4  ;;  %v2953_v36 = vmul.f32 %v11039_v21, %v2905_v42  ;;  %v2783_v7 = vmul.f32 1.0614054, %v11073_v62  ;;  %v3405_v59 = vmul.f32 %v8749_v41, %v3165_v11  ;;  %v3202_v55 = vsub.f32 0.0, %v2578_v18  ;;  %v15467_v41 = vld [vmem:[#allocation10_spill] sm:$0xff] }
 0x54f   :  { %v2640_v30 = vmul.f32 0.3275911, %v11071_v6  ;;  %v11090_v54 = vand.u32 2147483647, %v11082_v46  ;;  %v11095_v25 = vmul.f32 %v10485_v60, %v3593_v14  ;;  %v3103_v13 = vadd.f32 0.2548296, %v3055_v34 }
 0x550   :  { %v2831_v9 = vadd.f32 -1.4531521, %v2783_v7  ;;  %v3335_v31 = vmul.f32 1.442695, %v3263_v24  ;;  %v3500_v45 = vmul.f32 %v3452_v5, %v10952_v48  ;;  %v11101_v2 = vadd.f32 %v15467_v41, %v11092_v50  ;;  %v15468_v14 = vld [vmem:[#allocation11_spill] sm:$0xff] }
 0x551   :  { %15466 = vst [vmem:[#allocation28_spill] sm:$0xff] %v11095_v25  ;;  %v2688_v47 = vadd.f32 1.0, %v2640_v30  ;;  %v2620_v37 = vmul.f32 0.3275911, %v11090_v54  ;;  %v8753_v12 = vpop.eup %8752  ;;  %v3001_v11 = vadd.f32 -0.28449672, %v2953_v36  ;;  %v11107_v34 = vadd.f32 %v15468_v14, %v11092_v50 }
 0x552   :  { %v2879_v42 = vmul.f32 %v11073_v62, %v2831_v9  ;;  %vm2482_vm1 = vcmp.ge.f32.partialorder %v11029_v53, 0.0  ;;  %v3453_v24 = vsub.f32 1.0, %v3405_v59  ;;  %v3250_v7 = vmul.f32 %v3202_v55, %v2578_v18 }
 0x553   :  { %8758 = vrcp.f32 %v2688_v47  ;;  %v2668_v48 = vadd.f32 1.0, %v2620_v37  ;;  %v11110_v5 = vmul.f32 %v3546_v35, %v10867_v44  ;;  %v3151_v30 = vmul.f32 %v10983_v8, %v3103_v13 }
 0x554   :  { %v2927_v41 = vadd.f32 1.4214138, %v2879_v42  ;;  %v11114_v36 = vmul.f32 0.5, %v11020_v52  ;;  %v3548_v53 = vadd.f32 1.0, %v3500_v45  ;;  %8760 = vpow2.f32 %v3335_v31  ;;  %v11130_v52 = vpop.f32.mrb[48].mxu1 }
 0x555   :  { %15469 = vst [vmem:[#allocation10_spill] sm:$0xff] %v11110_v5  ;;  %v11116_v9 = vpop.eup %8754  ;;  %v11119_v14 = vsel %vm2482_vm1, 1.0, %v15440_v27  ;;  %v11122_v18 = vmul.f32 0.70710677, %v11101_v2  ;;  %v3049_v59 = vmul.f32 %v11039_v21, %v3001_v11  ;;  %v11128_v35 = vmul.f32 0.70710677, %v11107_v34 }
 0x556   :  { %v2975_v44 = vmul.f32 %v11073_v62, %v2927_v41  ;;  %v2770_v8 = vmul.f32 1.0614054, %v11116_v9  ;;  %15470 = vst [vmem:[#allocation11_spill] sm:$0xff] %v11130_v52  ;;  %v3501_v55 = vmul.f32 %v3453_v24, %v10988_v0  ;;  %v3309_v13 = vmul.f32 1.442695, %v3250_v7 }
 0x557   :  { %8762 = vrcp.f32 %v2668_v48  ;;  %v11134_v31 = vand.u32 2147483647, %v11122_v18  ;;  %v8757_v45 = vpop.eup %8756  ;;  %v3391_v47 = vmul.f32 %v8753_v12, %v3151_v30  ;;  %v11137_v11 = vmul.f32 0.5, %v11037_v49  ;;  %v11154_v30 = vpop.f32.mrb[22].mxu0 }
 0x558   :  { %v2818_v37 = vadd.f32 -1.4531521, %v2770_v8  ;;  %v3216_v42 = vsub.f32 0.0, %v11071_v6  ;;  %v3596_v41 = vmul.f32 %v3548_v53, %v10914_v3  ;;  %v3023_v25 = vadd.f32 -0.28449672, %v2975_v44  ;;  %15471 = vst [vmem:[#allocation29_spill] sm:$0xff] %v11154_v30 }
 0x559   :  { %v11142_v5 = vmul.f32 0.5, %v11058_v63  ;;  %v2642_v0 = vmul.f32 0.3275911, %v11134_v31  ;;  %v3097_v24 = vadd.f32 0.2548296, %v3049_v59  ;;  %vm2496_vm2 = vcmp.ge.f32.partialorder %v11052_v16, 0.0 }
 0x55a   :  { %v2866_v7 = vmul.f32 %v11116_v9, %v2818_v37  ;;  %v11148_v12 = vand.u32 2147483647, %v11128_v35  ;;  %v3549_v49 = vadd.f32 1.0, %v3501_v55  ;;  %8764 = vpow2.f32 %v3309_v13  ;;  %v11208_v30 = vpop.f32.mrb[49].mxu1 }
 0x55b   :  { %v2690_v48 = vadd.f32 1.0, %v2642_v0  ;;  %v11152_v3 = vadd.f32 %v10651_v20, %v10737_v40  ;;  %v3439_v63 = vsub.f32 1.0, %v3391_v47  ;;  %v3264_v59 = vmul.f32 %v3216_v42, %v11071_v6 }
 0x55c   :  { %v2914_v53 = vadd.f32 1.4214138, %v2866_v7  ;;  %v2643_v44 = vmul.f32 0.3275911, %v11148_v12  ;;  %v11161_v16 = vmul.f32 %v10485_v60, %v3596_v41  ;;  %v3071_v55 = vmul.f32 %v11073_v62, %v3023_v25 }
 0x55d   :  { %v11158_v8 = vpop.eup %8758  ;;  %v11165_v13 = vsel %vm2496_vm2, 1.0, %v15440_v27  ;;  %8766 = vrcp.f32 %v2690_v48  ;;  %v3145_v20 = vmul.f32 %v11039_v21, %v3097_v24  ;;  %v3196_v6 = vsub.f32 0.0, %v11090_v54  ;;  %v15474_v24 = vld [vmem:[#allocation14_spill] sm:$0xff] }
 0x55e   :  { %15472 = vst [vmem:[#allocation30_spill] sm:$0xff] %v11161_v16  ;;  %v2962_v40 = vmul.f32 %v11116_v9, %v2914_v53  ;;  %v2784_v47 = vmul.f32 1.0614054, %v11158_v8  ;;  %v8761_v37 = vpop.eup %8760  ;;  %v11172_v42 = vmul.f32 %v3549_v49, %v10943_v29  ;;  %vm2476_vm3 = vcmp.ge.f32.partialorder %v11082_v46, 0.0  ;;  %15475 = vst [vmem:[#allocation14_spill] sm:$0xff] %v11208_v30 }
 0x55f   :  { %v2691_v41 = vadd.f32 1.0, %v2643_v44  ;;  %v11176_v25 = vmul.f32 0.70710677, %v11152_v3  ;;  %v3487_v0 = vmul.f32 %v3439_v63, %v11002_v19  ;;  %v3337_v21 = vmul.f32 1.442695, %v3264_v59 }
 0x560   :  { %15473 = vst [vmem:[#allocation31_spill] sm:$0xff] %v11172_v42  ;;  %v2832_v7 = vadd.f32 -1.4531521, %v2784_v47  ;;  %v11181_v48 = vadd.f32 %v15474_v24, %v10561_v10  ;;  %v3119_v16 = vadd.f32 0.2548296, %v3071_v55  ;;  %v3385_v49 = vmul.f32 %v8757_v45, %v3145_v20 }
 0x561   :  { %v11183_v53 = vpop.eup %8762  ;;  %v3010_v26 = vadd.f32 -0.28449672, %v2962_v40  ;;  %8768 = vrcp.f32 %v2691_v41  ;;  %v11186_v29 = vand.u32 2147483647, %v11176_v25  ;;  %v3244_v19 = vmul.f32 %v3196_v6, %v11090_v54 }
 0x562   :  { %v2880_v44 = vmul.f32 %v11158_v8, %v2832_v7  ;;  %v2764_v42 = vmul.f32 1.0614054, %v11183_v53  ;;  %v11194_v10 = vsel %vm2476_vm3, 1.0, %v15440_v27  ;;  %v11197_v63 = vmul.f32 0.5, %v11101_v2 }
 0x563   :  { %v3218_v59 = vsub.f32 0.0, %v11134_v31  ;;  %v2635_v55 = vmul.f32 0.3275911, %v11186_v29  ;;  %v3535_v40 = vadd.f32 1.0, %v3487_v0  ;;  %8770 = vpow2.f32 %v3337_v21 }
 0x564   :  { %v2928_v45 = vadd.f32 1.4214138, %v2880_v44  ;;  %v2812_v20 = vadd.f32 -1.4531521, %v2764_v42  ;;  %v8765_v47 = vpop.eup %8764  ;;  %v3167_v41 = vmul.f32 %v11073_v62, %v3119_v16  ;;  %v3058_v54 = vmul.f32 %v11116_v9, %v3010_v26 }
 0x565   :  { %v2683_v6 = vadd.f32 1.0, %v2635_v55  ;;  %v11204_v46 = vmul.f32 0.70710677, %v11181_v48  ;;  %v3433_v7 = vsub.f32 1.0, %v3385_v49  ;;  %v3297_v4 = vmul.f32 1.442695, %v3244_v19 }
 0x566   :  { %v2976_v2 = vmul.f32 %v11158_v8, %v2928_v45  ;;  %v2860_v24 = vmul.f32 %v11183_v53, %v2812_v20  ;;  %v3266_v42 = vmul.f32 %v3218_v59, %v11134_v31  ;;  %v11214_v62 = vmul.f32 0.5, %v11107_v34  ;;  %v11226_v34 = vpop.permute.xlu1 %2073 }
 0x567   :  { %v11210_v0 = vpop.eup %8766  ;;  %8772 = vrcp.f32 %v2683_v6  ;;  %v11217_v26 = vand.u32 2147483647, %v11204_v46  ;;  %v11220_v16 = vmul.f32 %v3535_v40, %v10991_v33  ;;  %vm2498_vm4 = vcmp.ge.f32.partialorder %v11122_v18, 0.0  ;;  %v11230_v33 = vpop.f32.mrb[23].mxu0 }
 0x568   :  { %v2908_v21 = vadd.f32 1.4214138, %v2860_v24  ;;  %vm2499_vm5 = vcmp.ge.f32.partialorder %v11128_v35, 0.0  ;;  %v3407_v49 = vmul.f32 %v8761_v37, %v3167_v41  ;;  %v3106_v44 = vadd.f32 0.2548296, %v3058_v54  ;;  %15477 = vst [vmem:[#allocation33_spill] sm:$0xff] %v11230_v33 }
 0x569   :  { %15476 = vst [vmem:[#allocation32_spill] sm:$0xff] %v11220_v16  ;;  %v2786_v19 = vmul.f32 1.0614054, %v11210_v0  ;;  %v2629_v31 = vmul.f32 0.3275911, %v11217_v26  ;;  %v3481_v59 = vmul.f32 %v3433_v7, %v11033_v38  ;;  %8774 = vpow2.f32 %v3297_v4  ;;  %v15478_v41 = vld [vmem:[#allocation12_spill] sm:$0xff] }
 0x56a   :  { %v3024_v55 = vadd.f32 -0.28449672, %v2976_v2  ;;  %v2956_v45 = vmul.f32 %v11183_v53, %v2908_v21  ;;  %v3341_v6 = vmul.f32 1.442695, %v3266_v42  ;;  %v11236_v54 = vadd.f32 %v15478_v41, %v11226_v34 }
 0x56b   :  { %v11232_v40 = vpop.eup %8768  ;;  %v2834_v20 = vadd.f32 -1.4531521, %v2786_v19  ;;  %v2677_v37 = vadd.f32 1.0, %v2629_v31  ;;  %v11241_v24 = vsel %vm2498_vm4, 1.0, %v15440_v27  ;;  %v11246_v38 = vsel %vm2499_vm5, 1.0, %v15440_v27 }
 0x56c   :  { %v2787_v4 = vmul.f32 1.0614054, %v11232_v40  ;;  %v3219_v7 = vsub.f32 0.0, %v11148_v12  ;;  %v3455_v2 = vsub.f32 1.0, %v3407_v49  ;;  %v3154_v42 = vmul.f32 %v11116_v9, %v3106_v44 }
 0x56d   :  { %v2882_v21 = vmul.f32 %v11210_v0, %v2834_v20  ;;  %8776 = vrcp.f32 %v2677_v37  ;;  %v8771_v19 = vpop.eup %8770  ;;  %v3072_v18 = vmul.f32 %v11158_v8, %v3024_v55  ;;  %v3004_v31 = vadd.f32 -0.28449672, %v2956_v45  ;;  %v11263_v55 = vpop.f32.mrb[50].mxu1 }
 0x56e   :  { %v2835_v41 = vadd.f32 -1.4531521, %v2787_v4  ;;  %v11254_v16 = vmul.f32 0.5, %v11152_v3  ;;  %v3529_v35 = vadd.f32 1.0, %v3481_v59  ;;  %8778 = vpow2.f32 %v3341_v6  ;;  %15479 = vst [vmem:[#allocation12_spill] sm:$0xff] %v11263_v55 }
 0x56f   :  { %v2930_v33 = vadd.f32 1.4214138, %v2882_v21  ;;  %v11257_v30 = vmul.f32 0.70710677, %v11236_v54  ;;  %v3267_v9 = vmul.f32 %v3219_v7, %v11148_v12  ;;  %vm2491_vm6 = vcmp.ge.f32.partialorder %v11176_v25, 0.0 }
 0x570   :  { %v2883_v49 = vmul.f32 %v11232_v40, %v2835_v41  ;;  %v3211_v44 = vsub.f32 0.0, %v11186_v29  ;;  %v3503_v3 = vmul.f32 %v3455_v2, %v11079_v56  ;;  %v3394_v59 = vmul.f32 %v8765_v47, %v3154_v42  ;;  %v15481_v56 = vld [vmem:[#allocation15_spill] sm:$0xff] }
 0x571   :  { %v11265_v45 = vpop.eup %8772  ;;  %v2978_v20 = vmul.f32 %v11210_v0, %v2930_v33  ;;  %v11270_v6 = vand.u32 2147483647, %v11257_v30  ;;  %v3120_v37 = vadd.f32 0.2548296, %v3072_v18  ;;  %v3052_v4 = vmul.f32 %v11183_v53, %v3004_v31 }
 0x572   :  { %v2931_v12 = vadd.f32 1.4214138, %v2883_v49  ;;  %v2779_v7 = vmul.f32 1.0614054, %v11265_v45  ;;  %v11275_v21 = vmul.f32 %v3529_v35, %v11010_v1  ;;  %v11280_v47 = vadd.f32 %v15481_v56, %v10798_v32 }
 0x573   :  { %v3026_v41 = vadd.f32 -0.28449672, %v2978_v20  ;;  %v2645_v55 = vmul.f32 0.3275911, %v11270_v6  ;;  %v8775_v33 = vpop.eup %8774  ;;  %v3343_v42 = vmul.f32 1.442695, %v3267_v9  ;;  %v3259_v31 = vmul.f32 %v3211_v44, %v11186_v29 }
 0x574   :  { %15480 = vst [vmem:[#allocation34_spill] sm:$0xff] %v11275_v21  ;;  %v2979_v2 = vmul.f32 %v11232_v40, %v2931_v12  ;;  %v2827_v18 = vadd.f32 -1.4531521, %v2779_v7  ;;  %v3551_v49 = vadd.f32 1.0, %v3503_v3  ;;  %v11288_v1 = vsel %vm2491_vm6, 1.0, %v15440_v27 }
 0x575   :  { %v3074_v52 = vmul.f32 %v11210_v0, %v3026_v41  ;;  %v2693_v35 = vadd.f32 1.0, %v2645_v55  ;;  %v3442_v20 = vsub.f32 1.0, %v3394_v59  ;;  %v3168_v32 = vmul.f32 %v11158_v8, %v3120_v37  ;;  %v11301_v59 = vpop.f32.mrb[51].mxu1 }
 0x576   :  { %v3100_v56 = vadd.f32 0.2548296, %v3052_v4  ;;  %v2875_v21 = vmul.f32 %v11265_v45, %v2827_v18  ;;  %v3027_v9 = vadd.f32 -0.28449672, %v2979_v2  ;;  %v11295_v29 = vmul.f32 0.5, %v11181_v48 }
 0x577   :  { %v11292_v12 = vpop.eup %8776  ;;  %8780 = vrcp.f32 %v2693_v35  ;;  %v11298_v44 = vmul.f32 0.70710677, %v11280_v47  ;;  %v3327_v3 = vmul.f32 1.442695, %v3259_v31  ;;  %v3205_v55 = vsub.f32 0.0, %v11217_v26  ;;  %v15482_v35 = vld [vmem:[#allocation13_spill] sm:$0xff] }
 0x578   :  { %8782 = vpow2.f32 %v3343_v42  ;;  %v2923_v25 = vadd.f32 1.4214138, %v2875_v21  ;;  %v8779_v8 = vpop.eup %8778  ;;  %v3599_v37 = vmul.f32 %v3551_v49, %v11044_v28  ;;  %v3122_v4 = vadd.f32 0.2548296, %v3074_v52 }
 0x579   :  { %vm2485_vm7 = vcmp.ge.f32.partialorder %v11204_v46, 0.0  ;;  %v2773_v48 = vmul.f32 1.0614054, %v11292_v12  ;;  %v3490_v7 = vmul.f32 %v3442_v20, %v11119_v14  ;;  %v3408_v41 = vmul.f32 %v8771_v19, %v3168_v32 }
 0x57a   :  { %v3148_v2 = vmul.f32 %v11183_v53, %v3100_v56  ;;  %v2971_v21 = vmul.f32 %v11265_v45, %v2923_v25  ;;  %v3075_v42 = vmul.f32 %v11232_v40, %v3027_v9  ;;  %v2590_v31 = vand.u32 2147483647, %v11298_v44 }
 0x57b   :  { %v2821_v18 = vadd.f32 -1.4531521, %v2773_v48  ;;  %v11313_v28 = vadd.f32 %v15482_v35, %v11226_v34  ;;  %8784 = vpow2.f32 %v3327_v3  ;;  %v11316_v46 = vsel %vm2485_vm7, 1.0, %v15440_v27 }
 0x57c   :  { %v3019_v52 = vadd.f32 -0.28449672, %v2971_v21  ;;  %v3253_v14 = vmul.f32 %v3205_v55, %v11217_v26  ;;  %v11320_v53 = vmul.f32 %v10485_v60, %v3599_v37  ;;  %v3170_v19 = vmul.f32 %v11210_v0, %v3122_v4 }
 0x57d   :  { %v2869_v49 = vmul.f32 %v11292_v12, %v2821_v18  ;;  %v2638_v20 = vmul.f32 0.3275911, %v2590_v31  ;;  %v3456_v32 = vsub.f32 1.0, %v3408_v41  ;;  %v3388_v56 = vmul.f32 %v8775_v33, %v3148_v2 }
 0x57e   :  { %v3221_v9 = vsub.f32 0.0, %v11270_v6  ;;  %v11326_v25 = vmul.f32 0.70710677, %v11313_v28  ;;  %v3538_v3 = vadd.f32 1.0, %v3490_v7  ;;  %v3123_v48 = vadd.f32 0.2548296, %v3075_v42 }
 0x57f   :  { %v2917_v21 = vadd.f32 1.4214138, %v2869_v49  ;;  %v2686_v35 = vadd.f32 1.0, %v2638_v20  ;;  %v3067_v26 = vmul.f32 %v11265_v45, %v3019_v52  ;;  %v3315_v55 = vmul.f32 1.442695, %v3253_v14 }
 0x580   :  { %v11330_v37 = vmul.f32 0.5, %v11236_v54  ;;  %v11333_v0 = vand.u32 2147483647, %v11326_v25  ;;  %v3410_v33 = vmul.f32 %v8779_v8, %v3170_v19  ;;  %vm2501_vm9 = vcmp.ge.f32.partialorder %v11257_v30, 0.0  ;;  %v15483_v19 = vld [vmem:[#allocation16_spill] sm:$0xff] }
 0x581   :  { %v11335_v4 = vpop.eup %8780  ;;  %v2965_v41 = vmul.f32 %v11292_v12, %v2917_v21  ;;  %8786 = vrcp.f32 %v2686_v35  ;;  %v3504_v2 = vmul.f32 %v3456_v32, %v11165_v13  ;;  %v3436_v42 = vsub.f32 1.0, %v3388_v56 }
 0x582   :  { %v8783_v7 = vpop.eup %8782  ;;  %v2789_v18 = vmul.f32 1.0614054, %v11335_v4  ;;  %v3269_v54 = vmul.f32 %v3221_v9, %v11270_v6  ;;  %v11343_v52 = vmul.f32 %v3538_v3, %v11114_v36  ;;  %v3171_v14 = vmul.f32 %v11232_v40, %v3123_v48  ;;  %v11354_v3 = vpop.permute.xlu0 %2078 }
 0x583   :  { %v2646_v8 = vmul.f32 0.3275911, %v11333_v0  ;;  %v11349_v49 = vadd.f32 %v15483_v19, %v10693_v58  ;;  %v3115_v30 = vadd.f32 0.2548296, %v3067_v26  ;;  %8788 = vpow2.f32 %v3315_v55 }
 0x584   :  { %v11352_v13 = vsel %vm2501_vm9, 1.0, %v15440_v27  ;;  %v2837_v20 = vadd.f32 -1.4531521, %v2789_v18  ;;  %v3458_v32 = vsub.f32 1.0, %v3410_v33  ;;  %v3013_v56 = vadd.f32 -0.28449672, %v2965_v41 }
 0x585   :  { %v3214_v6 = vsub.f32 0.0, %v2590_v31  ;;  %v2694_v9 = vadd.f32 1.0, %v2646_v8  ;;  %v8785_v36 = vpop.eup %8784  ;;  %v3552_v40 = vadd.f32 1.0, %v3504_v2  ;;  %v3484_v48 = vmul.f32 %v3436_v42, %v11194_v10 }
 0x586   :  { %v2885_v21 = vmul.f32 %v11335_v4, %v2837_v20  ;;  %v3347_v58 = vmul.f32 1.442695, %v3269_v54  ;;  %v3411_v35 = vmul.f32 %v8783_v7, %v3171_v14  ;;  %v11359_v26 = vmul.f32 0.70710677, %v11349_v49 }
 0x587   :  { %8790 = vrcp.f32 %v2694_v9  ;;  %v11363_v55 = vadd.f32 %v10707_v23, %v11354_v3  ;;  %v3163_v33 = vmul.f32 %v11265_v45, %v3115_v30  ;;  %v11367_v18 = vmul.f32 0.5, %v11280_v47 }
 0x588   :  { %v2933_v41 = vadd.f32 1.4214138, %v2885_v21  ;;  %vm2494_vm10 = vcmp.ge.f32.partialorder %v11298_v44, 0.0  ;;  %v3506_v10 = vmul.f32 %v3458_v32, %v11241_v24  ;;  %v3061_v7 = vmul.f32 %v11292_v12, %v3013_v56 }
 0x589   :  { %v3262_v2 = vmul.f32 %v3214_v6, %v2590_v31  ;;  %v11373_v42 = vand.u32 2147483647, %v11359_v26  ;;  %v11376_v54 = vmul.f32 %v3552_v40, %v11137_v11  ;;  %v3532_v23 = vadd.f32 1.0, %v3484_v48 }
 0x58a   :  { %v2981_v45 = vmul.f32 %v11335_v4, %v2933_v41  ;;  %8792 = vpow2.f32 %v3347_v58  ;;  %v3459_v47 = vsub.f32 1.0, %v3411_v35  ;;  %v11383_v24 = vmul.f32 0.70710677, %v11363_v55 }
 0x58b   :  { %v11379_v14 = vpop.eup %8786  ;;  %v2632_v44 = vmul.f32 0.3275911, %v11373_v42  ;;  %v11387_v31 = vadd.f32 %v10735_v39, %v11354_v3  ;;  %v3403_v8 = vmul.f32 %v8785_v36, %v3163_v33  ;;  %v11390_v11 = vsel %vm2494_vm10, 1.0, %v15440_v27 }
 0x58c   :  { %v2782_v19 = vmul.f32 1.0614054, %v11379_v14  ;;  %vm2502_vm11 = vcmp.ge.f32.partialorder %v11326_v25, 0.0  ;;  %v3554_v30 = vadd.f32 1.0, %v3506_v10  ;;  %v3109_v20 = vadd.f32 0.2548296, %v3061_v7 }
 0x58d   :  { %v3333_v32 = vmul.f32 1.442695, %v3262_v2  ;;  %v2680_v56 = vadd.f32 1.0, %v2632_v44  ;;  %v8789_v6 = vpop.eup %8788  ;;  %v11395_v9 = vmul.f32 %v3532_v23, %v11142_v5  ;;  %v3029_v40 = vadd.f32 -0.28449672, %v2981_v45 }
 0x58e   :  { %v2830_v48 = vadd.f32 -1.4531521, %v2782_v19  ;;  %v11398_v39 = vand.u32 2147483647, %v11383_v24  ;;  %v3507_v36 = vmul.f32 %v3459_v47, %v11246_v38  ;;  %v3222_v21 = vsub.f32 0.0, %v11333_v0 }
 0x58f   :  { %8794 = vrcp.f32 %v2680_v56  ;;  %v11403_v58 = vmul.f32 0.70710677, %v11387_v31  ;;  %v3451_v35 = vsub.f32 1.0, %v3403_v8  ;;  %v11407_v41 = vmul.f32 0.5, %v11313_v28 }
 0x590   :  { %v2878_v33 = vmul.f32 %v11379_v14, %v2830_v48  ;;  %v2648_v5 = vmul.f32 0.3275911, %v11398_v39  ;;  %v3602_v7 = vmul.f32 %v3554_v30, %v11197_v63  ;;  %v3157_v38 = vmul.f32 %v11292_v12, %v3109_v20 }
 0x591   :  { %v11410_v10 = vpop.eup %8790  ;;  %v11417_v2 = vsel %vm2502_vm11, 1.0, %v15440_v27  ;;  %v11420_v23 = vand.u32 2147483647, %v11403_v58  ;;  %v3077_v45 = vmul.f32 %v11335_v4, %v3029_v40  ;;  %v3555_v8 = vadd.f32 1.0, %v3507_v36 }
 0x592   :  { %v2926_v28 = vadd.f32 1.4214138, %v2878_v33  ;;  %v2790_v47 = vmul.f32 1.0614054, %v11410_v10  ;;  %v2696_v44 = vadd.f32 1.0, %v2648_v5  ;;  %8796 = vpow2.f32 %v3333_v32 }
 0x593   :  { %v3270_v63 = vmul.f32 %v3222_v21, %v11333_v0  ;;  %v2649_v12 = vmul.f32 0.3275911, %v11420_v23  ;;  %v3499_v25 = vmul.f32 %v3451_v35, %v11288_v1  ;;  %v3397_v56 = vmul.f32 %v8789_v6, %v3157_v38 }
 0x594   :  { %v8793_v19 = vpop.eup %8792  ;;  %v2974_v30 = vmul.f32 %v11379_v14, %v2926_v28  ;;  %v2838_v20 = vadd.f32 -1.4531521, %v2790_v47  ;;  %8798 = vrcp.f32 %v2696_v44  ;;  %v3208_v40 = vsub.f32 0.0, %v11373_v42 }
 0x595   :  { %v2697_v48 = vadd.f32 1.0, %v2649_v12  ;;  %v11431_v33 = vadd.f32 %v10771_v57, %v11226_v34  ;;  %v11434_v32 = vmul.f32 %v10485_v60, %v3602_v7  ;;  %v3125_v0 = vadd.f32 0.2548296, %v3077_v45 }
 0x596   :  { %v2886_v36 = vmul.f32 %v11410_v10, %v2838_v20  ;;  %v11438_v1 = vmul.f32 0.5, %v11349_v49  ;;  %v11441_v21 = vmul.f32 %v3555_v8, %v11214_v62  ;;  %v3349_v6 = vmul.f32 1.442695, %v3270_v63 }
 0x597   :  { %vm2488_vm13 = vcmp.ge.f32.partialorder %v11359_v26, 0.0  ;;  %v11445_v35 = vmul.f32 0.70710677, %v11431_v33  ;;  %v3547_v57 = vadd.f32 1.0, %v3499_v25  ;;  %v3022_v34 = vadd.f32 -0.28449672, %v2974_v30 }
 0x598   :  { %v2934_v5 = vadd.f32 1.4214138, %v2886_v36  ;;  %8800 = vrcp.f32 %v2697_v48  ;;  %v3445_v38 = vsub.f32 1.0, %v3397_v56  ;;  %v3256_v45 = vmul.f32 %v3208_v40, %v11373_v42  ;;  %v11486_v36 = vpop.permute.xlu1 %2083 }
 0x599   :  { %v11447_v7 = vpop.eup %8794  ;;  %v11451_v49 = vand.u32 2147483647, %v11445_v35  ;;  %v11455_v62 = vadd.f32 %v10796_v15, %v10957_v61  ;;  %v3173_v28 = vmul.f32 %v11335_v4, %v3125_v0  ;;  %v11460_v44 = vmul.f32 0.5, %v11363_v55 }
 0x59a   :  { %v2776_v47 = vmul.f32 1.0614054, %v11447_v7  ;;  %v3224_v8 = vsub.f32 0.0, %v11398_v39  ;;  %v2982_v63 = vmul.f32 %v11410_v10, %v2934_v5  ;;  %8802 = vpow2.f32 %v3349_v6 }
 0x59b   :  { %v11467_v42 = vsel %vm2488_vm13, 1.0, %v15440_v27  ;;  %v2647_v15 = vmul.f32 0.3275911, %v11451_v49  ;;  %v11471_v61 = vmul.f32 %v3547_v57, %v11254_v16  ;;  %v3070_v4 = vmul.f32 %v11379_v14, %v3022_v34 }
 0x59c   :  { %v2824_v12 = vadd.f32 -1.4531521, %v2776_v47  ;;  %vm2504_vm14 = vcmp.ge.f32.partialorder %v11383_v24, 0.0  ;;  %v8797_v55 = vpop.eup %8796  ;;  %v3493_v25 = vmul.f32 %v3445_v38, %v11316_v46  ;;  %v3321_v30 = vmul.f32 1.442695, %v3256_v45 }
 0x59d   :  { %15484 = vst [vmem:[#allocation15_spill] sm:$0xff] %v11471_v61  ;;  %v2695_v20 = vadd.f32 1.0, %v2647_v15  ;;  %v11477_v56 = vmul.f32 0.70710677, %v11455_v62  ;;  %v3413_v40 = vmul.f32 %v8793_v19, %v3173_v28  ;;  %v3272_v16 = vmul.f32 %v3224_v8, %v11398_v39 }
 0x59e   :  { %v11479_v26 = vpop.eup %8798  ;;  %v2872_v48 = vmul.f32 %v11447_v7, %v2824_v12  ;;  %v11484_v0 = vmul.f32 0.5, %v11387_v31  ;;  %v3030_v24 = vadd.f32 -0.28449672, %v2982_v63  ;;  %v11489_v46 = vsel %vm2504_vm14, 1.0, %v15440_v27 }
 0x59f   :  { %v2792_v6 = vmul.f32 1.0614054, %v11479_v26  ;;  %8804 = vrcp.f32 %v2695_v20  ;;  %v3118_v57 = vadd.f32 0.2548296, %v3070_v4  ;;  %v3225_v19 = vsub.f32 0.0, %v11420_v23 }
 0x5a0   :  { %v2920_v34 = vadd.f32 1.4214138, %v2872_v48  ;;  %v11495_v5 = vadd.f32 %v10848_v43, %v11486_v36  ;;  %v3541_v39 = vadd.f32 1.0, %v3493_v25  ;;  %8806 = vpow2.f32 %v3321_v30 }
 0x5a1   :  { %v2840_v31 = vadd.f32 -1.4531521, %v2792_v6  ;;  %v11498_v38 = vand.u32 2147483647, %v11477_v56  ;;  %v3461_v28 = vsub.f32 1.0, %v3413_v40  ;;  %vm2505_vm15 = vcmp.ge.f32.partialorder %v11403_v58, 0.0 }
 0x5a2   :  { %v11500_v45 = vpop.eup %8800  ;;  %v2968_v47 = vmul.f32 %v11447_v7, %v2920_v34  ;;  %v3353_v8 = vmul.f32 1.442695, %v3272_v16  ;;  %v3078_v63 = vmul.f32 %v11410_v10, %v3030_v24  ;;  %v3166_v12 = vmul.f32 %v11379_v14, %v3118_v57 }
 0x5a3   :  { %v2888_v15 = vmul.f32 %v11479_v26, %v2840_v31  ;;  %v2793_v43 = vmul.f32 1.0614054, %v11500_v45  ;;  %v2641_v4 = vmul.f32 0.3275911, %v11498_v38  ;;  %v3273_v30 = vmul.f32 %v3225_v19, %v11420_v23 }
 0x5a4   :  { %v3016_v25 = vadd.f32 -0.28449672, %v2968_v47  ;;  %v11511_v20 = vmul.f32 0.70710677, %v11495_v5  ;;  %v8803_v40 = vpop.eup %8802  ;;  %v11514_v48 = vmul.f32 %v3541_v39, %v11295_v29  ;;  %v3509_v34 = vmul.f32 %v3461_v28, %v11352_v13 }
 0x5a5   :  { %v2936_v16 = vadd.f32 1.4214138, %v2888_v15  ;;  %v2841_v24 = vadd.f32 -1.4531521, %v2793_v43  ;;  %v2689_v6 = vadd.f32 1.0, %v2641_v4  ;;  %8808 = vpow2.f32 %v3353_v8 }
 0x5a6   :  { %15485 = vst [vmem:[#allocation13_spill] sm:$0xff] %v11514_v48  ;;  %v11520_v14 = vsel %vm2505_vm15, 1.0, %v15440_v27  ;;  %v11523_v23 = vmul.f32 0.5, %v11431_v33  ;;  %v3126_v57 = vadd.f32 0.2548296, %v3078_v63  ;;  %v3406_v39 = vmul.f32 %v8797_v55, %v3166_v12  ;;  %v15486_v63 = vld [vmem:[#allocation24_spill] sm:$0xff] }
 0x5a7   :  { %v2984_v19 = vmul.f32 %v11479_v26, %v2936_v16  ;;  %v2889_v29 = vmul.f32 %v11500_v45, %v2841_v24  ;;  %8810 = vrcp.f32 %v2689_v6  ;;  %v3355_v31 = vmul.f32 1.442695, %v3273_v30 }
 0x5a8   :  { %v3223_v47 = vsub.f32 0.0, %v11451_v49  ;;  %v11529_v13 = vand.u32 2147483647, %v11511_v20  ;;  %v3064_v58 = vmul.f32 %v11447_v7, %v3016_v25  ;;  %v11536_v15 = vadd.f32 %v15486_v63, %v11354_v3 }
 0x5a9   :  { %v11531_v28 = vpop.eup %8804  ;;  %v3032_v8 = vadd.f32 -0.28449672, %v2984_v19  ;;  %v2937_v33 = vadd.f32 1.4214138, %v2889_v29  ;;  %vm2503_vm1 = vcmp.ge.f32.partialorder %v11445_v35, 0.0  ;;  %v11541_v43 = vmul.f32 0.5, %v11455_v62 }
 0x5aa   :  { %v2791_v55 = vmul.f32 1.0614054, %v11531_v28  ;;  %v2651_v4 = vmul.f32 0.3275911, %v11529_v13  ;;  %v8807_v12 = vpop.eup %8806  ;;  %v3557_v30 = vadd.f32 1.0, %v3509_v34  ;;  %v3174_v16 = vmul.f32 %v11410_v10, %v3126_v57  ;;  %v15487_v10 = vld [vmem:[#allocation4_spill] sm:$0xff] }
 0x5ab   :  { %v3080_v25 = vmul.f32 %v11479_v26, %v3032_v8  ;;  %v2985_v24 = vmul.f32 %v11500_v45, %v2937_v33  ;;  %v3454_v6 = vsub.f32 1.0, %v3406_v39  ;;  %8812 = vpow2.f32 %v3355_v31 }
 0x5ac   :  { %v2839_v3 = vadd.f32 -1.4531521, %v2791_v55  ;;  %v2699_v19 = vadd.f32 1.0, %v2651_v4  ;;  %v3112_v29 = vadd.f32 0.2548296, %v3064_v58  ;;  %v3271_v61 = vmul.f32 %v3223_v47, %v11451_v49 }
 0x5ad   :  { %v3033_v63 = vadd.f32 -0.28449672, %v2985_v24  ;;  %v11549_v62 = vmul.f32 0.70710677, %v11536_v15  ;;  %vm2497_vm2 = vcmp.ge.f32.partialorder %v11477_v56, 0.0  ;;  %v11555_v34 = vadd.f32 %v15487_v10, %v11486_v36 }
 0x5ae   :  { %v2887_v48 = vmul.f32 %v11531_v28, %v2839_v3  ;;  %8814 = vrcp.f32 %v2699_v19  ;;  %v3414_v57 = vmul.f32 %v8803_v40, %v3174_v16  ;;  %v3128_v39 = vadd.f32 0.2548296, %v3080_v25 }
 0x5af   :  { %v3081_v31 = vmul.f32 %v11500_v45, %v3033_v63  ;;  %v3217_v58 = vsub.f32 0.0, %v11498_v38  ;;  %v8809_v8 = vpop.eup %8808  ;;  %v3605_v49 = vmul.f32 %v3557_v30, %v11330_v37  ;;  %v11563_v47 = vsel %vm2503_vm1, 1.0, %v15440_v27 }
 0x5b0   :  { %v2935_v33 = vadd.f32 1.4214138, %v2887_v48  ;;  %v11566_v55 = vand.u32 2147483647, %v11549_v62  ;;  %v3502_v40 = vmul.f32 %v3454_v6, %v11390_v11  ;;  %v3160_v16 = vmul.f32 %v11447_v7, %v3112_v29 }
 0x5b1   :  { %v11568_v4 = vpop.eup %8810  ;;  %v3351_v25 = vmul.f32 1.442695, %v3271_v61  ;;  %v11575_v37 = vsel %vm2497_vm2, 1.0, %v15440_v27  ;;  %v11581_v24 = vmul.f32 0.70710677, %v11555_v34  ;;  %v3462_v3 = vsub.f32 1.0, %v3414_v57 }
 0x5b2   :  { %v2983_v35 = vmul.f32 %v11531_v28, %v2935_v33  ;;  %v2785_v30 = vmul.f32 1.0614054, %v11568_v4  ;;  %v2650_v48 = vmul.f32 0.3275911, %v11566_v55  ;;  %v3176_v11 = vmul.f32 %v11479_v26, %v3128_v39  ;;  %v8566_v61 = vld [vmem:[%s15346_s10] sm:$0xff]  }
 0x5b3   :  { %v3129_v6 = vadd.f32 0.2548296, %v3081_v31  ;;  %v3265_v7 = vmul.f32 %v3217_v58, %v11498_v38  ;;  %v11589_v29 = vmul.f32 0.5, %v11495_v5  ;;  %v11592_v10 = vmul.f32 %v10485_v60, %v3605_v49  ;;  %8394 = vmatprep.mubr.bf16.mxu1 %v8566_v61 }
 0x5b4   :  { %v3031_v56 = vadd.f32 -0.28449672, %v2983_v35  ;;  %v2833_v19 = vadd.f32 -1.4531521, %v2785_v30  ;;  %v2698_v63 = vadd.f32 1.0, %v2650_v48  ;;  %v3550_v33 = vadd.f32 1.0, %v3502_v40 }
 0x5b5   :  { %8816 = vpow2.f32 %v3351_v25  ;;  %vm2507_vm3 = vcmp.ge.f32.partialorder %v11511_v20, 0.0  ;;  %v8813_v26 = vpop.eup %8812  ;;  %v3400_v38 = vmul.f32 %v8807_v12, %v3160_v16  ;;  %v11597_v39 = vand.u32 2147483647, %v11581_v24  ;;  %v11606_v16 = vpop.permute.xlu0 %2088 }
 0x5b6   :  { %v2881_v57 = vmul.f32 %v11568_v4, %v2833_v19  ;;  %8818 = vrcp.f32 %v2698_v63  ;;  %v3510_v5 = vmul.f32 %v3462_v3, %v11417_v2  ;;  %v3416_v31 = vmul.f32 %v8809_v8, %v3176_v11  ;;  %v15489_v3 = vld [vmem:[#allocation26_spill] sm:$0xff] }
 0x5b7   :  { %v3079_v58 = vmul.f32 %v11531_v28, %v3031_v56  ;;  %v3339_v49 = vmul.f32 1.442695, %v3265_v7  ;;  %v3177_v40 = vmul.f32 %v11500_v45, %v3129_v6  ;;  %v3227_v30 = vsub.f32 0.0, %v11529_v13 }
 0x5b8   :  { %v11601_v35 = vpop.eup %8814  ;;  %v2929_v25 = vadd.f32 1.4214138, %v2881_v57  ;;  %v2652_v12 = vmul.f32 0.3275911, %v11597_v39  ;;  %v11609_v48 = vmul.f32 %v3550_v33, %v11367_v18  ;;  %v11614_v2 = vsel %vm2507_vm3, 1.0, %v15440_v27 }
 0x5b9   :  { %v2795_v8 = vmul.f32 1.0614054, %v11601_v35  ;;  %v11619_v45 = vadd.f32 %v15489_v3, %v11092_v50  ;;  %v3448_v11 = vsub.f32 1.0, %v3400_v38  ;;  %v11624_v61 = vadd.f32 %v10993_v22, %v11606_v16 }
 0x5ba   :  { %15488 = vst [vmem:[#allocation16_spill] sm:$0xff] %v11609_v48  ;;  %v2977_v6 = vmul.f32 %v11568_v4, %v2929_v25  ;;  %v2700_v7 = vadd.f32 1.0, %v2652_v12  ;;  %v3464_v18 = vsub.f32 1.0, %v3416_v31  ;;  %v3127_v56 = vadd.f32 0.2548296, %v3079_v58  ;;  %v15496_v48 = vld [vmem:[#allocation29_spill] sm:$0xff] }
 0x5bb   :  { %8820 = vpow2.f32 %v3339_v49  ;;  %v2843_v20 = vadd.f32 -1.4531521, %v2795_v8  ;;  %v3558_v19 = vadd.f32 1.0, %v3510_v5  ;;  %v3417_v63 = vmul.f32 %v8813_v26, %v3177_v40 }
 0x5bc   :  { %v3275_v33 = vmul.f32 %v3227_v30, %v11529_v13  ;;  %8822 = vrcp.f32 %v2700_v7  ;;  %v3025_v57 = vadd.f32 -0.28449672, %v2977_v6  ;;  %v11629_v38 = vmul.f32 0.5, %v11536_v15 }
 0x5bd   :  { %v2891_v50 = vmul.f32 %v11601_v35, %v2843_v20  ;;  %v11632_v25 = vmul.f32 0.70710677, %v11619_v45  ;;  %v3496_v22 = vmul.f32 %v3448_v11, %v11467_v42  ;;  %vm2506_vm4 = vcmp.ge.f32.partialorder %v11549_v62, 0.0 }
 0x5be   :  { %v3226_v31 = vsub.f32 0.0, %v11566_v55  ;;  %v11638_v26 = vmul.f32 0.70710677, %v11624_v61  ;;  %v3512_v5 = vmul.f32 %v3464_v18, %v11489_v46  ;;  %v3175_v58 = vmul.f32 %v11531_v28, %v3127_v56 }
 0x5bf   :  { %v8817_v13 = vpop.eup %8816  ;;  %v2939_v49 = vadd.f32 1.4214138, %v2891_v50  ;;  %v11643_v15 = vand.u32 2147483647, %v11632_v25  ;;  %v11648_v42 = vmul.f32 %v3558_v19, %v11407_v41  ;;  %v3465_v30 = vsub.f32 1.0, %v3417_v63  ;;  %v15490_v50 = vld [vmem:[#allocation6_spill] sm:$0xff] }
 0x5c0   :  { %v11645_v40 = vpop.eup %8818  ;;  %v3359_v12 = vmul.f32 1.442695, %v3275_v33  ;;  %v11651_v8 = vmul.f32 0.5, %v11555_v34  ;;  %v3073_v3 = vmul.f32 %v11568_v4, %v3025_v57  ;;  %v3544_v6 = vadd.f32 1.0, %v3496_v22 }
 0x5c1   :  { %v2987_v46 = vmul.f32 %v11601_v35, %v2939_v49  ;;  %v2794_v28 = vmul.f32 1.0614054, %v11645_v40  ;;  %v2644_v11 = vmul.f32 0.3275911, %v11643_v15  ;;  %v11660_v7 = vsel %vm2506_vm4, 1.0, %v15440_v27 }
 0x5c2   :  { %v3274_v41 = vmul.f32 %v3226_v31, %v11566_v55  ;;  %v11664_v18 = vand.u32 2147483647, %v11638_v26  ;;  %v3560_v34 = vadd.f32 1.0, %v3512_v5  ;;  %v3415_v56 = vmul.f32 %v8817_v13, %v3175_v58 }
 0x5c3   :  { %v2842_v20 = vadd.f32 -1.4531521, %v2794_v28  ;;  %v2692_v19 = vadd.f32 1.0, %v2644_v11  ;;  %v3513_v63 = vmul.f32 %v3465_v30, %v11520_v14  ;;  %v3035_v33 = vadd.f32 -0.28449672, %v2987_v46 }
 0x5c4   :  { %v2654_v57 = vmul.f32 0.3275911, %v11664_v18  ;;  %v11670_v22 = vadd.f32 %v15490_v50, %v11606_v16  ;;  %v3121_v49 = vadd.f32 0.2548296, %v3073_v3  ;;  %v3228_v31 = vsub.f32 0.0, %v11597_v39 }
 0x5c5   :  { %v8821_v62 = vpop.eup %8820  ;;  %v2890_v55 = vmul.f32 %v11645_v40, %v2842_v20  ;;  %8824 = vrcp.f32 %v2692_v19  ;;  %v3357_v13 = vmul.f32 1.442695, %v3274_v41  ;;  %vm2508_vm5 = vcmp.ge.f32.partialorder %v11581_v24, 0.0  ;;  %v11683_v19 = vpop.permute.xlu1 %2093 }
 0x5c6   :  { %v11674_v5 = vpop.eup %8822  ;;  %8826 = vpow2.f32 %v3359_v12  ;;  %v2702_v14 = vadd.f32 1.0, %v2654_v57  ;;  %v3608_v58 = vmul.f32 %v3560_v34, %v11460_v44  ;;  %v3463_v30 = vsub.f32 1.0, %v3415_v56 }
 0x5c7   :  { %v2938_v46 = vadd.f32 1.4214138, %v2890_v55  ;;  %v2796_v28 = vmul.f32 1.0614054, %v11674_v5  ;;  %v3561_v11 = vadd.f32 1.0, %v3513_v63  ;;  %v3083_v3 = vmul.f32 %v11601_v35, %v3035_v33 }
 0x5c8   :  { %8828 = vrcp.f32 %v2702_v14  ;;  %v11681_v20 = vmul.f32 0.70710677, %v11670_v22  ;;  %v11686_v12 = vmul.f32 %v3544_v6, %v11438_v1  ;;  %v3169_v41 = vmul.f32 %v11568_v4, %v3121_v49 }
 0x5c9   :  { %v2844_v57 = vadd.f32 -1.4531521, %v2796_v28  ;;  %v3276_v44 = vmul.f32 %v3228_v31, %v11597_v39  ;;  %v2986_v34 = vmul.f32 %v11645_v40, %v2938_v46  ;;  %v11694_v56 = vsel %vm2508_vm5, 1.0, %v15440_v27  ;;  %v15492_v28 = vld [vmem:[#allocation20_spill] sm:$0xff] }
 0x5ca   :  { %v11697_v63 = vand.u32 2147483647, %v11681_v20  ;;  %v11701_v33 = vadd.f32 %v11054_v51, %v11683_v19  ;;  %v11704_v1 = vmul.f32 %v10485_v60, %v3608_v58  ;;  %v3511_v4 = vmul.f32 %v3463_v30, %v11563_v47 }
 0x5cb   :  { %8830 = vpow2.f32 %v3357_v13  ;;  %v2892_v39 = vmul.f32 %v11674_v5, %v2844_v57  ;;  %v11709_v6 = vmul.f32 %v3561_v11, %v11484_v0  ;;  %v3131_v24 = vadd.f32 0.2548296, %v3083_v3 }
 0x5cc   :  { %v11712_v50 = vmul.f32 0.5, %v11619_v45  ;;  %v2655_v49 = vmul.f32 0.3275911, %v11697_v63  ;;  %v3409_v55 = vmul.f32 %v8821_v62, %v3169_v41  ;;  %v3361_v31 = vmul.f32 1.442695, %v3276_v44  ;;  %v15491_v62 = vld [vmem:[#allocation18_spill] sm:$0xff] }
 0x5cd   :  { %v2940_v51 = vadd.f32 1.4214138, %v2892_v39  ;;  %v11716_v14 = vmul.f32 0.5, %v11624_v61  ;;  %v3034_v58 = vadd.f32 -0.28449672, %v2986_v34  ;;  %vm2500_vm6 = vcmp.ge.f32.partialorder %v11632_v25, 0.0 }
 0x5ce   :  { %v2703_v47 = vadd.f32 1.0, %v2655_v49  ;;  %v11720_v13 = vmul.f32 0.70710677, %v11701_v33  ;;  %v3559_v30 = vadd.f32 1.0, %v3511_v4  ;;  %v3220_v46 = vsub.f32 0.0, %v11643_v15 }
 0x5cf   :  { %v11722_v0 = vpop.eup %8824  ;;  %v2988_v45 = vmul.f32 %v11674_v5, %v2940_v51  ;;  %v3691_v11 = vpack.c.bf16 %v15492_v28, %v15491_v62  ;;  %v3179_v61 = vmul.f32 %v11601_v35, %v3131_v24  ;;  %v11732_v57 = vadd.f32 %v11086_v17, %v11486_v36 }
 0x5d0   :  { %v8827_v3 = vpop.eup %8826  ;;  %v2788_v41 = vmul.f32 1.0614054, %v11722_v0  ;;  %8832 = vrcp.f32 %v2703_v47  ;;  %v3457_v44 = vsub.f32 1.0, %v3409_v55  ;;  %vm2510_vm7 = vcmp.ge.f32.partialorder %v11638_v26, 0.0 }
 0x5d1   :  { %8834 = vpow2.f32 %v3361_v31  ;;  %v3230_v34 = vsub.f32 0.0, %v11664_v18  ;;  %3750 = vmatprep.subr.bf16.mxu0 %v3691_v11  ;;  %v3082_v39 = vmul.f32 %v11645_v40, %v3034_v58  ;;  %v3036_v49 = vadd.f32 -0.28449672, %v2988_v45 }
 0x5d2   :  { %v11736_v4 = vpop.eup %8828  ;;  %v2836_v35 = vadd.f32 -1.4531521, %v2788_v41  ;;  %v11740_v24 = vand.u32 2147483647, %v11720_v13  ;;  %v11743_v51 = vmul.f32 %v3559_v30, %v11523_v23  ;;  %v11748_v17 = vsel %vm2500_vm6, 1.0, %v15440_v27 }
 0x5d3   :  { %v3268_v36 = vmul.f32 %v3220_v46, %v11643_v15  ;;  %v2798_v55 = vmul.f32 1.0614054, %v11736_v4  ;;  %v3419_v31 = vmul.f32 %v8827_v3, %v3179_v61  ;;  %v11755_v45 = vmul.f32 0.70710677, %v11732_v57 }
 0x5d4   :  { %15493 = vst [vmem:[#allocation24_spill] sm:$0xff] %v11743_v51  ;;  %v2884_v58 = vmul.f32 %v11722_v0, %v2836_v35  ;;  %v2659_v47 = vmul.f32 0.3275911, %v11740_v24  ;;  %v3505_v23 = vmul.f32 %v3457_v44, %v11575_v37  ;;  %v11761_v25 = vsel %vm2510_vm7, 1.0, %v15440_v27 }
 0x5d5   :  { %v8831_v62 = vpop.eup %8830  ;;  %v2846_v30 = vadd.f32 -1.4531521, %v2798_v55  ;;  %v3278_v15 = vmul.f32 %v3230_v34, %v11664_v18  ;;  %v3130_v46 = vadd.f32 0.2548296, %v3082_v39  ;;  %v3084_v28 = vmul.f32 %v11674_v5, %v3036_v49  ;;  %v15494_v49 = vld [vmem:[#allocation11_spill] sm:$0xff] }
 0x5d6   :  { %v2932_v11 = vadd.f32 1.4214138, %v2884_v58  ;;  %v2707_v3 = vadd.f32 1.0, %v2659_v47  ;;  %v3345_v61 = vmul.f32 1.442695, %v3268_v36  ;;  %vm2511_vm9 = vcmp.ge.f32.partialorder %v11681_v20, 0.0 }
 0x5d7   :  { %v2894_v41 = vmul.f32 %v11736_v4, %v2846_v30  ;;  %v3231_v37 = vsub.f32 0.0, %v11697_v63  ;;  %v3467_v44 = vsub.f32 1.0, %v3419_v31  ;;  %v11770_v35 = vand.u32 2147483647, %v11755_v45 }
 0x5d8   :  { %v2980_v26 = vmul.f32 %v11722_v0, %v2932_v11  ;;  %8836 = vrcp.f32 %v2707_v3  ;;  %v3553_v18 = vadd.f32 1.0, %v3505_v23  ;;  %v11773_v39 = vmul.f32 0.5, %v11670_v22 }
 0x5d9   :  { %v2942_v34 = vadd.f32 1.4214138, %v2894_v41  ;;  %v11777_v36 = vadd.f32 %v15494_v49, %v11683_v19  ;;  %v3178_v58 = vmul.f32 %v11645_v40, %v3130_v46  ;;  %v3132_v31 = vadd.f32 0.2548296, %v3084_v28 }
 0x5da   :  { %v11779_v55 = vpop.eup %8832  ;;  %v3365_v47 = vmul.f32 1.442695, %v3278_v15  ;;  %v2653_v30 = vmul.f32 0.3275911, %v11770_v35  ;;  %v3028_v3 = vadd.f32 -0.28449672, %v2980_v26  ;;  %v3515_v49 = vmul.f32 %v3467_v44, %v11614_v2  ;;  %v11793_v15 = vpop.permute.xlu0 %2098 }
 0x5db   :  { %15495 = vst [vmem:[#allocation4_spill] sm:$0xff] %v11777_v36  ;;  %v8835_v11 = vpop.eup %8834  ;;  %v2990_v23 = vmul.f32 %v11736_v4, %v2942_v34  ;;  %v11787_v22 = vsel %vm2511_vm9, 1.0, %v15440_v27  ;;  %v2799_v41 = vmul.f32 1.0614054, %v11779_v55  ;;  %v3279_v51 = vmul.f32 %v3231_v37, %v11697_v63 }
 0x5dc   :  { %vm2515_vm10 = vcmp.ge.f32.partialorder %v11720_v13, 0.0  ;;  %v2701_v40 = vadd.f32 1.0, %v2653_v30  ;;  %8838 = vpow2.f32 %v3345_v61  ;;  %v11796_v26 = vmul.f32 0.70710677, %v11777_v36  ;;  %v15499_v13 = vld [vmem:[#allocation19_spill] sm:$0xff] }
 0x5dd   :  { %v3038_v46 = vadd.f32 -0.28449672, %v2990_v23  ;;  %v2847_v28 = vadd.f32 -1.4531521, %v2799_v41  ;;  %v3418_v20 = vmul.f32 %v8831_v62, %v3178_v58  ;;  %v3180_v34 = vmul.f32 %v11674_v5, %v3132_v31 }
 0x5de   :  { %8840 = vrcp.f32 %v2701_v40  ;;  %v11801_v2 = vadd.f32 %v15496_v48, %v11793_v15  ;;  %v11804_v63 = vmul.f32 %v3553_v18, %v11541_v43  ;;  %v3076_v37 = vmul.f32 %v11722_v0, %v3028_v3  ;;  %v15498_v40 = vld [vmem:[#allocation17_spill] sm:$0xff] }
 0x5df   :  { %8842 = vpow2.f32 %v3365_v47  ;;  %v2895_v61 = vmul.f32 %v11779_v55, %v2847_v28  ;;  %v3563_v44 = vadd.f32 1.0, %v3515_v49  ;;  %v3367_v30 = vmul.f32 1.442695, %v3279_v51 }
 0x5e0   :  { %15497 = vst [vmem:[#allocation26_spill] sm:$0xff] %v11804_v63  ;;  %v11809_v23 = vmul.f32 0.5, %v11701_v33  ;;  %v11812_v5 = vand.u32 2147483647, %v11796_v26  ;;  %v3086_v62 = vmul.f32 %v11736_v4, %v3038_v46  ;;  %v11818_v43 = vsel %vm2515_vm10, 1.0, %v15440_v27 }
 0x5e1   :  { %v2943_v48 = vadd.f32 1.4214138, %v2895_v61  ;;  %v3235_v18 = vsub.f32 0.0, %v11740_v24  ;;  %v3466_v31 = vsub.f32 1.0, %v3418_v20  ;;  %v3420_v51 = vmul.f32 %v8835_v11, %v3180_v34 }
 0x5e2   :  { %v11821_v58 = vpop.eup %8836  ;;  %v2657_v33 = vmul.f32 0.3275911, %v11812_v5  ;;  %v11825_v47 = vmul.f32 0.70710677, %v11801_v2  ;;  %v3124_v3 = vadd.f32 0.2548296, %v3076_v37  ;;  %v3690_v46 = vpack.c.bf16 %v15499_v13, %v15498_v40 }
 0x5e3   :  { %v2991_v41 = vmul.f32 %v11779_v55, %v2943_v48  ;;  %v2803_v49 = vmul.f32 1.0614054, %v11821_v58  ;;  %v3611_v28 = vmul.f32 %v3563_v44, %v11589_v29  ;;  %8844 = vpow2.f32 %v3367_v30 }
 0x5e4   :  { %v3229_v61 = vsub.f32 0.0, %v11770_v35  ;;  %v2705_v20 = vadd.f32 1.0, %v2657_v33  ;;  %v3134_v11 = vadd.f32 0.2548296, %v3086_v62  ;;  %v3283_v63 = vmul.f32 %v3235_v18, %v11740_v24  ;;  %3751 = vmatpush1.bf16.msra.mxu0 %v3690_v46  ;;  %v15500_v18 = vld [vmem:[#allocation14_spill] sm:$0xff] }
 0x5e5   :  { %v3039_v34 = vadd.f32 -0.28449672, %v2991_v41  ;;  %v2851_v36 = vadd.f32 -1.4531521, %v2803_v49  ;;  %v3514_v37 = vmul.f32 %v3466_v31, %v11660_v7  ;;  %v11836_v48 = vmul.f32 0.5, %v11732_v57 }
 0x5e6   :  { %8846 = vrcp.f32 %v2705_v20  ;;  %v11839_v40 = vand.u32 2147483647, %v11825_v47  ;;  %v8839_v29 = vpop.eup %8838  ;;  %v3468_v44 = vsub.f32 1.0, %v3420_v51  ;;  %v3172_v30 = vmul.f32 %v11722_v0, %v3124_v3 }
 0x5e7   :  { %v3087_v62 = vmul.f32 %v11779_v55, %v3039_v34  ;;  %v2899_v33 = vmul.f32 %v11821_v58, %v2851_v36  ;;  %v11847_v24 = vmul.f32 %v10485_v60, %v3611_v28  ;;  %v3277_v7 = vmul.f32 %v3229_v61, %v11770_v35 }
 0x5e8   :  { %v11844_v41 = vpop.eup %8840  ;;  %v2662_v57 = vmul.f32 0.3275911, %v11839_v40  ;;  %v11853_v31 = vadd.f32 %v15500_v18, %v11683_v19  ;;  %v3182_v0 = vmul.f32 %v11736_v4, %v3134_v11  ;;  %v3375_v49 = vmul.f32 1.442695, %v3283_v63  ;;  %v15502_v4 = vld [vmem:[#allocation33_spill] sm:$0xff] }
 0x5e9   :  { %v8843_v51 = vpop.eup %8842  ;;  %v2947_v3 = vadd.f32 1.4214138, %v2899_v33  ;;  %v2797_v36 = vmul.f32 1.0614054, %v11844_v41  ;;  %v3562_v13 = vadd.f32 1.0, %v3514_v37  ;;  %vm2509_vm11 = vcmp.ge.f32.partialorder %v11755_v45, 0.0 }
 0x5ea   :  { %15501 = vst [vmem:[#allocation6_spill] sm:$0xff] %v11853_v31  ;;  %v3135_v46 = vadd.f32 0.2548296, %v3087_v62  ;;  %v2710_v28 = vadd.f32 1.0, %v2662_v57  ;;  %v3516_v35 = vmul.f32 %v3468_v44, %v11694_v56  ;;  %v3412_v61 = vmul.f32 %v8839_v29, %v3172_v30 }
 0x5eb   :  { %v2995_v20 = vmul.f32 %v11821_v58, %v2947_v3  ;;  %v2845_v34 = vadd.f32 -1.4531521, %v2797_v36  ;;  %v3363_v19 = vmul.f32 1.442695, %v3277_v7  ;;  %v11861_v18 = vmul.f32 0.70710677, %v11853_v31 }
 0x5ec   :  { %8848 = vrcp.f32 %v2710_v28  ;;  %v11865_v63 = vadd.f32 %v15502_v4, %v11606_v16  ;;  %v3422_v11 = vmul.f32 %v8843_v51, %v3182_v0  ;;  %v3183_v56 = vmul.f32 %v11779_v55, %v3135_v46 }
 0x5ed   :  { %v3043_v37 = vadd.f32 -0.28449672, %v2995_v20  ;;  %8850 = vpow2.f32 %v3375_v49  ;;  %v2893_v62 = vmul.f32 %v11844_v41, %v2845_v34  ;;  %v8845_v33 = vpop.eup %8844  ;;  %v11872_v29 = vsel %vm2509_vm11, 1.0, %v15440_v27 }
 0x5ee   :  { %v3233_v44 = vsub.f32 0.0, %v11812_v5  ;;  %v2610_v30 = vand.u32 2147483647, %v11861_v18  ;;  %v11877_v16 = vmul.f32 %v3562_v13, %v11629_v38  ;;  %v3460_v7 = vsub.f32 1.0, %v3412_v61 }
 0x5ef   :  { %v3091_v57 = vmul.f32 %v11821_v58, %v3043_v37  ;;  %v2941_v51 = vadd.f32 1.4214138, %v2893_v62  ;;  %v3564_v3 = vadd.f32 1.0, %v3516_v35  ;;  %8852 = vpow2.f32 %v3363_v19 }
 0x5f0   :  { %v11880_v0 = vpop.eup %8846  ;;  %v2658_v55 = vmul.f32 0.3275911, %v2610_v30  ;;  %v11883_v45 = vmul.f32 0.70710677, %v11865_v63  ;;  %v3470_v49 = vsub.f32 1.0, %v3422_v11  ;;  %v3423_v38 = vmul.f32 %v8845_v33, %v3183_v56 }
 0x5f1   :  { %v3139_v36 = vadd.f32 0.2548296, %v3091_v57  ;;  %v2989_v46 = vmul.f32 %v11844_v41, %v2941_v51  ;;  %v2801_v28 = vmul.f32 1.0614054, %v11880_v0  ;;  %v3281_v13 = vmul.f32 %v3233_v44, %v11812_v5  ;;  %v15503_v57 = vld [vmem:[#allocation12_spill] sm:$0xff] }
 0x5f2   :  { %v2706_v61 = vadd.f32 1.0, %v2658_v55  ;;  %v2608_v20 = vand.u32 2147483647, %v11883_v45  ;;  %v3508_v34 = vmul.f32 %v3460_v7, %v11748_v17  ;;  %v3238_v4 = vsub.f32 0.0, %v11839_v40 }
 0x5f3   :  { %v3037_v35 = vadd.f32 -0.28449672, %v2989_v46  ;;  %v2849_v19 = vadd.f32 -1.4531521, %v2801_v28  ;;  %v11892_v37 = vmul.f32 %v3564_v3, %v11651_v8  ;;  %v3187_v11 = vmul.f32 %v11821_v58, %v3139_v36 }
 0x5f4   :  { %8854 = vrcp.f32 %v2706_v61  ;;  %v2656_v62 = vmul.f32 0.3275911, %v2608_v20  ;;  %v3518_v33 = vmul.f32 %v3470_v49, %v11761_v25  ;;  %v11899_v44 = vmul.f32 0.5, %v11801_v2 }
 0x5f5   :  { %v3085_v5 = vmul.f32 %v11844_v41, %v3037_v35  ;;  %v2897_v56 = vmul.f32 %v11880_v0, %v2849_v19  ;;  %v3471_v7 = vsub.f32 1.0, %v3423_v38  ;;  %vm2518_vm13 = vcmp.ge.f32.partialorder %v11825_v47, 0.0 }
 0x5f6   :  { %v11901_v17 = vpop.eup %8848  ;;  %v2704_v8 = vadd.f32 1.0, %v2656_v62  ;;  %v11906_v58 = vadd.f32 %v15503_v57, %v11793_v15  ;;  %v3556_v3 = vadd.f32 1.0, %v3508_v34  ;;  %v3371_v25 = vmul.f32 1.442695, %v3281_v13 }
 0x5f7   :  { %v8851_v51 = vpop.eup %8850  ;;  %v3286_v55 = vmul.f32 %v3238_v4, %v11839_v40  ;;  %v3234_v49 = vsub.f32 0.0, %v2610_v30  ;;  %v3133_v46 = vadd.f32 0.2548296, %v3085_v5  ;;  %v2806_v2 = vmul.f32 1.0614054, %v11901_v17  ;;  %v15505_v4 = vld [vmem:[#allocation21_spill] sm:$0xff] }
 0x5f8   :  { %v3427_v36 = vmul.f32 %v8851_v51, %v3187_v11  ;;  %8856 = vrcp.f32 %v2704_v8  ;;  %v3566_v28 = vadd.f32 1.0, %v3518_v33  ;;  %v2945_v38 = vadd.f32 1.4214138, %v2897_v56  ;;  %v15506_v11 = vld [vmem:[#allocation25_spill] sm:$0xff] }
 0x5f9   :  { %v11911_v61 = vmul.f32 0.70710677, %v11906_v58  ;;  %v11915_v35 = vadd.f32 %v11301_v59, %v11793_v15  ;;  %v8853_v19 = vpop.eup %8852  ;;  %v3519_v13 = vmul.f32 %v3471_v7, %v11787_v22  ;;  %v11921_v40 = vsel %vm2518_vm13, 1.0, %v15440_v27 }
 0x5fa   :  { %v2854_v34 = vadd.f32 -1.4531521, %v2806_v2  ;;  %v3694_v62 = vpack.c.bf16 %v15506_v11, %v15505_v4  ;;  %8858 = vpow2.f32 %v3371_v25  ;;  %v3381_v33 = vmul.f32 1.442695, %v3286_v55 }
 0x5fb   :  { %15504 = vst [vmem:[#allocation18_spill] sm:$0xff] %v11915_v35  ;;  %v3282_v5 = vmul.f32 %v3234_v49, %v2610_v30  ;;  %v3232_v56 = vsub.f32 0.0, %v2608_v20  ;;  %v3475_v8 = vsub.f32 1.0, %v3427_v36  ;;  %v3181_v59 = vmul.f32 %v11844_v41, %v3133_v46  ;;  %v15507_v49 = vld [vmem:[#allocation22_spill] sm:$0xff]  ;;  %v15508_v36 = vld [vmem:[#allocation23_spill] sm:$0xff] }
 0x5fc   :  { %v2902_v15 = vmul.f32 %v11901_v17, %v2854_v34  ;;  %v2612_v22 = vand.u32 2147483647, %v11911_v61  ;;  %3752 = vmatprep.subr.bf16.mxu0 %v3694_v62  ;;  %v11929_v47 = vmul.f32 %v3556_v3, %v11712_v50  ;;  %v3614_v7 = vmul.f32 %v3566_v28, %v11716_v14 }
 0x5fd   :  { %v2993_v57 = vmul.f32 %v11880_v0, %v2945_v38  ;;  %v11934_v51 = vmul.f32 0.70710677, %v11915_v35  ;;  %v3567_v25 = vadd.f32 1.0, %v3519_v13  ;;  %v3693_v46 = vpack.c.bf16 %v15508_v36, %v15507_v49  ;;  %v15516_v35 = vld [vmem:[#allocation30_spill] sm:$0xff] }
 0x5fe   :  { %v11936_v30 = vpop.eup %8854  ;;  %v2950_v55 = vadd.f32 1.4214138, %v2902_v15  ;;  %v2660_v41 = vmul.f32 0.3275911, %v2612_v22  ;;  %8860 = vpow2.f32 %v3381_v33  ;;  %v3373_v50 = vmul.f32 1.442695, %v3282_v5 }
 0x5ff   :  { %v2802_v2 = vmul.f32 1.0614054, %v11936_v30  ;;  %v3280_v3 = vmul.f32 %v3232_v56, %v2608_v20  ;;  %v3523_v14 = vmul.f32 %v3475_v8, %v11818_v43  ;;  %v3421_v28 = vmul.f32 %v8853_v19, %v3181_v59  ;;  %3753 = vmatpush1.bf16.msra.mxu0 %v3693_v46  ;;  %v15509_v43 = vld [vmem:[#allocation8_spill] sm:$0xff]  ;;  %v15510_v19 = vld [vmem:[#allocation5_spill] sm:$0xff] }
 0x600   :  { %v2998_v38 = vmul.f32 %v11901_v17, %v2950_v55  ;;  %v2708_v34 = vadd.f32 1.0, %v2660_v41  ;;  %v11944_v4 = vmul.f32 %v10485_v60, %v3614_v7  ;;  %v3041_v13 = vadd.f32 -0.28449672, %v2993_v57 }
 0x601   :  { %v2850_v11 = vadd.f32 -1.4531521, %v2802_v2  ;;  %v11947_v62 = vand.u32 2147483647, %v11934_v51  ;;  %v11952_v5 = vmul.f32 %v3567_v25, %v11773_v39  ;;  %v3697_v56 = vpack.c.bf16 %v15510_v19, %v15509_v43  ;;  %v15511_v2 = vld [vmem:[#allocation27_spill] sm:$0xff]  ;;  %v15513_v43 = vld [vmem:[#allocation10_spill] sm:$0xff] }
 0x602   :  { %v11949_v33 = vpop.eup %8856  ;;  %v3046_v20 = vadd.f32 -0.28449672, %v2998_v38  ;;  %8862 = vrcp.f32 %v2708_v34  ;;  %v3369_v15 = vmul.f32 1.442695, %v3280_v3  ;;  %v3236_v7 = vsub.f32 0.0, %v2612_v22  ;;  %v15512_v38 = vld [vmem:[#allocation9_spill] sm:$0xff] }
 0x603   :  { %v2898_v8 = vmul.f32 %v11936_v30, %v2850_v11  ;;  %v2800_v59 = vmul.f32 1.0614054, %v11949_v33  ;;  %v3571_v57 = vadd.f32 1.0, %v3523_v14  ;;  %v3469_v55 = vsub.f32 1.0, %v3421_v28  ;;  %3754 = vmatprep.subr.bf16.mxu0 %v3697_v56  ;;  %v15514_v14 = vld [vmem:[#allocation31_spill] sm:$0xff]  ;;  %v15515_v56 = vld [vmem:[#allocation28_spill] sm:$0xff] }
 0x604   :  { %v3094_v41 = vmul.f32 %v11901_v17, %v3046_v20  ;;  %v2661_v49 = vmul.f32 0.3275911, %v11947_v62  ;;  %v11960_v39 = vpop.eup %8858  ;;  %v3089_v25 = vmul.f32 %v11880_v0, %v3041_v13  ;;  %v3696_v34 = vpack.c.bf16 %v15512_v38, %v15511_v2 }
 0x605   :  { %v2946_v36 = vadd.f32 1.4214138, %v2898_v8  ;;  %v2848_v46 = vadd.f32 -1.4531521, %v2800_v59  ;;  %8864 = vpow2.f32 %v3373_v50  ;;  %v3700_v28 = vpack.c.bf16 %v15514_v14, %v15513_v43  ;;  %v15520_v14 = vld [vmem:[#allocation13_spill] sm:$0xff] }
 0x606   :  { %v3142_v11 = vadd.f32 0.2548296, %v3094_v41  ;;  %v2709_v3 = vadd.f32 1.0, %v2661_v49  ;;  %8866 = vpow2.f32 %v3369_v15  ;;  %v3284_v19 = vmul.f32 %v3236_v7, %v2612_v22  ;;  %3755 = vmatpush1.bf16.msra.mxu0 %v3696_v34 }
 0x607   :  { %v2896_v20 = vmul.f32 %v11949_v33, %v2848_v46  ;;  %v3699_v31 = vpack.c.bf16 %v15516_v35, %v15515_v56  ;;  %v11971_v13 = vmul.f32 %v3571_v57, %v11809_v23  ;;  %3756 = vmatprep.subr.bf16.mxu0 %v3700_v28  ;;  %v3703_v50 = vpack.c.bf16 %v11441_v21, %v11376_v54  ;;  %v15517_v35 = vld [vmem:[#allocation34_spill] sm:$0xff]  ;;  %v15518_v46 = vld [vmem:[#allocation7_spill] sm:$0xff] }
 0x608   :  { %v3190_v8 = vmul.f32 %v11901_v17, %v3142_v11  ;;  %8868 = vrcp.f32 %v2709_v3  ;;  %v8861_v59 = vpop.eup %8860  ;;  %v11977_v41 = vmul.f32 %v3469_v55, %v11872_v29  ;;  %v3137_v15 = vadd.f32 0.2548296, %v3089_v25  ;;  %v15519_v55 = vld [vmem:[#allocation32_spill] sm:$0xff] }
 0x609   :  { %v2994_v22 = vmul.f32 %v11936_v30, %v2946_v36  ;;  %v2944_v7 = vadd.f32 1.4214138, %v2896_v20  ;;  %v3640_v23 = vmul.f32 %v15518_v46, %v15517_v35  ;;  %v3643_v17 = vmul.f32 %v15518_v46, %v11395_v9 }
 0x60a   :  { %v3430_v49 = vmul.f32 %v8861_v59, %v3190_v8  ;;  %v3702_v57 = vpack.c.bf16 %v11434_v32, %v11320_v53  ;;  %v3377_v21 = vmul.f32 1.442695, %v3284_v19  ;;  %v3237_v29 = vsub.f32 0.0, %v11947_v62  ;;  %3757 = vmatpush1.bf16.msra.mxu0 %v3699_v31  ;;  %v15521_v8 = vld [vmem:[#allocation15_spill] sm:$0xff] }
 0x60b   :  { %v2992_v54 = vmul.f32 %v11949_v33, %v2944_v7  ;;  %v3646_v25 = vmul.f32 %v15518_v46, %v15519_v55  ;;  %3758 = vmatprep.subr.bf16.mxu0 %v3703_v50  ;;  %v3692_v38 = vpack.c.bf16 %v3643_v17, %v3640_v23  ;;  %v3649_v9 = vmul.f32 %v15518_v46, %v11343_v52  ;;  %v15522_v50 = vld [vmem:[#allocation16_spill] sm:$0xff]  ;;  %v15523_v23 = vld [vmem:[#allocation26_spill] sm:$0xff] }
 0x60c   :  { %v11990_v36 = vpop.eup %8862  ;;  %v3478_v2 = vsub.f32 1.0, %v3430_v49  ;;  %v3706_v53 = vpack.c.bf16 %v11709_v6, %v11648_v42  ;;  %v3185_v32 = vmul.f32 %v11880_v0, %v3137_v15  ;;  %v3042_v34 = vadd.f32 -0.28449672, %v2994_v22 }
 0x60d   :  { %vm2512_vm14 = vcmp.ge.f32.partialorder %v11883_v45, 0.0  ;;  %v3040_v31 = vadd.f32 -0.28449672, %v2992_v54  ;;  %v2804_v11 = vmul.f32 1.0614054, %v11990_v36  ;;  %8378 = vmatprep.subr.bf16.mxu1 %v3692_v38  ;;  %v3695_v43 = vpack.c.bf16 %v3649_v9, %v3646_v25  ;;  %v15524_v9 = vld [vmem:[#allocation24_spill] sm:$0xff] }
 0x60e   :  { %v3526_v3 = vmul.f32 %v3478_v2, %v11921_v40  ;;  %v3652_v28 = vmul.f32 %v15518_v46, %v15520_v14  ;;  %v3655_v52 = vmul.f32 %v15518_v46, %v11686_v12  ;;  %vm2513_vm15 = vcmp.ge.f32.partialorder %v11796_v26, 0.0  ;;  %3759 = vmatpush1.bf16.msra.mxu0 %v3702_v57  ;;  %8379 = vmatpush3.bf16.msra.mxu1 %v3692_v38 }
 0x60f   :  { %v3088_v42 = vmul.f32 %v11949_v33, %v3040_v31  ;;  %v2852_v6 = vadd.f32 -1.4531521, %v2804_v11  ;;  %v3285_v0 = vmul.f32 %v3237_v29, %v11947_v62  ;;  %v3705_v40 = vpack.c.bf16 %v11704_v1, %v11592_v10  ;;  %v8865_v20 = vpop.eup %8864  ;;  %8380 = vmatprep.subr.bf16.mxu1 %v3695_v43  ;;  %3760 = vmatprep.subr.bf16.mxu0 %v3706_v53 }
 0x610   :  { %v3574_v19 = vadd.f32 1.0, %v3526_v3  ;;  %v3698_v56 = vpack.c.bf16 %v3655_v52, %v3652_v28  ;;  %v3658_v12 = vmul.f32 %v15518_v46, %v15521_v8  ;;  %v3661_v59 = vmul.f32 %v15518_v46, %v15522_v50  ;;  %v8867_v15 = vpop.eup %8866 }
 0x611   :  { %v3090_v22 = vmul.f32 %v11936_v30, %v3042_v34  ;;  %v3136_v62 = vadd.f32 0.2548296, %v3088_v42  ;;  %v2900_v7 = vmul.f32 %v11990_v36, %v2852_v6  ;;  %v3709_v10 = vpack.c.bf16 %v11952_v5, %v11892_v37 }
 0x612   :  { %v12017_v1 = vpop.eup %8868  ;;  %v3622_v49 = vmul.f32 %v3574_v19, %v11899_v44  ;;  %v3701_v35 = vpack.c.bf16 %v3661_v59, %v3658_v12  ;;  %v3664_v17 = vmul.f32 %v15518_v46, %v15523_v23  ;;  %v3667_v57 = vmul.f32 %v15518_v46, %v11929_v47  ;;  %8381 = vmatpush3.bf16.msra.mxu1 %v3695_v43 }
 0x613   :  { %v3425_v54 = vmul.f32 %v11960_v39, %v3185_v32  ;;  %v3184_v29 = vmul.f32 %v11949_v33, %v3136_v62  ;;  %v2948_v55 = vadd.f32 1.4214138, %v2900_v7  ;;  %v2805_v25 = vmul.f32 1.0614054, %v12017_v1  ;;  %3761 = vmatpush1.bf16.msra.mxu0 %v3705_v40  ;;  %8382 = vmatprep.subr.bf16.mxu1 %v3698_v56 }
 0x614   :  { %8870 = vpow2.f32 %v3377_v21  ;;  %v3379_v37 = vmul.f32 1.442695, %v3285_v0  ;;  %3762 = vmatprep.subr.bf16.mxu0 %v3709_v10  ;;  %v3704_v44 = vpack.c.bf16 %v3667_v57, %v3664_v17  ;;  %v3708_v5 = vpack.c.bf16 %v11944_v4, %v11847_v24  ;;  %v15525_v10 = vld [vmem:[#allocation4_spill] sm:$0xff] }
 0x615   :  { %v3138_v2 = vadd.f32 0.2548296, %v3090_v22  ;;  %v3424_v38 = vmul.f32 %v8867_v15, %v3184_v29  ;;  %v2996_v47 = vmul.f32 %v11990_v36, %v2948_v55  ;;  %v2853_v39 = vadd.f32 -1.4531521, %v2805_v25 }
 0x616   :  { %v3670_v33 = vmul.f32 %v15518_v46, %v15524_v9  ;;  %v3673_v53 = vmul.f32 %v15518_v46, %v11877_v16  ;;  %v3682_v21 = vmul.f32 %v15518_v46, %v11971_v13  ;;  %v3685_v32 = vmul.f32 %v15518_v46, %v3622_v49  ;;  %8383 = vmatpush3.bf16.msra.mxu1 %v3698_v56 }
 0x617   :  { %v3565_v34 = vadd.f32 1.0, %v11977_v41  ;;  %v3472_v31 = vsub.f32 1.0, %v3424_v38  ;;  %v3044_v24 = vadd.f32 -0.28449672, %v2996_v47  ;;  %v2901_v4 = vmul.f32 %v12017_v1, %v2853_v39  ;;  %3763 = vmatpush1.bf16.msra.mxu0 %v3708_v5  ;;  %8384 = vmatprep.subr.bf16.mxu1 %v3701_v35  ;;  %v15527_v47 = vld [vmem:[#allocation18_spill] sm:$0xff] }
 0x618   :  { %v3473_v11 = vsub.f32 1.0, %v3425_v54  ;;  %v2560_v3 = vsel %vm2512_vm14, 1.0, %v15440_v27  ;;  %v3707_v16 = vpack.c.bf16 %v3673_v53, %v3670_v33  ;;  %v3713_v43 = vpack.c.bf16 %v3685_v32, %v3682_v21 }
 0x619   :  { %v3186_v13 = vmul.f32 %v11936_v30, %v3138_v2  ;;  %v3520_v14 = vmul.f32 %v3472_v31, %v2560_v3  ;;  %v3092_v28 = vmul.f32 %v11990_v36, %v3044_v24  ;;  %v2949_v41 = vadd.f32 1.4214138, %v2901_v4  ;;  %v12078_v31 = vld [vmem:[%s15347_s12] sm:$0xff]   ;;  %v3721_v24 = vpop.permute.xlu1 %3720  ;;  %v3726_v3 = vpop.permute.xlu0 %3725 }
 0x61a   :  { %v2561_v52 = vsel %vm2513_vm15, 1.0, %v15440_v27  ;;  %v2416_v42 = vmul.f32 0.5, %v11865_v63  ;;  %8872 = vpow2.f32 %v3379_v37  ;;  %v3613_v6 = vmul.f32 %v3565_v34, %v11836_v48  ;;  %8385 = vmatpush3.bf16.msra.mxu1 %v3701_v35 }
 0x61b   :  { %v3568_v45 = vadd.f32 1.0, %v3520_v14  ;;  %v3140_v0 = vadd.f32 0.2548296, %v3092_v28  ;;  %v2997_v40 = vmul.f32 %v12017_v1, %v2949_v41  ;;  %v3521_v19 = vmul.f32 %v3473_v11, %v2561_v52  ;;  %8386 = vmatprep.subr.bf16.mxu1 %v3704_v44 }
 0x61c   :  { %v3426_v30 = vmul.f32 %v8865_v20, %v3186_v13  ;;  %vm2516_vm1 = vcmp.ge.f32.partialorder %v11911_v61, 0.0  ;;  %v3676_v48 = vmul.f32 %v15518_v46, %v3613_v6  ;;  %vm2514_vm2 = vcmp.ge.f32.partialorder %v11861_v18, 0.0 }
 0x61d   :  { %v3616_v56 = vmul.f32 %v3568_v45, %v2416_v42  ;;  %v3188_v8 = vmul.f32 %v11990_v36, %v3140_v0  ;;  %v3045_v12 = vadd.f32 -0.28449672, %v2997_v40  ;;  %v3569_v15 = vadd.f32 1.0, %v3521_v19  ;;  %v12082_v4 = vpop.permute.xlu1 %3730  ;;  %v12087_v42 = vpop.permute.xlu0 %3735  ;;  %v15529_v45 = vld [vmem:[#allocation2_spill] sm:$0xff] }
 0x61e   :  { %v8871_v50 = vpop.eup %8870  ;;  %8387 = vmatpush3.bf16.msra.mxu1 %v3704_v44  ;;  %v3474_v20 = vsub.f32 1.0, %v3426_v30  ;;  %v2564_v7 = vsel %vm2516_vm1, 1.0, %v15440_v27  ;;  %v2417_v61 = vmul.f32 0.5, %v15525_v10  ;;  %v2562_v17 = vsel %vm2514_vm2, 1.0, %v15440_v27 }
 0x61f   :  { %v3428_v26 = vmul.f32 %v8871_v50, %v3188_v8  ;;  %v3093_v63 = vmul.f32 %v12017_v1, %v3045_v12  ;;  %v3679_v59 = vmul.f32 %v15518_v46, %v3616_v56  ;;  %8388 = vmatprep.subr.bf16.mxu1 %v3707_v16  ;;  %v2420_v46 = vmul.f32 0.5, %v11906_v58  ;;  %v8567_v58 = vld [vmem:[%s15346_s10 + $0x8] sm:$0xff]  }
 0x620   :  { %vm2517_vm3 = vcmp.ge.f32.partialorder %v11934_v51, 0.0  ;;  %v3617_v18 = vmul.f32 %v3569_v15, %v2417_v61  ;;  %v3522_v57 = vmul.f32 %v3474_v20, %v2562_v17  ;;  %v15526_v51 = vld [vmem:[#allocation6_spill] sm:$0xff]  ;;  %v2421_v39 = vmul.f32 0.5, %v15527_v47  ;;  %v15530_v56 = vld [vmem:[#allocation3_spill] sm:$0xff] }
 0x621   :  { %v3476_v22 = vsub.f32 1.0, %v3428_v26  ;;  %v3141_v62 = vadd.f32 0.2548296, %v3093_v63  ;;  %v3710_v36 = vpack.c.bf16 %v3679_v59, %v3676_v48  ;;  %v2565_v37 = vsel %vm2517_vm3, 1.0, %v15440_v27 }
 0x622   :  { %8389 = vmatpush3.bf16.msra.mxu1 %v3707_v16  ;;  %v3570_v44 = vadd.f32 1.0, %v3522_v57  ;;  %v2418_v38 = vmul.f32 0.5, %v15526_v51  ;;  %v15528_v34 = vmov 0   ;;  %vm4164_vm4 = vcmp.ge.s32.totalorder %v15529_v45, 3 }
 0x623   :  { %v3524_v49 = vmul.f32 %v3476_v22, %v2564_v7  ;;  %v3189_v35 = vmul.f32 %v12017_v1, %v3141_v62  ;;  %8390 = vmatprep.subr.bf16.mxu1 %v3710_v36  ;;  %v3680_v1 = vmul.f32 %v10485_v60, %v3617_v18  ;;  %vm4169_vm5 = vcmp.lt.s32.totalorder %v15530_v56, 355 }
 0x624   :  { %v8873_v23 = vpop.eup %8872  ;;  %v3618_v53 = vmul.f32 %v3570_v44, %v2418_v38  ;;  %v15531_v63 = vmov 0.0  }
 0x625   :  { %v3572_v54 = vadd.f32 1.0, %v3524_v49  ;;  %v3429_v29 = vmul.f32 %v8873_v23, %v3189_v35  ;;  %v12096_v48 = vsel %vm4164_vm4, 1.0, %v15531_v63  ;;  %v12101_v62 = vsel %vm4169_vm5, 1.0, %v15531_v63 }
 0x626   :  { %8391 = vmatpush3.bf16.msra.mxu1 %v3710_v36 }
 0x627   :  { %v3620_v55 = vmul.f32 %v3572_v54, %v2420_v46  ;;  %v3477_v25 = vsub.f32 1.0, %v3429_v29  ;;  %8392 = vmatprep.subr.bf16.mxu1 %v3713_v43 }
 0x629   :  { %v3683_v5 = vmul.f32 %v10485_v60, %v3620_v55  ;;  %v3525_v2 = vmul.f32 %v3477_v25, %v2565_v37  ;;  %v9330_v60 = vld [vmem:[%s15346_s10] sm:$0xff]  }
 0x62a   :  { %8393 = vmatpush3.bf16.msra.mxu1 %v3713_v43 }
 0x62b   :  { %v3573_v9 = vadd.f32 1.0, %v3525_v2  ;;  %v3711_v33 = vpack.c.bf16 %v3683_v5, %v3680_v1 }
 0x62d   :  { %v3621_v21 = vmul.f32 %v3573_v9, %v2421_v39  ;;  %8395 = vmatmul.mubr.bf16.vlgmr.msra.gmra.mrb[52].mxu1 %v8567_v58 }
 0x62e   :  { %8402 = vmatprep.mubr.msk.bf16.mxu1 %vm138_vm0, %v12078_v31 }
 0x62f   :  { %v3712_v32 = vpack.c.bf16 %v3621_v21, %v3618_v53 }
 0x631   :  { %3764 = vmatprep.subr.bf16.mxu0 %v3712_v32 }
 0x632   :  { %3765 = vmatpush1.bf16.msra.mxu0 %v3711_v33 }
 0x635   :  { %3783 = vmatmul.mubr.bf16.vlgmr.msra.gmra.mrb[24].mxu0 %v9330_v60 }
 0x636   :  { %3792 = vmatprep.mubr.bf16.mxu0 %v15528_v34 }
 0x63d   :  { %3793 = vmatmul.mubr.bf16.gmra.mrb[28].mxu0 %v8567_v58 }
 0x63e   :  { %4317 = vmatprep.mubr.bf16.mxu0 %v15528_v34 }
 0x700   :  { %v8396_v11 = vpop.f32.mrb[52].mxu1 }
 0x701   :  { %v3846_v16 = vadd.f32 %v8396_v11, %v12082_v4  ;;  %v3837_v43 = vpop.f32.mrb[53].mxu1 }
 0x702   :  { %v8397_v13 = vpop.f32.mrb[54].mxu1  ;;  %v3838_v52 = vadd.f32 %v3837_v43, %v3721_v24 }
 0x703   :  { %v3872_v14 = vmul.f32 0.70710677, %v3846_v16  ;;  %v3840_v28 = vpop.f32.mrb[55].mxu1  ;;  %v3849_v30 = vadd.f32 %v8397_v13, %v12087_v42  ;;  %v12109_v35 = vmul.f32 0.5, %v3846_v16 }
 0x704   :  { %v3866_v20 = vmul.f32 0.70710677, %v3838_v52  ;;  %v12111_v23 = vmul.f32 0.5, %v3838_v52  ;;  %v3841_v17 = vadd.f32 %v3840_v28, %v3726_v3 }
 0x705   :  { %v12085_v41 = vand.u32 2147483647, %v3872_v14  ;;  %vm3884_vm6 = vcmp.ge.f32.partialorder %v3872_v14, 0.0  ;;  %v3875_v61 = vmul.f32 0.70710677, %v3849_v30  ;;  %v12118_v54 = vmul.f32 0.5, %v3849_v30 }
 0x706   :  { %v12114_v18 = vsel %vm3884_vm6, 1.0, %v15440_v27  ;;  %v12116_v57 = vand.u32 2147483647, %v3866_v20  ;;  %vm3878_vm7 = vcmp.ge.f32.partialorder %v3866_v20, 0.0  ;;  %v12131_v9 = vmul.f32 0.5, %v3841_v17 }
 0x707   :  { %v3920_v0 = vmul.f32 0.3275911, %v12085_v41  ;;  %v4064_v25 = vsub.f32 0.0, %v12085_v41  ;;  %vm3887_vm9 = vcmp.ge.f32.partialorder %v3875_v61, 0.0  ;;  %v12125_v51 = vand.u32 2147483647, %v3875_v61 }
 0x708   :  { %v3784_v6 = vpop.f32.mrb[24].mxu0  ;;  %v3914_v39 = vmul.f32 0.3275911, %v12116_v57  ;;  %v12137_v32 = vsel %vm3878_vm7, 1.0, %v15440_v27  ;;  %v12144_v16 = vsel %vm3887_vm9, 1.0, %v15440_v27 }
 0x709   :  { %v3785_v40 = vadd.f32 %v3784_v6, %v3721_v24  ;;  %v3786_v19 = vpop.f32.mrb[25].mxu0  ;;  %v3932_v50 = vadd.f32 1.0, %v3920_v0  ;;  %v4076_v28 = vmul.f32 %v4064_v25, %v12085_v41  ;;  %v3923_v52 = vmul.f32 0.3275911, %v12125_v51 }
 0x70a   :  { %v3787_v8 = vadd.f32 %v3786_v19, %v3721_v24  ;;  %v3788_v12 = vpop.f32.mrb[26].mxu0  ;;  %v3926_v19 = vadd.f32 1.0, %v3914_v39  ;;  %v12156_v20 = vmul.f32 0.70710677, %v3841_v17 }
 0x70b   :  { %v12093_v26 = vmul.f32 0.70710677, %v3785_v40  ;;  %v3789_v59 = vadd.f32 %v3788_v12, %v3726_v3  ;;  %v3790_v15 = vpop.f32.mrb[27].mxu0  ;;  %8874 = vrcp.f32 %v3932_v50  ;;  %v12148_v13 = vmul.f32 0.5, %v3785_v40 }
 0x70c   :  { %v12098_v22 = vmul.f32 0.70710677, %v3787_v8  ;;  %v12106_v10 = vadd.f32 %v3790_v15, %v3726_v3  ;;  %v4058_v3 = vsub.f32 0.0, %v12116_v57  ;;  %v12154_v30 = vmul.f32 0.5, %v3787_v8 }
 0x70d   :  { %v3900_v36 = vand.u32 2147483647, %v12093_v26  ;;  %v12104_v7 = vmul.f32 0.70710677, %v3789_v59  ;;  %vm3876_vm10 = vcmp.ge.f32.partialorder %v12093_v26, 0.0  ;;  %v3935_v61 = vadd.f32 1.0, %v3923_v52 }
 0x70e   :  { %v3901_v49 = vand.u32 2147483647, %v12098_v22  ;;  %v12123_v44 = vmul.f32 0.70710677, %v12106_v10  ;;  %vm3877_vm11 = vcmp.ge.f32.partialorder %v12098_v22, 0.0  ;;  %vm3881_vm15 = vcmp.ge.f32.partialorder %v12156_v20, 0.0 }
 0x70f   :  { %v3912_v46 = vmul.f32 0.3275911, %v3900_v36  ;;  %v3903_v55 = vand.u32 2147483647, %v12104_v7  ;;  %v4056_v1 = vsub.f32 0.0, %v3900_v36  ;;  %vm3879_vm13 = vcmp.ge.f32.partialorder %v12104_v7, 0.0 }
 0x710   :  { %v3913_v29 = vmul.f32 0.3275911, %v3901_v49  ;;  %v3794_v5 = vpop.f32.mrb[28].mxu0  ;;  %v3904_v47 = vand.u32 2147483647, %v12123_v44  ;;  %v4057_v53 = vsub.f32 0.0, %v3901_v49 }
 0x711   :  { %v3924_v37 = vadd.f32 1.0, %v3912_v46  ;;  %v3915_v58 = vmul.f32 0.3275911, %v3903_v55  ;;  %v12127_v38 = vpop.f32.mrb[29].mxu0  ;;  %v4068_v24 = vmul.f32 %v4056_v1, %v3900_v36  ;;  %v4059_v14 = vsub.f32 0.0, %v3903_v55 }
 0x712   :  { %v3925_v2 = vadd.f32 1.0, %v3913_v29  ;;  %v12133_v33 = vpop.f32.mrb[30].mxu0  ;;  %v3916_v11 = vmul.f32 0.3275911, %v3904_v47  ;;  %v4069_v12 = vmul.f32 %v4057_v53, %v3901_v49  ;;  %v4060_v50 = vsub.f32 0.0, %v3904_v47 }
 0x713   :  { %8876 = vrcp.f32 %v3924_v37  ;;  %v3927_v21 = vadd.f32 1.0, %v3915_v58  ;;  %v12139_v60 = vpop.f32.mrb[31].mxu0  ;;  %v4080_v15 = vmul.f32 1.442695, %v4068_v24  ;;  %v12158_v36 = vmul.f32 0.5, %v3789_v59 }
 0x714   :  { %8878 = vrcp.f32 %v3925_v2  ;;  %v3928_v6 = vadd.f32 1.0, %v3916_v11  ;;  %v4071_v41 = vmul.f32 %v4059_v14, %v3903_v55  ;;  %v12161_v46 = vadd.f32 %v3794_v5, %v12082_v4 }
 0x715   :  { %v12146_v43 = vpop.eup %8874  ;;  %8880 = vrcp.f32 %v3927_v21  ;;  %v12164_v29 = vsel %vm3876_vm10, 1.0, %v15440_v27  ;;  %v12169_v26 = vand.u32 2147483647, %v12156_v20  ;;  %v4082_v49 = vmul.f32 1.442695, %v4069_v12 }
 0x716   :  { %v3956_v0 = vmul.f32 1.0614054, %v12146_v43  ;;  %8882 = vrcp.f32 %v3928_v6  ;;  %v4072_v17 = vmul.f32 %v4060_v50, %v3904_v47  ;;  %v4096_v25 = vmul.f32 1.442695, %v4076_v28 }
 0x717   :  { %8884 = vrcp.f32 %v3926_v19  ;;  %v4067_v37 = vsub.f32 0.0, %v12125_v51  ;;  %v3917_v1 = vmul.f32 0.3275911, %v12169_v26  ;;  %v4086_v58 = vmul.f32 1.442695, %v4071_v41 }
 0x718   :  { %v3968_v40 = vadd.f32 -1.4531521, %v3956_v0  ;;  %8886 = vpow2.f32 %v4080_v15  ;;  %v12179_v39 = vmul.f32 0.70710677, %v12161_v46  ;;  %v4070_v21 = vmul.f32 %v4058_v3, %v12116_v57 }
 0x719   :  { %8888 = vrcp.f32 %v3935_v61  ;;  %v3929_v24 = vadd.f32 1.0, %v3917_v1  ;;  %v4088_v14 = vmul.f32 1.442695, %v4072_v17  ;;  %v4079_v19 = vmul.f32 %v4067_v37, %v12125_v51 }
 0x71a   :  { %v3980_v8 = vmul.f32 %v12146_v43, %v3968_v40  ;;  %8890 = vpow2.f32 %v4082_v49  ;;  %v12185_v28 = vand.u32 2147483647, %v12179_v39  ;;  %v12197_v40 = vmul.f32 0.5, %v12106_v10 }
 0x71b   :  { %8892 = vrcp.f32 %v3929_v24  ;;  %v4084_v41 = vmul.f32 1.442695, %v4070_v21  ;;  %v12204_v17 = vsel %vm3877_vm11, 1.0, %v15440_v27  ;;  %v4102_v37 = vmul.f32 1.442695, %v4079_v19 }
 0x71c   :  { %v3992_v55 = vadd.f32 1.4214138, %v3980_v8  ;;  %8894 = vpow2.f32 %v4086_v58  ;;  %v3918_v57 = vmul.f32 0.3275911, %v12185_v28  ;;  %v4061_v21 = vsub.f32 0.0, %v12169_v26 }
 0x71d   :  { %v12171_v59 = vpop.eup %8876  ;;  %8896 = vpow2.f32 %v4096_v25  ;;  %vm3880_vm14 = vcmp.ge.f32.partialorder %v12123_v44, 0.0  ;;  %vm3882_vm1 = vcmp.ge.f32.partialorder %v12179_v39, 0.0 }
 0x71e   :  { %v12175_v5 = vpop.eup %8878  ;;  %v3948_v2 = vmul.f32 1.0614054, %v12171_v59  ;;  %v4004_v53 = vmul.f32 %v12146_v43, %v3992_v55  ;;  %8898 = vpow2.f32 %v4088_v14  ;;  %v3930_v58 = vadd.f32 1.0, %v3918_v57 }
 0x71f   :  { %v3949_v47 = vmul.f32 1.0614054, %v12175_v5  ;;  %v12187_v52 = vpop.eup %8880  ;;  %8900 = vpow2.f32 %v4084_v41 }
 0x720   :  { %v3960_v11 = vadd.f32 -1.4531521, %v3948_v2  ;;  %v4016_v0 = vadd.f32 -0.28449672, %v4004_v53  ;;  %v3951_v50 = vmul.f32 1.0614054, %v12187_v52  ;;  %v12193_v3 = vpop.eup %8882  ;;  %8902 = vpow2.f32 %v4102_v37 }
 0x721   :  { %v3961_v6 = vadd.f32 -1.4531521, %v3949_v47  ;;  %v3952_v51 = vmul.f32 1.0614054, %v12193_v3  ;;  %v12206_v1 = vpop.eup %8884  ;;  %8904 = vrcp.f32 %v3930_v58 }
 0x722   :  { %v3972_v12 = vmul.f32 %v12171_v59, %v3960_v11  ;;  %v3963_v8 = vadd.f32 -1.4531521, %v3951_v50  ;;  %v4028_v49 = vmul.f32 %v12146_v43, %v4016_v0  ;;  %v8887_v47 = vpop.eup %8886  ;;  %v3950_v22 = vmul.f32 1.0614054, %v12206_v1 }
 0x723   :  { %v3973_v15 = vmul.f32 %v12175_v5, %v3961_v6  ;;  %v3964_v2 = vadd.f32 -1.4531521, %v3952_v51  ;;  %v12214_v24 = vpop.eup %8888 }
 0x724   :  { %v3984_v61 = vadd.f32 1.4214138, %v3972_v12  ;;  %v3975_v25 = vmul.f32 %v12187_v52, %v3963_v8  ;;  %v4040_v0 = vadd.f32 0.2548296, %v4028_v49  ;;  %v3962_v12 = vadd.f32 -1.4531521, %v3950_v22  ;;  %v8891_v57 = vpop.eup %8890 }
 0x725   :  { %v3985_v55 = vadd.f32 1.4214138, %v3973_v15  ;;  %v3976_v6 = vmul.f32 %v12193_v3, %v3964_v2  ;;  %v3959_v50 = vmul.f32 1.0614054, %v12214_v24  ;;  %v12220_v8 = vpop.eup %8892  ;;  %v4073_v49 = vmul.f32 %v4061_v21, %v12169_v26 }
 0x726   :  { %v3996_v10 = vmul.f32 %v12171_v59, %v3984_v61  ;;  %v3987_v14 = vadd.f32 1.4214138, %v3975_v25  ;;  %v8895_v25 = vpop.eup %8894  ;;  %v3953_v22 = vmul.f32 1.0614054, %v12220_v8  ;;  %v4052_v58 = vmul.f32 %v12146_v43, %v4040_v0 }
 0x727   :  { %v3997_v53 = vmul.f32 %v12175_v5, %v3985_v55  ;;  %v3988_v41 = vadd.f32 1.4214138, %v3976_v6  ;;  %v3974_v55 = vmul.f32 %v12206_v1, %v3962_v12  ;;  %v4090_v63 = vmul.f32 1.442695, %v4073_v49 }
 0x728   :  { %v4008_v11 = vadd.f32 -0.28449672, %v3996_v10  ;;  %v3999_v61 = vmul.f32 %v12187_v52, %v3987_v14  ;;  %v3971_v10 = vadd.f32 -1.4531521, %v3959_v50  ;;  %v3965_v26 = vadd.f32 -1.4531521, %v3953_v22 }
 0x729   :  { %v4009_v19 = vadd.f32 -0.28449672, %v3997_v53  ;;  %v4000_v37 = vmul.f32 %v12193_v3, %v3988_v41  ;;  %v3986_v6 = vadd.f32 1.4214138, %v3974_v55  ;;  %8906 = vpow2.f32 %v4090_v63 }
 0x72a   :  { %v4020_v15 = vmul.f32 %v12171_v59, %v4008_v11  ;;  %v4011_v53 = vadd.f32 -0.28449672, %v3999_v61  ;;  %v8897_v11 = vpop.eup %8896  ;;  %v3983_v56 = vmul.f32 %v12214_v24, %v3971_v10  ;;  %v3977_v0 = vmul.f32 %v12220_v8, %v3965_v26 }
 0x72b   :  { %v4021_v51 = vmul.f32 %v12175_v5, %v4009_v19  ;;  %v4012_v50 = vadd.f32 -0.28449672, %v4000_v37  ;;  %v8899_v21 = vpop.eup %8898  ;;  %v3998_v61 = vmul.f32 %v12206_v1, %v3986_v6  ;;  %v4112_v10 = vmul.f32 %v8897_v11, %v4052_v58 }
 0x72c   :  { %v4032_v2 = vadd.f32 0.2548296, %v4020_v15  ;;  %v4023_v12 = vmul.f32 %v12187_v52, %v4011_v53  ;;  %v3995_v41 = vadd.f32 1.4214138, %v3983_v56  ;;  %v8901_v55 = vpop.eup %8900  ;;  %v3989_v49 = vadd.f32 1.4214138, %v3977_v0 }
 0x72d   :  { %v4033_v14 = vadd.f32 0.2548296, %v4021_v51  ;;  %v4024_v43 = vmul.f32 %v12193_v3, %v4012_v50  ;;  %v3892_v0 = vsel %vm3880_vm14, 1.0, %v15440_v27 }
 0x72e   :  { %v4044_v19 = vmul.f32 %v12171_v59, %v4032_v2  ;;  %v4035_v51 = vadd.f32 0.2548296, %v4023_v12  ;;  %v3891_v59 = vsel %vm3879_vm13, 1.0, %v15440_v27  ;;  %v4010_v2 = vadd.f32 -0.28449672, %v3998_v61 }
 0x72f   :  { %v4045_v15 = vmul.f32 %v12175_v5, %v4033_v14  ;;  %v4007_v53 = vmul.f32 %v12214_v24, %v3995_v41  ;;  %v4036_v56 = vadd.f32 0.2548296, %v4024_v43  ;;  %v4001_v11 = vmul.f32 %v12220_v8, %v3989_v49 }
 0x730   :  { %v4104_v45 = vmul.f32 %v8887_v47, %v4044_v19  ;;  %v4047_v37 = vmul.f32 %v12187_v52, %v4035_v51  ;;  %v8903_v47 = vpop.eup %8902  ;;  %v4022_v14 = vmul.f32 %v12206_v1, %v4010_v2  ;;  %v4124_v52 = vsub.f32 1.0, %v4112_v10 }
 0x731   :  { %v4105_v5 = vmul.f32 %v8891_v57, %v4045_v15  ;;  %v4019_v6 = vadd.f32 -0.28449672, %v4007_v53  ;;  %v12241_v19 = vpop.eup %8904  ;;  %v4048_v7 = vmul.f32 %v12193_v3, %v4036_v56  ;;  %v12247_v57 = vadd.f32 %v12127_v38, %v12082_v4 }
 0x732   :  { %v4116_v22 = vsub.f32 1.0, %v4104_v45  ;;  %v4107_v12 = vmul.f32 %v8895_v25, %v4047_v37  ;;  %v4034_v58 = vadd.f32 0.2548296, %v4022_v14  ;;  %v4013_v15 = vadd.f32 -0.28449672, %v4001_v11 }
 0x733   :  { %v4031_v45 = vmul.f32 %v12214_v24, %v4019_v6  ;;  %v4117_v50 = vsub.f32 1.0, %v4105_v5  ;;  %v4108_v63 = vmul.f32 %v8899_v21, %v4048_v7  ;;  %v3954_v41 = vmul.f32 1.0614054, %v12241_v19 }
 0x734   :  { %v4119_v26 = vsub.f32 1.0, %v4107_v12  ;;  %v4128_v25 = vmul.f32 %v4116_v22, %v12164_v29  ;;  %v4046_v3 = vmul.f32 %v12206_v1, %v4034_v58  ;;  %v4025_v38 = vmul.f32 %v12220_v8, %v4013_v15 }
 0x735   :  { %v4043_v61 = vadd.f32 0.2548296, %v4031_v45  ;;  %v4120_v4 = vsub.f32 1.0, %v4108_v63  ;;  %v12256_v43 = vmul.f32 0.70710677, %v12247_v57  ;;  %v4136_v21 = vmul.f32 %v4124_v52, %v12114_v18 }
 0x736   :  { %v4131_v51 = vmul.f32 %v4119_v26, %v3891_v59  ;;  %v4106_v10 = vmul.f32 %v8901_v55, %v4046_v3  ;;  %v4129_v1 = vmul.f32 %v4117_v50, %v12204_v17  ;;  %v4037_v59 = vadd.f32 0.2548296, %v4025_v38  ;;  %v8907_v55 = vpop.eup %8906 }
 0x737   :  { %v4055_v29 = vmul.f32 %v12214_v24, %v4043_v61  ;;  %v4132_v53 = vmul.f32 %v4120_v4, %v3892_v0  ;;  %v4140_v5 = vadd.f32 1.0, %v4128_v25  ;;  %v3966_v49 = vadd.f32 -1.4531521, %v3954_v41 }
 0x738   :  { %v4143_v2 = vadd.f32 1.0, %v4131_v51  ;;  %v4118_v37 = vsub.f32 1.0, %v4106_v10  ;;  %v4049_v44 = vmul.f32 %v12220_v8, %v4037_v59  ;;  %v12268_v18 = vand.u32 2147483647, %v12256_v43 }
 0x739   :  { %v4115_v56 = vmul.f32 %v8903_v47, %v4055_v29  ;;  %v4144_v24 = vadd.f32 1.0, %v4132_v53  ;;  %v12273_v6 = vadd.f32 %v12133_v33, %v12087_v42  ;;  %v4141_v47 = vadd.f32 1.0, %v4129_v1 }
 0x73a   :  { %v4155_v22 = vmul.f32 %v4143_v2, %v12158_v36  ;;  %v4130_v17 = vmul.f32 %v4118_v37, %v12137_v32  ;;  %v4148_v12 = vadd.f32 1.0, %v4136_v21  ;;  %v4109_v7 = vmul.f32 %v8907_v55, %v4049_v44 }
 0x73b   :  { %v4127_v14 = vsub.f32 1.0, %v4115_v56  ;;  %v3919_v36 = vmul.f32 0.3275911, %v12268_v18  ;;  %v4152_v11 = vmul.f32 %v4140_v5, %v12148_v13  ;;  %v3978_v58 = vmul.f32 %v12241_v19, %v3966_v49 }
 0x73c   :  { %v4142_v8 = vadd.f32 1.0, %v4130_v17  ;;  %v3893_v32 = vsel %vm3881_vm15, 1.0, %v15440_v27  ;;  %v4121_v45 = vsub.f32 1.0, %v4109_v7  ;;  %v12283_v33 = vmul.f32 0.70710677, %v12273_v6 }
 0x73d   :  { %v4139_v52 = vmul.f32 %v4127_v14, %v12144_v16  ;;  %v3931_v50 = vadd.f32 1.0, %v3919_v36  ;;  %v4182_v26 = vmul.f32 %v12096_v48, %v4155_v22  ;;  %v4156_v63 = vmul.f32 %v4144_v24, %v12197_v40 }
 0x73e   :  { %v4062_v13 = vsub.f32 0.0, %v12185_v28  ;;  %v4160_v16 = vmul.f32 %v4148_v12, %v12109_v35  ;;  %v4133_v25 = vmul.f32 %v4121_v45, %v3893_v32  ;;  %v3909_v3 = vand.u32 2147483647, %v12283_v33  ;;  %v12320_v12 = vld [vmem:[%s15347_s12 + $0x10] sm:$0xff]  }
 0x73f   :  { %v4151_v15 = vadd.f32 1.0, %v4139_v52  ;;  %8908 = vrcp.f32 %v3931_v50  ;;  %v4179_v20 = vmul.f32 %v12096_v48, %v4152_v11  ;;  %v4153_v61 = vmul.f32 %v4141_v47, %v12154_v30 }
 0x740   :  { %v4154_v41 = vmul.f32 %v4142_v8, %v12111_v23  ;;  %v3990_v51 = vadd.f32 1.4214138, %v3978_v58  ;;  %v4145_v38 = vadd.f32 1.0, %v4133_v25  ;;  %v3921_v40 = vmul.f32 0.3275911, %v3909_v3 }
 0x741   :  { %v4163_v4 = vmul.f32 %v4151_v15, %v12118_v54  ;;  %v12296_v0 = vadd.f32 %v12139_v60, %v12087_v42  ;;  %v4200_v35 = vpack.c.bf16 %v4156_v63, %v4153_v61  ;;  %v4199_v21 = vpack.c.bf16 %v4182_v26, %v4179_v20 }
 0x742   :  { %v4157_v10 = vmul.f32 %v4145_v38, %v12131_v9  ;;  %v3933_v29 = vadd.f32 1.0, %v3921_v40  ;;  %v4002_v1 = vmul.f32 %v12241_v19, %v3990_v51  ;;  %v4074_v30 = vmul.f32 %v4062_v13, %v12185_v28  ;;  %v12330_v13 = vld [vmem:[%s15347_s12 + $0x18] sm:$0xff]  }
 0x743   :  { %v12302_v23 = vmul.f32 0.70710677, %v12296_v0  ;;  %4285 = vmatprep.subr.bf16.mxu0 %v4200_v35  ;;  %v4181_v54 = vmul.f32 %v12101_v62, %v4154_v41  ;;  %v4187_v60 = vmul.f32 %v12101_v62, %v4160_v16  ;;  %v4190_v2 = vmul.f32 %v12101_v62, %v4163_v4 }
 0x744   :  { %8910 = vrcp.f32 %v3933_v29  ;;  %4286 = vmatpush1.bf16.msra.mxu0 %v4199_v21  ;;  %v4184_v42 = vmul.f32 %v12101_v62, %v4157_v10  ;;  %v4014_v5 = vadd.f32 -0.28449672, %v4002_v1  ;;  %v4092_v56 = vmul.f32 1.442695, %v4074_v30  ;;  %v12314_v62 = vld [vmem:[%s15347_s12 + $0x8] sm:$0xff]  }
 0x745   :  { %v3910_v9 = vand.u32 2147483647, %v12302_v23  ;;  %v4204_v59 = vpack.c.bf16 %v4190_v2, %v4187_v60  ;;  %v4063_v22 = vsub.f32 0.0, %v12268_v18  ;;  %v4065_v55 = vsub.f32 0.0, %v3909_v3 }
 0x746   :  { %v4201_v53 = vpack.c.bf16 %v4184_v42, %v4181_v54  ;;  %v4026_v24 = vmul.f32 %v12241_v19, %v4014_v5  ;;  %v3894_v42 = vsel %vm3882_vm1, 1.0, %v15440_v27  ;;  %vm3885_vm2 = vcmp.ge.f32.partialorder %v12283_v33, 0.0 }
 0x747   :  { %v3922_v28 = vmul.f32 0.3275911, %v3910_v9  ;;  %v4075_v47 = vmul.f32 %v4063_v22, %v12268_v18  ;;  %v4077_v36 = vmul.f32 %v4065_v55, %v3909_v3  ;;  %v4066_v50 = vsub.f32 0.0, %v3910_v9 }
 0x748   :  { %8398 = vmatprep.subr.bf16.mxu1 %v4201_v53  ;;  %v4038_v11 = vadd.f32 0.2548296, %v4026_v24  ;;  %vm3883_vm3 = vcmp.ge.f32.partialorder %v12256_v43, 0.0  ;;  %v3858_v24 = vmul.f32 0.5, %v12161_v46  ;;  %v3861_v33 = vmul.f32 0.5, %v12273_v6 }
 0x749   :  { %v8909_v37 = vpop.eup %8908  ;;  %v3934_v44 = vadd.f32 1.0, %v3922_v28  ;;  %8399 = vmatpush3.bf16.msra.mxu1 %v4201_v53  ;;  %v4094_v32 = vmul.f32 1.442695, %v4075_v47  ;;  %v4098_v18 = vmul.f32 1.442695, %v4077_v36  ;;  %v4078_v20 = vmul.f32 %v4066_v50, %v3910_v9 }
 0x74a   :  { %v3955_v49 = vmul.f32 1.0614054, %v8909_v37  ;;  %8400 = vmatprep.subr.bf16.mxu1 %v4204_v59  ;;  %v4050_v26 = vmul.f32 %v12241_v19, %v4038_v11  ;;  %v3895_v36 = vsel %vm3883_vm3, 1.0, %v15440_v27  ;;  %vm3886_vm4 = vcmp.ge.f32.partialorder %v12302_v23, 0.0 }
 0x74b   :  { %8912 = vrcp.f32 %v3934_v44  ;;  %v4100_v35 = vmul.f32 1.442695, %v4078_v20  ;;  %v3897_v44 = vsel %vm3885_vm2, 1.0, %v15440_v27  ;;  %v3898_v46 = vsel %vm3886_vm4, 1.0, %v15440_v27 }
 0x74c   :  { %v3967_v17 = vadd.f32 -1.4531521, %v3955_v49  ;;  %8914 = vpow2.f32 %v4092_v56  ;;  %v3862_v6 = vmul.f32 0.5, %v12296_v0 }
 0x74d   :  { %8401 = vmatpush3.bf16.msra.mxu1 %v4204_v59  ;;  %8916 = vpow2.f32 %v4094_v32 }
 0x74e   :  { %v3979_v14 = vmul.f32 %v8909_v37, %v3967_v17  ;;  %v8911_v7 = vpop.eup %8910  ;;  %8918 = vpow2.f32 %v4098_v18 }
 0x74f   :  { %v3957_v52 = vmul.f32 1.0614054, %v8911_v7  ;;  %8920 = vpow2.f32 %v4100_v35 }
 0x750   :  { %v3991_v8 = vadd.f32 1.4214138, %v3979_v14  ;;  %8403 = vmatmul.mubr.msk.bf16.vlgmr.msra.gmra.mrb[56].mxu1 %vm138_vm0, %v12314_v62 }
 0x751   :  { %v3969_v45 = vadd.f32 -1.4531521, %v3957_v52  ;;  %8406 = vmatprep.mubr.msk.bf16.mxu1 %vm138_vm0, %v12320_v12 }
 0x752   :  { %v4003_v58 = vmul.f32 %v8909_v37, %v3991_v8 }
 0x753   :  { %v3981_v15 = vmul.f32 %v8911_v7, %v3969_v45 }
 0x754   :  { %v4015_v63 = vadd.f32 -0.28449672, %v4003_v58 }
 0x755   :  { %v8913_v16 = vpop.eup %8912  ;;  %v3993_v3 = vadd.f32 1.4214138, %v3981_v15 }
 0x756   :  { %v4027_v25 = vmul.f32 %v8909_v37, %v4015_v63  ;;  %v8915_v61 = vpop.eup %8914  ;;  %v3958_v41 = vmul.f32 1.0614054, %v8913_v16  ;;  %v3859_v63 = vmul.f32 0.5, %v12247_v57  ;;  %v12362_v57 = vpop.permute.xlu0 %4220 }
 0x757   :  { %v4110_v51 = vmul.f32 %v8915_v61, %v4050_v26  ;;  %v4005_v4 = vmul.f32 %v8911_v7, %v3993_v3  ;;  %v8917_v2 = vpop.eup %8916 }
 0x758   :  { %v4039_v38 = vadd.f32 0.2548296, %v4027_v25  ;;  %v3970_v40 = vadd.f32 -1.4531521, %v3958_v41  ;;  %8407 = vmatmul.mubr.msk.bf16.gmra.mrb[60].mxu1 %vm138_vm0, %v12330_v13  ;;  %v8919_v59 = vpop.eup %8918 }
 0x759   :  { %v4017_v19 = vadd.f32 -0.28449672, %v4005_v4  ;;  %5307 = vmatprep.mubr.bf16.mxu1 %v15528_v34  ;;  %v4122_v10 = vsub.f32 1.0, %v4110_v51  ;;  %v8921_v47 = vpop.eup %8920 }
 0x75a   :  { %v3982_v21 = vmul.f32 %v8913_v16, %v3970_v40  ;;  %v4051_v1 = vmul.f32 %v8909_v37, %v4039_v38  ;;  %v12367_v20 = vpop.permute.xlu0 %4230 }
 0x75b   :  { %v4029_v29 = vmul.f32 %v8911_v7, %v4017_v19  ;;  %v4134_v9 = vmul.f32 %v4122_v10, %v3894_v42 }
 0x75c   :  { %v3994_v30 = vadd.f32 1.4214138, %v3982_v21  ;;  %v4111_v5 = vmul.f32 %v8917_v2, %v4051_v1  ;;  %v15533_v2 = vld [vmem:[#allocation2_spill] sm:$0xff] }
 0x75d   :  { %v4041_v54 = vadd.f32 0.2548296, %v4029_v29  ;;  %v4146_v39 = vadd.f32 1.0, %v4134_v9 }
 0x75e   :  { %v4006_v60 = vmul.f32 %v8913_v16, %v3994_v30  ;;  %v4123_v37 = vsub.f32 1.0, %v4111_v5  ;;  %v12376_v29 = vpop.permute.xlu0 %4240 }
 0x75f   :  { %v4053_v53 = vmul.f32 %v8911_v7, %v4041_v54  ;;  %v4158_v7 = vmul.f32 %v4146_v39, %v3858_v24  ;;  %15532 = vst [vmem:[#allocation20_spill] sm:$0xff] %v12376_v29 }
 0x760   :  { %v4018_v28 = vadd.f32 -0.28449672, %v4006_v60  ;;  %v4135_v8 = vmul.f32 %v4123_v37, %v3895_v36 }
 0x761   :  { %v4113_v56 = vmul.f32 %v8919_v59, %v4053_v53  ;;  %v4185_v32 = vmul.f32 %v12096_v48, %v4158_v7 }
 0x762   :  { %v4030_v49 = vmul.f32 %v8913_v16, %v4018_v28  ;;  %v4147_v50 = vadd.f32 1.0, %v4135_v8 }
 0x763   :  { %v4125_v22 = vsub.f32 1.0, %v4113_v56 }
 0x764   :  { %v4042_v55 = vadd.f32 0.2548296, %v4030_v49 }
 0x765   :  { %v4137_v17 = vmul.f32 %v4125_v22, %v3897_v44  ;;  %v15535_v44 = vmov 0.0  }
 0x766   :  { %v4054_v14 = vmul.f32 %v8913_v16, %v4042_v55  ;;  %v4159_v16 = vmul.f32 %v4147_v50, %v3859_v63 }
 0x767   :  { %v4149_v11 = vadd.f32 1.0, %v4137_v17  ;;  %v12385_v17 = vpop.permute.xlu0 %4250 }
 0x768   :  { %v4114_v52 = vmul.f32 %v8921_v47, %v4054_v14  ;;  %15536 = vst [vmem:[#allocation29_spill] sm:$0xff] %v12385_v17 }
 0x769   :  { %v4161_v43 = vmul.f32 %v4149_v11, %v3861_v33 }
 0x76a   :  { %v4126_v58 = vsub.f32 1.0, %v4114_v52 }
 0x76b   :  { %v4188_v45 = vmul.f32 %v12096_v48, %v4161_v43  ;;  %v12360_v48 = vpop.permute.xlu1 %4215 }
 0x76c   :  { %v4138_v18 = vmul.f32 %v4126_v58, %v3898_v46 }
 0x76d   :  { %v4202_v26 = vpack.c.bf16 %v4188_v45, %v4185_v32 }
 0x76e   :  { %v4150_v15 = vadd.f32 1.0, %v4138_v18 }
 0x770   :  { %v4162_v25 = vmul.f32 %v4150_v15, %v3862_v6 }
 0x772   :  { %v4203_v23 = vpack.c.bf16 %v4162_v25, %v4159_v16 }
 0x774   :  { %4287 = vmatprep.subr.bf16.mxu0 %v4203_v23 }
 0x775   :  { %4288 = vmatpush1.bf16.msra.mxu0 %v4202_v26 }
 0x778   :  { %8167 = vmatmul.mubr.msk.bf16.vlgmr.msra.gmra.mrb[32].mxu0 %vm138_vm0, %v12078_v31  ;;  %v12364_v31 = vpop.permute.xlu1 %4225 }
 0x779   :  { %4327 = vmatprep.mubr.bf16.mxu0 %v15528_v34 }
 0x77c   :  { %v12374_v21 = vpop.permute.xlu1 %4235 }
 0x780   :  { %8168 = vmatmul.mubr.msk.bf16.gmra.mrb[36].mxu0 %vm138_vm0, %v12314_v62  ;;  %v12380_v37 = vpop.permute.xlu1 %4245 }
 0x781   :  { %4337 = vmatprep.mubr.bf16.mxu0 %v15528_v34  ;;  %15534 = vst [vmem:[#allocation11_spill] sm:$0xff] %v12380_v37 }
 0x788   :  { %8169 = vmatmul.mubr.msk.bf16.gmra.mrb[40].mxu0 %vm138_vm0, %v12320_v12 }
 0x789   :  { %4347 = vmatprep.mubr.bf16.mxu0 %v15528_v34 }
 0x790   :  { %8170 = vmatmul.mubr.msk.bf16.gmra.mrb[44].mxu0 %vm138_vm0, %v12330_v13  ;;  %vm5047_vm0 = vcmp.ge.s32.totalorder %v15533_v2, 2 }
 0x791   :  { %v12383_v55 = vsel %vm5047_vm0, 1.0, %v15535_v44 }
 0x823   :  { %v8404_v0 = vpop.f32.mrb[56].mxu1 }
 0x824   :  { %v4401_v3 = vadd.f32 %v8404_v0, %v12364_v31  ;;  %v4392_v62 = vpop.f32.mrb[57].mxu1 }
 0x825   :  { %v4393_v61 = vadd.f32 %v4392_v62, %v12360_v48  ;;  %v8405_v12 = vpop.f32.mrb[58].mxu1 }
 0x826   :  { %v4455_v41 = vmul.f32 0.70710677, %v4401_v3  ;;  %v4404_v51 = vadd.f32 %v8405_v12, %v12367_v20  ;;  %v4395_v4 = vpop.f32.mrb[59].mxu1  ;;  %v12387_v14 = vmul.f32 0.5, %v4401_v3 }
 0x827   :  { %v4449_v13 = vmul.f32 0.70710677, %v4393_v61  ;;  %v4396_v19 = vadd.f32 %v4395_v4, %v12362_v57  ;;  %v12391_v33 = vmul.f32 0.5, %v4393_v61 }
 0x828   :  { %v4527_v38 = vand.u32 2147483647, %v4455_v41  ;;  %v12371_v40 = vmul.f32 0.70710677, %v4404_v51  ;;  %vm4479_vm5 = vcmp.ge.f32.partialorder %v4455_v41, 0.0  ;;  %v12396_v32 = vmul.f32 0.5, %v4404_v51 }
 0x829   :  { %v4521_v35 = vand.u32 2147483647, %v4449_v13  ;;  %v4452_v42 = vmul.f32 0.70710677, %v4396_v19  ;;  %vm4473_vm6 = vcmp.ge.f32.partialorder %v4449_v13, 0.0  ;;  %v12404_v26 = vsel %vm4479_vm5, 1.0, %v15440_v27 }
 0x82a   :  { %v4551_v10 = vmul.f32 0.3275911, %v4527_v38  ;;  %v4530_v30 = vand.u32 2147483647, %v12371_v40  ;;  %v4839_v9 = vsub.f32 0.0, %v4527_v38  ;;  %vm4482_vm7 = vcmp.ge.f32.partialorder %v12371_v40, 0.0 }
 0x82b   :  { %v4545_v1 = vmul.f32 0.3275911, %v4521_v35  ;;  %v8408_v60 = vpop.f32.mrb[60].mxu1  ;;  %v4524_v28 = vand.u32 2147483647, %v4452_v42  ;;  %v4833_v49 = vsub.f32 0.0, %v4521_v35 }
 0x82c   :  { %v4575_v54 = vadd.f32 1.0, %v4551_v10  ;;  %v4554_v59 = vmul.f32 0.3275911, %v4530_v30  ;;  %v4408_v5 = vpop.f32.mrb[61].mxu1  ;;  %v4863_v47 = vmul.f32 %v4839_v9, %v4527_v38  ;;  %v4417_v7 = vadd.f32 %v8408_v60, %v12380_v37 }
 0x82d   :  { %v4569_v53 = vadd.f32 1.0, %v4545_v1  ;;  %v8409_v56 = vpop.f32.mrb[62].mxu1  ;;  %v4548_v24 = vmul.f32 0.3275911, %v4524_v28  ;;  %v4409_v36 = vadd.f32 %v4408_v5, %v12374_v21  ;;  %v4857_v52 = vmul.f32 %v4833_v49, %v4521_v35 }
 0x82e   :  { %8922 = vrcp.f32 %v4575_v54  ;;  %v4578_v39 = vadd.f32 1.0, %v4554_v59  ;;  %v4411_v22 = vpop.f32.mrb[63].mxu1  ;;  %v4420_v8 = vadd.f32 %v8409_v56, %v12385_v17  ;;  %v4842_v43 = vsub.f32 0.0, %v4530_v30 }
 0x82f   :  { %8924 = vrcp.f32 %v4569_v53  ;;  %v4572_v11 = vadd.f32 1.0, %v4548_v24  ;;  %v12394_v58 = vmul.f32 0.70710677, %v4417_v7  ;;  %v12398_v45 = vmul.f32 0.70710677, %v4409_v36 }
 0x830   :  { %8926 = vrcp.f32 %v4578_v39  ;;  %v4895_v46 = vmul.f32 1.442695, %v4863_v47  ;;  %v12401_v18 = vmul.f32 0.70710677, %v4420_v8  ;;  %v12407_v63 = vmul.f32 0.5, %v4396_v19 }
 0x831   :  { %8928 = vrcp.f32 %v4572_v11  ;;  %v4539_v50 = vand.u32 2147483647, %v12394_v58  ;;  %v12410_v6 = vand.u32 2147483647, %v12398_v45  ;;  %v12413_v15 = vsel %vm4473_vm6, 1.0, %v15440_v27 }
 0x832   :  { %v4883_v16 = vmul.f32 1.442695, %v4857_v52  ;;  %v4866_v25 = vmul.f32 %v4842_v43, %v4530_v30  ;;  %vm4476_vm9 = vcmp.ge.f32.partialorder %v4452_v42, 0.0  ;;  %v4836_v3 = vsub.f32 0.0, %v4524_v28 }
 0x833   :  { %v4563_v23 = vmul.f32 0.3275911, %v4539_v50  ;;  %v4557_v62 = vmul.f32 0.3275911, %v12410_v6  ;;  %v12419_v61 = vand.u32 2147483647, %v12401_v18  ;;  %8930 = vpow2.f32 %v4895_v46 }
 0x834   :  { %v12425_v51 = vsel %vm4482_vm7, 1.0, %v15440_v27  ;;  %v12430_v19 = vadd.f32 %v4411_v22, %v12376_v29  ;;  %v4901_v10 = vmul.f32 1.442695, %v4866_v25  ;;  %v12433_v1 = vsel %vm4476_vm9, 1.0, %v15440_v27 }
 0x835   :  { %v4587_v4 = vadd.f32 1.0, %v4563_v23  ;;  %v4581_v38 = vadd.f32 1.0, %v4557_v62  ;;  %v4566_v40 = vmul.f32 0.3275911, %v12419_v61  ;;  %v4860_v42 = vmul.f32 %v4836_v3, %v4524_v28 }
 0x836   :  { %v12439_v59 = vmul.f32 0.5, %v4417_v7  ;;  %v12441_v5 = vmul.f32 0.5, %v4409_v36  ;;  %v4851_v39 = vsub.f32 0.0, %v4539_v50  ;;  %v12447_v22 = vmul.f32 0.70710677, %v12430_v19 }
 0x837   :  { %8932 = vrcp.f32 %v4587_v4  ;;  %v4590_v60 = vadd.f32 1.0, %v4566_v40  ;;  %v4889_v52 = vmul.f32 1.442695, %v4860_v42  ;;  %v12450_v7 = vmul.f32 0.5, %v4420_v8 }
 0x838   :  { %v12415_v0 = vpop.eup %8922  ;;  %8934 = vpow2.f32 %v4883_v16  ;;  %15537 = vst [vmem:[#allocation17_spill] sm:$0xff] %v12441_v5  ;;  %v4845_v16 = vsub.f32 0.0, %v12410_v6  ;;  %vm4491_vm10 = vcmp.ge.f32.partialorder %v12394_v58, 0.0  ;;  %v4875_v23 = vmul.f32 %v4851_v39, %v4539_v50 }
 0x839   :  { %v12421_v12 = vpop.eup %8924  ;;  %v4623_v41 = vmul.f32 1.0614054, %v12415_v0  ;;  %8936 = vrcp.f32 %v4581_v38  ;;  %15538 = vst [vmem:[#allocation19_spill] sm:$0xff] %v12450_v7  ;;  %v4536_v3 = vand.u32 2147483647, %v12447_v22  ;;  %vm4485_vm11 = vcmp.ge.f32.partialorder %v12398_v45, 0.0 }
 0x83a   :  { %v4617_v13 = vmul.f32 1.0614054, %v12421_v12  ;;  %v12435_v30 = vpop.eup %8926  ;;  %8938 = vpow2.f32 %v4901_v10  ;;  %vm4494_vm13 = vcmp.ge.f32.partialorder %v12401_v18, 0.0  ;;  %vm4488_vm14 = vcmp.ge.f32.partialorder %v12447_v22, 0.0 }
 0x83b   :  { %v4647_v35 = vadd.f32 -1.4531521, %v4623_v41  ;;  %v4626_v53 = vmul.f32 1.0614054, %v12435_v30  ;;  %v12443_v56 = vpop.eup %8928  ;;  %8940 = vrcp.f32 %v4590_v60  ;;  %v4560_v58 = vmul.f32 0.3275911, %v4536_v3 }
 0x83c   :  { %v4641_v54 = vadd.f32 -1.4531521, %v4617_v13  ;;  %v4620_v47 = vmul.f32 1.0614054, %v12443_v56  ;;  %v4854_v13 = vsub.f32 0.0, %v12419_v61  ;;  %8942 = vpow2.f32 %v4889_v52 }
 0x83d   :  { %v4671_v9 = vmul.f32 %v12415_v0, %v4647_v35  ;;  %v4650_v28 = vadd.f32 -1.4531521, %v4626_v53  ;;  %v8931_v62 = vpop.eup %8930  ;;  %v4919_v53 = vmul.f32 1.442695, %v4875_v23  ;;  %v12495_v45 = vmul.f32 0.5, %v12430_v19 }
 0x83e   :  { %v4665_v49 = vmul.f32 %v12421_v12, %v4641_v54  ;;  %v4644_v46 = vadd.f32 -1.4531521, %v4620_v47  ;;  %v4869_v54 = vmul.f32 %v4845_v16, %v12410_v6  ;;  %v4878_v47 = vmul.f32 %v4854_v13, %v12419_v61 }
 0x83f   :  { %v4695_v24 = vadd.f32 1.4214138, %v4671_v9  ;;  %v4674_v43 = vmul.f32 %v12435_v30, %v4650_v28  ;;  %v12476_v6 = vsel %vm4491_vm10, 1.0, %v15440_v27  ;;  %15541 = vst [vmem:[#allocation12_spill] sm:$0xff] %v12495_v45  ;;  %8944 = vpow2.f32 %v4919_v53 }
 0x840   :  { %v4689_v11 = vadd.f32 1.4214138, %v4665_v49  ;;  %v4668_v8 = vmul.f32 %v12443_v56, %v4644_v46  ;;  %v4848_v49 = vsub.f32 0.0, %v4536_v3  ;;  %v12509_v53 = vadd.f32 1.0, %v4560_v58 }
 0x841   :  { %v4719_v36 = vmul.f32 %v12415_v0, %v4695_v24  ;;  %v4698_v4 = vadd.f32 1.4214138, %v4674_v43  ;;  %v12462_v40 = vpop.eup %8932  ;;  %v12486_v43 = vsel %vm4494_vm13, 1.0, %v15440_v27 }
 0x842   :  { %v4713_v25 = vmul.f32 %v12421_v12, %v4689_v11  ;;  %v4692_v10 = vadd.f32 1.4214138, %v4668_v8  ;;  %v8935_v42 = vpop.eup %8934  ;;  %v4635_v9 = vmul.f32 1.0614054, %v12462_v40  ;;  %15540 = vst [vmem:[#allocation33_spill] sm:$0xff] %v12486_v43 }
 0x843   :  { %v4743_v41 = vadd.f32 -0.28449672, %v4719_v36  ;;  %v4722_v50 = vmul.f32 %v12435_v30, %v4698_v4  ;;  %v12471_v11 = vpop.eup %8936  ;;  %v12481_v36 = vsel %vm4485_vm11, 1.0, %v15440_v27  ;;  %v4872_v4 = vmul.f32 %v4848_v49, %v4536_v3 }
 0x844   :  { %v4737_v38 = vadd.f32 -0.28449672, %v4713_v25  ;;  %v4716_v28 = vmul.f32 %v12443_v56, %v4692_v10  ;;  %15539 = vst [vmem:[#allocation14_spill] sm:$0xff] %v12481_v36  ;;  %v12488_v46 = vpop.eup %8938  ;;  %v4659_v16 = vadd.f32 -1.4531521, %v4635_v9 }
 0x845   :  { %v4767_v35 = vmul.f32 %v12415_v0, %v4743_v41  ;;  %v4746_v24 = vadd.f32 -0.28449672, %v4722_v50  ;;  %v12492_v25 = vpop.eup %8940  ;;  %v4907_v41 = vmul.f32 1.442695, %v4869_v54  ;;  %v4629_v13 = vmul.f32 1.0614054, %v12471_v11 }
 0x846   :  { %v4761_v60 = vmul.f32 %v12421_v12, %v4737_v38  ;;  %v4740_v23 = vadd.f32 -0.28449672, %v4716_v28  ;;  %v4925_v38 = vmul.f32 1.442695, %v4878_v47  ;;  %v12504_v54 = vsel %vm4488_vm14, 1.0, %v15440_v27  ;;  %v12511_v49 = vpop.eup %8942 }
 0x847   :  { %v4791_v39 = vadd.f32 0.2548296, %v4767_v35  ;;  %v4770_v18 = vmul.f32 %v12435_v30, %v4746_v24  ;;  %15542 = vst [vmem:[#allocation21_spill] sm:$0xff] %v12504_v54  ;;  %v4638_v9 = vmul.f32 1.0614054, %v12492_v25  ;;  %8946 = vpow2.f32 %v4907_v41 }
 0x848   :  { %v4785_v52 = vadd.f32 0.2548296, %v4761_v60  ;;  %v4683_v60 = vmul.f32 %v12462_v40, %v4659_v16  ;;  %v4764_v24 = vmul.f32 %v12443_v56, %v4740_v23  ;;  %v12515_v22 = vmul.f32 1.442695, %v4872_v4 }
 0x849   :  { %v4815_v61 = vmul.f32 %v12415_v0, %v4791_v39  ;;  %v4794_v47 = vadd.f32 0.2548296, %v4770_v18  ;;  %v12521_v2 = vadd.f32 -1.4531521, %v4638_v9  ;;  %8948 = vpow2.f32 %v4925_v38  ;;  %v12528_v9 = vpop.eup %8944 }
 0x84a   :  { %v4809_v10 = vmul.f32 %v12421_v12, %v4785_v52  ;;  %v4788_v4 = vadd.f32 0.2548296, %v4764_v24  ;;  %vm5250_vm14 = vcmask 523264  }
 0x84b   :  { %v4319_v8 = vpop.f32.mrb[32].mxu0  ;;  %v4935_v50 = vmul.f32 %v8931_v62, %v4815_v61  ;;  %v4818_v41 = vmul.f32 %v12435_v30, %v4794_v47 }
 0x84c   :  { %v4320_v0 = vadd.f32 %v4319_v8, %v12360_v48  ;;  %v4321_v35 = vpop.f32.mrb[33].mxu0  ;;  %v4929_v58 = vmul.f32 %v8935_v42, %v4809_v10 }
 0x84d   :  { %v4322_v19 = vadd.f32 %v4321_v35, %v12360_v48  ;;  %v4323_v3 = vpop.f32.mrb[34].mxu0  ;;  %v12517_v48 = vadd.f32 -1.4531521, %v4629_v13  ;;  %v4959_v16 = vsub.f32 1.0, %v4935_v50  ;;  %v12519_v35 = vadd.f32 1.4214138, %v4683_v60 }
 0x84e   :  { %v4447_v39 = vmul.f32 0.70710677, %v4320_v0  ;;  %v4324_v62 = vadd.f32 %v4323_v3, %v12362_v57  ;;  %v4325_v12 = vpop.f32.mrb[35].mxu0  ;;  %v12524_v44 = vmul.f32 0.5, %v4320_v0  ;;  %v4953_v10 = vsub.f32 1.0, %v4929_v58 }
 0x84f   :  { %v4448_v28 = vmul.f32 0.70710677, %v4322_v19  ;;  %v4326_v23 = vadd.f32 %v4325_v12, %v12362_v57  ;;  %v4983_v42 = vmul.f32 %v4959_v16, %v12404_v26  ;;  %v12530_v24 = vmul.f32 0.5, %v4322_v19 }
 0x850   :  { %v4519_v52 = vand.u32 2147483647, %v4447_v39  ;;  %v4450_v61 = vmul.f32 0.70710677, %v4324_v62  ;;  %vm4471_vm15 = vcmp.ge.f32.partialorder %v4447_v39, 0.0 }
 0x851   :  { %v4520_v8 = vand.u32 2147483647, %v4448_v28  ;;  %vm4472_vm1 = vcmp.ge.f32.partialorder %v4448_v28, 0.0  ;;  %v4451_v0 = vmul.f32 0.70710677, %v4326_v23  ;;  %v12535_v16 = vsel %vm4471_vm15, 1.0, %v15440_v27  ;;  %v12539_v58 = vpop.eup %8946 }
 0x852   :  { %v4543_v3 = vmul.f32 0.3275911, %v4519_v52  ;;  %v4831_v34 = vsub.f32 0.0, %v4519_v52  ;;  %v4522_v13 = vand.u32 2147483647, %v4450_v61  ;;  %vm4474_vm2 = vcmp.ge.f32.partialorder %v4450_v61, 0.0 }
 0x853   :  { %v4544_v18 = vmul.f32 0.3275911, %v4520_v8  ;;  %v4832_v50 = vsub.f32 0.0, %v4520_v8  ;;  %v4329_v60 = vpop.f32.mrb[36].mxu0  ;;  %v12542_v28 = vsel %vm4472_vm1, 1.0, %v15440_v27  ;;  %v12545_v19 = vsel %vm4474_vm2, 1.0, %v15440_v27 }
 0x854   :  { %v4567_v17 = vadd.f32 1.0, %v4543_v3  ;;  %v4855_v38 = vmul.f32 %v4831_v34, %v4519_v52  ;;  %v4546_v54 = vmul.f32 0.3275911, %v4522_v13  ;;  %v4331_v57 = vpop.f32.mrb[37].mxu0  ;;  %v4834_v47 = vsub.f32 0.0, %v4522_v13 }
 0x855   :  { %v4568_v45 = vadd.f32 1.0, %v4544_v18  ;;  %v4333_v12 = vpop.f32.mrb[38].mxu0  ;;  %v4856_v39 = vmul.f32 %v4832_v50, %v4520_v8  ;;  %v12537_v34 = vmul.f32 0.5, %v4324_v62  ;;  %v4523_v52 = vand.u32 2147483647, %v4451_v0  ;;  %v12549_v8 = vpop.eup %8948 }
 0x856   :  { %8950 = vrcp.f32 %v4567_v17  ;;  %v4570_v30 = vadd.f32 1.0, %v4546_v54  ;;  %v12532_v26 = vpop.f32.mrb[39].mxu0  ;;  %v4879_v17 = vmul.f32 1.442695, %v4855_v38  ;;  %v4977_v61 = vmul.f32 %v4953_v10, %v12413_v15  ;;  %15543 = vst [vmem:[#allocation25_spill] sm:$0xff] %v12549_v8 }
 0x857   :  { %8952 = vrcp.f32 %v4568_v45  ;;  %v5007_v45 = vadd.f32 1.0, %v4983_v42  ;;  %v4547_v54 = vmul.f32 0.3275911, %v4523_v52  ;;  %v4938_v3 = vmul.f32 %v12488_v46, %v4818_v41 }
 0x858   :  { %8954 = vrcp.f32 %v4570_v30  ;;  %v4858_v62 = vmul.f32 %v4834_v47, %v4522_v13  ;;  %v4835_v18 = vsub.f32 0.0, %v4523_v52  ;;  %v4330_v50 = vadd.f32 %v4329_v60, %v12364_v31 }
 0x859   :  { %8956 = vrcp.f32 %v12509_v53  ;;  %v4881_v7 = vmul.f32 1.442695, %v4856_v39  ;;  %v4571_v37 = vadd.f32 1.0, %v4547_v54  ;;  %v4812_v42 = vmul.f32 %v12443_v56, %v4788_v4 }
 0x85a   :  { %v4332_v30 = vadd.f32 %v4331_v57, %v12364_v31  ;;  %vm4475_vm3 = vcmp.ge.f32.partialorder %v4451_v0, 0.0  ;;  %v12559_v15 = vmul.f32 0.70710677, %v4330_v50  ;;  %v12563_v46 = vmul.f32 %v12471_v11, %v12517_v48 }
 0x85b   :  { %v12553_v38 = vpop.f32.mrb[40].mxu0  ;;  %8958 = vpow2.f32 %v12515_v22  ;;  %v5001_v13 = vadd.f32 1.0, %v4977_v61  ;;  %v4962_v41 = vsub.f32 1.0, %v4938_v3  ;;  %v4885_v31 = vmul.f32 1.442695, %v4858_v62 }
 0x85c   :  { %v12557_v5 = vpop.f32.mrb[41].mxu0  ;;  %8960 = vrcp.f32 %v4571_v37  ;;  %v12568_v10 = vmul.f32 0.70710677, %v4332_v30  ;;  %v12572_v4 = vmul.f32 0.5, %v4326_v23  ;;  %v4859_v60 = vmul.f32 %v4835_v18, %v4523_v52 }
 0x85d   :  { %v12566_v53 = vpop.f32.mrb[42].mxu0  ;;  %v12575_v57 = vand.u32 2147483647, %v12559_v15  ;;  %8962 = vpow2.f32 %v4879_v17  ;;  %v12581_v22 = vsel %vm4475_vm3, 1.0, %v15440_v27  ;;  %v4932_v37 = vmul.f32 %v12511_v49, %v4812_v42 }
 0x85e   :  { %15544 = vst [vmem:[#allocation22_spill] sm:$0xff] %v12566_v53  ;;  %v12570_v56 = vpop.f32.mrb[43].mxu0  ;;  %15546 = vst [vmem:[#allocation8_spill] sm:$0xff] %v12572_v4  ;;  %v12585_v47 = vand.u32 2147483647, %v12568_v10  ;;  %8964 = vpow2.f32 %v4881_v7  ;;  %v12591_v52 = vmul.f32 %v5007_v45, %v12387_v14  ;;  %v12596_v0 = vmul.f32 %v5001_v13, %v12391_v33 }
 0x85f   :  { %15545 = vst [vmem:[#allocation23_spill] sm:$0xff] %v12570_v56  ;;  %v4549_v54 = vmul.f32 0.3275911, %v12575_v57  ;;  %v4986_v49 = vmul.f32 %v4962_v41, %v12425_v51  ;;  %v4887_v62 = vmul.f32 1.442695, %v4859_v60  ;;  %v12601_v42 = vadd.f32 %v4333_v12, %v12367_v20 }
 0x860   :  { %v12577_v48 = vpop.eup %8950  ;;  %15547 = vst [vmem:[#allocation5_spill] sm:$0xff] %v12591_v52  ;;  %15548 = vst [vmem:[#allocation27_spill] sm:$0xff] %v12596_v0  ;;  %v4550_v61 = vmul.f32 0.3275911, %v12585_v47  ;;  %v4956_v52 = vsub.f32 1.0, %v4932_v37  ;;  %v12607_v56 = vmul.f32 0.5, %v4330_v50 }
 0x861   :  { %v12587_v39 = vpop.eup %8952  ;;  %v4615_v23 = vmul.f32 1.0614054, %v12577_v48  ;;  %v4573_v18 = vadd.f32 1.0, %v4549_v54  ;;  %v12615_v12 = vmul.f32 0.5, %v4332_v30  ;;  %vm4477_vm4 = vcmp.ge.f32.partialorder %v12559_v15, 0.0 }
 0x862   :  { %v4616_v17 = vmul.f32 1.0614054, %v12587_v39  ;;  %v12605_v14 = vpop.eup %8954  ;;  %15550 = vst [vmem:[#allocation10_spill] sm:$0xff] %v12607_v56  ;;  %v4574_v33 = vadd.f32 1.0, %v4550_v61  ;;  %vm4478_vm0 = vcmp.ge.f32.partialorder %v12568_v10, 0.0 }
 0x863   :  { %v4639_v3 = vadd.f32 -1.4531521, %v4615_v23  ;;  %v12603_v7 = vpop.f32.mrb[44].mxu0  ;;  %v12611_v51 = vpop.eup %8956  ;;  %v4618_v60 = vmul.f32 1.0614054, %v12605_v14  ;;  %8966 = vrcp.f32 %v4573_v18  ;;  %15552 = vst [vmem:[#allocation28_spill] sm:$0xff] %v12615_v12 }
 0x864   :  { %15549 = vst [vmem:[#allocation9_spill] sm:$0xff] %v12603_v7  ;;  %v4640_v45 = vadd.f32 -1.4531521, %v4616_v17  ;;  %v12609_v13 = vpop.f32.mrb[45].mxu0  ;;  %v5010_v17 = vadd.f32 1.0, %v4986_v49  ;;  %8968 = vrcp.f32 %v4574_v33 }
 0x865   :  { %15551 = vst [vmem:[#allocation31_spill] sm:$0xff] %v12609_v13  ;;  %v4663_v41 = vmul.f32 %v12577_v48, %v4639_v3  ;;  %v12617_v23 = vpop.f32.mrb[46].mxu0  ;;  %v12623_v37 = vpop.eup %8958  ;;  %v4642_v0 = vadd.f32 -1.4531521, %v4618_v60  ;;  %8970 = vpow2.f32 %v4885_v31  ;;  %v12626_v3 = vmul.f32 0.70710677, %v12601_v42 }
 0x866   :  { %15553 = vst [vmem:[#allocation30_spill] sm:$0xff] %v12617_v23  ;;  %v4664_v54 = vmul.f32 %v12587_v39, %v4640_v45  ;;  %v12621_v50 = vpop.f32.mrb[47].mxu0  ;;  %15555 = vst [vmem:[#allocation7_spill] sm:$0xff] %v12623_v37  ;;  %v12628_v30 = vpop.eup %8960  ;;  %8972 = vpow2.f32 %v4887_v62  ;;  %v4980_v45 = vmul.f32 %v4956_v52, %v12433_v1  ;;  %v4731_v31 = vmul.f32 %v12462_v40, %v12519_v35 }
 0x867   :  { %15554 = vst [vmem:[#allocation34_spill] sm:$0xff] %v12621_v50  ;;  %v4687_v61 = vadd.f32 1.4214138, %v4663_v41  ;;  %v4666_v33 = vmul.f32 %v12605_v14, %v4642_v0  ;;  %v4619_v50 = vmul.f32 1.0614054, %v12628_v30  ;;  %v8963_v41 = vpop.eup %8962  ;;  %v12641_v62 = vsel %vm4477_vm4, 1.0, %v15440_v27 }
 0x868   :  { %v4688_v18 = vadd.f32 1.4214138, %v4664_v54  ;;  %v4837_v1 = vsub.f32 0.0, %v12575_v57  ;;  %v4528_v52 = vand.u32 2147483647, %v12626_v3  ;;  %v8965_v54 = vpop.eup %8964  ;;  %v12646_v13 = vmul.f32 %v5010_v17, %v12396_v32 }
 0x869   :  { %v4711_v49 = vmul.f32 %v12577_v48, %v4687_v61  ;;  %v4690_v0 = vadd.f32 1.4214138, %v4666_v33  ;;  %v4643_v23 = vadd.f32 -1.4531521, %v4619_v50  ;;  %v5004_v7 = vadd.f32 1.0, %v4980_v45 }
 0x86a   :  { %v4712_v60 = vmul.f32 %v12587_v39, %v4688_v18  ;;  %15556 = vst [vmem:[#allocation32_spill] sm:$0xff] %v12646_v13  ;;  %v12651_v18 = vsel %vm4478_vm0, 1.0, %v15440_v27  ;;  %v4552_v15 = vmul.f32 0.3275911, %v4528_v52  ;;  %v4861_v32 = vmul.f32 %v4837_v1, %v12575_v57 }
 0x86b   :  { %v4735_v61 = vadd.f32 -0.28449672, %v4711_v49  ;;  %15557 = vst [vmem:[#allocation13_spill] sm:$0xff] %v12651_v18  ;;  %v4714_v37 = vmul.f32 %v12605_v14, %v4690_v0  ;;  %v4667_v53 = vmul.f32 %v12628_v30, %v4643_v23  ;;  %v4755_v49 = vadd.f32 -0.28449672, %v4731_v31 }
 0x86c   :  { %v4736_v35 = vadd.f32 -0.28449672, %v4712_v60  ;;  %v4838_v17 = vsub.f32 0.0, %v12585_v47  ;;  %v4576_v45 = vadd.f32 1.0, %v4552_v15  ;;  %v4336_v31 = vadd.f32 %v12532_v26, %v12367_v20 }
 0x86d   :  { %v4759_v12 = vmul.f32 %v12577_v48, %v4735_v61  ;;  %v12659_v33 = vpop.eup %8966  ;;  %v4738_v60 = vadd.f32 -0.28449672, %v4714_v37  ;;  %v4691_v13 = vadd.f32 1.4214138, %v4667_v53  ;;  %v4779_v29 = vmul.f32 %v12462_v40, %v4755_v49 }
 0x86e   :  { %v4760_v50 = vmul.f32 %v12587_v39, %v4736_v35  ;;  %v12662_v61 = vpop.eup %8968  ;;  %v4621_v23 = vmul.f32 1.0614054, %v12659_v33  ;;  %8974 = vrcp.f32 %v4576_v45  ;;  %v4891_v36 = vmul.f32 1.442695, %v4861_v32 }
 0x86f   :  { %v4783_v10 = vadd.f32 0.2548296, %v4759_v12  ;;  %v8971_v57 = vpop.eup %8970  ;;  %v4762_v35 = vmul.f32 %v12605_v14, %v4738_v60  ;;  %v4715_v12 = vmul.f32 %v12628_v30, %v4691_v13  ;;  %v4622_v53 = vmul.f32 1.0614054, %v12662_v61 }
 0x870   :  { %v4784_v0 = vadd.f32 0.2548296, %v4760_v50  ;;  %v12671_v37 = vpop.eup %8972  ;;  %v4645_v49 = vadd.f32 -1.4531521, %v4621_v23  ;;  %v4862_v50 = vmul.f32 %v4838_v17, %v12585_v47  ;;  %v4803_v45 = vadd.f32 0.2548296, %v4779_v29 }
 0x871   :  { %v4807_v1 = vmul.f32 %v12577_v48, %v4783_v10  ;;  %v4786_v56 = vadd.f32 0.2548296, %v4762_v35  ;;  %v4739_v20 = vadd.f32 -0.28449672, %v4715_v12  ;;  %v4646_v26 = vadd.f32 -1.4531521, %v4622_v53 }
 0x872   :  { %v4808_v15 = vmul.f32 %v12587_v39, %v4784_v0  ;;  %v4669_v48 = vmul.f32 %v12659_v33, %v4645_v49  ;;  %v4840_v10 = vsub.f32 0.0, %v4528_v52  ;;  %v4457_v60 = vmul.f32 0.70710677, %v4336_v31 }
 0x873   :  { %v4927_v43 = vmul.f32 %v8963_v41, %v4807_v1  ;;  %v4670_v18 = vmul.f32 %v12662_v61, %v4646_v26  ;;  %v4827_v8 = vmul.f32 %v12462_v40, %v4803_v45  ;;  %v4763_v39 = vmul.f32 %v12628_v30, %v4739_v20 }
 0x874   :  { %v4928_v4 = vmul.f32 %v8965_v54, %v4808_v15  ;;  %v4693_v0 = vadd.f32 1.4214138, %v4669_v48  ;;  %v4893_v47 = vmul.f32 1.442695, %v4862_v50  ;;  %v12680_v29 = vmul.f32 0.5, %v12601_v42 }
 0x875   :  { %v4951_v13 = vsub.f32 1.0, %v4927_v43  ;;  %v4810_v54 = vmul.f32 %v12605_v14, %v4786_v56  ;;  %v12684_v17 = vmul.f32 %v5004_v7, %v12407_v63  ;;  %v4694_v23 = vadd.f32 1.4214138, %v4670_v18 }
 0x876   :  { %v4952_v41 = vsub.f32 1.0, %v4928_v4  ;;  %v4717_v43 = vmul.f32 %v12659_v33, %v4693_v0  ;;  %vm4480_vm5 = vcmp.ge.f32.partialorder %v12626_v3, 0.0  ;;  %v4864_v32 = vmul.f32 %v4840_v10, %v4528_v52 }
 0x877   :  { %v12688_v40 = vand.u32 2147483647, %v4457_v60  ;;  %v4975_v1 = vmul.f32 %v4951_v13, %v12535_v16  ;;  %8976 = vpow2.f32 %v4891_v36  ;;  %v4718_v42 = vmul.f32 %v12662_v61, %v4694_v23 }
 0x878   :  { %v4947_v4 = vmul.f32 %v12528_v9, %v4827_v8  ;;  %v12693_v35 = vpop.eup %8974  ;;  %v4787_v56 = vadd.f32 0.2548296, %v4763_v39  ;;  %v4741_v63 = vadd.f32 -0.28449672, %v4717_v43  ;;  %8978 = vpow2.f32 %v4893_v47 }
 0x879   :  { %v4553_v7 = vmul.f32 0.3275911, %v12688_v40  ;;  %v4976_v14 = vmul.f32 %v4952_v41, %v12542_v28  ;;  %v4930_v3 = vmul.f32 %v8971_v57, %v4810_v54  ;;  %v4742_v52 = vadd.f32 -0.28449672, %v4718_v42 }
 0x87a   :  { %v12698_v18 = vsel %vm4480_vm5, 1.0, %v15440_v27  ;;  %v4765_v36 = vmul.f32 %v12659_v33, %v4741_v63  ;;  %v4624_v16 = vmul.f32 1.0614054, %v12693_v35  ;;  %v4897_v12 = vmul.f32 1.442695, %v4864_v32 }
 0x87b   :  { %v4686_v9 = vmul.f32 %v12492_v25, %v12521_v2  ;;  %v4999_v8 = vadd.f32 1.0, %v4975_v1  ;;  %v4766_v53 = vmul.f32 %v12662_v61, %v4742_v52  ;;  %v4971_v15 = vsub.f32 1.0, %v4947_v4 }
 0x87c   :  { %vm4481_vm6 = vcmp.ge.f32.partialorder %v4457_v60, 0.0  ;;  %v4811_v28 = vmul.f32 %v12628_v30, %v4787_v56  ;;  %v4789_v57 = vadd.f32 0.2548296, %v4765_v36  ;;  %v4648_v49 = vadd.f32 -1.4531521, %v4624_v16 }
 0x87d   :  { %v4577_v50 = vadd.f32 1.0, %v4553_v7  ;;  %v5000_v45 = vadd.f32 1.0, %v4976_v14  ;;  %v4954_v20 = vsub.f32 1.0, %v4930_v3  ;;  %v4790_v26 = vadd.f32 0.2548296, %v4766_v53 }
 0x87e   :  { %v12706_v48 = vmul.f32 0.5, %v4336_v31  ;;  %v4813_v10 = vmul.f32 %v12659_v33, %v4789_v57  ;;  %v4672_v13 = vmul.f32 %v12693_v35, %v4648_v49  ;;  %v4701_v2 = vadd.f32 1.4214138, %v12563_v46 }
 0x87f   :  { %8980 = vrcp.f32 %v4577_v50  ;;  %v5023_v39 = vmul.f32 %v4999_v8, %v12524_v44  ;;  %v4995_v30 = vmul.f32 %v4971_v15, %v12476_v6  ;;  %v12715_v0 = vsel %vm4481_vm6, 1.0, %v15440_v27 }
 0x880   :  { %8982 = vpow2.f32 %v4897_v12  ;;  %v4931_v47 = vmul.f32 %v12671_v37, %v4811_v28  ;;  %v4696_v31 = vadd.f32 1.4214138, %v4672_v13  ;;  %v4725_v41 = vmul.f32 %v12471_v11, %v4701_v2 }
 0x881   :  { %v4710_v33 = vadd.f32 1.4214138, %v4686_v9  ;;  %v8977_v54 = vpop.eup %8976  ;;  %v12720_v23 = vmul.f32 %v5000_v45, %v12530_v24  ;;  %v4978_v46 = vmul.f32 %v4954_v20, %v12545_v19  ;;  %v4814_v44 = vmul.f32 %v12662_v61, %v4790_v26 }
 0x882   :  { %v4632_v6 = vmul.f32 1.0614054, %v12611_v51  ;;  %v8979_v43 = vpop.eup %8978  ;;  %v4933_v60 = vmul.f32 %v8977_v54, %v4813_v10  ;;  %v4720_v32 = vmul.f32 %v12693_v35, %v4696_v31  ;;  %v4749_v1 = vadd.f32 -0.28449672, %v4725_v41 }
 0x883   :  { %v4734_v37 = vmul.f32 %v12492_v25, %v4710_v33  ;;  %v12728_v42 = vmul.f32 %v12383_v55, %v5023_v39  ;;  %v5019_v4 = vadd.f32 1.0, %v4995_v30  ;;  %v4340_v24 = vadd.f32 %v12553_v38, %v12374_v21 }
 0x884   :  { %v4656_v56 = vadd.f32 -1.4531521, %v4632_v6  ;;  %v4955_v19 = vsub.f32 1.0, %v4931_v47  ;;  %v4744_v63 = vadd.f32 -0.28449672, %v4720_v32  ;;  %v4773_v61 = vmul.f32 %v12471_v11, %v4749_v1 }
 0x885   :  { %v4758_v7 = vadd.f32 -0.28449672, %v4734_v37  ;;  %v4934_v14 = vmul.f32 %v8979_v43, %v4814_v44  ;;  %v4841_v3 = vsub.f32 0.0, %v12688_v40  ;;  %v12735_v36 = vmul.f32 0.70710677, %v4340_v24  ;;  %v15558_v44 = vld [vmem:[#allocation25_spill] sm:$0xff] }
 0x886   :  { %v4680_v52 = vmul.f32 %v12611_v51, %v4656_v56  ;;  %v4957_v16 = vsub.f32 1.0, %v4933_v60  ;;  %v4768_v12 = vmul.f32 %v12693_v35, %v4744_v63  ;;  %v4797_v9 = vadd.f32 0.2548296, %v4773_v61 }
 0x887   :  { %v4782_v8 = vmul.f32 %v12492_v25, %v4758_v7  ;;  %v5002_v53 = vadd.f32 1.0, %v4978_v46  ;;  %v12740_v38 = vmul.f32 %v5019_v4, %v12439_v59  ;;  %v4531_v28 = vand.u32 2147483647, %v12735_v36  ;;  %v15561_v7 = vld [vmem:[#allocation8_spill] sm:$0xff] }
 0x888   :  { %v4704_v15 = vadd.f32 1.4214138, %v4680_v52  ;;  %v4979_v49 = vmul.f32 %v4955_v19, %v12581_v22  ;;  %v4792_v50 = vadd.f32 0.2548296, %v4768_v12  ;;  %v4821_v45 = vmul.f32 %v12471_v11, %v4797_v9  ;;  %v15560_v19 = vld [vmem:[#allocation14_spill] sm:$0xff] }
 0x889   :  { %v12743_v57 = vpop.eup %8980  ;;  %v4806_v20 = vadd.f32 0.2548296, %v4782_v8  ;;  %v4958_v10 = vsub.f32 1.0, %v4934_v14  ;;  %v4865_v2 = vmul.f32 %v4841_v3, %v12688_v40  ;;  %v4981_v39 = vmul.f32 %v4957_v16, %v12641_v62 }
 0x88a   :  { %v8983_v26 = vpop.eup %8982  ;;  %v4625_v13 = vmul.f32 1.0614054, %v12743_v57  ;;  %v4728_v59 = vmul.f32 %v12611_v51, %v4704_v15  ;;  %v4816_v30 = vmul.f32 %v12693_v35, %v4792_v50  ;;  %v4941_v47 = vmul.f32 %v12539_v58, %v4821_v45 }
 0x88b   :  { %v4830_v22 = vmul.f32 %v12492_v25, %v4806_v20  ;;  %v4555_v11 = vmul.f32 0.3275911, %v4531_v28  ;;  %v4342_v33 = vadd.f32 %v12557_v5, %v12374_v21  ;;  %v5026_v54 = vmul.f32 %v5002_v53, %v12537_v34  ;;  %v15559_v25 = vld [vmem:[#allocation13_spill] sm:$0xff]  ;;  %v15562_v53 = vld [vmem:[#allocation10_spill] sm:$0xff] }
 0x88c   :  { %v4649_v31 = vadd.f32 -1.4531521, %v4625_v13  ;;  %v4752_v41 = vadd.f32 -0.28449672, %v4728_v59  ;;  %v4936_v46 = vmul.f32 %v8983_v26, %v4816_v30  ;;  %v4965_v40 = vsub.f32 1.0, %v4941_v47  ;;  %v15563_v26 = vld [vmem:[#allocation33_spill] sm:$0xff] }
 0x88d   :  { %v4950_v6 = vmul.f32 %v15558_v44, %v4830_v22  ;;  %v5003_v43 = vadd.f32 1.0, %v4979_v49  ;;  %v4579_v58 = vadd.f32 1.0, %v4555_v11  ;;  %v5005_v60 = vadd.f32 1.0, %v4981_v39  ;;  %v15564_v13 = vld [vmem:[#allocation20_spill] sm:$0xff]  ;;  %v15566_v59 = vld [vmem:[#allocation7_spill] sm:$0xff] }
 0x88e   :  { %v4673_v62 = vmul.f32 %v12743_v57, %v4649_v31  ;;  %v4776_v35 = vmul.f32 %v12611_v51, %v4752_v41  ;;  %v4982_v32 = vmul.f32 %v4958_v10, %v15559_v25  ;;  %v4899_v1 = vmul.f32 1.442695, %v4865_v2  ;;  %v15565_v2 = vld [vmem:[#allocation22_spill] sm:$0xff]  ;;  %v15568_v22 = vld [vmem:[#allocation28_spill] sm:$0xff] }
 0x88f   :  { %v4843_v37 = vsub.f32 0.0, %v4531_v28  ;;  %8984 = vrcp.f32 %v4579_v58  ;;  %v4460_v21 = vmul.f32 0.70710677, %v4342_v33  ;;  %v12762_v5 = vmul.f32 %v12383_v55, %v5026_v54 }
 0x890   :  { %v4697_v4 = vadd.f32 1.4214138, %v4673_v62  ;;  %v4800_v56 = vadd.f32 0.2548296, %v4776_v35  ;;  %v4960_v34 = vsub.f32 1.0, %v4936_v46  ;;  %v4989_v63 = vmul.f32 %v4965_v40, %v15560_v19  ;;  %v15569_v62 = vld [vmem:[#allocation17_spill] sm:$0xff] }
 0x891   :  { %v4974_v61 = vsub.f32 1.0, %v4950_v6  ;;  %v12766_v14 = vmul.f32 %v5003_v43, %v15561_v7  ;;  %v4532_v16 = vand.u32 2147483647, %v4460_v21  ;;  %v5006_v12 = vadd.f32 1.0, %v4982_v32  ;;  %v15572_v7 = vld [vmem:[#allocation19_spill] sm:$0xff] }
 0x892   :  { %v4721_v3 = vmul.f32 %v12743_v57, %v4697_v4  ;;  %v4824_v52 = vmul.f32 %v12611_v51, %v4800_v56  ;;  %8986 = vpow2.f32 %v4899_v1  ;;  %v12770_v9 = vmul.f32 0.5, %v4340_v24 }
 0x893   :  { %v4867_v8 = vmul.f32 %v4843_v37, %v4531_v28  ;;  %v5029_v15 = vmul.f32 %v5005_v60, %v15562_v53  ;;  %vm4483_vm7 = vcmp.ge.f32.partialorder %v12735_v36, 0.0  ;;  %v4556_v50 = vmul.f32 0.3275911, %v4532_v16  ;;  %v15567_v28 = vld [vmem:[#allocation23_spill] sm:$0xff] }
 0x894   :  { %v4745_v49 = vadd.f32 -0.28449672, %v4721_v3  ;;  %v4984_v45 = vmul.f32 %v4960_v34, %v12698_v18  ;;  %v5013_v20 = vadd.f32 1.0, %v4989_v63  ;;  %v4998_v10 = vmul.f32 %v4974_v61, %v15563_v26  ;;  %v15570_v37 = vld [vmem:[#allocation11_spill] sm:$0xff] }
 0x895   :  { %v4344_v51 = vadd.f32 %v15565_v2, %v15564_v13  ;;  %v4944_v39 = vmul.f32 %v15566_v59, %v4824_v52  ;;  %v4580_v30 = vadd.f32 1.0, %v4556_v50  ;;  %v4844_v24 = vsub.f32 0.0, %v4532_v16 }
 0x896   :  { %v4346_v47 = vadd.f32 %v15567_v28, %v15564_v13  ;;  %v12782_v31 = vmul.f32 %v5006_v12, %v15568_v22  ;;  %v12785_v36 = vsel %vm4483_vm7, 1.0, %v15440_v27  ;;  %v4903_v18 = vmul.f32 1.442695, %v4867_v8  ;;  %v15573_v12 = vld [vmem:[#allocation21_spill] sm:$0xff] }
 0x897   :  { %v4462_v41 = vmul.f32 0.70710677, %v4344_v51  ;;  %v12788_v11 = vmul.f32 %v12383_v55, %v5029_v15  ;;  %v4769_v54 = vmul.f32 %v12743_v57, %v4745_v49  ;;  %v12791_v46 = vmul.f32 0.5, %v4342_v33  ;;  %v15571_v33 = vld [vmem:[#allocation9_spill] sm:$0xff] }
 0x898   :  { %8988 = vrcp.f32 %v4580_v30  ;;  %v5008_v40 = vadd.f32 1.0, %v4984_v45  ;;  %v5022_v44 = vadd.f32 1.0, %v4998_v10  ;;  %vm4484_vm9 = vcmp.ge.f32.partialorder %v4460_v21, 0.0  ;;  %v15574_v10 = vld [vmem:[#allocation31_spill] sm:$0xff] }
 0x899   :  { %v4534_v6 = vand.u32 2147483647, %v4462_v41  ;;  %v12793_v43 = vpop.eup %8984  ;;  %v12796_v35 = vmul.f32 %v5013_v20, %v15569_v62  ;;  %v4968_v58 = vsub.f32 1.0, %v4944_v39  ;;  %v4868_v60 = vmul.f32 %v4844_v24, %v4532_v16 }
 0x89a   :  { %v4463_v25 = vmul.f32 0.70710677, %v4346_v47  ;;  %v4627_v32 = vmul.f32 1.0614054, %v12793_v43  ;;  %8990 = vpow2.f32 %v4903_v18  ;;  %v12801_v4 = vadd.f32 %v15571_v33, %v15570_v37 }
 0x89b   :  { %v4558_v1 = vmul.f32 0.3275911, %v4534_v6  ;;  %v4793_v56 = vadd.f32 0.2548296, %v4769_v54  ;;  %v12804_v21 = vsel %vm4484_vm9, 1.0, %v15440_v27  ;;  %v4846_v34 = vsub.f32 0.0, %v4534_v6 }
 0x89c   :  { %v4535_v19 = vand.u32 2147483647, %v4463_v25  ;;  %v8987_v63 = vpop.eup %8986  ;;  %v5032_v61 = vmul.f32 %v5008_v40, %v12680_v29  ;;  %v12808_v3 = vmul.f32 %v5022_v44, %v15572_v7  ;;  %v4651_v52 = vadd.f32 -1.4531521, %v4627_v32 }
 0x89d   :  { %v4582_v16 = vadd.f32 1.0, %v4558_v1  ;;  %v4992_v8 = vmul.f32 %v4968_v58, %v15573_v12  ;;  %v4905_v53 = vmul.f32 1.442695, %v4868_v60  ;;  %vm4486_vm10 = vcmp.ge.f32.partialorder %v4462_v41, 0.0 }
 0x89e   :  { %v4559_v15 = vmul.f32 0.3275911, %v4535_v19  ;;  %v4675_v49 = vmul.f32 %v12793_v43, %v4651_v52  ;;  %v4847_v50 = vsub.f32 0.0, %v4535_v19  ;;  %v12813_v45 = vmul.f32 0.70710677, %v12801_v4 }
 0x89f   :  { %8992 = vrcp.f32 %v4582_v16  ;;  %v4817_v20 = vmul.f32 %v12743_v57, %v4793_v56  ;;  %v4870_v29 = vmul.f32 %v4846_v34, %v4534_v6  ;;  %v12818_v13 = vadd.f32 %v15574_v10, %v15570_v37  ;;  %v15576_v56 = vld [vmem:[#allocation29_spill] sm:$0xff]  ;;  %v15577_v34 = vld [vmem:[#allocation30_spill] sm:$0xff] }
 0x8a0   :  { %v4583_v26 = vadd.f32 1.0, %v4559_v15  ;;  %v12821_v2 = vmul.f32 %v12383_v55, %v5032_v61  ;;  %v4699_v59 = vadd.f32 1.4214138, %v4675_v49  ;;  %v12823_v39 = vmul.f32 0.5, %v4344_v51 }
 0x8a1   :  { %v4537_v30 = vand.u32 2147483647, %v12813_v45  ;;  %v5016_v28 = vadd.f32 1.0, %v4992_v8  ;;  %v12830_v57 = vsel %vm4486_vm10, 1.0, %v15440_v27  ;;  %v12832_v22 = vmul.f32 0.5, %v4346_v47  ;;  %v15575_v47 = vld [vmem:[#allocation12_spill] sm:$0xff] }
 0x8a2   :  { %v12826_v24 = vpop.eup %8988  ;;  %8994 = vrcp.f32 %v4583_v26  ;;  %v4723_v18 = vmul.f32 %v12793_v43, %v4699_v59  ;;  %v4871_v40 = vmul.f32 %v4847_v50, %v4535_v19  ;;  %v4937_v51 = vmul.f32 %v8987_v63, %v4817_v20  ;;  %v15578_v26 = vld [vmem:[#allocation34_spill] sm:$0xff] }
 0x8a3   :  { %v4628_v54 = vmul.f32 1.0614054, %v12826_v24  ;;  %v4561_v44 = vmul.f32 0.3275911, %v4537_v30  ;;  %8996 = vpow2.f32 %v4905_v53  ;;  %v4909_v6 = vmul.f32 1.442695, %v4870_v29 }
 0x8a4   :  { %v12837_v62 = vmul.f32 0.70710677, %v12818_v13  ;;  %v8991_v58 = vpop.eup %8990  ;;  %v4747_v60 = vadd.f32 -0.28449672, %v4723_v18  ;;  %vm4487_vm11 = vcmp.ge.f32.partialorder %v4463_v25, 0.0  ;;  %v12840_v1 = vmul.f32 %v5016_v28, %v15575_v47 }
 0x8a5   :  { %v4652_v41 = vadd.f32 -1.4531521, %v4628_v54  ;;  %v4585_v32 = vadd.f32 1.0, %v4561_v44  ;;  %v4849_v37 = vsub.f32 0.0, %v4537_v30  ;;  %v12845_v19 = vadd.f32 %v15577_v34, %v15576_v56 }
 0x8a6   :  { %v4538_v33 = vand.u32 2147483647, %v12837_v62  ;;  %v4771_v63 = vmul.f32 %v12793_v43, %v4747_v60  ;;  %v4911_v7 = vmul.f32 1.442695, %v4871_v40  ;;  %v4961_v52 = vsub.f32 1.0, %v4937_v51 }
 0x8a7   :  { %v4676_v61 = vmul.f32 %v12826_v24, %v4652_v41  ;;  %8998 = vrcp.f32 %v4585_v32  ;;  %v12850_v25 = vsel %vm4487_vm11, 1.0, %v15440_v27  ;;  %v12855_v49 = vmul.f32 0.70710677, %v12845_v19 }
 0x8a8   :  { %v4562_v16 = vmul.f32 0.3275911, %v4538_v33  ;;  %v4850_v12 = vsub.f32 0.0, %v4538_v33  ;;  %v4795_v53 = vadd.f32 0.2548296, %v4771_v63  ;;  %9000 = vpow2.f32 %v4909_v6 }
 0x8a9   :  { %v12852_v8 = vpop.eup %8992  ;;  %v4700_v15 = vadd.f32 1.4214138, %v4676_v61  ;;  %v4873_v20 = vmul.f32 %v4849_v37, %v4537_v30  ;;  %v12860_v10 = vadd.f32 %v15578_v26, %v15576_v56  ;;  %9002 = vpow2.f32 %v4911_v7  ;;  %v15579_v7 = vld [vmem:[#allocation3_spill] sm:$0xff] }
 0x8aa   :  { %v4630_v50 = vmul.f32 1.0614054, %v12852_v8  ;;  %v4586_v29 = vadd.f32 1.0, %v4562_v16  ;;  %v4819_v59 = vmul.f32 %v12793_v43, %v4795_v53  ;;  %v4540_v18 = vand.u32 2147483647, %v12855_v49 }
 0x8ab   :  { %v4724_v28 = vmul.f32 %v12826_v24, %v4700_v15  ;;  %v4985_v40 = vmul.f32 %v4961_v52, %v12715_v0  ;;  %v4874_v51 = vmul.f32 %v4850_v12, %v4538_v33  ;;  %v4915_v47 = vmul.f32 1.442695, %v4873_v20 }
 0x8ac   :  { %v12865_v54 = vpop.eup %8994  ;;  %v4654_v44 = vadd.f32 -1.4531521, %v4630_v50  ;;  %9004 = vrcp.f32 %v4586_v29  ;;  %v4939_v30 = vmul.f32 %v8991_v58, %v4819_v59  ;;  %v4564_v41 = vmul.f32 0.3275911, %v4540_v18 }
 0x8ad   :  { %v4748_v6 = vadd.f32 -0.28449672, %v4724_v28  ;;  %v4631_v60 = vmul.f32 1.0614054, %v12865_v54  ;;  %v8997_v32 = vpop.eup %8996  ;;  %v4852_v37 = vsub.f32 0.0, %v4540_v18  ;;  %vm5052_vm13 = vcmp.lt.s32.totalorder %v15579_v7, 356 }
 0x8ae   :  { %v4678_v43 = vmul.f32 %v12852_v8, %v4654_v44  ;;  %v12871_v56 = vmul.f32 0.70710677, %v12860_v10  ;;  %v4963_v34 = vsub.f32 1.0, %v4939_v30  ;;  %v4588_v61 = vadd.f32 1.0, %v4564_v41 }
 0x8af   :  { %v4772_v63 = vmul.f32 %v12826_v24, %v4748_v6  ;;  %v4655_v0 = vadd.f32 -1.4531521, %v4631_v60  ;;  %v4917_v33 = vmul.f32 1.442695, %v4874_v51  ;;  %v4876_v52 = vmul.f32 %v4852_v37, %v4540_v18 }
 0x8b0   :  { %v4702_v58 = vadd.f32 1.4214138, %v4678_v43  ;;  %v4541_v16 = vand.u32 2147483647, %v12871_v56  ;;  %v4987_v53 = vmul.f32 %v4963_v34, %v12785_v36  ;;  %9006 = vrcp.f32 %v4588_v61 }
 0x8b1   :  { %v12876_v12 = vpop.eup %8998  ;;  %v4796_v15 = vadd.f32 0.2548296, %v4772_v63  ;;  %v4679_v50 = vmul.f32 %v12865_v54, %v4655_v0  ;;  %9008 = vpow2.f32 %v4915_v47  ;;  %v4921_v26 = vmul.f32 1.442695, %v4876_v52 }
 0x8b2   :  { %v4726_v20 = vmul.f32 %v12852_v8, %v4702_v58  ;;  %v4633_v29 = vmul.f32 1.0614054, %v12876_v12  ;;  %v9001_v59 = vpop.eup %9000  ;;  %v5011_v28 = vadd.f32 1.0, %v4987_v53  ;;  %v4565_v51 = vmul.f32 0.3275911, %v4541_v16 }
 0x8b3   :  { %v4820_v18 = vmul.f32 %v12826_v24, %v4796_v15  ;;  %v4703_v44 = vadd.f32 1.4214138, %v4679_v50  ;;  %v5009_v30 = vadd.f32 1.0, %v4985_v40  ;;  %9010 = vpow2.f32 %v4917_v33  ;;  %v9003_v36 = vpop.eup %9002 }
 0x8b4   :  { %v4750_v6 = vadd.f32 -0.28449672, %v4726_v20  ;;  %v4657_v60 = vadd.f32 -1.4531521, %v4633_v29  ;;  %9012 = vpow2.f32 %v4921_v26  ;;  %v4589_v37 = vadd.f32 1.0, %v4565_v51  ;;  %v15581_v51 = vld [vmem:[#allocation27_spill] sm:$0xff] }
 0x8b5   :  { %v4940_v41 = vmul.f32 %v8997_v32, %v4820_v18  ;;  %v4727_v43 = vmul.f32 %v12865_v54, %v4703_v44  ;;  %v4853_v0 = vsub.f32 0.0, %v4541_v16  ;;  %v5103_v24 = vpack.c.bf16 %v12766_v14, %v12720_v23 }
 0x8b6   :  { %v12884_v34 = vpop.eup %9004  ;;  %v4774_v47 = vmul.f32 %v12852_v8, %v4750_v6  ;;  %v4681_v63 = vmul.f32 %v12876_v12, %v4657_v60  ;;  %v5035_v40 = vmul.f32 %v5011_v28, %v12770_v9  ;;  %v5033_v33 = vmul.f32 %v5009_v30, %v12706_v48 }
 0x8b7   :  { %v4964_v61 = vsub.f32 1.0, %v4940_v41  ;;  %v4751_v58 = vadd.f32 -0.28449672, %v4727_v43  ;;  %v4634_v32 = vmul.f32 1.0614054, %v12884_v34  ;;  %9014 = vrcp.f32 %v4589_v37  ;;  %5275 = vmatprep.subr.bf16.mxu1 %v5103_v24  ;;  %v15582_v37 = vld [vmem:[#allocation5_spill] sm:$0xff] }
 0x8b8   :  { %v4798_v52 = vadd.f32 0.2548296, %v4774_v47  ;;  %v4705_v53 = vadd.f32 1.4214138, %v4681_v63  ;;  %v5102_v23 = vpack.c.bf16 %v12762_v5, %v12728_v42  ;;  %v4877_v29 = vmul.f32 %v4853_v0, %v4541_v16 }
 0x8b9   :  { %v4988_v15 = vmul.f32 %v4964_v61, %v12804_v21  ;;  %v4775_v50 = vmul.f32 %v12865_v54, %v4751_v58  ;;  %v4658_v20 = vadd.f32 -1.4531521, %v4634_v32  ;;  %v15580_v26 = vmov 0.0  }
 0x8ba   :  { %v4822_v14 = vmul.f32 %v12852_v8, %v4798_v52  ;;  %v4729_v9 = vmul.f32 %v12876_v12, %v4705_v53  ;;  %v8176_v48 = vsel %vm5052_vm13, 1.0, %v15580_v26  ;;  %v12902_v28 = vpop.eup %9006  ;;  %v12905_v18 = vmul.f32 %v12383_v55, %v5035_v40  ;;  %5276 = vmatpush1.bf16.msra.mxu1 %v5102_v23  ;;  %v15583_v52 = vld [vmem:[#allocation32_spill] sm:$0xff] }
 0x8bb   :  { %v4799_v21 = vadd.f32 0.2548296, %v4775_v50  ;;  %v4682_v44 = vmul.f32 %v12884_v34, %v4658_v20  ;;  %v5064_v42 = vmul.f32 %v8176_v48, %v15581_v51  ;;  %v9009_v5 = vpop.eup %9008  ;;  %v4636_v16 = vmul.f32 1.0614054, %v12902_v28 }
 0x8bc   :  { %v4942_v8 = vmul.f32 %v9001_v59, %v4822_v14  ;;  %v4753_v30 = vadd.f32 -0.28449672, %v4729_v9  ;;  %v5067_v6 = vmul.f32 %v8176_v48, %v12684_v17  ;;  %v5012_v60 = vadd.f32 1.0, %v4988_v15 }
 0x8bd   :  { %v4823_v41 = vmul.f32 %v12865_v54, %v4799_v21  ;;  %v4706_v43 = vadd.f32 1.4214138, %v4682_v44  ;;  %v5070_v47 = vmul.f32 %v8176_v48, %v15582_v37  ;;  %v12913_v63 = vpop.eup %9010  ;;  %v4660_v40 = vadd.f32 -1.4531521, %v4636_v16 }
 0x8be   :  { %v4966_v0 = vsub.f32 1.0, %v4942_v8  ;;  %v4777_v24 = vmul.f32 %v12876_v12, %v4753_v30  ;;  %v5104_v61 = vpack.c.bf16 %v5067_v6, %v5064_v42  ;;  %v12916_v58 = vpop.eup %9012  ;;  %v5073_v17 = vmul.f32 %v8176_v48, %v15583_v52  ;;  %v8574_v52 = vld [vmem:[%s15348_s14 + $0x10] sm:$0xff]  }
 0x8bf   :  { %v4943_v59 = vmul.f32 %v9003_v36, %v4823_v41  ;;  %v4730_v32 = vmul.f32 %v12884_v34, %v4706_v43  ;;  %v5106_v53 = vpack.c.bf16 %v5033_v33, %v12782_v31  ;;  %v4684_v50 = vmul.f32 %v12902_v28, %v4660_v40 }
 0x8c0   :  { %v4990_v54 = vmul.f32 %v4966_v0, %v12830_v57  ;;  %v4801_v15 = vadd.f32 0.2548296, %v4777_v24  ;;  %8410 = vmatprep.subr.bf16.mxu0 %v5104_v61  ;;  %v5105_v20 = vpack.c.bf16 %v12821_v2, %v12788_v11  ;;  %v5107_v9 = vpack.c.bf16 %v5073_v17, %v5070_v47 }
 0x8c1   :  { %v4967_v23 = vsub.f32 1.0, %v4943_v59  ;;  %v4754_v14 = vadd.f32 -0.28449672, %v4730_v32  ;;  %8411 = vmatpush3.bf16.msra.mxu0 %v5104_v61  ;;  %5277 = vmatprep.subr.bf16.mxu1 %v5106_v53  ;;  %v5076_v36 = vmul.f32 %v8176_v48, %v12796_v35  ;;  %v12926_v21 = vpop.eup %9014  ;;  %v4708_v57 = vadd.f32 1.4214138, %v4684_v50  ;;  %v12937_v35 = vld [vmem:[%s15348_s14] sm:$0xff]  }
 0x8c2   :  { %v5014_v44 = vadd.f32 1.0, %v4990_v54  ;;  %v4825_v31 = vmul.f32 %v12876_v12, %v4801_v15  ;;  %5278 = vmatpush1.bf16.msra.mxu1 %v5105_v20  ;;  %v5079_v33 = vmul.f32 %v8176_v48, %v12840_v1  ;;  %v4637_v2 = vmul.f32 1.0614054, %v12926_v21  ;;  %8412 = vmatprep.subr.bf16.mxu0 %v5107_v9 }
 0x8c3   :  { %v4991_v51 = vmul.f32 %v4967_v23, %v12850_v25  ;;  %v4778_v11 = vmul.f32 %v12884_v34, %v4754_v14  ;;  %v5082_v42 = vmul.f32 %v8176_v48, %v12740_v38  ;;  %v4732_v30 = vmul.f32 %v12902_v28, %v4708_v57  ;;  %8418 = vmatprep.mubr.msk.bf16.mxu0 %vm5250_vm14, %v12937_v35 }
 0x8c4   :  { %v5038_v12 = vmul.f32 %v5014_v44, %v12823_v39  ;;  %v4945_v8 = vmul.f32 %v9009_v5, %v4825_v31  ;;  %v5110_v1 = vpack.c.bf16 %v5079_v33, %v5076_v36  ;;  %v4661_v6 = vadd.f32 -1.4531521, %v4637_v2 }
 0x8c5   :  { %v5015_v16 = vadd.f32 1.0, %v4991_v51  ;;  %v4802_v25 = vadd.f32 0.2548296, %v4778_v11  ;;  %8413 = vmatpush3.bf16.msra.mxu0 %v5107_v9  ;;  %v5085_v41 = vmul.f32 %v8176_v48, %v12808_v3  ;;  %v4756_v38 = vadd.f32 -0.28449672, %v4732_v30 }
 0x8c6   :  { %v5077_v43 = vmul.f32 %v12383_v55, %v5038_v12  ;;  %v4923_v37 = vmul.f32 1.442695, %v4877_v29  ;;  %8414 = vmatprep.subr.bf16.mxu0 %v5110_v1  ;;  %v5036_v47 = vmul.f32 %v5012_v60, %v12791_v46  ;;  %v4685_v5 = vmul.f32 %v12926_v21, %v4661_v6 }
 0x8c7   :  { %v5039_v39 = vmul.f32 %v5015_v16, %v12832_v22  ;;  %v5113_v0 = vpack.c.bf16 %v5085_v41, %v5082_v42  ;;  %vm4489_vm15 = vcmp.ge.f32.partialorder %v12813_v45, 0.0  ;;  %v4969_v24 = vsub.f32 1.0, %v4945_v8  ;;  %v13018_v41 = vpop.permute.xlu0 %5137 }
 0x8c8   :  { %v4780_v3 = vmul.f32 %v12902_v28, %v4756_v38  ;;  %v5108_v48 = vpack.c.bf16 %v5077_v43, %v12905_v18  ;;  %v4826_v29 = vmul.f32 %v12884_v34, %v4802_v25  ;;  %v4709_v40 = vadd.f32 1.4214138, %v4685_v5  ;;  %v8573_v18 = vld [vmem:[%s15348_s14 + $0x8] sm:$0xff]   ;;  %v8578_v25 = vld [vmem:[%s15348_s14 + $0x30] sm:$0xff]  }
 0x8c9   :  { %8415 = vmatpush3.bf16.msra.mxu0 %v5110_v1  ;;  %v5109_v46 = vpack.c.bf16 %v5039_v39, %v5036_v47  ;;  %9016 = vpow2.f32 %v4923_v37  ;;  %v4513_v22 = vsel %vm4489_vm15, 1.0, %v15440_v27  ;;  %vm4492_vm1 = vcmp.ge.f32.partialorder %v12855_v49, 0.0  ;;  %v8577_v1 = vld [vmem:[%s15348_s14 + $0x28] sm:$0xff]  }
 0x8ca   :  { %v4804_v60 = vadd.f32 0.2548296, %v4780_v3  ;;  %8416 = vmatprep.subr.bf16.mxu0 %v5113_v0  ;;  %v4733_v61 = vmul.f32 %v12926_v21, %v4709_v40  ;;  %v4993_v59 = vmul.f32 %v4969_v24, %v4513_v22  ;;  %v4946_v34 = vmul.f32 %v12913_v63, %v4826_v29 }
 0x8cb   :  { %5279 = vmatprep.subr.bf16.mxu1 %v5109_v46  ;;  %vm4490_vm2 = vcmp.ge.f32.partialorder %v12837_v62, 0.0  ;;  %v4516_v63 = vsel %vm4492_vm1, 1.0, %v15440_v27  ;;  %v4441_v20 = vmul.f32 0.5, %v12801_v4  ;;  %v4444_v36 = vmul.f32 0.5, %v12845_v19  ;;  %v8575_v62 = vld [vmem:[%s15348_s14 + $0x18] sm:$0xff]   ;;  %v8576_v4 = vld [vmem:[%s15348_s14 + $0x20] sm:$0xff]   ;;  %v13023_v39 = vpop.permute.xlu0 %5147 }
 0x8cc   :  { %v4828_v45 = vmul.f32 %v12902_v28, %v4804_v60  ;;  %5280 = vmatpush1.bf16.msra.mxu1 %v5108_v48  ;;  %v4757_v32 = vadd.f32 -0.28449672, %v4733_v61  ;;  %v5017_v28 = vadd.f32 1.0, %v4993_v59  ;;  %v4970_v15 = vsub.f32 1.0, %v4946_v34 }
 0x8cd   :  { %8417 = vmatpush3.bf16.msra.mxu0 %v5113_v0  ;;  %v4514_v9 = vsel %vm4490_vm2, 1.0, %v15440_v27  ;;  %vm4493_vm3 = vcmp.ge.f32.partialorder %v12871_v56, 0.0  ;;  %v4442_v12 = vmul.f32 0.5, %v12818_v13  ;;  %v4445_v8 = vmul.f32 0.5, %v12860_v10  ;;  %v8579_v13 = vld [vmem:[%s15348_s14 + $0x38] sm:$0xff]  }
 0x8ce   :  { %v4948_v17 = vmul.f32 %v12916_v58, %v4828_v45  ;;  %v4781_v53 = vmul.f32 %v12926_v21, %v4757_v32  ;;  %v5041_v14 = vmul.f32 %v5017_v28, %v4441_v20  ;;  %v4994_v31 = vmul.f32 %v4970_v15, %v4514_v9 }
 0x8cf   :  { %v4517_v19 = vsel %vm4493_vm3, 1.0, %v15440_v27  ;;  %v15584_v10 = vmov 0   ;;  %vm6738_vm4 = vcmp.lt.s32.totalorder %v15579_v7, 357 }
 0x8d0   :  { %v4972_v54 = vsub.f32 1.0, %v4948_v17  ;;  %8419 = vmatmul.mubr.msk.bf16.vlgmr.msra.gmra.mrb[48].mxu0 %vm5250_vm14, %v8573_v18  ;;  %v4805_v50 = vadd.f32 0.2548296, %v4781_v53  ;;  %v5080_v51 = vmul.f32 %v12383_v55, %v5041_v14  ;;  %v5018_v2 = vadd.f32 1.0, %v4994_v31 }
 0x8d1   :  { %8422 = vmatprep.mubr.msk.bf16.mxu0 %vm5250_vm14, %v8574_v52  ;;  %v13040_v9 = vsel %vm6738_vm4, 1.0, %v15580_v26 }
 0x8d2   :  { %v4996_v23 = vmul.f32 %v4972_v54, %v4516_v63  ;;  %v4829_v49 = vmul.f32 %v12926_v21, %v4805_v50  ;;  %v5042_v16 = vmul.f32 %v5018_v2, %v4442_v12  ;;  %v15586_v50 = vld [vmem:[#allocation2_spill] sm:$0xff]  ;;  %15588 = vst [vmem:[#allocation26_spill] sm:$0xff] %v13040_v9 }
 0x8d3   :  { %v9017_v58 = vpop.eup %9016  ;;  %vm6733_vm0 = vcmp.ge.s32.totalorder %v15586_v50, 1 }
 0x8d4   :  { %v5020_v44 = vadd.f32 1.0, %v4996_v23  ;;  %v4949_v57 = vmul.f32 %v9017_v58, %v4829_v49 }
 0x8d6   :  { %v5044_v21 = vmul.f32 %v5020_v44, %v4444_v36  ;;  %v4973_v33 = vsub.f32 1.0, %v4949_v57 }
 0x8d8   :  { %v5083_v11 = vmul.f32 %v12383_v55, %v5044_v21  ;;  %8423 = vmatmul.mubr.msk.bf16.gmra.mrb[52].mxu0 %vm5250_vm14, %v8575_v62  ;;  %v4997_v42 = vmul.f32 %v4973_v33, %v4517_v19  ;;  %v13047_v21 = vpop.permute.xlu0 %5157 }
 0x8d9   :  { %8426 = vmatprep.mubr.msk.bf16.mxu0 %vm5250_vm14, %v8576_v4  ;;  %15590 = vst [vmem:[#allocation4_spill] sm:$0xff] %v13047_v21 }
 0x8da   :  { %v5111_v56 = vpack.c.bf16 %v5083_v11, %v5080_v51  ;;  %v5021_v30 = vadd.f32 1.0, %v4997_v42 }
 0x8dc   :  { %v5045_v55 = vmul.f32 %v5021_v30, %v4445_v8 }
 0x8de   :  { %v5112_v6 = vpack.c.bf16 %v5045_v55, %v5042_v16 }
 0x8e0   :  { %8427 = vmatmul.mubr.msk.bf16.gmra.mrb[56].mxu0 %vm5250_vm14, %v8577_v1  ;;  %5281 = vmatprep.subr.bf16.mxu1 %v5112_v6 }
 0x8e1   :  { %8430 = vmatprep.mubr.msk.bf16.mxu0 %vm5250_vm14, %v8578_v25  ;;  %5282 = vmatpush1.bf16.msra.mxu1 %v5111_v56 }
 0x8e4   :  { %8185 = vmatmul.mubr.msk.bf16.vlgmr.msra.gmra.mrb[64].mxu1 %vm5250_vm14, %v12937_v35  ;;  %v13016_v35 = vpop.permute.xlu1 %5132 }
 0x8e5   :  { %5317 = vmatprep.mubr.bf16.mxu1 %v15584_v10 }
 0x8e8   :  { %8431 = vmatmul.mubr.msk.bf16.gmra.mrb[60].mxu0 %vm5250_vm14, %v8579_v13  ;;  %v13020_v43 = vpop.permute.xlu1 %5142 }
 0x8e9   :  { %6932 = vmatprep.mubr.bf16.mxu0 %v15584_v10 }
 0x8ec   :  { %8186 = vmatmul.mubr.msk.bf16.gmra.mrb[68].mxu1 %vm5250_vm14, %v8573_v18  ;;  %v13028_v61 = vpop.permute.xlu1 %5152 }
 0x8ed   :  { %5327 = vmatprep.mubr.bf16.mxu1 %v15584_v10  ;;  %15585 = vst [vmem:[#allocation15_spill] sm:$0xff] %v13028_v61 }
 0x8f0   :  { %v13037_v14 = vpop.permute.xlu1 %5162 }
 0x8f1   :  { %15587 = vst [vmem:[#allocation16_spill] sm:$0xff] %v13037_v14 }
 0x8f4   :  { %8187 = vmatmul.mubr.msk.bf16.gmra.mrb[72].mxu1 %vm5250_vm14, %v8574_v52 }
 0x8f5   :  { %5337 = vmatprep.mubr.bf16.mxu1 %v15584_v10 }
 0x8fc   :  { %8188 = vmatmul.mubr.msk.bf16.gmra.mrb[76].mxu1 %vm5250_vm14, %v8575_v62  ;;  %v13043_v62 = vsel %vm6733_vm0, 1.0, %v15580_v26 }
 0x8fd   :  { %5347 = vmatprep.mubr.bf16.mxu1 %v15584_v10  ;;  %15589 = vst [vmem:[#allocation24_spill] sm:$0xff] %v13043_v62 }
 0x904   :  { %8189 = vmatmul.mubr.msk.bf16.gmra.mrb[80].mxu1 %vm5250_vm14, %v8576_v4 }
 0x905   :  { %5357 = vmatprep.mubr.bf16.mxu1 %v15584_v10 }
 0x90c   :  { %8190 = vmatmul.mubr.msk.bf16.gmra.mrb[84].mxu1 %vm5250_vm14, %v8577_v1 }
 0x90d   :  { %5367 = vmatprep.mubr.bf16.mxu1 %v15584_v10 }
 0x914   :  { %8191 = vmatmul.mubr.msk.bf16.gmra.mrb[88].mxu1 %vm5250_vm14, %v8578_v25 }
 0x915   :  { %5377 = vmatprep.mubr.bf16.mxu1 %v15584_v10 }
 0x91c   :  { %8192 = vmatmul.mubr.msk.bf16.gmra.mrb[92].mxu1 %vm5250_vm14, %v8579_v13 }
 0x9a3   :  { %v8420_v38 = vpop.f32.mrb[48].mxu0 }
 0x9a4   :  { %v5431_v37 = vadd.f32 %v8420_v38, %v13020_v43  ;;  %v5422_v47 = vpop.f32.mrb[49].mxu0 }
 0x9a5   :  { %v5423_v5 = vadd.f32 %v5422_v47, %v13016_v35  ;;  %v8421_v0 = vpop.f32.mrb[50].mxu0 }
 0x9a6   :  { %v5541_v24 = vmul.f32 0.70710677, %v5431_v37  ;;  %v5434_v3 = vadd.f32 %v8421_v0, %v13023_v39  ;;  %v5425_v48 = vpop.f32.mrb[51].mxu0  ;;  %v13057_v12 = vmul.f32 0.5, %v5431_v37 }
 0x9a7   :  { %v5535_v29 = vmul.f32 0.70710677, %v5423_v5  ;;  %v5426_v60 = vadd.f32 %v5425_v48, %v13018_v41  ;;  %v13059_v8 = vmul.f32 0.5, %v5423_v5 }
 0x9a8   :  { %v5685_v40 = vand.u32 2147483647, %v5541_v24  ;;  %v5544_v46 = vmul.f32 0.70710677, %v5434_v3  ;;  %vm5589_vm5 = vcmp.ge.f32.partialorder %v5541_v24, 0.0  ;;  %v13070_v25 = vmul.f32 0.5, %v5434_v3 }
 0x9a9   :  { %v5679_v22 = vand.u32 2147483647, %v5535_v29  ;;  %v13030_v17 = vmul.f32 0.70710677, %v5426_v60  ;;  %vm5583_vm6 = vcmp.ge.f32.partialorder %v5535_v29, 0.0  ;;  %v13068_v55 = vsel %vm5589_vm5, 1.0, %v15440_v27  ;;  %v13094_v29 = vpop.permute.xlu0 %5167 }
 0x9aa   :  { %v5733_v59 = vmul.f32 0.3275911, %v5685_v40  ;;  %v6309_v45 = vsub.f32 0.0, %v5685_v40  ;;  %v5688_v34 = vand.u32 2147483647, %v5544_v46  ;;  %vm5592_vm7 = vcmp.ge.f32.partialorder %v5544_v46, 0.0 }
 0x9ab   :  { %v5727_v18 = vmul.f32 0.3275911, %v5679_v22  ;;  %v6303_v52 = vsub.f32 0.0, %v5679_v22  ;;  %v8424_v53 = vpop.f32.mrb[52].mxu0  ;;  %v5682_v63 = vand.u32 2147483647, %v13030_v17 }
 0x9ac   :  { %v5781_v32 = vadd.f32 1.0, %v5733_v59  ;;  %v5736_v54 = vmul.f32 0.3275911, %v5688_v34  ;;  %v5438_v15 = vpop.f32.mrb[53].mxu0  ;;  %v6357_v23 = vmul.f32 %v6309_v45, %v5685_v40  ;;  %v6312_v44 = vsub.f32 0.0, %v5688_v34  ;;  %15592 = vst [vmem:[#allocation18_spill] sm:$0xff] %v13094_v29 }
 0x9ad   :  { %v5775_v28 = vadd.f32 1.0, %v5727_v18  ;;  %v8425_v20 = vpop.f32.mrb[54].mxu0  ;;  %v6351_v7 = vmul.f32 %v6303_v52, %v5679_v22  ;;  %v5730_v36 = vmul.f32 0.3275911, %v5682_v63  ;;  %v5447_v31 = vadd.f32 %v8424_v53, %v13037_v14 }
 0x9ae   :  { %9018 = vrcp.f32 %v5781_v32  ;;  %v5784_v49 = vadd.f32 1.0, %v5736_v54  ;;  %v13035_v58 = vpop.f32.mrb[55].mxu0  ;;  %v5439_v57 = vadd.f32 %v5438_v15, %v13028_v61  ;;  %v6413_v33 = vmul.f32 1.442695, %v6357_v23 }
 0x9af   :  { %9020 = vrcp.f32 %v5775_v28  ;;  %v5778_v4 = vadd.f32 1.0, %v5730_v36  ;;  %v13049_v51 = vmul.f32 0.70710677, %v5447_v31  ;;  %v6401_v19 = vmul.f32 1.442695, %v6351_v7 }
 0x9b0   :  { %9022 = vrcp.f32 %v5784_v49  ;;  %v6306_v2 = vsub.f32 0.0, %v5682_v63  ;;  %v13053_v42 = vmul.f32 0.70710677, %v5439_v57  ;;  %v6360_v30 = vmul.f32 %v6312_v44, %v5688_v34 }
 0x9b1   :  { %9024 = vrcp.f32 %v5778_v4  ;;  %v13062_v1 = vand.u32 2147483647, %v13049_v51  ;;  %v13072_v6 = vmul.f32 0.5, %v5426_v60  ;;  %v13081_v37 = vsel %vm5583_vm6, 1.0, %v15440_v27 }
 0x9b2   :  { %v13075_v13 = vand.u32 2147483647, %v13053_v42  ;;  %9026 = vpow2.f32 %v6413_v33  ;;  %v13085_v47 = vsel %vm5592_vm7, 1.0, %v15440_v27  ;;  %vm5586_vm9 = vcmp.ge.f32.partialorder %v13030_v17, 0.0 }
 0x9b3   :  { %v13051_v11 = vpop.f32.mrb[56].mxu0  ;;  %v5745_v5 = vmul.f32 0.3275911, %v13062_v1  ;;  %9028 = vpow2.f32 %v6401_v19  ;;  %v6354_v24 = vmul.f32 %v6306_v2, %v5682_v63  ;;  %v6419_v46 = vmul.f32 1.442695, %v6360_v30 }
 0x9b4   :  { %v13055_v56 = vpop.f32.mrb[57].mxu0  ;;  %v5739_v48 = vmul.f32 0.3275911, %v13075_v13  ;;  %v5450_v53 = vadd.f32 %v8425_v20, %v13094_v29  ;;  %v13110_v54 = vsel %vm5586_vm9, 1.0, %v15440_v27  ;;  %v13119_v49 = vmul.f32 0.5, %v5447_v31 }
 0x9b5   :  { %v13064_v16 = vpop.f32.mrb[58].mxu0  ;;  %v5793_v59 = vadd.f32 1.0, %v5745_v5  ;;  %v6407_v23 = vmul.f32 1.442695, %v6354_v24  ;;  %v13128_v44 = vmul.f32 0.5, %v5439_v57  ;;  %vm5601_vm10 = vcmp.ge.f32.partialorder %v13049_v51, 0.0 }
 0x9b6   :  { %v13077_v38 = vpop.f32.mrb[59].mxu0  ;;  %v5787_v32 = vadd.f32 1.0, %v5739_v48  ;;  %v13139_v2 = vmul.f32 0.5, %v5450_v53  ;;  %v13171_v9 = vsel %vm5601_vm10, 1.0, %v15440_v27  ;;  %vm5595_vm11 = vcmp.ge.f32.partialorder %v13053_v42, 0.0 }
 0x9b7   :  { %15591 = vst [vmem:[#allocation6_spill] sm:$0xff] %v13077_v38  ;;  %v5309_v3 = vpop.f32.mrb[64].mxu1  ;;  %9030 = vrcp.f32 %v5793_v59  ;;  %v13149_v59 = vadd.f32 %v13035_v58, %v13047_v21  ;;  %v6315_v58 = vsub.f32 0.0, %v13075_v13 }
 0x9b8   :  { %v13088_v0 = vpop.eup %9018  ;;  %v13098_v22 = vadd.f32 %v5309_v3, %v13016_v35  ;;  %v5311_v45 = vpop.f32.mrb[65].mxu1  ;;  %9032 = vrcp.f32 %v5787_v32  ;;  %15595 = vst [vmem:[#allocation14_spill] sm:$0xff] %v13139_v2 }
 0x9b9   :  { %v13092_v40 = vpop.eup %9020  ;;  %v5877_v60 = vmul.f32 1.0614054, %v13088_v0  ;;  %v13102_v34 = vadd.f32 %v5311_v45, %v13016_v35  ;;  %v13104_v52 = vpop.f32.mrb[66].mxu1  ;;  %9034 = vpow2.f32 %v6419_v46  ;;  %v6321_v46 = vsub.f32 0.0, %v13062_v1 }
 0x9ba   :  { %v5871_v18 = vmul.f32 1.0614054, %v13092_v40  ;;  %v13113_v15 = vmul.f32 0.70710677, %v13098_v22  ;;  %v13115_v63 = vpop.f32.mrb[67].mxu1  ;;  %v13117_v50 = vpop.eup %9022  ;;  %9036 = vpow2.f32 %v6407_v23 }
 0x9bb   :  { %v5925_v28 = vadd.f32 -1.4531521, %v5877_v60  ;;  %v13121_v20 = vpop.f32.mrb[60].mxu0  ;;  %v5880_v17 = vmul.f32 1.0614054, %v13117_v50  ;;  %v13132_v33 = vpop.eup %9024 }
 0x9bc   :  { %v5919_v35 = vadd.f32 -1.4531521, %v5871_v18  ;;  %15593 = vst [vmem:[#allocation25_spill] sm:$0xff] %v13121_v20  ;;  %v13126_v36 = vand.u32 2147483647, %v13113_v15  ;;  %v13130_v4 = vpop.f32.mrb[61].mxu0  ;;  %v13151_v45 = vpop.eup %9026 }
 0x9bd   :  { %v5973_v7 = vmul.f32 %v13088_v0, %v5925_v28  ;;  %15594 = vst [vmem:[#allocation13_spill] sm:$0xff] %v13130_v4  ;;  %v13137_v31 = vmul.f32 0.70710677, %v13102_v34  ;;  %v13141_v30 = vpop.f32.mrb[62].mxu0  ;;  %v5928_v24 = vadd.f32 -1.4531521, %v5880_v17 }
 0x9be   :  { %v5967_v19 = vmul.f32 %v13092_v40, %v5919_v35  ;;  %15596 = vst [vmem:[#allocation8_spill] sm:$0xff] %v13141_v30  ;;  %v5874_v57 = vmul.f32 1.0614054, %v13132_v33  ;;  %v5725_v48 = vmul.f32 0.3275911, %v13126_v36  ;;  %v13181_v23 = vpop.f32.mrb[63].mxu0 }
 0x9bf   :  { %v6021_v5 = vadd.f32 1.4214138, %v5973_v7  ;;  %v13145_v60 = vmul.f32 0.70710677, %v5450_v53  ;;  %v5976_v32 = vmul.f32 %v13117_v50, %v5928_v24  ;;  %v13156_v35 = vpop.f32.mrb[68].mxu1  ;;  %v13158_v7 = vpop.eup %9028  ;;  %15597 = vst [vmem:[#allocation10_spill] sm:$0xff] %v13181_v23 }
 0x9c0   :  { %v6015_v3 = vadd.f32 1.4214138, %v5967_v19  ;;  %v5922_v28 = vadd.f32 -1.4531521, %v5874_v57  ;;  %v5773_v17 = vadd.f32 1.0, %v5725_v48  ;;  %v13165_v10 = vpop.f32.mrb[69].mxu1 }
 0x9c1   :  { %v6069_v18 = vmul.f32 %v13088_v0, %v6021_v5  ;;  %v13162_v19 = vand.u32 2147483647, %v13137_v31  ;;  %v6024_v26 = vadd.f32 1.4214138, %v5976_v32  ;;  %v13174_v48 = vpop.eup %9030  ;;  %v13179_v32 = vpop.f32.mrb[70].mxu1  ;;  %vm5604_vm13 = vcmp.ge.f32.partialorder %v13145_v60, 0.0 }
 0x9c2   :  { %v6063_v53 = vmul.f32 %v13092_v40, %v6015_v3  ;;  %v5970_v24 = vmul.f32 %v13132_v33, %v5922_v28  ;;  %9038 = vrcp.f32 %v5773_v17  ;;  %v13183_v28 = vpop.eup %9032  ;;  %v5889_v51 = vmul.f32 1.0614054, %v13174_v48  ;;  %v13188_v30 = vpop.f32.mrb[71].mxu1 }
 0x9c3   :  { %v6117_v5 = vadd.f32 -0.28449672, %v6069_v18  ;;  %v5726_v3 = vmul.f32 0.3275911, %v13162_v19  ;;  %v6072_v29 = vmul.f32 %v13117_v50, %v6024_v26  ;;  %v6369_v18 = vmul.f32 %v6321_v46, %v13062_v1  ;;  %15598 = vst [vmem:[#allocation33_spill] sm:$0xff] %v13188_v30  ;;  %v9035_v21 = vpop.eup %9034 }
 0x9c4   :  { %v6111_v57 = vadd.f32 -0.28449672, %v6063_v53  ;;  %v6018_v14 = vadd.f32 1.4214138, %v5970_v24  ;;  %v6363_v17 = vmul.f32 %v6315_v58, %v13075_v13  ;;  %v5937_v24 = vadd.f32 -1.4531521, %v5889_v51 }
 0x9c5   :  { %v5774_v53 = vadd.f32 1.0, %v5726_v3  ;;  %v6165_v26 = vmul.f32 %v13088_v0, %v6117_v5  ;;  %v6120_v42 = vadd.f32 -0.28449672, %v6072_v29  ;;  %v13194_v23 = vsel %vm5595_vm11, 1.0, %v15440_v27 }
 0x9c6   :  { %v6159_v1 = vmul.f32 %v13092_v40, %v6111_v57  ;;  %v6066_v46 = vmul.f32 %v13132_v33, %v6018_v14  ;;  %v5883_v3 = vmul.f32 1.0614054, %v13183_v28  ;;  %v6437_v4 = vmul.f32 1.442695, %v6369_v18 }
 0x9c7   :  { %9040 = vrcp.f32 %v5774_v53  ;;  %v6168_v13 = vmul.f32 %v13117_v50, %v6120_v42  ;;  %v13199_v20 = vsel %vm5604_vm13, 1.0, %v15440_v27  ;;  %v13201_v5 = vpop.f32.mrb[72].mxu1  ;;  %vm5581_vm15 = vcmp.ge.f32.partialorder %v13113_v15, 0.0 }
 0x9c8   :  { %v6114_v58 = vadd.f32 -0.28449672, %v6066_v46  ;;  %15599 = vst [vmem:[#allocation20_spill] sm:$0xff] %v13199_v20  ;;  %15600 = vst [vmem:[#allocation22_spill] sm:$0xff] %v13201_v5  ;;  %v5985_v14 = vmul.f32 %v13174_v48, %v5937_v24  ;;  %v5931_v29 = vadd.f32 -1.4531521, %v5883_v3  ;;  %9042 = vpow2.f32 %v6437_v4 }
 0x9c9   :  { %v6425_v57 = vmul.f32 1.442695, %v6363_v17  ;;  %v13205_v51 = vpop.f32.mrb[73].mxu1  ;;  %v6213_v53 = vadd.f32 0.2548296, %v6165_v26  ;;  %v6301_v42 = vsub.f32 0.0, %v13126_v36  ;;  %v9037_v17 = vpop.eup %9036 }
 0x9ca   :  { %15601 = vst [vmem:[#allocation7_spill] sm:$0xff] %v13205_v51  ;;  %v6207_v61 = vadd.f32 0.2548296, %v6159_v1  ;;  %v6162_v38 = vmul.f32 %v13132_v33, %v6114_v58  ;;  %v13209_v18 = vpop.f32.mrb[74].mxu1  ;;  %v6216_v46 = vadd.f32 0.2548296, %v6168_v13  ;;  %v5979_v5 = vmul.f32 %v13183_v28, %v5931_v29 }
 0x9cb   :  { %15602 = vst [vmem:[#allocation23_spill] sm:$0xff] %v13209_v18  ;;  %v6033_v2 = vadd.f32 1.4214138, %v5985_v14  ;;  %v13213_v30 = vmul.f32 0.5, %v13149_v59  ;;  %v13215_v24 = vpop.f32.mrb[75].mxu1  ;;  %v13218_v26 = vmul.f32 0.5, %v13098_v22  ;;  %v13225_v58 = vadd.f32 %v13104_v52, %v13018_v41 }
 0x9cc   :  { %15604 = vst [vmem:[#allocation17_spill] sm:$0xff] %v13215_v24  ;;  %v6210_v3 = vadd.f32 0.2548296, %v6162_v38  ;;  %v13221_v1 = vmul.f32 0.5, %v13102_v34  ;;  %v13227_v13 = vpop.eup %9038  ;;  %v13232_v14 = vsel %vm5581_vm15, 1.0, %v15440_v27  ;;  %v6261_v22 = vmul.f32 %v13088_v0, %v6213_v53 }
 0x9cd   :  { %15603 = vst [vmem:[#allocation28_spill] sm:$0xff] %v13213_v30  ;;  %v6081_v29 = vmul.f32 %v13174_v48, %v6033_v2  ;;  %v6027_v38 = vadd.f32 1.4214138, %v5979_v5  ;;  %v6255_v34 = vmul.f32 %v13092_v40, %v6207_v61  ;;  %v5869_v24 = vmul.f32 1.0614054, %v13227_v13 }
 0x9ce   :  { %v6349_v52 = vmul.f32 %v6301_v42, %v13126_v36  ;;  %v6264_v18 = vmul.f32 %v13117_v50, %v6216_v46  ;;  %9044 = vpow2.f32 %v6425_v57  ;;  %v6258_v15 = vmul.f32 %v13132_v33, %v6210_v3 }
 0x9cf   :  { %v6129_v51 = vadd.f32 -0.28449672, %v6081_v29  ;;  %v6075_v30 = vmul.f32 %v13183_v28, %v6027_v38  ;;  %v5917_v20 = vadd.f32 -1.4531521, %v5869_v24  ;;  %v6302_v4 = vsub.f32 0.0, %v13162_v19 }
 0x9d0   :  { %v13244_v2 = vmul.f32 0.70710677, %v13225_v58  ;;  %vm5582_vm1 = vcmp.ge.f32.partialorder %v13137_v31, 0.0  ;;  %v13251_v50 = vand.u32 2147483647, %v13145_v60  ;;  %v6501_v36 = vmul.f32 %v13151_v45, %v6261_v22 }
 0x9d1   :  { %v13246_v0 = vpop.eup %9040  ;;  %v6177_v61 = vmul.f32 %v13174_v48, %v6129_v51  ;;  %v6123_v40 = vadd.f32 -0.28449672, %v6075_v30  ;;  %v6495_v33 = vmul.f32 %v13158_v7, %v6255_v34  ;;  %v5965_v5 = vmul.f32 %v13227_v13, %v5917_v20  ;;  %v13258_v51 = vpop.f32.mrb[76].mxu1 }
 0x9d2   :  { %v6397_v57 = vmul.f32 1.442695, %v6349_v52  ;;  %v6504_v53 = vmul.f32 %v9035_v21, %v6264_v18  ;;  %v5870_v46 = vmul.f32 1.0614054, %v13246_v0  ;;  %v6498_v3 = vmul.f32 %v9037_v17, %v6258_v15  ;;  %v13262_v45 = vpop.f32.mrb[77].mxu1  ;;  %v9043_v52 = vpop.eup %9042 }
 0x9d3   :  { %v6225_v42 = vadd.f32 0.2548296, %v6177_v61  ;;  %v6171_v24 = vmul.f32 %v13183_v28, %v6123_v40  ;;  %v6013_v30 = vadd.f32 1.4214138, %v5965_v5  ;;  %v6350_v60 = vmul.f32 %v6302_v4, %v13162_v19 }
 0x9d4   :  { %v5680_v29 = vand.u32 2147483647, %v13244_v2  ;;  %v5918_v20 = vadd.f32 -1.4531521, %v5870_v46  ;;  %v5748_v21 = vmul.f32 0.3275911, %v13251_v50  ;;  %9046 = vpow2.f32 %v6397_v57 }
 0x9d5   :  { %v6273_v7 = vmul.f32 %v13174_v48, %v6225_v42  ;;  %v6219_v38 = vadd.f32 0.2548296, %v6171_v24  ;;  %v6549_v18 = vsub.f32 1.0, %v6501_v36  ;;  %v6061_v22 = vmul.f32 %v13227_v13, %v6013_v30  ;;  %v13279_v30 = vpop.f32.mrb[78].mxu1 }
 0x9d6   :  { %v5728_v34 = vmul.f32 0.3275911, %v5680_v29  ;;  %v6543_v17 = vsub.f32 1.0, %v6495_v33  ;;  %v6552_v15 = vsub.f32 1.0, %v6504_v53  ;;  %v5966_v19 = vmul.f32 %v13246_v0, %v5918_v20 }
 0x9d7   :  { %v6267_v4 = vmul.f32 %v13183_v28, %v6219_v38  ;;  %v6109_v61 = vadd.f32 -0.28449672, %v6061_v22  ;;  %v6513_v40 = vmul.f32 %v9043_v52, %v6273_v7  ;;  %v5796_v48 = vadd.f32 1.0, %v5748_v21 }
 0x9d8   :  { %v5776_v5 = vadd.f32 1.0, %v5728_v34  ;;  %v9045_v42 = vpop.eup %9044  ;;  %v6546_v46 = vsub.f32 1.0, %v6498_v3  ;;  %v13272_v36 = vsel %vm5582_vm1, 1.0, %v15440_v27  ;;  %v6014_v57 = vadd.f32 1.4214138, %v5966_v19 }
 0x9d9   :  { %v6399_v24 = vmul.f32 1.442695, %v6350_v60  ;;  %v6157_v33 = vmul.f32 %v13227_v13, %v6109_v61  ;;  %v6507_v53 = vmul.f32 %v9045_v42, %v6267_v4  ;;  %v13277_v28 = vadd.f32 %v13115_v63, %v13018_v41 }
 0x9da   :  { %9048 = vrcp.f32 %v5776_v5  ;;  %v6597_v7 = vmul.f32 %v6549_v18, %v13068_v55  ;;  %v6591_v3 = vmul.f32 %v6543_v17, %v13081_v37  ;;  %v6600_v31 = vmul.f32 %v6552_v15, %v13085_v47 }
 0x9db   :  { %v6062_v20 = vmul.f32 %v13246_v0, %v6014_v57  ;;  %v6205_v38 = vadd.f32 0.2548296, %v6157_v33  ;;  %v6561_v60 = vsub.f32 1.0, %v6513_v40  ;;  %v6304_v21 = vsub.f32 0.0, %v5680_v29 }
 0x9dc   :  { %9050 = vrcp.f32 %v5796_v48  ;;  %v6594_v22 = vmul.f32 %v6546_v46, %v13110_v54  ;;  %v6324_v41 = vsub.f32 0.0, %v13251_v50  ;;  %v6555_v52 = vsub.f32 1.0, %v6507_v53  ;;  %v13295_v54 = vpop.permute.xlu1 %5172 }
 0x9dd   :  { %v6110_v34 = vadd.f32 -0.28449672, %v6062_v20  ;;  %9052 = vpow2.f32 %v6399_v24  ;;  %v6253_v63 = vmul.f32 %v13227_v13, %v6205_v38  ;;  %vm5584_vm2 = vcmp.ge.f32.partialorder %v13244_v2, 0.0  ;;  %v13300_v2 = vpop.f32.mrb[79].mxu1 }
 0x9de   :  { %v13290_v55 = vmul.f32 0.70710677, %v13277_v28  ;;  %v6645_v37 = vadd.f32 1.0, %v6597_v7  ;;  %v6639_v47 = vadd.f32 1.0, %v6591_v3  ;;  %v6648_v18 = vadd.f32 1.0, %v6600_v31  ;;  %v9047_v15 = vpop.eup %9046 }
 0x9df   :  { %v13293_v17 = vmul.f32 0.70710677, %v13149_v59  ;;  %v6609_v19 = vmul.f32 %v6561_v60, %v13171_v9  ;;  %v6158_v4 = vmul.f32 %v13246_v0, %v6110_v34  ;;  %v6352_v13 = vmul.f32 %v6304_v21, %v5680_v29 }
 0x9e0   :  { %v5681_v61 = vand.u32 2147483647, %v13290_v55  ;;  %v6642_v40 = vadd.f32 1.0, %v6594_v22  ;;  %v13303_v5 = vmul.f32 0.5, %v13225_v58  ;;  %v13306_v48 = vsel %vm5584_vm2, 1.0, %v15440_v27 }
 0x9e1   :  { %v6372_v59 = vmul.f32 %v6324_v41, %v13251_v50  ;;  %v6493_v42 = vmul.f32 %v9047_v15, %v6253_v63  ;;  %v6603_v46 = vmul.f32 %v6555_v52, %v13194_v23  ;;  %v5320_v29 = vadd.f32 %v13156_v35, %v13020_v43 }
 0x9e2   :  { %v5729_v9 = vmul.f32 0.3275911, %v5681_v61  ;;  %v13313_v57 = vmul.f32 %v6645_v37, %v13057_v12  ;;  %v13316_v24 = vmul.f32 %v6639_v47, %v13059_v8  ;;  %v13319_v58 = vmul.f32 %v6648_v18, %v13070_v25  ;;  %v13333_v25 = vpop.permute.xlu1 %5182 }
 0x9e3   :  { %v13322_v33 = vand.u32 2147483647, %v13293_v17  ;;  %v6657_v53 = vadd.f32 1.0, %v6609_v19  ;;  %v6206_v23 = vadd.f32 0.2548296, %v6158_v4  ;;  %v13327_v35 = vmul.f32 %v6642_v40, %v13072_v6 }
 0x9e4   :  { %15605 = vst [vmem:[#allocation11_spill] sm:$0xff] %v13313_v57  ;;  %15606 = vst [vmem:[#allocation9_spill] sm:$0xff] %v13316_v24  ;;  %v13324_v50 = vpop.eup %9048  ;;  %v6403_v7 = vmul.f32 1.442695, %v6352_v13  ;;  %v5777_v3 = vadd.f32 1.0, %v5729_v9  ;;  %v6541_v38 = vsub.f32 1.0, %v6493_v42  ;;  %v13340_v63 = vadd.f32 %v13051_v11, %v13333_v25 }
 0x9e5   :  { %15607 = vst [vmem:[#allocation19_spill] sm:$0xff] %v13319_v58  ;;  %15608 = vst [vmem:[#allocation21_spill] sm:$0xff] %v13327_v35  ;;  %v5872_v12 = vmul.f32 1.0614054, %v13324_v50  ;;  %v6443_v31 = vmul.f32 1.442695, %v6372_v59  ;;  %v13343_v52 = vmul.f32 %v6657_v53, %v13119_v49  ;;  %v6254_v37 = vmul.f32 %v13246_v0, %v6206_v23 }
 0x9e6   :  { %v5742_v8 = vmul.f32 0.3275911, %v13322_v33  ;;  %v13331_v20 = vpop.eup %9050  ;;  %v6651_v60 = vadd.f32 1.0, %v6603_v46  ;;  %9054 = vrcp.f32 %v5777_v3  ;;  %v13335_v21 = vmul.f32 0.70710677, %v5320_v29  ;;  %v13355_v49 = vpop.f32.mrb[80].mxu1 }
 0x9e7   :  { %v9053_v22 = vpop.eup %9052  ;;  %v5920_v34 = vadd.f32 -1.4531521, %v5872_v12  ;;  %v5892_v41 = vmul.f32 1.0614054, %v13331_v20  ;;  %15609 = vst [vmem:[#allocation31_spill] sm:$0xff] %v13343_v52  ;;  %9056 = vpow2.f32 %v6403_v7  ;;  %v13347_v47 = vmul.f32 0.5, %v13277_v28 }
 0x9e8   :  { %v5790_v6 = vadd.f32 1.0, %v5742_v8  ;;  %v6305_v19 = vsub.f32 0.0, %v5681_v61  ;;  %v6589_v4 = vmul.f32 %v6541_v38, %v13232_v14  ;;  %vm5585_vm3 = vcmp.ge.f32.partialorder %v13290_v55, 0.0 }
 0x9e9   :  { %v5968_v18 = vmul.f32 %v13324_v50, %v5920_v34  ;;  %v5940_v15 = vadd.f32 -1.4531521, %v5892_v41  ;;  %v13353_v11 = vand.u32 2147483647, %v13335_v21  ;;  %v13358_v0 = vmul.f32 %v6651_v60, %v13128_v44 }
 0x9ea   :  { %9058 = vrcp.f32 %v5790_v6  ;;  %v13362_v40 = vmul.f32 0.70710677, %v13340_v63  ;;  %v6494_v59 = vmul.f32 %v9053_v22, %v6254_v37  ;;  %vm5598_vm4 = vcmp.ge.f32.partialorder %v13293_v17, 0.0  ;;  %v13376_v17 = vpop.f32.mrb[81].mxu1 }
 0x9eb   :  { %9060 = vpow2.f32 %v6443_v31  ;;  %15610 = vst [vmem:[#allocation12_spill] sm:$0xff] %v13358_v0  ;;  %v6016_v28 = vadd.f32 1.4214138, %v5968_v18  ;;  %v5988_v13 = vmul.f32 %v13331_v20, %v5940_v15  ;;  %v5731_v14 = vmul.f32 0.3275911, %v13353_v11 }
 0x9ec   :  { %v13368_v55 = vadd.f32 %v13165_v10, %v13020_v43  ;;  %v13372_v44 = vsel %vm5585_vm3, 1.0, %v15440_v27  ;;  %v6353_v9 = vmul.f32 %v6305_v19, %v5681_v61  ;;  %v6637_v53 = vadd.f32 1.0, %v6589_v4 }
 0x9ed   :  { %v6064_v42 = vmul.f32 %v13324_v50, %v6016_v28  ;;  %v6036_v46 = vadd.f32 1.4214138, %v5988_v13  ;;  %v6318_v23 = vsub.f32 0.0, %v13322_v33  ;;  %v5779_v7 = vadd.f32 1.0, %v5731_v14 }
 0x9ee   :  { %v5709_v3 = vand.u32 2147483647, %v13362_v40  ;;  %v13380_v10 = vsel %vm5598_vm4, 1.0, %v15440_v27  ;;  %v13383_v43 = vmul.f32 0.70710677, %v13368_v55  ;;  %v6542_v61 = vsub.f32 1.0, %v6494_v59 }
 0x9ef   :  { %v6112_v12 = vadd.f32 -0.28449672, %v6064_v42  ;;  %v6084_v31 = vmul.f32 %v13331_v20, %v6036_v46  ;;  %v13387_v38 = vmul.f32 0.5, %v5320_v29  ;;  %9062 = vrcp.f32 %v5779_v7 }
 0x9f0   :  { %v13385_v8 = vpop.eup %9054  ;;  %v5757_v60 = vmul.f32 0.3275911, %v5709_v3  ;;  %v6405_v6 = vmul.f32 1.442695, %v6353_v9  ;;  %v6685_v18 = vmul.f32 %v6637_v53, %v13218_v26  ;;  %v6366_v15 = vmul.f32 %v6318_v23, %v13322_v33 }
 0x9f1   :  { %v6160_v22 = vmul.f32 %v13324_v50, %v6112_v12  ;;  %v6132_v34 = vadd.f32 -0.28449672, %v6084_v31  ;;  %v5873_v41 = vmul.f32 1.0614054, %v13385_v8  ;;  %v9057_v37 = vpop.eup %9056  ;;  %vm5587_vm0 = vcmp.ge.f32.partialorder %v13335_v21, 0.0  ;;  %v13412_v31 = vpop.f32.mrb[82].mxu1 }
 0x9f2   :  { %v5805_v19 = vadd.f32 1.0, %v5757_v60  ;;  %v5684_v59 = vand.u32 2147483647, %v13383_v43  ;;  %v6590_v42 = vmul.f32 %v6542_v61, %v13272_v36  ;;  %v13402_v26 = vadd.f32 %v13055_v56, %v13295_v54 }
 0x9f3   :  { %v6208_v29 = vadd.f32 0.2548296, %v6160_v22  ;;  %v6180_v28 = vmul.f32 %v13331_v20, %v6132_v34  ;;  %v5921_v13 = vadd.f32 -1.4531521, %v5873_v41  ;;  %v6307_v9 = vsub.f32 0.0, %v13353_v11 }
 0x9f4   :  { %v13394_v4 = vpop.eup %9058  ;;  %9064 = vrcp.f32 %v5805_v19  ;;  %v5732_v53 = vmul.f32 0.3275911, %v5684_v59  ;;  %v6431_v12 = vmul.f32 1.442695, %v6366_v15  ;;  %v13410_v36 = vsel %vm5587_vm0, 1.0, %v15440_v27 }
 0x9f5   :  { %v9061_v14 = vpop.eup %9060  ;;  %v5886_v46 = vmul.f32 1.0614054, %v13394_v4  ;;  %v5969_v33 = vmul.f32 %v13385_v8, %v5921_v13  ;;  %9066 = vpow2.f32 %v6405_v6  ;;  %v6256_v23 = vmul.f32 %v13324_v50, %v6208_v29 }
 0x9f6   :  { %v6228_v61 = vadd.f32 0.2548296, %v6180_v28  ;;  %v6333_v60 = vsub.f32 0.0, %v5709_v3  ;;  %v5780_v22 = vadd.f32 1.0, %v5732_v53  ;;  %v13415_v34 = vmul.f32 %v13043_v62, %v6685_v18 }
 0x9f7   :  { %v5934_v7 = vadd.f32 -1.4531521, %v5886_v46  ;;  %v6017_v56 = vadd.f32 1.4214138, %v5969_v33  ;;  %v6638_v41 = vadd.f32 1.0, %v6590_v42  ;;  %v6355_v21 = vmul.f32 %v6307_v9, %v13353_v11 }
 0x9f8   :  { %15611 = vst [vmem:[#allocation29_spill] sm:$0xff] %v13415_v34  ;;  %v13419_v50 = vmul.f32 0.70710677, %v13402_v26  ;;  %v13424_v19 = vmul.f32 0.5, %v13340_v63  ;;  %9068 = vrcp.f32 %v5780_v22  ;;  %v6496_v28 = vmul.f32 %v9057_v37, %v6256_v23  ;;  %v13438_v37 = vpop.f32.mrb[83].mxu1 }
 0x9f9   :  { %v5982_v6 = vmul.f32 %v13394_v4, %v5934_v7  ;;  %v6065_v15 = vmul.f32 %v13385_v8, %v6017_v56  ;;  %v13426_v29 = vpop.eup %9062  ;;  %9070 = vpow2.f32 %v6431_v12  ;;  %vm5613_vm5 = vcmp.ge.f32.partialorder %v13362_v40, 0.0 }
 0x9fa   :  { %v6276_v18 = vmul.f32 %v13331_v20, %v6228_v61  ;;  %v5875_v46 = vmul.f32 1.0614054, %v13426_v29  ;;  %v6381_v33 = vmul.f32 %v6333_v60, %v5709_v3  ;;  %v13432_v53 = vmul.f32 %v6638_v41, %v13221_v1  ;;  %v13446_v3 = vpop.permute.xlu0 %5177 }
 0x9fb   :  { %v6030_v13 = vadd.f32 1.4214138, %v5982_v6  ;;  %v6113_v42 = vadd.f32 -0.28449672, %v6065_v15  ;;  %v6308_v11 = vsub.f32 0.0, %v5684_v59  ;;  %v13442_v20 = vsel %vm5613_vm5, 1.0, %v15440_v27 }
 0x9fc   :  { %15612 = vst [vmem:[#allocation30_spill] sm:$0xff] %v13432_v53  ;;  %v13436_v9 = vand.u32 2147483647, %v13419_v50  ;;  %v5923_v40 = vadd.f32 -1.4531521, %v5875_v46  ;;  %v6544_v1 = vsub.f32 1.0, %v6496_v28  ;;  %v6516_v22 = vmul.f32 %v9061_v14, %v6276_v18 }
 0x9fd   :  { %v6078_v63 = vmul.f32 %v13394_v4, %v6030_v13  ;;  %v6161_v23 = vmul.f32 %v13385_v8, %v6113_v42  ;;  %v6409_v7 = vmul.f32 1.442695, %v6355_v21  ;;  %vm5588_vm6 = vcmp.ge.f32.partialorder %v13383_v43, 0.0 }
 0x9fe   :  { %v13444_v12 = vpop.eup %9064  ;;  %v5751_v56 = vmul.f32 0.3275911, %v13436_v9  ;;  %v5971_v41 = vmul.f32 %v13426_v29, %v5923_v40  ;;  %v6461_v6 = vmul.f32 1.442695, %v6381_v33  ;;  %v5324_v15 = vadd.f32 %v13179_v32, %v13023_v39 }
 0x9ff   :  { %v6126_v61 = vadd.f32 -0.28449672, %v6078_v63  ;;  %v9067_v60 = vpop.eup %9066  ;;  %v5901_v13 = vmul.f32 1.0614054, %v13444_v12  ;;  %v6356_v42 = vmul.f32 %v6308_v11, %v5684_v59  ;;  %v6209_v28 = vadd.f32 0.2548296, %v6161_v23 }
 0xa00   :  { %v5799_v46 = vadd.f32 1.0, %v5751_v56  ;;  %v6019_v63 = vadd.f32 1.4214138, %v5971_v41  ;;  %9072 = vpow2.f32 %v6409_v7  ;;  %v13456_v52 = vmul.f32 0.5, %v13368_v55  ;;  %v13469_v55 = vpop.permute.xlu0 %5187 }
 0xa01   :  { %v6174_v21 = vmul.f32 %v13394_v4, %v6126_v61  ;;  %v6592_v14 = vmul.f32 %v6544_v1, %v13306_v48  ;;  %v5949_v18 = vadd.f32 -1.4531521, %v5901_v13  ;;  %v13462_v33 = vsel %vm5588_vm6, 1.0, %v15440_v27 }
 0xa02   :  { %9074 = vrcp.f32 %v5799_v46  ;;  %v13464_v32 = vpop.eup %9068  ;;  %v6564_v40 = vsub.f32 1.0, %v6516_v22  ;;  %v6067_v59 = vmul.f32 %v13426_v29, %v6019_v63  ;;  %v13467_v11 = vmul.f32 0.70710677, %v5324_v15 }
 0xa03   :  { %9076 = vpow2.f32 %v6461_v6  ;;  %v9071_v23 = vpop.eup %9070  ;;  %v6222_v7 = vadd.f32 0.2548296, %v6174_v21  ;;  %v5997_v48 = vmul.f32 %v13444_v12, %v5949_v18  ;;  %v5876_v1 = vmul.f32 1.0614054, %v13464_v32  ;;  %v15613_v21 = vld [vmem:[#allocation20_spill] sm:$0xff] }
 0xa04   :  { %v6411_v43 = vmul.f32 1.442695, %v6356_v42  ;;  %v6257_v61 = vmul.f32 %v13385_v8, %v6209_v28  ;;  %v6115_v56 = vadd.f32 -0.28449672, %v6067_v59  ;;  %v5686_v41 = vand.u32 2147483647, %v13467_v11 }
 0xa05   :  { %v5466_v22 = vadd.f32 %v13064_v16, %v13469_v55  ;;  %v6640_v6 = vadd.f32 1.0, %v6592_v14  ;;  %v6045_v13 = vadd.f32 1.4214138, %v5997_v48  ;;  %v5924_v46 = vadd.f32 -1.4531521, %v5876_v1  ;;  %v13487_v14 = vpop.f32.mrb[84].mxu1 }
 0xa06   :  { %v13478_v63 = vmul.f32 0.5, %v13402_v26  ;;  %v6612_v0 = vmul.f32 %v6564_v40, %v15613_v21  ;;  %v6163_v18 = vmul.f32 %v13426_v29, %v6115_v56  ;;  %vm5607_vm7 = vcmp.ge.f32.partialorder %v13419_v50, 0.0  ;;  %v13492_v53 = vpop.f32.mrb[85].mxu1  ;;  %v15616_v50 = vld [vmem:[#allocation14_spill] sm:$0xff] }
 0xa07   :  { %v5734_v42 = vmul.f32 0.3275911, %v5686_v41  ;;  %v6270_v8 = vmul.f32 %v13394_v4, %v6222_v7  ;;  %v6093_v28 = vmul.f32 %v13444_v12, %v6045_v13  ;;  %v5972_v59 = vmul.f32 %v13464_v32, %v5924_v46 }
 0xa08   :  { %v6327_v16 = vsub.f32 0.0, %v13436_v9  ;;  %v6497_v48 = vmul.f32 %v9067_v60, %v6257_v61  ;;  %v6211_v26 = vadd.f32 0.2548296, %v6163_v18  ;;  %v13489_v34 = vmul.f32 0.70710677, %v5466_v22 }
 0xa09   :  { %v5782_v1 = vadd.f32 1.0, %v5734_v42  ;;  %v6688_v40 = vmul.f32 %v6640_v6, %v13303_v5  ;;  %v6141_v56 = vadd.f32 -0.28449672, %v6093_v28  ;;  %v6020_v21 = vadd.f32 1.4214138, %v5972_v59  ;;  %v15615_v28 = vld [vmem:[#allocation33_spill] sm:$0xff] }
 0xa0a   :  { %9078 = vpow2.f32 %v6411_v43  ;;  %v9073_v4 = vpop.eup %9072  ;;  %v6660_v7 = vadd.f32 1.0, %v6612_v0  ;;  %v6259_v13 = vmul.f32 %v13426_v29, %v6211_v26  ;;  %v13495_v46 = vmul.f32 0.5, %v5324_v15 }
 0xa0b   :  { %9080 = vrcp.f32 %v5782_v1  ;;  %v6510_v60 = vmul.f32 %v9071_v23, %v6270_v8  ;;  %v6189_v61 = vmul.f32 %v13444_v12, %v6141_v56  ;;  %v6068_v18 = vmul.f32 %v13464_v32, %v6020_v21 }
 0xa0c   :  { %v13497_v58 = vpop.eup %9074  ;;  %v6375_v5 = vmul.f32 %v6327_v16, %v13436_v9  ;;  %v6545_v43 = vsub.f32 1.0, %v6497_v48  ;;  %v13505_v0 = vsel %vm5607_vm7, 1.0, %v15440_v27  ;;  %v5712_v15 = vand.u32 2147483647, %v13489_v34 }
 0xa0d   :  { %v9077_v6 = vpop.eup %9076  ;;  %v5895_v29 = vmul.f32 1.0614054, %v13497_v58  ;;  %v13510_v42 = vmul.f32 %v13043_v62, %v6688_v40  ;;  %v6237_v23 = vadd.f32 0.2548296, %v6189_v61  ;;  %v6116_v8 = vadd.f32 -0.28449672, %v6068_v18 }
 0xa0e   :  { %v13514_v59 = vadd.f32 %v15615_v28, %v13023_v39  ;;  %v6499_v9 = vmul.f32 %v9073_v4, %v6259_v13  ;;  %v6310_v48 = vsub.f32 0.0, %v5686_v41  ;;  %v5760_v26 = vmul.f32 0.3275911, %v5712_v15  ;;  %v13525_v28 = vpop.f32.mrb[86].mxu1 }
 0xa0f   :  { %15614 = vst [vmem:[#allocation34_spill] sm:$0xff] %v13510_v42  ;;  %v5943_v16 = vadd.f32 -1.4531521, %v5895_v29  ;;  %v13517_v1 = vmul.f32 %v6660_v7, %v15616_v50  ;;  %v6558_v56 = vsub.f32 1.0, %v6510_v60  ;;  %v6449_v21 = vmul.f32 1.442695, %v6375_v5 }
 0xa10   :  { %v13520_v57 = vmul.f32 0.70710677, %v13514_v59  ;;  %v6593_v40 = vmul.f32 %v6545_v43, %v13372_v44  ;;  %v6285_v61 = vmul.f32 %v13444_v12, %v6237_v23  ;;  %v5808_v39 = vadd.f32 1.0, %v5760_v26  ;;  %15618 = vst [vmem:[#allocation27_spill] sm:$0xff] %v13525_v28 }
 0xa11   :  { %15617 = vst [vmem:[#allocation3_spill] sm:$0xff] %v13517_v1  ;;  %v5991_v18 = vmul.f32 %v13497_v58, %v5943_v16  ;;  %v6164_v4 = vmul.f32 %v13464_v32, %v6116_v8  ;;  %vm5590_vm9 = vcmp.ge.f32.partialorder %v13467_v11, 0.0  ;;  %v13529_v7 = vmul.f32 0.5, %v5466_v22 }
 0xa12   :  { %v5687_v13 = vand.u32 2147483647, %v13520_v57  ;;  %v6547_v60 = vsub.f32 1.0, %v6499_v9  ;;  %v6358_v29 = vmul.f32 %v6310_v48, %v5686_v41  ;;  %9082 = vrcp.f32 %v5808_v39  ;;  %v13543_v48 = vpop.permute.xlu1 %5192 }
 0xa13   :  { %v6039_v5 = vadd.f32 1.4214138, %v5991_v18  ;;  %v6606_v12 = vmul.f32 %v6558_v56, %v13380_v10  ;;  %9084 = vpow2.f32 %v6449_v21  ;;  %v6336_v43 = vsub.f32 0.0, %v5712_v15  ;;  %15619 = vst [vmem:[#allocation5_spill] sm:$0xff] %v13543_v48  ;;  %v13548_v18 = vpop.f32.mrb[87].mxu1 }
 0xa14   :  { %v9079_v44 = vpop.eup %9078  ;;  %v5735_v23 = vmul.f32 0.3275911, %v5687_v13  ;;  %v6641_v26 = vadd.f32 1.0, %v6593_v40  ;;  %v6525_v8 = vmul.f32 %v9077_v6, %v6285_v61  ;;  %v13539_v22 = vsel %vm5590_vm9, 1.0, %v15440_v27  ;;  %v15620_v6 = vld [vmem:[#allocation6_spill] sm:$0xff]  ;;  %15621 = vst [vmem:[#allocation32_spill] sm:$0xff] %v13548_v18 }
 0xa15   :  { %v13533_v16 = vpop.eup %9080  ;;  %v6087_v50 = vmul.f32 %v13497_v58, %v6039_v5  ;;  %v6212_v9 = vadd.f32 0.2548296, %v6164_v4  ;;  %vm5616_vm10 = vcmp.ge.f32.partialorder %v13489_v34, 0.0  ;;  %v6595_v56 = vmul.f32 %v6547_v60, %v13410_v36 }
 0xa16   :  { %v5878_v41 = vmul.f32 1.0614054, %v13533_v16  ;;  %v5783_v10 = vadd.f32 1.0, %v5735_v23  ;;  %v6415_v40 = vmul.f32 1.442695, %v6358_v29  ;;  %v5458_v61 = vadd.f32 %v15620_v6, %v13446_v3  ;;  %v13573_v34 = vpop.permute.xlu1 %5202 }
 0xa17   :  { %v6135_v21 = vadd.f32 -0.28449672, %v6087_v50  ;;  %v6654_v11 = vadd.f32 1.0, %v6606_v12  ;;  %v6384_v5 = vmul.f32 %v6336_v43, %v5712_v15  ;;  %v13551_v4 = vmul.f32 %v6641_v26, %v13347_v47  ;;  %v15623_v12 = vld [vmem:[#allocation15_spill] sm:$0xff]  ;;  %v15624_v15 = vld [vmem:[#allocation22_spill] sm:$0xff]  ;;  %v15625_v50 = vld [vmem:[#allocation28_spill] sm:$0xff] }
 0xa18   :  { %v5926_v39 = vadd.f32 -1.4531521, %v5878_v41  ;;  %9086 = vrcp.f32 %v5783_v10  ;;  %v6573_v1 = vsub.f32 1.0, %v6525_v8  ;;  %v13554_v42 = vmul.f32 0.70710677, %v5458_v61  ;;  %15627 = vst [vmem:[#allocation33_spill] sm:$0xff] %v13573_v34 }
 0xa19   :  { %15622 = vst [vmem:[#allocation2_spill] sm:$0xff] %v13551_v4  ;;  %v6183_v23 = vmul.f32 %v13497_v58, %v6135_v21  ;;  %v6260_v36 = vmul.f32 %v13464_v32, %v6212_v9  ;;  %v13561_v29 = vsel %vm5616_vm10, 1.0, %v15440_v27  ;;  %v13565_v43 = vadd.f32 %v15624_v15, %v15623_v12 }
 0xa1a   :  { %v5974_v60 = vmul.f32 %v13533_v16, %v5926_v39  ;;  %v6643_v47 = vadd.f32 1.0, %v6595_v56  ;;  %9088 = vpow2.f32 %v6415_v40  ;;  %v6311_v26 = vsub.f32 0.0, %v5687_v13 }
 0xa1b   :  { %v5706_v8 = vand.u32 2147483647, %v13554_v42  ;;  %v13569_v41 = vmul.f32 %v6654_v11, %v15625_v50  ;;  %v6231_v32 = vadd.f32 0.2548296, %v6183_v23  ;;  %v6467_v10 = vmul.f32 1.442695, %v6384_v5 }
 0xa1c   :  { %v6022_v9 = vadd.f32 1.4214138, %v5974_v60  ;;  %v13571_v21 = vpop.eup %9082  ;;  %v6621_v6 = vmul.f32 %v6573_v1, %v13442_v20  ;;  %vm5591_vm11 = vcmp.ge.f32.partialorder %v13520_v57, 0.0  ;;  %v13578_v56 = vmul.f32 0.70710677, %v13565_v43  ;;  %v15628_v5 = vld [vmem:[#allocation25_spill] sm:$0xff] }
 0xa1d   :  { %15626 = vst [vmem:[#allocation20_spill] sm:$0xff] %v13569_v41  ;;  %v5754_v39 = vmul.f32 0.3275911, %v5706_v8  ;;  %v9085_v40 = vpop.eup %9084  ;;  %v6500_v15 = vmul.f32 %v9079_v44, %v6260_v36  ;;  %v5904_v23 = vmul.f32 1.0614054, %v13571_v21  ;;  %v13584_v60 = vadd.f32 %v15628_v5, %v13573_v34  ;;  %v15631_v34 = vld [vmem:[#allocation7_spill] sm:$0xff] }
 0xa1e   :  { %v6070_v11 = vmul.f32 %v13533_v16, %v6022_v9  ;;  %v6691_v50 = vmul.f32 %v6643_v47, %v13387_v38  ;;  %v13588_v20 = vmul.f32 0.5, %v13514_v59  ;;  %v6359_v1 = vmul.f32 %v6311_v26, %v5687_v13  ;;  %v13604_v26 = vpop.f32.mrb[88].mxu1 }
 0xa1f   :  { %v5802_v41 = vadd.f32 1.0, %v5754_v39  ;;  %v6279_v4 = vmul.f32 %v13497_v58, %v6231_v32  ;;  %v5952_v35 = vadd.f32 -1.4531521, %v5904_v23  ;;  %9090 = vpow2.f32 %v6467_v10  ;;  %15629 = vst [vmem:[#allocation14_spill] sm:$0xff] %v13604_v26  ;;  %v13616_v26 = vpop.f32.mrb[89].mxu1 }
 0xa20   :  { %v6118_v24 = vadd.f32 -0.28449672, %v6070_v11  ;;  %v6669_v44 = vadd.f32 1.0, %v6621_v6  ;;  %v13594_v36 = vsel %vm5591_vm11, 1.0, %v15440_v27  ;;  %v5689_v9 = vand.u32 2147483647, %v13578_v56 }
 0xa21   :  { %9092 = vrcp.f32 %v5802_v41  ;;  %v6548_v59 = vsub.f32 1.0, %v6500_v15  ;;  %v6000_v47 = vmul.f32 %v13571_v21, %v5952_v35  ;;  %v13602_v58 = vmul.f32 0.70710677, %v13584_v60  ;;  %15632 = vst [vmem:[#allocation15_spill] sm:$0xff] %v13616_v26 }
 0xa22   :  { %v13597_v38 = vpop.eup %9086  ;;  %v6166_v13 = vmul.f32 %v13533_v16, %v6118_v24  ;;  %v13607_v32 = vmul.f32 %v13043_v62, %v6691_v50  ;;  %v6417_v41 = vmul.f32 1.442695, %v6359_v1  ;;  %v5737_v10 = vmul.f32 0.3275911, %v5689_v9 }
 0xa23   :  { %v5879_v57 = vmul.f32 1.0614054, %v13597_v38  ;;  %v6519_v6 = vmul.f32 %v9085_v40, %v6279_v4  ;;  %v6048_v11 = vadd.f32 1.4214138, %v6000_v47  ;;  %v6330_v15 = vsub.f32 0.0, %v5706_v8 }
 0xa24   :  { %15630 = vst [vmem:[#allocation6_spill] sm:$0xff] %v13607_v32  ;;  %v6214_v39 = vadd.f32 0.2548296, %v6166_v13  ;;  %v9089_v23 = vpop.eup %9088  ;;  %v13610_v5 = vmul.f32 0.5, %v5458_v61  ;;  %v5785_v35 = vadd.f32 1.0, %v5737_v10  ;;  %v13614_v18 = vadd.f32 %v15631_v34, %v15623_v12 }
 0xa25   :  { %v5927_v24 = vadd.f32 -1.4531521, %v5879_v57  ;;  %v13619_v50 = vmul.f32 %v6669_v44, %v13424_v19  ;;  %v6596_v1 = vmul.f32 %v6548_v59, %v13462_v33  ;;  %v6096_v4 = vmul.f32 %v13571_v21, %v6048_v11 }
 0xa26   :  { %v5721_v40 = vand.u32 2147483647, %v13602_v58  ;;  %v6262_v13 = vmul.f32 %v13533_v16, %v6214_v39  ;;  %vm5610_vm13 = vcmp.ge.f32.partialorder %v13554_v42, 0.0  ;;  %9094 = vrcp.f32 %v5785_v35 }
 0xa27   :  { %15633 = vst [vmem:[#allocation22_spill] sm:$0xff] %v13619_v50  ;;  %v5975_v61 = vmul.f32 %v13597_v38, %v5927_v24  ;;  %v6567_v12 = vsub.f32 1.0, %v6519_v6  ;;  %v6378_v34 = vmul.f32 %v6330_v15, %v5706_v8  ;;  %v6313_v47 = vsub.f32 0.0, %v5689_v9 }
 0xa28   :  { %v5769_v57 = vmul.f32 0.3275911, %v5721_v40  ;;  %v6144_v10 = vadd.f32 -0.28449672, %v6096_v4  ;;  %9096 = vpow2.f32 %v6417_v41  ;;  %v13628_v33 = vmul.f32 0.70710677, %v13614_v18 }
 0xa29   :  { %v6023_v19 = vadd.f32 1.4214138, %v5975_v61  ;;  %v13630_v44 = vpop.eup %9090  ;;  %v6644_v59 = vadd.f32 1.0, %v6596_v1  ;;  %v13633_v16 = vsel %vm5610_vm13, 1.0, %v15440_v27  ;;  %v13636_v39 = vmul.f32 0.5, %v13565_v43  ;;  %v15634_v61 = vld [vmem:[#allocation13_spill] sm:$0xff] }
 0xa2a   :  { %v5817_v42 = vadd.f32 1.0, %v5769_v57  ;;  %v6502_v8 = vmul.f32 %v9089_v23, %v6262_v13  ;;  %vm5593_vm15 = vcmp.ge.f32.partialorder %v13578_v56, 0.0  ;;  %v5690_v41 = vand.u32 2147483647, %v13628_v33 }
 0xa2b   :  { %v13638_v6 = vpop.eup %9092  ;;  %v6071_v11 = vmul.f32 %v13597_v38, %v6023_v19  ;;  %v6615_v15 = vmul.f32 %v6567_v12, %v13505_v0  ;;  %v6455_v35 = vmul.f32 1.442695, %v6378_v34  ;;  %v6192_v1 = vmul.f32 %v13571_v21, %v6144_v10 }
 0xa2c   :  { %v5898_v24 = vmul.f32 1.0614054, %v13638_v6  ;;  %9098 = vrcp.f32 %v5817_v42  ;;  %v6361_v4 = vmul.f32 %v6313_v47, %v5689_v9  ;;  %v13648_v57 = vadd.f32 %v15634_v61, %v13543_v48 }
 0xa2d   :  { %v6119_v43 = vadd.f32 -0.28449672, %v6071_v11  ;;  %v13651_v23 = vmul.f32 %v6644_v59, %v13456_v52  ;;  %v6345_v19 = vsub.f32 0.0, %v5721_v40  ;;  %v5738_v50 = vmul.f32 0.3275911, %v5690_v41 }
 0xa2e   :  { %v5946_v13 = vadd.f32 -1.4531521, %v5898_v24  ;;  %v6550_v32 = vsub.f32 1.0, %v6502_v8  ;;  %v13657_v12 = vsel %vm5593_vm15, 1.0, %v15440_v27  ;;  %v13660_v9 = vmul.f32 0.5, %v13584_v60 }
 0xa2f   :  { %15635 = vst [vmem:[#allocation28_spill] sm:$0xff] %v13651_v23  ;;  %v6167_v0 = vmul.f32 %v13597_v38, %v6119_v43  ;;  %v6663_v34 = vadd.f32 1.0, %v6615_v15  ;;  %vm5625_vm1 = vcmp.ge.f32.partialorder %v13602_v58, 0.0  ;;  %v5786_v52 = vadd.f32 1.0, %v5738_v50 }
 0xa30   :  { %v5994_v47 = vmul.f32 %v13638_v6, %v5946_v13  ;;  %v13664_v10 = vpop.eup %9094  ;;  %v6240_v59 = vadd.f32 0.2548296, %v6192_v1  ;;  %9100 = vpow2.f32 %v6455_v35  ;;  %v6421_v42 = vmul.f32 1.442695, %v6361_v4  ;;  %v15636_v4 = vld [vmem:[#allocation4_spill] sm:$0xff]  ;;  %v15637_v13 = vld [vmem:[#allocation23_spill] sm:$0xff] }
 0xa31   :  { %v13667_v8 = vmul.f32 0.70710677, %v13648_v57  ;;  %v6215_v56 = vadd.f32 0.2548296, %v6167_v0  ;;  %v5881_v24 = vmul.f32 1.0614054, %v13664_v10  ;;  %v6393_v60 = vmul.f32 %v6345_v19, %v5721_v40  ;;  %v13686_v19 = vpop.permute.xlu0 %5197 }
 0xa32   :  { %v6042_v11 = vadd.f32 1.4214138, %v5994_v47  ;;  %v9097_v43 = vpop.eup %9096  ;;  %v6598_v15 = vmul.f32 %v6550_v32, %v13539_v22  ;;  %v13672_v61 = vsel %vm5625_vm1, 1.0, %v15440_v27  ;;  %9102 = vrcp.f32 %v5786_v52 }
 0xa33   :  { %v5715_v58 = vand.u32 2147483647, %v13667_v8  ;;  %v5929_v35 = vadd.f32 -1.4531521, %v5881_v24  ;;  %v6314_v1 = vsub.f32 0.0, %v5690_v41  ;;  %v13678_v0 = vadd.f32 %v15637_v13, %v15636_v4 }
 0xa34   :  { %v6090_v50 = vmul.f32 %v13638_v6, %v6042_v11  ;;  %v13681_v47 = vmul.f32 %v6663_v34, %v13478_v63  ;;  %v6288_v40 = vmul.f32 %v13571_v21, %v6240_v59  ;;  %9104 = vpow2.f32 %v6421_v42  ;;  %v13692_v34 = vpop.f32.mrb[90].mxu1 }
 0xa35   :  { %v5763_v22 = vmul.f32 0.3275911, %v5715_v58  ;;  %v6263_v52 = vmul.f32 %v13597_v38, %v6215_v56  ;;  %v5977_v24 = vmul.f32 %v13664_v10, %v5929_v35  ;;  %v6485_v23 = vmul.f32 1.442695, %v6393_v60  ;;  %15639 = vst [vmem:[#allocation7_spill] sm:$0xff] %v13692_v34  ;;  %v13698_v38 = vpop.f32.mrb[91].mxu1 }
 0xa36   :  { %15638 = vst [vmem:[#allocation25_spill] sm:$0xff] %v13681_v47  ;;  %v13684_v32 = vpop.eup %9098  ;;  %v6138_v11 = vadd.f32 -0.28449672, %v6090_v50  ;;  %v6646_v26 = vadd.f32 1.0, %v6598_v15  ;;  %vm5594_vm2 = vcmp.ge.f32.partialorder %v13628_v33, 0.0  ;;  %v6362_v42 = vmul.f32 %v6314_v1, %v5690_v41  ;;  %15640 = vst [vmem:[#allocation13_spill] sm:$0xff] %v13698_v38 }
 0xa37   :  { %v5913_v13 = vmul.f32 1.0614054, %v13684_v32  ;;  %v5811_v63 = vadd.f32 1.0, %v5763_v22  ;;  %v6025_v59 = vadd.f32 1.4214138, %v5977_v24  ;;  %v6528_v56 = vmul.f32 %v13630_v44, %v6288_v40  ;;  %v13712_v40 = vpop.permute.xlu0 %5207 }
 0xa38   :  { %v6186_v21 = vmul.f32 %v13638_v6, %v6138_v11  ;;  %v13696_v47 = vmul.f32 0.70710677, %v13678_v0  ;;  %v13702_v15 = vmul.f32 0.5, %v13614_v18  ;;  %v6503_v33 = vmul.f32 %v9097_v43, %v6263_v52  ;;  %15641 = vst [vmem:[#allocation4_spill] sm:$0xff] %v13712_v40 }
 0xa39   :  { %v5961_v60 = vadd.f32 -1.4531521, %v5913_v13  ;;  %9106 = vrcp.f32 %v5811_v63  ;;  %v6073_v50 = vmul.f32 %v13664_v10, %v6025_v59  ;;  %v13706_v35 = vsel %vm5594_vm2, 1.0, %v15440_v27 }
 0xa3a   :  { %v13709_v41 = vand.u32 2147483647, %v13696_v47  ;;  %v9101_v1 = vpop.eup %9100  ;;  %v6234_v22 = vadd.f32 0.2548296, %v6186_v21  ;;  %9108 = vpow2.f32 %v6485_v23  ;;  %v6339_v44 = vsub.f32 0.0, %v5715_v58  ;;  %v15642_v21 = vld [vmem:[#allocation8_spill] sm:$0xff] }
 0xa3b   :  { %v6009_v11 = vmul.f32 %v13684_v32, %v5961_v60  ;;  %v6694_v18 = vmul.f32 %v6646_v26, %v13495_v46  ;;  %v6121_v24 = vadd.f32 -0.28449672, %v6073_v50  ;;  %v6423_v43 = vmul.f32 1.442695, %v6362_v42 }
 0xa3c   :  { %v5740_v52 = vmul.f32 0.3275911, %v13709_v41  ;;  %v13716_v13 = vpop.eup %9102  ;;  %v6576_v63 = vsub.f32 1.0, %v6528_v56  ;;  %vm5619_vm3 = vcmp.ge.f32.partialorder %v13667_v8, 0.0  ;;  %v13721_v38 = vadd.f32 %v15642_v21, %v13712_v40  ;;  %v15643_v21 = vld [vmem:[#allocation17_spill] sm:$0xff] }
 0xa3d   :  { %v6057_v59 = vadd.f32 1.4214138, %v6009_v11  ;;  %v6551_v23 = vsub.f32 1.0, %v6503_v33  ;;  %v6169_v60 = vmul.f32 %v13664_v10, %v6121_v24  ;;  %v5882_v34 = vmul.f32 1.0614054, %v13716_v13 }
 0xa3e   :  { %v5788_v46 = vadd.f32 1.0, %v5740_v52  ;;  %v9105_v26 = vpop.eup %9104  ;;  %v6282_v42 = vmul.f32 %v13638_v6, %v6234_v22  ;;  %v6387_v48 = vmul.f32 %v6339_v44, %v5715_v58  ;;  %v13728_v56 = vmul.f32 0.70710677, %v13721_v38 }
 0xa3f   :  { %v6105_v50 = vmul.f32 %v13684_v32, %v6057_v59  ;;  %v6217_v11 = vadd.f32 0.2548296, %v6169_v60  ;;  %v5930_v28 = vadd.f32 -1.4531521, %v5882_v34  ;;  %v13732_v33 = vadd.f32 %v15643_v21, %v15636_v4 }
 0xa40   :  { %9110 = vrcp.f32 %v5788_v46  ;;  %v13735_v24 = vmul.f32 %v13043_v62, %v6694_v18  ;;  %v6624_v52 = vmul.f32 %v6576_v63, %v13561_v29  ;;  %v13739_v6 = vmul.f32 0.5, %v13648_v57 }
 0xa41   :  { %v6153_v40 = vadd.f32 -0.28449672, %v6105_v50  ;;  %v6599_v58 = vmul.f32 %v6551_v23, %v13594_v36  ;;  %v6265_v22 = vmul.f32 %v13664_v10, %v6217_v11  ;;  %v5978_v34 = vmul.f32 %v13716_v13, %v5930_v28 }
 0xa42   :  { %15644 = vst [vmem:[#allocation23_spill] sm:$0xff] %v13735_v24  ;;  %v13747_v4 = vsel %vm5619_vm3, 1.0, %v15440_v27  ;;  %v6522_v18 = vmul.f32 %v9101_v1, %v6282_v42  ;;  %v6473_v63 = vmul.f32 1.442695, %v6387_v48  ;;  %v5724_v57 = vand.u32 2147483647, %v13728_v56 }
 0xa43   :  { %v13749_v44 = vpop.eup %9106  ;;  %v6201_v29 = vmul.f32 %v13684_v32, %v6153_v40  ;;  %v6026_v59 = vadd.f32 1.4214138, %v5978_v34  ;;  %9112 = vpow2.f32 %v6423_v43  ;;  %v13755_v10 = vmul.f32 0.70710677, %v13732_v33 }
 0xa44   :  { %v5907_v36 = vmul.f32 1.0614054, %v13749_v44  ;;  %v9109_v28 = vpop.eup %9108  ;;  %v6672_v23 = vadd.f32 1.0, %v6624_v52  ;;  %v6505_v8 = vmul.f32 %v9105_v26, %v6265_v22  ;;  %vm5596_vm4 = vcmp.ge.f32.partialorder %v13696_v47, 0.0 }
 0xa45   :  { %v5772_v60 = vmul.f32 0.3275911, %v5724_v57  ;;  %v6249_v46 = vadd.f32 0.2548296, %v6201_v29  ;;  %v6074_v1 = vmul.f32 %v13716_v13, %v6026_v59  ;;  %v6316_v48 = vsub.f32 0.0, %v13709_v41 }
 0xa46   :  { %v5955_v40 = vadd.f32 -1.4531521, %v5907_v36  ;;  %v6647_v42 = vadd.f32 1.0, %v6599_v58  ;;  %v6570_v50 = vsub.f32 1.0, %v6522_v18  ;;  %v13761_v43 = vmul.f32 0.5, %v13678_v0 }
 0xa47   :  { %v5820_v11 = vadd.f32 1.0, %v5772_v60  ;;  %v6122_v21 = vadd.f32 -0.28449672, %v6074_v1  ;;  %9114 = vpow2.f32 %v6473_v63  ;;  %v13765_v26 = vand.u32 2147483647, %v13755_v10 }
 0xa48   :  { %v6003_v34 = vmul.f32 %v13749_v44, %v5955_v40  ;;  %v13768_v52 = vmul.f32 %v6672_v23, %v13529_v7  ;;  %v6553_v22 = vsub.f32 1.0, %v6505_v8  ;;  %v13773_v58 = vsel %vm5596_vm4, 1.0, %v15440_v27  ;;  %v15646_v8 = vld [vmem:[#allocation10_spill] sm:$0xff]  ;;  %v13789_v40 = vpop.f32.mrb[92].mxu1 }
 0xa49   :  { %9116 = vrcp.f32 %v5820_v11  ;;  %v6297_v18 = vmul.f32 %v13684_v32, %v6249_v46  ;;  %v6364_v63 = vmul.f32 %v6316_v48, %v13709_v41  ;;  %v5741_v59 = vmul.f32 0.3275911, %v13765_v26 }
 0xa4a   :  { %15645 = vst [vmem:[#allocation8_spill] sm:$0xff] %v13768_v52  ;;  %v13775_v0 = vpop.eup %9110  ;;  %v6051_v29 = vadd.f32 1.4214138, %v6003_v34  ;;  %v6618_v36 = vmul.f32 %v6570_v50, %v13633_v16  ;;  %v6348_v23 = vsub.f32 0.0, %v5724_v57  ;;  %v5474_v47 = vadd.f32 %v15646_v8, %v13686_v19  ;;  %v13796_v50 = vpop.f32.mrb[93].mxu1 }
 0xa4b   :  { %v5884_v7 = vmul.f32 1.0614054, %v13775_v0  ;;  %v13785_v60 = vmul.f32 %v6647_v42, %v13588_v20  ;;  %v6170_v1 = vmul.f32 %v13716_v13, %v6122_v21  ;;  %v5789_v46 = vadd.f32 1.0, %v5741_v59 }
 0xa4c   :  { %v6099_v32 = vmul.f32 %v13749_v44, %v6051_v29  ;;  %v6601_v41 = vmul.f32 %v6553_v22, %v13657_v12  ;;  %v13793_v16 = vmul.f32 0.5, %v13721_v38  ;;  %vm5628_vm0 = vcmp.ge.f32.partialorder %v13728_v56, 0.0  ;;  %v15648_v56 = vld [vmem:[#allocation16_spill] sm:$0xff] }
 0xa4d   :  { %15647 = vst [vmem:[#allocation17_spill] sm:$0xff] %v13785_v60  ;;  %v5932_v48 = vadd.f32 -1.4531521, %v5884_v7  ;;  %v9113_v11 = vpop.eup %9112  ;;  %v6537_v20 = vmul.f32 %v9109_v28, %v6297_v18  ;;  %v6427_v34 = vmul.f32 1.442695, %v6364_v63  ;;  %9118 = vrcp.f32 %v5789_v46 }
 0xa4e   :  { %v6147_v42 = vadd.f32 -0.28449672, %v6099_v32  ;;  %v6666_v21 = vadd.f32 1.0, %v6618_v36  ;;  %v6396_v59 = vmul.f32 %v6348_v23, %v5724_v57  ;;  %v13799_v8 = vmul.f32 0.70710677, %v5474_v47 }
 0xa4f   :  { %v5980_v29 = vmul.f32 %v13775_v0, %v5932_v48  ;;  %v6218_v12 = vadd.f32 0.2548296, %v6170_v1  ;;  %v13802_v22 = vsel %vm5628_vm0, 1.0, %v15440_v27  ;;  %v13805_v38 = vmul.f32 0.5, %v13732_v33  ;;  %v13824_v48 = vpop.f32.mrb[94].mxu1 }
 0xa50   :  { %v13809_v7 = vadd.f32 %v13258_v51, %v15648_v56  ;;  %v6649_v28 = vadd.f32 1.0, %v6601_v41  ;;  %v6195_v18 = vmul.f32 %v13749_v44, %v6147_v42  ;;  %vm5597_vm5 = vcmp.ge.f32.partialorder %v13755_v10, 0.0  ;;  %15650 = vst [vmem:[#allocation16_spill] sm:$0xff] %v13824_v48 }
 0xa51   :  { %v6028_v63 = vadd.f32 1.4214138, %v5980_v29  ;;  %v9115_v57 = vpop.eup %9114  ;;  %v6585_v36 = vsub.f32 1.0, %v6537_v20  ;;  %9120 = vpow2.f32 %v6427_v34  ;;  %v6317_v23 = vsub.f32 0.0, %v13765_v26  ;;  %v13831_v29 = vpop.f32.mrb[95].mxu1 }
 0xa52   :  { %v5718_v1 = vand.u32 2147483647, %v13799_v8  ;;  %v13818_v33 = vmul.f32 %v6666_v21, %v13610_v5  ;;  %v6491_v46 = vmul.f32 1.442695, %v6396_v59  ;;  %v13822_v41 = vmul.f32 0.70710677, %v13809_v7 }
 0xa53   :  { %v13815_v32 = vpop.eup %9116  ;;  %v6076_v51 = vmul.f32 %v13775_v0, %v6028_v63  ;;  %v6266_v10 = vmul.f32 %v13716_v13, %v6218_v12  ;;  %v13829_v42 = vsel %vm5597_vm5, 1.0, %v15440_v27  ;;  %15651 = vst [vmem:[#allocation35_spill] sm:$0xff] %v13831_v29  ;;  %v6697_v5 = vmul.f32 %v6649_v28, %v13636_v39 }
 0xa54   :  { %15649 = vst [vmem:[#allocation10_spill] sm:$0xff] %v13818_v33  ;;  %v5916_v20 = vmul.f32 1.0614054, %v13815_v32  ;;  %v5766_v34 = vmul.f32 0.3275911, %v5718_v1  ;;  %v6633_v52 = vmul.f32 %v6585_v36, %v13672_v61  ;;  %v6365_v24 = vmul.f32 %v6317_v23, %v13765_v26 }
 0xa55   :  { %v6243_v21 = vadd.f32 0.2548296, %v6195_v18  ;;  %v6124_v63 = vadd.f32 -0.28449672, %v6076_v51  ;;  %v5695_v59 = vand.u32 2147483647, %v13822_v41  ;;  %9122 = vpow2.f32 %v6491_v46 }
 0xa56   :  { %v5964_v33 = vadd.f32 -1.4531521, %v5916_v20  ;;  %v5814_v13 = vadd.f32 1.0, %v5766_v34  ;;  %v5342_v48 = vadd.f32 %v13262_v45, %v15648_v56  ;;  %v6506_v39 = vmul.f32 %v9113_v11, %v6266_v10 }
 0xa57   :  { %v6172_v12 = vmul.f32 %v13775_v0, %v6124_v63  ;;  %v5743_v60 = vmul.f32 0.3275911, %v5695_v59  ;;  %v13840_v29 = vpop.eup %9118  ;;  %v13843_v18 = vmul.f32 0.5, %v5474_v47  ;;  %v13846_v61 = vmul.f32 %v13043_v62, %v6697_v5  ;;  %v15652_v5 = vld [vmem:[#allocation18_spill] sm:$0xff] }
 0xa58   :  { %v6012_v28 = vmul.f32 %v13815_v32, %v5964_v33  ;;  %9124 = vrcp.f32 %v5814_v13  ;;  %v6291_v26 = vmul.f32 %v13749_v44, %v6243_v21  ;;  %v5885_v23 = vmul.f32 1.0614054, %v13840_v29 }
 0xa59   :  { %v6220_v36 = vadd.f32 0.2548296, %v6172_v12  ;;  %v6681_v51 = vadd.f32 1.0, %v6633_v52  ;;  %v6429_v20 = vmul.f32 1.442695, %v6365_v24  ;;  %v5791_v45 = vadd.f32 1.0, %v5743_v60 }
 0xa5a   :  { %v6060_v46 = vadd.f32 1.4214138, %v6012_v28  ;;  %v5933_v56 = vadd.f32 -1.4531521, %v5885_v23  ;;  %vm5622_vm6 = vcmp.ge.f32.partialorder %v13799_v8, 0.0  ;;  %v6342_v11 = vsub.f32 0.0, %v5718_v1 }
 0xa5b   :  { %v13851_v33 = vmul.f32 0.70710677, %v5342_v48  ;;  %v9121_v47 = vpop.eup %9120  ;;  %v6554_v10 = vsub.f32 1.0, %v6506_v39  ;;  %9126 = vrcp.f32 %v5791_v45  ;;  %v13856_v44 = vadd.f32 %v13279_v30, %v15652_v5 }
 0xa5c   :  { %v6108_v34 = vmul.f32 %v13815_v32, %v6060_v46  ;;  %v6531_v21 = vmul.f32 %v9115_v57, %v6291_v26  ;;  %v6268_v52 = vmul.f32 %v13775_v0, %v6220_v36  ;;  %v5981_v24 = vmul.f32 %v13840_v29, %v5933_v56 }
 0xa5d   :  { %v5696_v60 = vand.u32 2147483647, %v13851_v33  ;;  %v13862_v8 = vmul.f32 %v6681_v51, %v13660_v9  ;;  %9128 = vpow2.f32 %v6429_v20  ;;  %v13865_v13 = vsel %vm5622_vm6, 1.0, %v15440_v27 }
 0xa5e   :  { %v6156_v63 = vadd.f32 -0.28449672, %v6108_v34  ;;  %v6029_v12 = vadd.f32 1.4214138, %v5981_v24  ;;  %v6390_v39 = vmul.f32 %v6342_v11, %v5718_v1  ;;  %v13868_v30 = vmul.f32 0.5, %v13809_v7 }
 0xa5f   :  { %v5744_v57 = vmul.f32 0.3275911, %v5696_v60  ;;  %v6602_v0 = vmul.f32 %v6554_v10, %v13706_v35  ;;  %v6319_v26 = vsub.f32 0.0, %v5695_v59  ;;  %v13873_v36 = vmul.f32 0.70710677, %v13856_v44  ;;  %v9123_v9 = vpop.eup %9122 }
 0xa60   :  { %v6204_v28 = vmul.f32 %v13815_v32, %v6156_v63  ;;  %v6579_v23 = vsub.f32 1.0, %v6531_v21  ;;  %v6508_v51 = vmul.f32 %v9121_v47, %v6268_v52  ;;  %v6077_v46 = vmul.f32 %v13840_v29, %v6029_v12 }
 0xa61   :  { %v5792_v20 = vadd.f32 1.0, %v5744_v57  ;;  %vm5599_vm7 = vcmp.ge.f32.partialorder %v13822_v41, 0.0  ;;  %v13879_v7 = vmul.f32 0.5, %v5342_v48  ;;  %v5698_v35 = vand.u32 2147483647, %v13873_v36 }
 0xa62   :  { %v13876_v45 = vpop.eup %9124  ;;  %v6252_v1 = vadd.f32 0.2548296, %v6204_v28  ;;  %v6125_v56 = vadd.f32 -0.28449672, %v6077_v46  ;;  %v6479_v10 = vmul.f32 1.442695, %v6390_v39  ;;  %v6367_v47 = vmul.f32 %v6319_v26, %v5695_v59 }
 0xa63   :  { %v5910_v11 = vmul.f32 1.0614054, %v13876_v45  ;;  %9130 = vrcp.f32 %v5792_v20  ;;  %v13883_v34 = vadd.f32 1.0, %v6602_v0  ;;  %v5746_v21 = vmul.f32 0.3275911, %v5698_v35 }
 0xa64   :  { %v5346_v52 = vadd.f32 %v13300_v2, %v15652_v5  ;;  %v6627_v24 = vmul.f32 %v6579_v23, %v13747_v4  ;;  %v6556_v63 = vsub.f32 1.0, %v6508_v51  ;;  %v6173_v48 = vmul.f32 %v13840_v29, %v6125_v56 }
 0xa65   :  { %v5958_v12 = vadd.f32 -1.4531521, %v5910_v11  ;;  %v13889_v57 = vpop.eup %9126  ;;  %v6300_v28 = vmul.f32 %v13815_v32, %v6252_v1  ;;  %v13895_v39 = vsel %vm5599_vm7, 1.0, %v15440_v27  ;;  %v6320_v59 = vsub.f32 0.0, %v5696_v60 }
 0xa66   :  { %v5794_v0 = vadd.f32 1.0, %v5746_v21  ;;  %9132 = vpow2.f32 %v6479_v10  ;;  %v5887_v2 = vmul.f32 1.0614054, %v13889_v57  ;;  %vm5600_vm9 = vcmp.ge.f32.partialorder %v13851_v33, 0.0 }
 0xa67   :  { %v6006_v26 = vmul.f32 %v13876_v45, %v5958_v12  ;;  %v9129_v4 = vpop.eup %9128  ;;  %v6221_v5 = vadd.f32 0.2548296, %v6173_v48  ;;  %v6433_v23 = vmul.f32 1.442695, %v6367_v47  ;;  %v5555_v51 = vmul.f32 0.70710677, %v5346_v52 }
 0xa68   :  { %9134 = vrcp.f32 %v5794_v0  ;;  %v13900_v32 = vadd.f32 1.0, %v6627_v24  ;;  %v6604_v41 = vmul.f32 %v6556_v63, %v13773_v58  ;;  %v5935_v20 = vadd.f32 -1.4531521, %v5887_v2 }
 0xa69   :  { %v6054_v46 = vadd.f32 1.4214138, %v6006_v26  ;;  %v6540_v1 = vmul.f32 %v9123_v9, %v6300_v28  ;;  %v13904_v56 = vsel %vm5600_vm9, 1.0, %v15440_v27  ;;  %v6368_v11 = vmul.f32 %v6320_v59, %v5696_v60 }
 0xa6a   :  { %v5699_v10 = vand.u32 2147483647, %v5555_v51  ;;  %v5983_v33 = vmul.f32 %v13889_v57, %v5935_v20  ;;  %v6322_v48 = vsub.f32 0.0, %v5698_v35  ;;  %v5350_v47 = vadd.f32 %v13355_v49, %v13295_v54 }
 0xa6b   :  { %v6102_v21 = vmul.f32 %v13876_v45, %v6054_v46  ;;  %v6269_v24 = vmul.f32 %v13840_v29, %v6221_v5  ;;  %9136 = vpow2.f32 %v6433_v23  ;;  %v13912_v58 = vmul.f32 0.5, %v13856_v44 }
 0xa6c   :  { %v5747_v9 = vmul.f32 0.3275911, %v5699_v10  ;;  %v6652_v12 = vadd.f32 1.0, %v6604_v41  ;;  %v6031_v28 = vadd.f32 1.4214138, %v5983_v33  ;;  %vm5602_vm10 = vcmp.ge.f32.partialorder %v13873_v36, 0.0 }
 0xa6d   :  { %v13914_v63 = vpop.eup %9130  ;;  %v6150_v60 = vadd.f32 -0.28449672, %v6102_v21  ;;  %v6588_v59 = vsub.f32 1.0, %v6540_v1  ;;  %v6435_v26 = vmul.f32 1.442695, %v6368_v11  ;;  %v6370_v5 = vmul.f32 %v6322_v48, %v5698_v35 }
 0xa6e   :  { %v5888_v0 = vmul.f32 1.0614054, %v13914_v63  ;;  %v5795_v2 = vadd.f32 1.0, %v5747_v9  ;;  %v6079_v29 = vmul.f32 %v13889_v57, %v6031_v28  ;;  %v13920_v44 = vmul.f32 0.70710677, %v5350_v47 }
 0xa6f   :  { %v6198_v49 = vmul.f32 %v13876_v45, %v6150_v60  ;;  %v6509_v23 = vmul.f32 %v9129_v4, %v6269_v24  ;;  %v13923_v41 = vsel %vm5602_vm10, 1.0, %v15440_v27  ;;  %v13925_v1 = vmul.f32 0.5, %v5346_v52 }
 0xa70   :  { %v5936_v46 = vadd.f32 -1.4531521, %v5888_v0  ;;  %9138 = vrcp.f32 %v5795_v2  ;;  %v9133_v20 = vpop.eup %9132  ;;  %v6127_v36 = vadd.f32 -0.28449672, %v6079_v29  ;;  %vm5603_vm11 = vcmp.ge.f32.partialorder %v5555_v51, 0.0 }
 0xa71   :  { %v13929_v11 = vadd.f32 %v13376_v17, %v13295_v54  ;;  %v6246_v35 = vadd.f32 0.2548296, %v6198_v49  ;;  %v6323_v4 = vsub.f32 0.0, %v5699_v10  ;;  %v5701_v48 = vand.u32 2147483647, %v13920_v44 }
 0xa72   :  { %v13931_v21 = vpop.eup %9134  ;;  %v5984_v33 = vmul.f32 %v13914_v63, %v5936_v46  ;;  %v6636_v24 = vmul.f32 %v6588_v59, %v13802_v22  ;;  %v6175_v9 = vmul.f32 %v13889_v57, %v6127_v36  ;;  %v6439_v60 = vmul.f32 1.442695, %v6370_v5  ;;  %v8580_v5 = vld [vmem:[%s15349_s16] sm:$0xff]  }
 0xa73   :  { %v5890_v52 = vmul.f32 1.0614054, %v13931_v21  ;;  %v6557_v51 = vsub.f32 1.0, %v6509_v23  ;;  %v13939_v54 = vsel %vm5603_vm11, 1.0, %v15440_v27  ;;  %v5749_v17 = vmul.f32 0.3275911, %v5701_v48  ;;  %8450 = vmatprep.mubr.bf16.mxu1 %v8580_v5 }
 0xa74   :  { %v6032_v28 = vadd.f32 1.4214138, %v5984_v33  ;;  %v6223_v0 = vadd.f32 0.2548296, %v6175_v9  ;;  %9140 = vpow2.f32 %v6435_v26  ;;  %v13942_v49 = vmul.f32 0.70710677, %v13929_v11 }
 0xa75   :  { %v5938_v2 = vadd.f32 -1.4531521, %v5890_v52  ;;  %v9137_v29 = vpop.eup %9136  ;;  %v6294_v22 = vmul.f32 %v13876_v45, %v6246_v35  ;;  %v6371_v46 = vmul.f32 %v6323_v4, %v5699_v10  ;;  %v5797_v36 = vadd.f32 1.0, %v5749_v17 }
 0xa76   :  { %v6080_v59 = vmul.f32 %v13914_v63, %v6032_v28  ;;  %v6684_v23 = vadd.f32 1.0, %v6636_v24  ;;  %v13950_v9 = vmul.f32 0.5, %v5350_v47  ;;  %v13954_v26 = vadd.f32 %v13412_v31, %v13446_v3 }
 0xa77   :  { %v5986_v33 = vmul.f32 %v13931_v21, %v5938_v2  ;;  %v6605_v52 = vmul.f32 %v6557_v51, %v13829_v42  ;;  %v6271_v45 = vmul.f32 %v13889_v57, %v6223_v0  ;;  %9142 = vrcp.f32 %v5797_v36 }
 0xa78   :  { %v6128_v35 = vadd.f32 -0.28449672, %v6080_v59  ;;  %v13960_v10 = vmul.f32 %v13883_v34, %v13702_v15  ;;  %v6700_v4 = vmul.f32 %v6652_v12, %v13761_v43  ;;  %v13964_v47 = vand.u32 2147483647, %v13942_v49 }
 0xa79   :  { %v6034_v24 = vadd.f32 1.4214138, %v5986_v33  ;;  %v6534_v31 = vmul.f32 %v9133_v20, %v6294_v22  ;;  %v6441_v51 = vmul.f32 1.442695, %v6371_v46  ;;  %v6325_v57 = vsub.f32 0.0, %v5701_v48 }
 0xa7a   :  { %v13966_v28 = vpop.eup %9138  ;;  %v6176_v42 = vmul.f32 %v13914_v63, %v6128_v35  ;;  %v13971_v17 = vmul.f32 %v13900_v32, %v13739_v6  ;;  %v13976_v43 = vmul.f32 0.70710677, %v13954_v26  ;;  %v6653_v12 = vadd.f32 1.0, %v6605_v52 }
 0xa7b   :  { %v6082_v15 = vmul.f32 %v13931_v21, %v6034_v24  ;;  %v5891_v34 = vmul.f32 1.0614054, %v13966_v28  ;;  %v6511_v0 = vmul.f32 %v9137_v29, %v6271_v45  ;;  %v5750_v20 = vmul.f32 0.3275911, %v13964_v47 }
 0xa7c   :  { %v6224_v2 = vadd.f32 0.2548296, %v6176_v42  ;;  %v13980_v22 = vmul.f32 %v13043_v62, %v6700_v4  ;;  %9144 = vpow2.f32 %v6439_v60  ;;  %v6582_v6 = vsub.f32 1.0, %v6534_v31 }
 0xa7d   :  { %v6130_v59 = vadd.f32 -0.28449672, %v6082_v15  ;;  %v5939_v46 = vadd.f32 -1.4531521, %v5891_v34  ;;  %vm5605_vm13 = vcmp.ge.f32.partialorder %v13920_v44, 0.0  ;;  %v6373_v32 = vmul.f32 %v6325_v57, %v5701_v48 }
 0xa7e   :  { %v5798_v36 = vadd.f32 1.0, %v5750_v20  ;;  %v9141_v5 = vpop.eup %9140  ;;  %v6272_v33 = vmul.f32 %v13914_v63, %v6224_v2  ;;  %v5704_v45 = vand.u32 2147483647, %v13976_v43  ;;  %v13988_v35 = vmul.f32 %v6684_v23, %v13793_v16 }
 0xa7f   :  { %v6178_v52 = vmul.f32 %v13931_v21, %v6130_v59  ;;  %v5987_v29 = vmul.f32 %v13966_v28, %v5939_v46  ;;  %v6559_v4 = vsub.f32 1.0, %v6511_v0  ;;  %v13992_v60 = vadd.f32 %v13438_v37, %v13446_v3 }
 0xa80   :  { %9146 = vrcp.f32 %v5798_v36  ;;  %v5752_v31 = vmul.f32 0.3275911, %v5704_v45  ;;  %v13997_v42 = vmul.f32 %v6653_v12, %v13805_v38  ;;  %v6630_v57 = vmul.f32 %v6582_v6, %v13865_v13 }
 0xa81   :  { %v6226_v48 = vadd.f32 0.2548296, %v6178_v52  ;;  %v6035_v24 = vadd.f32 1.4214138, %v5987_v29  ;;  %9148 = vpow2.f32 %v6441_v51  ;;  %v13994_v63 = vpop.eup %9142  ;;  %v14003_v16 = vsel %vm5605_vm13, 1.0, %v15440_v27 }
 0xa82   :  { %vm5606_vm15 = vcmp.ge.f32.partialorder %v13942_v49, 0.0  ;;  %v6512_v37 = vmul.f32 %v9141_v5, %v6272_v33  ;;  %v5893_v23 = vmul.f32 1.0614054, %v13994_v63  ;;  %v6445_v51 = vmul.f32 1.442695, %v6373_v32 }
 0xa83   :  { %v6083_v3 = vmul.f32 %v13966_v28, %v6035_v24  ;;  %v6607_v15 = vmul.f32 %v6559_v4, %v13895_v39  ;;  %v6274_v38 = vmul.f32 %v13931_v21, %v6226_v48  ;;  %v5800_v34 = vadd.f32 1.0, %v5752_v31 }
 0xa84   :  { %v14011_v13 = vmul.f32 0.70710677, %v13992_v60  ;;  %v5941_v44 = vadd.f32 -1.4531521, %v5893_v23  ;;  %v6326_v0 = vsub.f32 0.0, %v13964_v47  ;;  %v14016_v49 = vadd.f32 %v13487_v14, %v13333_v25 }
 0xa85   :  { %v6131_v12 = vadd.f32 -0.28449672, %v6083_v3  ;;  %v6678_v2 = vadd.f32 1.0, %v6630_v57  ;;  %v14019_v20 = vmul.f32 0.5, %v13929_v11  ;;  %v14022_v39 = vsel %vm5606_vm15, 1.0, %v15440_v27 }
 0xa86   :  { %9150 = vrcp.f32 %v5800_v34  ;;  %v9145_v21 = vpop.eup %9144  ;;  %v6560_v59 = vsub.f32 1.0, %v6512_v37  ;;  %v5989_v6 = vmul.f32 %v13994_v63, %v5941_v44  ;;  %v6655_v32 = vadd.f32 1.0, %v6607_v15 }
 0xa87   :  { %v6179_v46 = vmul.f32 %v13966_v28, %v6131_v12  ;;  %9152 = vpow2.f32 %v6445_v51  ;;  %v6514_v36 = vmul.f32 %v9145_v21, %v6274_v38  ;;  %vm5608_vm1 = vcmp.ge.f32.partialorder %v13976_v43, 0.0 }
 0xa88   :  { %v5705_v14 = vand.u32 2147483647, %v14011_v13  ;;  %v6037_v11 = vadd.f32 1.4214138, %v5989_v6  ;;  %v6374_v33 = vmul.f32 %v6326_v0, %v13964_v47  ;;  %v14030_v52 = vmul.f32 0.70710677, %v14016_v49 }
 0xa89   :  { %v6227_v5 = vadd.f32 0.2548296, %v6179_v46  ;;  %v14035_v4 = vmul.f32 %v6678_v2, %v13843_v18  ;;  %v14038_v48 = vmul.f32 0.5, %v13954_v26  ;;  %v6328_v24 = vsub.f32 0.0, %v5704_v45 }
 0xa8a   :  { %v14032_v29 = vpop.eup %9146  ;;  %v5753_v31 = vmul.f32 0.3275911, %v5705_v14  ;;  %v6608_v57 = vmul.f32 %v6560_v59, %v13904_v56  ;;  %v6085_v37 = vmul.f32 %v13994_v63, %v6037_v11  ;;  %v14044_v3 = vsel %vm5608_vm1, 1.0, %v15440_v27 }
 0xa8b   :  { %v9149_v43 = vpop.eup %9148  ;;  %v5894_v47 = vmul.f32 1.0614054, %v14032_v29  ;;  %v6562_v23 = vsub.f32 1.0, %v6514_v36  ;;  %v6275_v51 = vmul.f32 %v13966_v28, %v6227_v5  ;;  %v14048_v15 = vand.u32 2147483647, %v14030_v52 }
 0xa8c   :  { %v5801_v18 = vadd.f32 1.0, %v5753_v31  ;;  %v6703_v26 = vmul.f32 %v6655_v32, %v13868_v30  ;;  %v6133_v38 = vadd.f32 -0.28449672, %v6085_v37  ;;  %v6447_v12 = vmul.f32 1.442695, %v6374_v33  ;;  %v15653_v31 = vld [vmem:[#allocation27_spill] sm:$0xff] }
 0xa8d   :  { %v5942_v34 = vadd.f32 -1.4531521, %v5894_v47  ;;  %v6376_v56 = vmul.f32 %v6328_v24, %v5704_v45  ;;  %v5755_v44 = vmul.f32 0.3275911, %v14048_v15  ;;  %v14054_v0 = vadd.f32 %v13492_v53, %v13333_v25 }
 0xa8e   :  { %9154 = vrcp.f32 %v5801_v18  ;;  %v6656_v2 = vadd.f32 1.0, %v6608_v57  ;;  %v6181_v28 = vmul.f32 %v13994_v63, %v6133_v38  ;;  %v14059_v59 = vmul.f32 0.5, %v13992_v60 }
 0xa8f   :  { %v5990_v21 = vmul.f32 %v14032_v29, %v5942_v34  ;;  %v6610_v46 = vmul.f32 %v6562_v23, %v13923_v41  ;;  %v6515_v45 = vmul.f32 %v9149_v43, %v6275_v51  ;;  %v6329_v6 = vsub.f32 0.0, %v5705_v14 }
 0xa90   :  { %v14061_v30 = vpop.eup %9150  ;;  %v5803_v32 = vadd.f32 1.0, %v5755_v44  ;;  %v6229_v5 = vadd.f32 0.2548296, %v6181_v28  ;;  %9156 = vpow2.f32 %v6447_v12  ;;  %v6451_v53 = vmul.f32 1.442695, %v6376_v56 }
 0xa91   :  { %v9153_v36 = vpop.eup %9152  ;;  %v6038_v11 = vadd.f32 1.4214138, %v5990_v21  ;;  %v5896_v25 = vmul.f32 1.0614054, %v14061_v30  ;;  %vm5609_vm2 = vcmp.ge.f32.partialorder %v14011_v13, 0.0  ;;  %v14070_v33 = vmul.f32 %v13043_v62, %v6703_v26 }
 0xa92   :  { %9158 = vrcp.f32 %v5803_v32  ;;  %v14067_v60 = vmul.f32 0.70710677, %v14054_v0  ;;  %v5364_v43 = vadd.f32 %v15653_v31, %v13469_v55  ;;  %v6658_v57 = vadd.f32 1.0, %v6610_v46  ;;  %v15654_v32 = vld [vmem:[#allocation32_spill] sm:$0xff] }
 0xa93   :  { %v6086_v41 = vmul.f32 %v14032_v29, %v6038_v11  ;;  %v5944_v24 = vadd.f32 -1.4531521, %v5896_v25  ;;  %v6563_v37 = vsub.f32 1.0, %v6515_v45  ;;  %v6377_v47 = vmul.f32 %v6329_v6, %v5705_v14 }
 0xa94   :  { %v5708_v23 = vand.u32 2147483647, %v14067_v60  ;;  %v6277_v13 = vmul.f32 %v13994_v63, %v6229_v5  ;;  %v14079_v38 = vsel %vm5609_vm2, 1.0, %v15440_v27  ;;  %v14082_v26 = vmul.f32 %v6656_v2, %v13879_v7 }
 0xa95   :  { %v6134_v51 = vadd.f32 -0.28449672, %v6086_v41  ;;  %v5992_v18 = vmul.f32 %v14061_v30, %v5944_v24  ;;  %9160 = vpow2.f32 %v6451_v53  ;;  %vm5611_vm3 = vcmp.ge.f32.partialorder %v14030_v52, 0.0 }
 0xa96   :  { %v5756_v34 = vmul.f32 0.3275911, %v5708_v23  ;;  %v6331_v56 = vsub.f32 0.0, %v14048_v15  ;;  %v14087_v44 = vmul.f32 0.70710677, %v5364_v43  ;;  %v6706_v28 = vmul.f32 %v6658_v57, %v13912_v58 }
 0xa97   :  { %v6182_v12 = vmul.f32 %v14032_v29, %v6134_v51  ;;  %v6040_v14 = vadd.f32 1.4214138, %v5992_v18  ;;  %v6611_v21 = vmul.f32 %v6563_v37, %v13939_v54  ;;  %v6453_v46 = vmul.f32 1.442695, %v6377_v47 }
 0xa98   :  { %v14089_v63 = vpop.eup %9154  ;;  %v5804_v7 = vadd.f32 1.0, %v5756_v34  ;;  %v6517_v2 = vmul.f32 %v9153_v36, %v6277_v13  ;;  %v5366_v5 = vadd.f32 %v15654_v32, %v13469_v55  ;;  %v14098_v11 = vmul.f32 0.5, %v14016_v49 }
 0xa99   :  { %v6088_v45 = vmul.f32 %v14061_v30, %v6040_v14  ;;  %v5897_v6 = vmul.f32 1.0614054, %v14089_v63  ;;  %v14103_v25 = vsel %vm5611_vm3, 1.0, %v15440_v27  ;;  %v5710_v58 = vand.u32 2147483647, %v14087_v44 }
 0xa9a   :  { %9162 = vrcp.f32 %v5804_v7  ;;  %v9157_v54 = vpop.eup %9156  ;;  %v6230_v36 = vadd.f32 0.2548296, %v6182_v12  ;;  %v6379_v24 = vmul.f32 %v6331_v56, %v14048_v15  ;;  %v14110_v55 = vmul.f32 %v13043_v62, %v6706_v28 }
 0xa9b   :  { %v6136_v53 = vadd.f32 -0.28449672, %v6088_v45  ;;  %v5945_v41 = vadd.f32 -1.4531521, %v5897_v6  ;;  %v6659_v49 = vadd.f32 1.0, %v6611_v21  ;;  %9164 = vpow2.f32 %v6453_v46 }
 0xa9c   :  { %v14107_v31 = vpop.eup %9158  ;;  %15655 = vst [vmem:[#allocation18_spill] sm:$0xff] %v14110_v55  ;;  %v5758_v57 = vmul.f32 0.3275911, %v5710_v58  ;;  %v6565_v52 = vsub.f32 1.0, %v6517_v2  ;;  %v14114_v13 = vmul.f32 0.70710677, %v5366_v5  ;;  %v6278_v12 = vmul.f32 %v14032_v29, %v6230_v36 }
 0xa9d   :  { %v6184_v37 = vmul.f32 %v14061_v30, %v6136_v53  ;;  %v5993_v47 = vmul.f32 %v14089_v63, %v5945_v41  ;;  %v5899_v51 = vmul.f32 1.0614054, %v14107_v31  ;;  %v14118_v18 = vmul.f32 0.5, %v14054_v0  ;;  %v15656_v36 = vld [vmem:[#allocation5_spill] sm:$0xff]  ;;  %v15657_v53 = vld [vmem:[#allocation14_spill] sm:$0xff] }
 0xa9e   :  { %v6332_v15 = vsub.f32 0.0, %v5708_v23  ;;  %v5806_v34 = vadd.f32 1.0, %v5758_v57  ;;  %v6457_v56 = vmul.f32 1.442695, %v6379_v24  ;;  %v14121_v28 = vmul.f32 0.5, %v5364_v43 }
 0xa9f   :  { %v6041_v14 = vadd.f32 1.4214138, %v5993_v47  ;;  %v9161_v21 = vpop.eup %9160  ;;  %v6232_v46 = vadd.f32 0.2548296, %v6184_v37  ;;  %v5947_v7 = vadd.f32 -1.4531521, %v5899_v51  ;;  %v14125_v2 = vmul.f32 %v6659_v49, %v13925_v1 }
 0xaa0   :  { %vm5612_vm4 = vcmp.ge.f32.partialorder %v14067_v60, 0.0  ;;  %9166 = vrcp.f32 %v5806_v34  ;;  %v6613_v0 = vmul.f32 %v6565_v52, %v14003_v16  ;;  %v14130_v6 = vand.u32 2147483647, %v14114_v13 }
 0xaa1   :  { %v6089_v45 = vmul.f32 %v14089_v63, %v6041_v14  ;;  %v5995_v29 = vmul.f32 %v14107_v31, %v5947_v7  ;;  %v6380_v43 = vmul.f32 %v6332_v15, %v5708_v23  ;;  %v6334_v32 = vsub.f32 0.0, %v5710_v58 }
 0xaa2   :  { %v14135_v41 = vadd.f32 %v15657_v53, %v15656_v36  ;;  %v6518_v24 = vmul.f32 %v9157_v54, %v6278_v12  ;;  %9168 = vpow2.f32 %v6457_v56  ;;  %v5759_v1 = vmul.f32 0.3275911, %v14130_v6 }
 0xaa3   :  { %v6137_v57 = vadd.f32 -0.28449672, %v6089_v45  ;;  %v6280_v16 = vmul.f32 %v14061_v30, %v6232_v46  ;;  %v6043_v52 = vadd.f32 1.4214138, %v5995_v29  ;;  %v14144_v37 = vsel %vm5612_vm4, 1.0, %v15440_v27  ;;  %v15658_v45 = vld [vmem:[#allocation15_spill] sm:$0xff] }
 0xaa4   :  { %v14138_v49 = vpop.eup %9162  ;;  %v14147_v23 = vmul.f32 0.70710677, %v14135_v41  ;;  %v6661_v47 = vadd.f32 1.0, %v6613_v0  ;;  %v14151_v15 = vmul.f32 0.5, %v5366_v5  ;;  %v6459_v30 = vmul.f32 1.442695, %v6380_v43 }
 0xaa5   :  { %v6185_v54 = vmul.f32 %v14089_v63, %v6137_v57  ;;  %v5900_v51 = vmul.f32 1.0614054, %v14138_v49  ;;  %v9165_v34 = vpop.eup %9164  ;;  %v6091_v12 = vmul.f32 %v14107_v31, %v6043_v52  ;;  %v6382_v14 = vmul.f32 %v6334_v32, %v5710_v58 }
 0xaa6   :  { %v5807_v56 = vadd.f32 1.0, %v5759_v1  ;;  %v6566_v46 = vsub.f32 1.0, %v6518_v24  ;;  %v14156_v29 = vadd.f32 %v15658_v45, %v15656_v36  ;;  %v6520_v0 = vmul.f32 %v9161_v21, %v6280_v16 }
 0xaa7   :  { %v6233_v60 = vadd.f32 0.2548296, %v6185_v54  ;;  %v5948_v7 = vadd.f32 -1.4531521, %v5900_v51  ;;  %v6139_v53 = vadd.f32 -0.28449672, %v6091_v12  ;;  %v6709_v5 = vmul.f32 %v6661_v47, %v13950_v9 }
 0xaa8   :  { %9170 = vrcp.f32 %v5807_v56  ;;  %v5713_v57 = vand.u32 2147483647, %v14147_v23  ;;  %vm5614_vm0 = vcmp.ge.f32.partialorder %v14087_v44, 0.0  ;;  %v6463_v24 = vmul.f32 1.442695, %v6382_v14 }
 0xaa9   :  { %v6281_v55 = vmul.f32 %v14089_v63, %v6233_v60  ;;  %v5996_v43 = vmul.f32 %v14138_v49, %v5948_v7  ;;  %v6187_v32 = vmul.f32 %v14107_v31, %v6139_v53  ;;  %vm5615_vm5 = vcmp.ge.f32.partialorder %v14114_v13, 0.0 }
 0xaaa   :  { %v14163_v58 = vpop.eup %9166  ;;  %v5761_v21 = vmul.f32 0.3275911, %v5713_v57  ;;  %v6614_v36 = vmul.f32 %v6566_v46, %v14022_v39  ;;  %v6335_v9 = vsub.f32 0.0, %v14130_v6  ;;  %v6568_v63 = vsub.f32 1.0, %v6520_v0 }
 0xaab   :  { %v6044_v1 = vadd.f32 1.4214138, %v5996_v43  ;;  %v5902_v16 = vmul.f32 1.0614054, %v14163_v58  ;;  %v6235_v52 = vadd.f32 0.2548296, %v6187_v32  ;;  %v6521_v12 = vmul.f32 %v9165_v34, %v6281_v55 }
 0xaac   :  { %v5809_v47 = vadd.f32 1.0, %v5761_v21  ;;  %v14171_v54 = vmul.f32 0.70710677, %v14156_v29  ;;  %v9169_v51 = vpop.eup %9168  ;;  %9172 = vpow2.f32 %v6459_v30  ;;  %v14175_v60 = vmul.f32 %v13043_v62, %v6709_v5  ;;  %v15660_v43 = vld [vmem:[#allocation21_spill] sm:$0xff]  ;;  %v15661_v32 = vld [vmem:[#allocation26_spill] sm:$0xff] }
 0xaad   :  { %v6092_v14 = vmul.f32 %v14138_v49, %v6044_v1  ;;  %v5950_v56 = vadd.f32 -1.4531521, %v5902_v16  ;;  %v14180_v39 = vsel %vm5614_vm0, 1.0, %v15440_v27  ;;  %v14185_v46 = vsel %vm5615_vm5, 1.0, %v15440_v27 }
 0xaae   :  { %15659 = vst [vmem:[#allocation27_spill] sm:$0xff] %v14175_v60  ;;  %9174 = vrcp.f32 %v5809_v47  ;;  %v6283_v55 = vmul.f32 %v14107_v31, %v6235_v52  ;;  %v6662_v7 = vadd.f32 1.0, %v6614_v36  ;;  %v6616_v45 = vmul.f32 %v6568_v63, %v14044_v3 }
 0xaaf   :  { %v6140_v34 = vadd.f32 -0.28449672, %v6092_v14  ;;  %v5998_v30 = vmul.f32 %v14163_v58, %v5950_v56  ;;  %9176 = vpow2.f32 %v6463_v24  ;;  %v6383_v0 = vmul.f32 %v6335_v9, %v14130_v6  ;;  %v15662_v24 = vld [vmem:[#allocation9_spill] sm:$0xff]  ;;  %v15663_v6 = vld [vmem:[#allocation7_spill] sm:$0xff] }
 0xab0   :  { %v14192_v44 = vand.u32 2147483647, %v14171_v54  ;;  %v6569_v53 = vsub.f32 1.0, %v6521_v12  ;;  %v6337_v13 = vsub.f32 0.0, %v5713_v57  ;;  %v6753_v21 = vmul.f32 %v15661_v32, %v15660_v43 }
 0xab1   :  { %v6046_v5 = vadd.f32 1.4214138, %v5998_v30  ;;  %vm5617_vm6 = vcmp.ge.f32.partialorder %v14147_v23, 0.0  ;;  %v6750_v3 = vmul.f32 %v15661_v32, %v15662_v24  ;;  %v14204_v36 = vadd.f32 %v15663_v6, %v13686_v19 }
 0xab2   :  { %v14196_v1 = vpop.eup %9170  ;;  %v5762_v31 = vmul.f32 0.3275911, %v14192_v44  ;;  %v6523_v16 = vmul.f32 %v9169_v51, %v6283_v55  ;;  %v6188_v9 = vmul.f32 %v14138_v49, %v6140_v34  ;;  %v6664_v47 = vadd.f32 1.0, %v6616_v45 }
 0xab3   :  { %v6094_v63 = vmul.f32 %v14163_v58, %v6046_v5  ;;  %v5903_v52 = vmul.f32 1.0614054, %v14196_v1  ;;  %v14210_v12 = vmul.f32 0.5, %v14135_v41  ;;  %v6806_v56 = vpack.c.bf16 %v6753_v21, %v6750_v3 }
 0xab4   :  { %v5810_v14 = vadd.f32 1.0, %v5762_v31  ;;  %v6617_v30 = vmul.f32 %v6569_v53, %v14079_v38  ;;  %v6385_v60 = vmul.f32 %v6337_v13, %v5713_v57  ;;  %v6465_v6 = vmul.f32 1.442695, %v6383_v0  ;;  %v15664_v13 = vld [vmem:[#allocation13_spill] sm:$0xff] }
 0xab5   :  { %v6142_v43 = vadd.f32 -0.28449672, %v6094_v63  ;;  %v5951_v24 = vadd.f32 -1.4531521, %v5903_v52  ;;  %v14216_v51 = vsel %vm5617_vm6, 1.0, %v15440_v27  ;;  %8434 = vmatprep.subr.bf16.mxu1 %v6806_v56  ;;  %v6571_v34 = vsub.f32 1.0, %v6523_v16 }
 0xab6   :  { %9178 = vrcp.f32 %v5810_v14  ;;  %v14219_v55 = vmul.f32 0.70710677, %v14204_v36  ;;  %v9173_v41 = vpop.eup %9172  ;;  %v6236_v45 = vadd.f32 0.2548296, %v6188_v9  ;;  %8435 = vmatpush3.bf16.msra.mxu1 %v6806_v56  ;;  %v6712_v0 = vmul.f32 %v6664_v47, %v14038_v48 }
 0xab7   :  { %v6190_v5 = vmul.f32 %v14163_v58, %v6142_v43  ;;  %v5999_v38 = vmul.f32 %v14196_v1, %v5951_v24  ;;  %v14227_v23 = vmul.f32 0.5, %v14156_v29  ;;  %v14232_v21 = vadd.f32 %v15664_v13, %v13686_v19 }
 0xab8   :  { %v14223_v57 = vpop.eup %9174  ;;  %v5716_v53 = vand.u32 2147483647, %v14219_v55  ;;  %v6665_v3 = vadd.f32 1.0, %v6617_v30  ;;  %v6469_v9 = vmul.f32 1.442695, %v6385_v60  ;;  %vm5618_vm7 = vcmp.ge.f32.partialorder %v14171_v54, 0.0 }
 0xab9   :  { %v9177_v31 = vpop.eup %9176  ;;  %v6047_v16 = vadd.f32 1.4214138, %v5999_v38  ;;  %v14236_v63 = vmul.f32 %v6662_v7, %v14019_v20  ;;  %v6238_v52 = vadd.f32 0.2548296, %v6190_v5  ;;  %v5905_v48 = vmul.f32 1.0614054, %v14223_v57 }
 0xaba   :  { %v5764_v29 = vmul.f32 0.3275911, %v5716_v53  ;;  %v6619_v47 = vmul.f32 %v6571_v34, %v14103_v25  ;;  %v6284_v14 = vmul.f32 %v14138_v49, %v6236_v45  ;;  %v6338_v56 = vsub.f32 0.0, %v14192_v44 }
 0xabb   :  { %v6095_v19 = vmul.f32 %v14196_v1, %v6047_v16  ;;  %9180 = vpow2.f32 %v6465_v6  ;;  %v5953_v30 = vadd.f32 -1.4531521, %v5905_v48  ;;  %v14244_v43 = vmul.f32 0.70710677, %v14232_v21  ;;  %v15665_v16 = vld [vmem:[#allocation11_spill] sm:$0xff]  ;;  %v15667_v48 = vld [vmem:[#allocation30_spill] sm:$0xff] }
 0xabc   :  { %v5812_v60 = vadd.f32 1.0, %v5764_v29  ;;  %v14247_v20 = vmul.f32 %v13043_v62, %v6712_v0  ;;  %9182 = vpow2.f32 %v6469_v9  ;;  %v14252_v25 = vsel %vm5618_vm7, 1.0, %v15440_v27  ;;  %v15668_v29 = vld [vmem:[#allocation2_spill] sm:$0xff] }
 0xabd   :  { %v6143_v7 = vadd.f32 -0.28449672, %v6095_v19  ;;  %v14255_v49 = vmul.f32 %v6665_v3, %v14059_v59  ;;  %v6286_v24 = vmul.f32 %v14163_v58, %v6238_v52  ;;  %v6001_v6 = vmul.f32 %v14223_v57, %v5953_v30  ;;  %v15666_v3 = vld [vmem:[#allocation19_spill] sm:$0xff] }
 0xabe   :  { %9184 = vrcp.f32 %v5812_v60  ;;  %v6667_v34 = vadd.f32 1.0, %v6619_v47  ;;  %v6524_v45 = vmul.f32 %v9173_v41, %v6284_v14  ;;  %v6386_v38 = vmul.f32 %v6338_v56, %v14192_v44 }
 0xabf   :  { %v6191_v5 = vmul.f32 %v14196_v1, %v6143_v7  ;;  %v6049_v13 = vadd.f32 1.4214138, %v6001_v6  ;;  %v14264_v54 = vand.u32 2147483647, %v14244_v43  ;;  %v6756_v59 = vmul.f32 %v15661_v32, %v15665_v16  ;;  %v15669_v7 = vld [vmem:[#allocation33_spill] sm:$0xff] }
 0xac0   :  { %v14261_v0 = vpop.eup %9178  ;;  %v6759_v58 = vmul.f32 %v15661_v32, %v15666_v3  ;;  %v6340_v41 = vsub.f32 0.0, %v5716_v53  ;;  %v6805_v47 = vpack.c.bf16 %v15668_v29, %v15667_v48  ;;  %v6526_v44 = vmul.f32 %v9177_v31, %v6286_v24  ;;  %v15670_v31 = vld [vmem:[#allocation29_spill] sm:$0xff]  ;;  %v15671_v24 = vld [vmem:[#allocation34_spill] sm:$0xff] }
 0xac1   :  { %v6239_v9 = vadd.f32 0.2548296, %v6191_v5  ;;  %v5906_v52 = vmul.f32 1.0614054, %v14261_v0  ;;  %v6097_v14 = vmul.f32 %v14223_v57, %v6049_v13  ;;  %v5765_v19 = vmul.f32 0.3275911, %v14264_v54 }
 0xac2   :  { %v6809_v56 = vpack.c.bf16 %v6759_v58, %v6756_v59  ;;  %v6471_v60 = vmul.f32 1.442695, %v6386_v38  ;;  %vm5620_vm9 = vcmp.ge.f32.partialorder %v14219_v55, 0.0  ;;  %6900 = vmatprep.subr.bf16.mxu0 %v6805_v47  ;;  %v14278_v6 = vadd.f32 %v13789_v40, %v15669_v7 }
 0xac3   :  { %v5954_v30 = vadd.f32 -1.4531521, %v5906_v52  ;;  %v6287_v5 = vmul.f32 %v14196_v1, %v6239_v9  ;;  %v6145_v16 = vadd.f32 -0.28449672, %v6097_v14  ;;  %v5813_v3 = vadd.f32 1.0, %v5765_v19 }
 0xac4   :  { %8436 = vmatprep.subr.bf16.mxu1 %v6809_v56  ;;  %v6804_v13 = vpack.c.bf16 %v15671_v24, %v15670_v31  ;;  %v6715_v48 = vmul.f32 %v6667_v34, %v14098_v11  ;;  %v6572_v59 = vsub.f32 1.0, %v6524_v45  ;;  %v6388_v58 = vmul.f32 %v6340_v41, %v5716_v53 }
 0xac5   :  { %v6002_v38 = vmul.f32 %v14261_v0, %v5954_v30  ;;  %8437 = vmatpush3.bf16.msra.mxu1 %v6809_v56  ;;  %v9181_v52 = vpop.eup %9180  ;;  %v6574_v29 = vsub.f32 1.0, %v6526_v44  ;;  %v6193_v40 = vmul.f32 %v14223_v57, %v6145_v16  ;;  %9186 = vrcp.f32 %v5813_v3 }
 0xac6   :  { %v14287_v1 = vmul.f32 0.70710677, %v14278_v6  ;;  %6901 = vmatpush1.bf16.msra.mxu0 %v6804_v13  ;;  %v9183_v9 = vpop.eup %9182  ;;  %9188 = vpow2.f32 %v6471_v60  ;;  %v14290_v14 = vmul.f32 0.5, %v14204_v36  ;;  %v14295_v11 = vsel %vm5620_vm9, 1.0, %v15440_v27 }
 0xac7   :  { %v6050_v47 = vadd.f32 1.4214138, %v6002_v38  ;;  %v6527_v34 = vmul.f32 %v9181_v52, %v6287_v5  ;;  %v6241_v45 = vadd.f32 0.2548296, %v6193_v40  ;;  %v14302_v44 = vadd.f32 %v13796_v50, %v15669_v7 }
 0xac8   :  { %v14297_v53 = vpop.eup %9184  ;;  %v5719_v41 = vand.u32 2147483647, %v14287_v1  ;;  %v14305_v19 = vmul.f32 %v13043_v62, %v6715_v48  ;;  %v6620_v36 = vmul.f32 %v6572_v59, %v14144_v37  ;;  %v6622_v30 = vmul.f32 %v6574_v29, %v14180_v39 }
 0xac9   :  { %v6098_v56 = vmul.f32 %v14261_v0, %v6050_v47  ;;  %v5908_v55 = vmul.f32 1.0614054, %v14297_v53  ;;  %v6289_v60 = vmul.f32 %v14223_v57, %v6241_v45  ;;  %v6475_v5 = vmul.f32 1.442695, %v6388_v58  ;;  %v15672_v57 = vld [vmem:[#allocation12_spill] sm:$0xff] }
 0xaca   :  { %v5767_v16 = vmul.f32 0.3275911, %v5719_v41  ;;  %v14313_v50 = vmul.f32 0.5, %v14232_v21  ;;  %v6341_v7 = vsub.f32 0.0, %v14264_v54  ;;  %v6575_v24 = vsub.f32 1.0, %v6527_v34  ;;  %v15673_v58 = vld [vmem:[#allocation20_spill] sm:$0xff] }
 0xacb   :  { %v6146_v3 = vadd.f32 -0.28449672, %v6098_v56  ;;  %v5956_v31 = vadd.f32 -1.4531521, %v5908_v55  ;;  %v6529_v13 = vmul.f32 %v9183_v9, %v6289_v60  ;;  %v14317_v48 = vmul.f32 0.70710677, %v14302_v44 }
 0xacc   :  { %v5815_v37 = vadd.f32 1.0, %v5767_v16  ;;  %v6762_v38 = vmul.f32 %v15661_v32, %v15672_v57  ;;  %v6765_v52 = vmul.f32 %v15661_v32, %v15673_v58  ;;  %v6668_v21 = vadd.f32 1.0, %v6620_v36  ;;  %v15674_v16 = vld [vmem:[#allocation4_spill] sm:$0xff] }
 0xacd   :  { %v6194_v59 = vmul.f32 %v14261_v0, %v6146_v3  ;;  %v6004_v39 = vmul.f32 %v14297_v53, %v5956_v31  ;;  %v6670_v29 = vadd.f32 1.0, %v6622_v30  ;;  %v6577_v40 = vsub.f32 1.0, %v6529_v13  ;;  %v15675_v3 = vld [vmem:[#allocation16_spill] sm:$0xff] }
 0xace   :  { %9190 = vrcp.f32 %v5815_v37  ;;  %v6812_v34 = vpack.c.bf16 %v6765_v52, %v6762_v38  ;;  %v6623_v56 = vmul.f32 %v6575_v24, %v14185_v46  ;;  %v6389_v55 = vmul.f32 %v6341_v7, %v14264_v54  ;;  %v15676_v52 = vld [vmem:[#allocation35_spill] sm:$0xff] }
 0xacf   :  { %v6242_v47 = vadd.f32 0.2548296, %v6194_v59  ;;  %v6052_v9 = vadd.f32 1.4214138, %v6004_v39  ;;  %9192 = vpow2.f32 %v6475_v5  ;;  %v14325_v45 = vpop.eup %9186  ;;  %v5720_v60 = vand.u32 2147483647, %v14317_v48 }
 0xad0   :  { %v14332_v31 = vadd.f32 %v15675_v3, %v15674_v16  ;;  %v9189_v36 = vpop.eup %9188  ;;  %v5909_v5 = vmul.f32 1.0614054, %v14325_v45  ;;  %v6343_v37 = vsub.f32 0.0, %v5719_v41  ;;  %8438 = vmatprep.subr.bf16.mxu1 %v6812_v34  ;;  %v6718_v59 = vmul.f32 %v6670_v29, %v14121_v28 }
 0xad1   :  { %v6290_v30 = vmul.f32 %v14261_v0, %v6242_v47  ;;  %v6100_v13 = vmul.f32 %v14297_v53, %v6052_v9  ;;  %v6625_v46 = vmul.f32 %v6577_v40, %v14216_v51  ;;  %vm5621_vm10 = vcmp.ge.f32.partialorder %v14244_v43, 0.0  ;;  %8439 = vmatpush3.bf16.msra.mxu1 %v6812_v34 }
 0xad2   :  { %v5768_v54 = vmul.f32 0.3275911, %v5720_v60  ;;  %v5957_v39 = vadd.f32 -1.4531521, %v5909_v5  ;;  %v14341_v57 = vmul.f32 0.70710677, %v14332_v31  ;;  %v14345_v47 = vadd.f32 %v15676_v52, %v15674_v16 }
 0xad3   :  { %v6530_v7 = vmul.f32 %v9189_v36, %v6290_v30  ;;  %v6148_v24 = vadd.f32 -0.28449672, %v6100_v13  ;;  %v6671_v0 = vadd.f32 1.0, %v6623_v56  ;;  %v6477_v38 = vmul.f32 1.442695, %v6389_v55 }
 0xad4   :  { %v5816_v58 = vadd.f32 1.0, %v5768_v54  ;;  %v14348_v28 = vmul.f32 %v6668_v21, %v14118_v18  ;;  %v6005_v29 = vmul.f32 %v14325_v45, %v5957_v39  ;;  %v6391_v40 = vmul.f32 %v6343_v37, %v5719_v41 }
 0xad5   :  { %v6196_v51 = vmul.f32 %v14297_v53, %v6148_v24  ;;  %v6673_v9 = vadd.f32 1.0, %v6625_v46  ;;  %v6578_v34 = vsub.f32 1.0, %v6530_v7  ;;  %v14355_v56 = vsel %vm5621_vm10, 1.0, %v15440_v27  ;;  %v15677_v7 = vld [vmem:[#allocation3_spill] sm:$0xff] }
 0xad6   :  { %9194 = vrcp.f32 %v5816_v58  ;;  %v14358_v55 = vmul.f32 %v13043_v62, %v6718_v59  ;;  %v6053_v3 = vadd.f32 1.4214138, %v6005_v29  ;;  %v14361_v18 = vand.u32 2147483647, %v14341_v57  ;;  %v15678_v29 = vld [vmem:[#allocation31_spill] sm:$0xff] }
 0xad7   :  { %v6244_v16 = vadd.f32 0.2548296, %v6196_v51  ;;  %v14366_v41 = vmul.f32 %v6671_v0, %v14151_v15  ;;  %9196 = vpow2.f32 %v6477_v38  ;;  %v6344_v36 = vsub.f32 0.0, %v5720_v60 }
 0xad8   :  { %v14363_v21 = vpop.eup %9190  ;;  %v14369_v43 = vmul.f32 0.70710677, %v14345_v47  ;;  %v6101_v5 = vmul.f32 %v14325_v45, %v6053_v3  ;;  %v6481_v59 = vmul.f32 1.442695, %v6391_v40  ;;  %v6626_v46 = vmul.f32 %v6578_v34, %v14252_v25 }
 0xad9   :  { %v9193_v30 = vpop.eup %9192  ;;  %v6292_v13 = vmul.f32 %v14297_v53, %v6244_v16  ;;  %v5911_v37 = vmul.f32 1.0614054, %v14363_v21  ;;  %v5770_v54 = vmul.f32 0.3275911, %v14361_v18  ;;  %v6771_v24 = vmul.f32 %v15661_v32, %v15677_v7 }
 0xada   :  { %v14377_v15 = vand.u32 2147483647, %v14369_v43  ;;  %v6721_v39 = vmul.f32 %v6673_v9, %v14210_v12  ;;  %v6149_v38 = vadd.f32 -0.28449672, %v6101_v5  ;;  %v6392_v58 = vmul.f32 %v6344_v36, %v5720_v60 }
 0xadb   :  { %v6532_v0 = vmul.f32 %v9193_v30, %v6292_v13  ;;  %v5959_v53 = vadd.f32 -1.4531521, %v5911_v37  ;;  %v5818_v52 = vadd.f32 1.0, %v5770_v54  ;;  %v6768_v25 = vmul.f32 %v15661_v32, %v15678_v29  ;;  %v15679_v54 = vld [vmem:[#allocation28_spill] sm:$0xff]  ;;  %v15683_v29 = vld [vmem:[#allocation25_spill] sm:$0xff] }
 0xadc   :  { %v5771_v51 = vmul.f32 0.3275911, %v14377_v15  ;;  %v6197_v34 = vmul.f32 %v14325_v45, %v6149_v38  ;;  %9198 = vpow2.f32 %v6481_v59  ;;  %v6674_v3 = vadd.f32 1.0, %v6626_v46  ;;  %v15681_v46 = vld [vmem:[#allocation6_spill] sm:$0xff]  ;;  %v15682_v38 = vld [vmem:[#allocation23_spill] sm:$0xff] }
 0xadd   :  { %v6580_v40 = vsub.f32 1.0, %v6532_v0  ;;  %v6007_v16 = vmul.f32 %v14363_v21, %v5959_v53  ;;  %9200 = vrcp.f32 %v5818_v52  ;;  %v6815_v12 = vpack.c.bf16 %v6771_v24, %v6768_v25  ;;  %v15680_v0 = vld [vmem:[#allocation17_spill] sm:$0xff] }
 0xade   :  { %v5819_v7 = vadd.f32 1.0, %v5771_v51  ;;  %v14388_v9 = vmul.f32 %v13043_v62, %v6721_v39  ;;  %v6245_v36 = vadd.f32 0.2548296, %v6197_v34  ;;  %v6483_v5 = vmul.f32 1.442695, %v6392_v58 }
 0xadf   :  { %v6628_v60 = vmul.f32 %v6580_v40, %v14295_v11  ;;  %v6055_v30 = vadd.f32 1.4214138, %v6007_v16  ;;  %v6346_v37 = vsub.f32 0.0, %v14361_v18  ;;  %8440 = vmatprep.subr.bf16.mxu1 %v6815_v12  ;;  %v6808_v59 = vpack.c.bf16 %v15680_v0, %v15679_v54  ;;  %v15684_v40 = vld [vmem:[#allocation10_spill] sm:$0xff] }
 0xae0   :  { %v14391_v13 = vpop.eup %9194  ;;  %v6807_v53 = vpack.c.bf16 %v15682_v38, %v15681_v46  ;;  %v6293_v39 = vmul.f32 %v14325_v45, %v6245_v36  ;;  %8441 = vmatpush3.bf16.msra.mxu1 %v6815_v12  ;;  %v14402_v58 = vmul.f32 %v6674_v3, %v14227_v23  ;;  %9202 = vrcp.f32 %v5819_v7  ;;  %v15685_v12 = vld [vmem:[#allocation22_spill] sm:$0xff]  ;;  %v15686_v23 = vld [vmem:[#allocation8_spill] sm:$0xff] }
 0xae1   :  { %v6676_v24 = vadd.f32 1.0, %v6628_v60  ;;  %v6103_v52 = vmul.f32 %v14363_v21, %v6055_v30  ;;  %v5912_v11 = vmul.f32 1.0614054, %v14391_v13  ;;  %v9197_v51 = vpop.eup %9196  ;;  %6902 = vmatprep.subr.bf16.mxu0 %v6808_v59  ;;  %v6774_v25 = vmul.f32 %v15661_v32, %v15683_v29 }
 0xae2   :  { %v6777_v34 = vmul.f32 %v15661_v32, %v15684_v40  ;;  %v6533_v45 = vmul.f32 %v9197_v51, %v6293_v39  ;;  %6903 = vmatpush1.bf16.msra.mxu0 %v6807_v53  ;;  %v6780_v54 = vmul.f32 %v15661_v32, %v15685_v12  ;;  %v6783_v3 = vmul.f32 %v15661_v32, %v15686_v23 }
 0xae3   :  { %v6724_v16 = vmul.f32 %v6676_v24, %v14290_v14  ;;  %v6151_v60 = vadd.f32 -0.28449672, %v6103_v52  ;;  %v5960_v36 = vadd.f32 -1.4531521, %v5912_v11  ;;  %v6811_v7 = vpack.c.bf16 %v13997_v42, %v13960_v10 }
 0xae4   :  { %v6818_v30 = vpack.c.bf16 %v6777_v34, %v6774_v25  ;;  %v6581_v0 = vsub.f32 1.0, %v6533_v45  ;;  %v6394_v14 = vmul.f32 %v6346_v37, %v14361_v18  ;;  %v6347_v53 = vsub.f32 0.0, %v14377_v15 }
 0xae5   :  { %v6199_v59 = vmul.f32 %v14363_v21, %v6151_v60  ;;  %v6008_v46 = vmul.f32 %v14391_v13, %v5960_v36  ;;  %v14419_v38 = vmul.f32 %v13043_v62, %v6724_v16  ;;  %v6821_v24 = vpack.c.bf16 %v6783_v3, %v6780_v54  ;;  %6904 = vmatprep.subr.bf16.mxu0 %v6811_v7  ;;  %v15688_v36 = vld [vmem:[#allocation27_spill] sm:$0xff] }
 0xae6   :  { %8442 = vmatprep.subr.bf16.mxu1 %v6818_v30  ;;  %v6810_v39 = vpack.c.bf16 %v13980_v22, %v13846_v61  ;;  %v9199_v52 = vpop.eup %9198  ;;  %v6629_v10 = vmul.f32 %v6581_v0, %v14355_v56  ;;  %v6786_v11 = vmul.f32 %v15661_v32, %v13971_v17  ;;  %v6789_v18 = vmul.f32 %v15661_v32, %v14035_v4 }
 0xae7   :  { %v6056_v42 = vadd.f32 1.4214138, %v6008_v46  ;;  %8443 = vmatpush3.bf16.msra.mxu1 %v6818_v30  ;;  %v14429_v37 = vpop.eup %9200  ;;  %9204 = vpow2.f32 %v6483_v5  ;;  %v6792_v51 = vmul.f32 %v15661_v32, %v13862_v8  ;;  %v6795_v61 = vmul.f32 %v15661_v32, %v13988_v35  ;;  %v15687_v5 = vld [vmem:[#allocation18_spill] sm:$0xff]  ;;  %v8582_v46 = vld [vmem:[%s15349_s16 + $0x10] sm:$0xff]  }
 0xae8   :  { %8444 = vmatprep.subr.bf16.mxu1 %v6821_v24  ;;  %6905 = vmatpush1.bf16.msra.mxu0 %v6810_v39  ;;  %v6814_v22 = vpack.c.bf16 %v14125_v2, %v14082_v26  ;;  %v6677_v56 = vadd.f32 1.0, %v6629_v10  ;;  %v6247_v29 = vadd.f32 0.2548296, %v6199_v59  ;;  %v5914_v4 = vmul.f32 1.0614054, %v14429_v37 }
 0xae9   :  { %v6104_v17 = vmul.f32 %v14391_v13, %v6056_v42  ;;  %v6824_v25 = vpack.c.bf16 %v6789_v18, %v6786_v11  ;;  %v6827_v40 = vpack.c.bf16 %v6795_v61, %v6792_v51  ;;  %v6813_v34 = vpack.c.bf16 %v15687_v5, %v14070_v33 }
 0xaea   :  { %6906 = vmatprep.subr.bf16.mxu0 %v6814_v22  ;;  %v6817_v8 = vpack.c.bf16 %v14255_v49, %v14236_v63  ;;  %v6725_v35 = vmul.f32 %v6677_v56, %v14313_v50  ;;  %v5962_v45 = vadd.f32 -1.4531521, %v5914_v4  ;;  %v6395_v26 = vmul.f32 %v6347_v53, %v14377_v15  ;;  %v9203_v2 = vpop.eup %9202 }
 0xaeb   :  { %v6152_v16 = vadd.f32 -0.28449672, %v6104_v17  ;;  %8445 = vmatpush3.bf16.msra.mxu1 %v6821_v24  ;;  %v6487_v60 = vmul.f32 1.442695, %v6394_v14  ;;  %v6816_v30 = vpack.c.bf16 %v14247_v20, %v15688_v36  ;;  %v6820_v33 = vpack.c.bf16 %v14366_v41, %v14348_v28 }
 0xaec   :  { %8446 = vmatprep.subr.bf16.mxu1 %v6824_v25  ;;  %6907 = vmatpush1.bf16.msra.mxu0 %v6813_v34  ;;  %v6819_v63 = vpack.c.bf16 %v14358_v55, %v14305_v19  ;;  %v6295_v49 = vmul.f32 %v14363_v21, %v6247_v29  ;;  %v6010_v15 = vmul.f32 %v14429_v37, %v5962_v45  ;;  %v5915_v12 = vmul.f32 1.0614054, %v9203_v2 }
 0xaed   :  { %v6200_v50 = vmul.f32 %v14391_v13, %v6152_v16  ;;  %6908 = vmatprep.subr.bf16.mxu0 %v6817_v8  ;;  %v6823_v54 = vpack.c.bf16 %v6725_v35, %v14402_v58  ;;  %v6822_v23 = vpack.c.bf16 %v14419_v38, %v14388_v9  ;;  %9206 = vpow2.f32 %v6487_v60  ;;  %v14461_v58 = vld [vmem:[%s15349_s16 + $0x8] sm:$0xff]  }
 0xaee   :  { %v6058_v3 = vadd.f32 1.4214138, %v6010_v15  ;;  %v5963_v7 = vadd.f32 -1.4531521, %v5915_v12  ;;  %v6489_v28 = vmul.f32 1.442695, %v6395_v26  ;;  %v6535_v19 = vmul.f32 %v9199_v52, %v6295_v49 }
 0xaef   :  { %v6248_v20 = vadd.f32 0.2548296, %v6200_v50  ;;  %8447 = vmatpush3.bf16.msra.mxu1 %v6824_v25  ;;  %v15689_v14 = vmov 0.0   ;;  %vm5623_vm11 = vcmp.ge.f32.partialorder %v14287_v1, 0.0  ;;  %vm5624_vm13 = vcmp.ge.f32.partialorder %v14317_v48, 0.0  ;;  %v8583_v1 = vld [vmem:[%s15349_s16 + $0x18] sm:$0xff]  }
 0xaf0   :  { %8448 = vmatprep.subr.bf16.mxu1 %v6827_v40  ;;  %6909 = vmatpush1.bf16.msra.mxu0 %v6816_v30  ;;  %v6106_v55 = vmul.f32 %v14429_v37, %v6058_v3  ;;  %v6011_v21 = vmul.f32 %v9203_v2, %v5963_v7  ;;  %9208 = vpow2.f32 %v6489_v28  ;;  %v6583_v38 = vsub.f32 1.0, %v6535_v19  ;;  %v9331_v12 = vld [vmem:[%s15349_s16] sm:$0xff]  }
 0xaf1   :  { %6910 = vmatprep.subr.bf16.mxu0 %v6820_v33  ;;  %v9205_v41 = vpop.eup %9204  ;;  %v6296_v9 = vmul.f32 %v14391_v13, %v6248_v20  ;;  %v5671_v10 = vsel %vm5623_vm11, 1.0, %v15440_v27  ;;  %vm5626_vm15 = vcmp.ge.f32.partialorder %v14341_v57, 0.0  ;;  %vm5627_vm1 = vcmp.ge.f32.partialorder %v14369_v43, 0.0 }
 0xaf2   :  { %v6154_v0 = vadd.f32 -0.28449672, %v6106_v55  ;;  %v6059_v59 = vadd.f32 1.4214138, %v6011_v21  ;;  %v6631_v42 = vmul.f32 %v6583_v38, %v5671_v10  ;;  %v5674_v5 = vsel %vm5626_vm15, 1.0, %v15440_v27 }
 0xaf3   :  { %8449 = vmatpush3.bf16.msra.mxu1 %v6827_v40  ;;  %v6536_v13 = vmul.f32 %v9205_v41, %v6296_v9  ;;  %v5527_v40 = vmul.f32 0.5, %v14278_v6  ;;  %v5530_v35 = vmul.f32 0.5, %v14332_v31  ;;  %v5675_v6 = vsel %vm5627_vm1, 1.0, %v15440_v27 }
 0xaf4   :  { %6911 = vmatpush1.bf16.msra.mxu0 %v6819_v63  ;;  %8458 = vmatprep.subr.bf16.mxu1 %v15689_v14  ;;  %v6202_v53 = vmul.f32 %v14429_v37, %v6154_v0  ;;  %v6107_v24 = vmul.f32 %v9203_v2, %v6059_v59  ;;  %v6679_v29 = vadd.f32 1.0, %v6631_v42  ;;  %v5528_v36 = vmul.f32 0.5, %v14302_v44  ;;  %v14498_v44 = vpop.permute.xlu1 %6838 }
 0xaf5   :  { %6912 = vmatprep.subr.bf16.mxu0 %v6823_v54  ;;  %v6584_v61 = vsub.f32 1.0, %v6536_v13  ;;  %v5531_v33 = vmul.f32 0.5, %v14345_v47  ;;  %v15690_v54 = vmov 0   ;;  %v14500_v47 = vpop.permute.xlu0 %6843 }
 0xaf6   :  { %8451 = vmatmul.mubr.bf16.vlgmr.msra.gmra.mrb[96].mxu1 %v14461_v58  ;;  %v6250_v39 = vadd.f32 0.2548296, %v6202_v53  ;;  %v6155_v52 = vadd.f32 -0.28449672, %v6107_v24  ;;  %v6727_v57 = vmul.f32 %v6679_v29, %v5527_v40 }
 0xaf7   :  { %8454 = vmatprep.mubr.bf16.mxu1 %v8582_v46  ;;  %v9207_v51 = vpop.eup %9206 }
 0xaf8   :  { %6913 = vmatpush1.bf16.msra.mxu0 %v6822_v23  ;;  %v6298_v11 = vmul.f32 %v14429_v37, %v6250_v39  ;;  %v6203_v18 = vmul.f32 %v9203_v2, %v6155_v52  ;;  %v5672_v37 = vsel %vm5624_vm13, 1.0, %v15440_v27  ;;  %v6790_v30 = vmul.f32 %v13043_v62, %v6727_v57  ;;  %v14502_v23 = vpop.permute.xlu1 %6848 }
 0xaf9   :  { %v6632_v48 = vmul.f32 %v6584_v61, %v5672_v37  ;;  %v14505_v28 = vpop.permute.xlu0 %6853 }
 0xafa   :  { %v6538_v22 = vmul.f32 %v9207_v51, %v6298_v11  ;;  %v6251_v56 = vadd.f32 0.2548296, %v6203_v18  ;;  %v9209_v25 = vpop.eup %9208 }
 0xafb   :  { %v6680_v26 = vadd.f32 1.0, %v6632_v48 }
 0xafc   :  { %v6586_v17 = vsub.f32 1.0, %v6538_v22  ;;  %v6299_v4 = vmul.f32 %v9203_v2, %v6251_v56  ;;  %v14512_v53 = vpop.permute.xlu1 %6858 }
 0xafd   :  { %v6728_v49 = vmul.f32 %v6680_v26, %v5528_v36  ;;  %15691 = vst [vmem:[#allocation32_spill] sm:$0xff] %v14512_v53  ;;  %v14514_v13 = vpop.permute.xlu0 %6863 }
 0xafe   :  { %8455 = vmatmul.mubr.bf16.gmra.mrb[100].mxu1 %v8583_v1  ;;  %v6634_v34 = vmul.f32 %v6586_v17, %v5674_v5  ;;  %v6539_v8 = vmul.f32 %v9209_v25, %v6299_v4  ;;  %15692 = vst [vmem:[#allocation5_spill] sm:$0xff] %v14514_v13 }
 0xaff   :  { %8466 = vmatprep.mubr.msk.bf16.mxu1 %vm9337_vm12, %v15689_v14 }
 0xb00   :  { %v6682_v16 = vadd.f32 1.0, %v6634_v34  ;;  %v6587_v45 = vsub.f32 1.0, %v6539_v8  ;;  %v14525_v17 = vpop.permute.xlu1 %6868 }
 0xb01   :  { %15693 = vst [vmem:[#allocation14_spill] sm:$0xff] %v14525_v17  ;;  %v14528_v25 = vpop.permute.xlu0 %6873 }
 0xb02   :  { %v6730_v2 = vmul.f32 %v6682_v16, %v5530_v35  ;;  %v6635_v60 = vmul.f32 %v6587_v45, %v5675_v6  ;;  %15694 = vst [vmem:[#allocation15_spill] sm:$0xff] %v14528_v25 }
 0xb04   :  { %v6793_v43 = vmul.f32 %v13043_v62, %v6730_v2  ;;  %v6683_v63 = vadd.f32 1.0, %v6635_v60 }
 0xb06   :  { %v6731_v50 = vmul.f32 %v6683_v63, %v5531_v33  ;;  %v6825_v15 = vpack.c.bf16 %v6793_v43, %v6790_v30 }
 0xb08   :  { %v6826_v31 = vpack.c.bf16 %v6731_v50, %v6728_v49 }
 0xb0a   :  { %6914 = vmatprep.subr.bf16.mxu0 %v6826_v31 }
 0xb0b   :  { %6915 = vmatpush1.bf16.msra.mxu0 %v6825_v15 }
 0xb0e   :  { %6933 = vmatmul.mubr.bf16.vlgmr.msra.gmra.mrb[64].mxu0 %v9331_v12 }
 0xb0f   :  { %6942 = vmatprep.mubr.bf16.mxu0 %v15690_v54 }
 0xb16   :  { %6943 = vmatmul.mubr.bf16.gmra.mrb[68].mxu0 %v14461_v58 }
 0xb17   :  { %6952 = vmatprep.mubr.bf16.mxu0 %v15690_v54 }
 0xb1e   :  { %6953 = vmatmul.mubr.bf16.gmra.mrb[72].mxu0 %v8582_v46 }
 0xb1f   :  { %6962 = vmatprep.mubr.bf16.mxu0 %v15690_v54 }
 0xb26   :  { %6963 = vmatmul.mubr.bf16.gmra.mrb[76].mxu0 %v8583_v1 }
 0xb27   :  { %7752 = vmatprep.mubr.bf16.mxu0 %v15690_v54 }
 0xbc9   :  { %v8452_v20 = vpop.f32.mrb[96].mxu1 }
 0xbca   :  { %v7016_v3 = vadd.f32 %v8452_v20, %v14502_v23  ;;  %v7007_v7 = vpop.f32.mrb[97].mxu1 }
 0xbcb   :  { %v7008_v19 = vadd.f32 %v7007_v7, %v14498_v44  ;;  %v8453_v55 = vpop.f32.mrb[98].mxu1 }
 0xbcc   :  { %v7070_v21 = vmul.f32 0.70710677, %v7016_v3  ;;  %v7019_v41 = vadd.f32 %v8453_v55, %v14505_v28  ;;  %v7010_v58 = vpop.f32.mrb[99].mxu1  ;;  %v14551_v6 = vmul.f32 0.5, %v7016_v3 }
 0xbcd   :  { %v7064_v9 = vmul.f32 0.70710677, %v7008_v19  ;;  %v7011_v46 = vadd.f32 %v7010_v58, %v14500_v47  ;;  %v14553_v26 = vmul.f32 0.5, %v7008_v19 }
 0xbce   :  { %v7142_v0 = vand.u32 2147483647, %v7070_v21  ;;  %v14509_v59 = vmul.f32 0.70710677, %v7019_v41  ;;  %vm7094_vm2 = vcmp.ge.f32.partialorder %v7070_v21, 0.0  ;;  %v14561_v30 = vmul.f32 0.5, %v7019_v41 }
 0xbcf   :  { %v7136_v38 = vand.u32 2147483647, %v7064_v9  ;;  %v14519_v42 = vmul.f32 0.70710677, %v7011_v46  ;;  %vm7088_vm3 = vcmp.ge.f32.partialorder %v7064_v9, 0.0  ;;  %v14559_v60 = vsel %vm7094_vm2, 1.0, %v15440_v27 }
 0xbd0   :  { %v7166_v24 = vmul.f32 0.3275911, %v7142_v0  ;;  %v14517_v52 = vand.u32 2147483647, %v14509_v59  ;;  %v7454_v34 = vsub.f32 0.0, %v7142_v0  ;;  %v14567_v63 = vsel %vm7088_vm3, 1.0, %v15440_v27 }
 0xbd1   :  { %v7160_v39 = vmul.f32 0.3275911, %v7136_v38  ;;  %v8456_v11 = vpop.f32.mrb[100].mxu1  ;;  %v14523_v61 = vand.u32 2147483647, %v14519_v42  ;;  %v7448_v35 = vsub.f32 0.0, %v7136_v38 }
 0xbd2   :  { %v7190_v10 = vadd.f32 1.0, %v7166_v24  ;;  %v7169_v51 = vmul.f32 0.3275911, %v14517_v52  ;;  %v7023_v1 = vpop.f32.mrb[101].mxu1  ;;  %v14531_v40 = vadd.f32 %v8456_v11, %v14525_v17  ;;  %v7478_v36 = vmul.f32 %v7454_v34, %v7142_v0 }
 0xbd3   :  { %v7184_v18 = vadd.f32 1.0, %v7160_v39  ;;  %v8457_v22 = vpop.f32.mrb[102].mxu1  ;;  %v7163_v4 = vmul.f32 0.3275911, %v14523_v61  ;;  %v14534_v37 = vadd.f32 %v7023_v1, %v14512_v53  ;;  %v14569_v49 = vmul.f32 0.5, %v7011_v46 }
 0xbd4   :  { %9210 = vrcp.f32 %v7190_v10  ;;  %v7193_v56 = vadd.f32 1.0, %v7169_v51  ;;  %v7026_v29 = vpop.f32.mrb[103].mxu1  ;;  %v14537_v48 = vadd.f32 %v8457_v22, %v14528_v25  ;;  %v14540_v8 = vmul.f32 0.70710677, %v14531_v40 }
 0xbd5   :  { %9212 = vrcp.f32 %v7184_v18  ;;  %v7187_v5 = vadd.f32 1.0, %v7163_v4  ;;  %v14543_v57 = vmul.f32 0.70710677, %v14534_v37  ;;  %v7472_v20 = vmul.f32 %v7448_v35, %v7136_v38 }
 0xbd6   :  { %9214 = vrcp.f32 %v7193_v56  ;;  %v14546_v16 = vand.u32 2147483647, %v14540_v8  ;;  %v14549_v45 = vmul.f32 0.70710677, %v14537_v48  ;;  %v7457_v3 = vsub.f32 0.0, %v14517_v52 }
 0xbd7   :  { %9216 = vrcp.f32 %v7187_v5  ;;  %v14556_v2 = vand.u32 2147483647, %v14543_v57  ;;  %v14582_v41 = vadd.f32 %v7026_v29, %v14514_v13  ;;  %v7510_v9 = vmul.f32 1.442695, %v7478_v36 }
 0xbd8   :  { %v7178_v43 = vmul.f32 0.3275911, %v14546_v16  ;;  %v14573_v15 = vand.u32 2147483647, %v14549_v45  ;;  %vm7097_vm4 = vcmp.ge.f32.partialorder %v14509_v59, 0.0  ;;  %v7451_v38 = vsub.f32 0.0, %v14523_v61 }
 0xbd9   :  { %v7172_v50 = vmul.f32 0.3275911, %v14556_v2  ;;  %v7481_v18 = vmul.f32 %v7457_v3, %v14517_v52  ;;  %vm7091_vm0 = vcmp.ge.f32.partialorder %v14519_v42, 0.0  ;;  %v7498_v56 = vmul.f32 1.442695, %v7472_v20 }
 0xbda   :  { %v7202_v7 = vadd.f32 1.0, %v7178_v43  ;;  %v7181_v21 = vmul.f32 0.3275911, %v14573_v15  ;;  %v14600_v29 = vsel %vm7097_vm4, 1.0, %v15440_v27  ;;  %v14603_v4 = vmul.f32 0.70710677, %v14582_v41 }
 0xbdb   :  { %v7196_v55 = vadd.f32 1.0, %v7172_v50  ;;  %v14609_v36 = vsel %vm7091_vm0, 1.0, %v15440_v27  ;;  %v7475_v43 = vmul.f32 %v7451_v38, %v14523_v61  ;;  %v14656_v14 = vmul.f32 0.5, %v14534_v37 }
 0xbdc   :  { %9218 = vrcp.f32 %v7202_v7  ;;  %v7205_v24 = vadd.f32 1.0, %v7181_v21  ;;  %v14622_v21 = vand.u32 2147483647, %v14603_v4  ;;  %vm7106_vm5 = vcmp.ge.f32.partialorder %v14540_v8, 0.0 }
 0xbdd   :  { %9220 = vrcp.f32 %v7196_v55  ;;  %v7466_v55 = vsub.f32 0.0, %v14546_v16  ;;  %vm7100_vm6 = vcmp.ge.f32.partialorder %v14543_v57, 0.0  ;;  %vm7109_vm7 = vcmp.ge.f32.partialorder %v14549_v45, 0.0 }
 0xbde   :  { %v14564_v33 = vpop.eup %9210  ;;  %9222 = vrcp.f32 %v7205_v24  ;;  %v7504_v24 = vmul.f32 1.442695, %v7475_v43  ;;  %vm7103_vm9 = vcmp.ge.f32.partialorder %v14603_v4, 0.0  ;;  %v14736_v45 = vmul.f32 0.5, %v14582_v41 }
 0xbdf   :  { %v14575_v31 = vpop.eup %9212  ;;  %v7238_v12 = vmul.f32 1.0614054, %v14564_v33  ;;  %9224 = vpow2.f32 %v7510_v9  ;;  %v14752_v41 = vsel %vm7103_vm9, 1.0, %v15440_v27 }
 0xbe0   :  { %v7232_v19 = vmul.f32 1.0614054, %v14575_v31  ;;  %v14585_v0 = vpop.eup %9214  ;;  %9226 = vpow2.f32 %v7498_v56 }
 0xbe1   :  { %v7262_v58 = vadd.f32 -1.4531521, %v7238_v12  ;;  %v6934_v39 = vpop.f32.mrb[64].mxu0  ;;  %v7241_v11 = vmul.f32 1.0614054, %v14585_v0  ;;  %v14594_v1 = vpop.eup %9216 }
 0xbe2   :  { %v7256_v46 = vadd.f32 -1.4531521, %v7232_v19  ;;  %v14592_v51 = vpop.f32.mrb[65].mxu0  ;;  %v7235_v42 = vmul.f32 1.0614054, %v14594_v1  ;;  %v14618_v19 = vmul.f32 0.5, %v14531_v40 }
 0xbe3   :  { %v7286_v10 = vmul.f32 %v14564_v33, %v7262_v58  ;;  %v14605_v5 = vpop.f32.mrb[66].mxu0  ;;  %v7265_v34 = vadd.f32 -1.4531521, %v7241_v11  ;;  %v7516_v12 = vmul.f32 1.442695, %v7481_v18 }
 0xbe4   :  { %v7280_v22 = vmul.f32 %v14575_v31, %v7256_v46  ;;  %v7259_v20 = vadd.f32 -1.4531521, %v7235_v42  ;;  %v14614_v3 = vpop.f32.mrb[67].mxu0  ;;  %v14626_v46 = vadd.f32 %v6934_v39, %v14498_v44 }
 0xbe5   :  { %v7310_v52 = vadd.f32 1.4214138, %v7286_v10  ;;  %v7289_v50 = vmul.f32 %v14585_v0, %v7265_v34  ;;  %v7175_v10 = vmul.f32 0.3275911, %v14622_v21 }
 0xbe6   :  { %v7304_v35 = vadd.f32 1.4214138, %v7280_v22  ;;  %v7283_v9 = vmul.f32 %v14594_v1, %v7259_v20  ;;  %v14629_v11 = vpop.eup %9218 }
 0xbe7   :  { %v7334_v59 = vmul.f32 %v14564_v33, %v7310_v52  ;;  %v7313_v61 = vadd.f32 1.4214138, %v7289_v50  ;;  %v7460_v52 = vsub.f32 0.0, %v14556_v2  ;;  %v14636_v42 = vpop.eup %9220  ;;  %v7250_v56 = vmul.f32 1.0614054, %v14629_v11 }
 0xbe8   :  { %v7328_v7 = vmul.f32 %v14575_v31, %v7304_v35  ;;  %v7307_v22 = vadd.f32 1.4214138, %v7283_v9  ;;  %v7490_v35 = vmul.f32 %v7466_v55, %v14546_v16  ;;  %v7199_v43 = vadd.f32 1.0, %v7175_v10 }
 0xbe9   :  { %v7358_v58 = vadd.f32 -0.28449672, %v7334_v59  ;;  %v7337_v18 = vmul.f32 %v14585_v0, %v7313_v61  ;;  %v14634_v34 = vpop.f32.mrb[68].mxu0  ;;  %v7274_v54 = vadd.f32 -1.4531521, %v7250_v56  ;;  %v7469_v55 = vsub.f32 0.0, %v14573_v15 }
 0xbea   :  { %v7352_v38 = vadd.f32 -0.28449672, %v7328_v7  ;;  %v14641_v59 = vpop.f32.mrb[69].mxu0  ;;  %v7331_v20 = vmul.f32 %v14594_v1, %v7307_v22  ;;  %v7244_v7 = vmul.f32 1.0614054, %v14636_v42  ;;  %9228 = vrcp.f32 %v7199_v43 }
 0xbeb   :  { %v7382_v40 = vmul.f32 %v14564_v33, %v7358_v58  ;;  %v7361_v50 = vadd.f32 -0.28449672, %v7337_v18  ;;  %v14646_v58 = vmul.f32 0.70710677, %v14626_v46  ;;  %9230 = vpow2.f32 %v7516_v12  ;;  %v14651_v10 = vpop.f32.mrb[70].mxu0 }
 0xbec   :  { %v7376_v39 = vmul.f32 %v14575_v31, %v7352_v38  ;;  %v14648_v38 = vpop.eup %9222  ;;  %v7355_v25 = vadd.f32 -0.28449672, %v7331_v20  ;;  %v7268_v16 = vadd.f32 -1.4531521, %v7244_v7  ;;  %v7298_v17 = vmul.f32 %v14629_v11, %v7274_v54 }
 0xbed   :  { %v7406_v61 = vadd.f32 0.2548296, %v7382_v40  ;;  %v9225_v18 = vpop.eup %9224  ;;  %v7385_v22 = vmul.f32 %v14585_v0, %v7361_v50  ;;  %v7253_v40 = vmul.f32 1.0614054, %v14648_v38  ;;  %v7534_v56 = vmul.f32 1.442695, %v7490_v35 }
 0xbee   :  { %v7400_v9 = vadd.f32 0.2548296, %v7376_v39  ;;  %v14659_v39 = vpop.f32.mrb[71].mxu0  ;;  %v7379_v12 = vmul.f32 %v14594_v1, %v7355_v25  ;;  %v7292_v43 = vmul.f32 %v14636_v42, %v7268_v16  ;;  %v7484_v20 = vmul.f32 %v7460_v52, %v14556_v2  ;;  %v9227_v25 = vpop.eup %9226 }
 0xbef   :  { %15695 = vst [vmem:[#allocation21_spill] sm:$0xff] %v14659_v39  ;;  %9232 = vpow2.f32 %v7504_v24  ;;  %v7322_v7 = vadd.f32 1.4214138, %v7298_v17  ;;  %v7277_v13 = vadd.f32 -1.4531521, %v7253_v40  ;;  %v7430_v54 = vmul.f32 %v14564_v33, %v7406_v61 }
 0xbf0   :  { %v14665_v50 = vand.u32 2147483647, %v14646_v58  ;;  %v7424_v37 = vmul.f32 %v14575_v31, %v7400_v9  ;;  %v7316_v62 = vadd.f32 1.4214138, %v7292_v43  ;;  %v7493_v53 = vmul.f32 %v7469_v55, %v14573_v15 }
 0xbf1   :  { %v14670_v39 = vpop.f32.mrb[72].mxu0  ;;  %v7409_v35 = vadd.f32 0.2548296, %v7385_v22  ;;  %v7346_v16 = vmul.f32 %v14629_v11, %v7322_v7  ;;  %v7301_v2 = vmul.f32 %v14648_v38, %v7277_v13  ;;  %v7403_v52 = vadd.f32 0.2548296, %v7379_v12 }
 0xbf2   :  { %v7158_v17 = vmul.f32 0.3275911, %v14665_v50  ;;  %v14675_v24 = vpop.f32.mrb[73].mxu0  ;;  %v7340_v33 = vmul.f32 %v14636_v42, %v7316_v62  ;;  %v7522_v31 = vmul.f32 1.442695, %v7484_v20  ;;  %v7550_v40 = vmul.f32 %v9225_v18, %v7430_v54 }
 0xbf3   :  { %15696 = vst [vmem:[#allocation9_spill] sm:$0xff] %v14675_v24  ;;  %v14679_v61 = vpop.f32.mrb[74].mxu0  ;;  %v7370_v15 = vadd.f32 -0.28449672, %v7346_v16  ;;  %v7325_v9 = vadd.f32 1.4214138, %v7301_v2  ;;  %v7544_v12 = vmul.f32 %v9227_v25, %v7424_v37  ;;  %v7433_v24 = vmul.f32 %v14585_v0, %v7409_v35 }
 0xbf4   :  { %v7182_v55 = vadd.f32 1.0, %v7158_v17  ;;  %v14681_v22 = vpop.f32.mrb[75].mxu0  ;;  %v7364_v13 = vadd.f32 -0.28449672, %v7340_v33  ;;  %v7540_v43 = vmul.f32 1.442695, %v7493_v53  ;;  %v14684_v7 = vpop.eup %9228  ;;  %v7427_v16 = vmul.f32 %v14594_v1, %v7403_v52 }
 0xbf5   :  { %v7349_v62 = vmul.f32 %v14648_v38, %v7325_v9  ;;  %v9231_v20 = vpop.eup %9230  ;;  %v7394_v2 = vmul.f32 %v14629_v11, %v7370_v15  ;;  %v7247_v54 = vmul.f32 1.0614054, %v14684_v7  ;;  %v7574_v37 = vsub.f32 1.0, %v7550_v40 }
 0xbf6   :  { %9234 = vrcp.f32 %v7182_v55  ;;  %v7388_v18 = vmul.f32 %v14636_v42, %v7364_v13  ;;  %v7463_v0 = vsub.f32 0.0, %v14622_v21  ;;  %v14696_v25 = vadd.f32 %v14592_v51, %v14498_v44 }
 0xbf7   :  { %9236 = vpow2.f32 %v7534_v56  ;;  %v7373_v53 = vadd.f32 -0.28449672, %v7349_v62  ;;  %v7568_v56 = vsub.f32 1.0, %v7544_v12  ;;  %v7553_v17 = vmul.f32 %v9231_v20, %v7433_v24 }
 0xbf8   :  { %9238 = vpow2.f32 %v7522_v31  ;;  %v7271_v33 = vadd.f32 -1.4531521, %v7247_v54  ;;  %v7418_v9 = vadd.f32 0.2548296, %v7394_v2  ;;  %v7412_v55 = vadd.f32 0.2548296, %v7388_v18 }
 0xbf9   :  { %9240 = vpow2.f32 %v7540_v43  ;;  %v14698_v1 = vpop.f32.mrb[76].mxu0  ;;  %v9233_v35 = vpop.eup %9232  ;;  %v7397_v52 = vmul.f32 %v14648_v38, %v7373_v53  ;;  %v14704_v40 = vmul.f32 0.5, %v14537_v48  ;;  %v14711_v44 = vsel %vm7106_vm5, 1.0, %v15440_v27 }
 0xbfa   :  { %v14701_v31 = vpop.f32.mrb[77].mxu0  ;;  %v7547_v15 = vmul.f32 %v9233_v35, %v7427_v16  ;;  %v14716_v51 = vsel %vm7100_vm6, 1.0, %v15440_v27  ;;  %v7295_v43 = vmul.f32 %v14684_v7, %v7271_v33  ;;  %v7598_v48 = vmul.f32 %v7574_v37, %v14559_v60 }
 0xbfb   :  { %v14706_v13 = vpop.f32.mrb[78].mxu0  ;;  %v7421_v24 = vadd.f32 0.2548296, %v7397_v52  ;;  %v14725_v62 = vsel %vm7109_vm7, 1.0, %v15440_v27  ;;  %v7487_v8 = vmul.f32 %v7463_v0, %v14622_v21  ;;  %v7592_v57 = vmul.f32 %v7568_v56, %v14567_v63 }
 0xbfc   :  { %v14719_v12 = vpop.f32.mrb[79].mxu0  ;;  %v7577_v20 = vsub.f32 1.0, %v7553_v17  ;;  %v7319_v16 = vadd.f32 1.4214138, %v7295_v43  ;;  %v14731_v2 = vmul.f32 0.70710677, %v14696_v25  ;;  %v7442_v53 = vmul.f32 %v14629_v11, %v7418_v9 }
 0xbfd   :  { %v7571_v18 = vsub.f32 1.0, %v7547_v15  ;;  %v7436_v60 = vmul.f32 %v14636_v42, %v7412_v55  ;;  %v7445_v37 = vmul.f32 %v14648_v38, %v7421_v24  ;;  %v14743_v63 = vmul.f32 0.5, %v14626_v46 }
 0xbfe   :  { %v7343_v21 = vmul.f32 %v14684_v7, %v7319_v16  ;;  %v14747_v0 = vadd.f32 %v14605_v5, %v14500_v47  ;;  %v7622_v11 = vadd.f32 1.0, %v7598_v48  ;;  %v7528_v42 = vmul.f32 1.442695, %v7487_v8 }
 0xbff   :  { %v7616_v17 = vadd.f32 1.0, %v7592_v57  ;;  %v7601_v52 = vmul.f32 %v7577_v20, %v14600_v29  ;;  %v14757_v33 = vand.u32 2147483647, %v14731_v2  ;;  %v7595_v15 = vmul.f32 %v7571_v18, %v14609_v36 }
 0xc00   :  { %v14738_v54 = vpop.eup %9234  ;;  %v7367_v46 = vadd.f32 -0.28449672, %v7343_v21  ;;  %v7446_v43 = vsub.f32 0.0, %v14665_v50  ;;  %v14763_v8 = vmul.f32 0.70710677, %v14747_v0  ;;  %9242 = vpow2.f32 %v7528_v42 }
 0xc01   :  { %v9237_v35 = vpop.eup %9236  ;;  %v7230_v56 = vmul.f32 1.0614054, %v14738_v54  ;;  %v7159_v48 = vmul.f32 0.3275911, %v14757_v33  ;;  %vm7086_vm10 = vcmp.ge.f32.partialorder %v14646_v58, 0.0  ;;  %v7646_v36 = vmul.f32 %v7622_v11, %v14551_v6 }
 0xc02   :  { %v9239_v38 = vpop.eup %9238  ;;  %v7562_v9 = vmul.f32 %v9237_v35, %v7442_v53  ;;  %v7391_v29 = vmul.f32 %v14684_v7, %v7367_v46  ;;  %v7640_v20 = vmul.f32 %v7616_v17, %v14553_v26  ;;  %v7625_v16 = vadd.f32 1.0, %v7601_v52 }
 0xc03   :  { %v9241_v5 = vpop.eup %9240  ;;  %v7556_v55 = vmul.f32 %v9239_v38, %v7436_v60  ;;  %v7254_v24 = vadd.f32 -1.4531521, %v7230_v56  ;;  %v7183_v18 = vadd.f32 1.0, %v7159_v48  ;;  %v7619_v53 = vadd.f32 1.0, %v7595_v15 }
 0xc04   :  { %v7565_v4 = vmul.f32 %v9241_v5, %v7445_v37  ;;  %v7586_v60 = vsub.f32 1.0, %v7562_v9  ;;  %v7470_v56 = vmul.f32 %v7446_v43, %v14665_v50  ;;  %v14772_v42 = vand.u32 2147483647, %v14763_v8 }
 0xc05   :  { %v7278_v57 = vmul.f32 %v14738_v54, %v7254_v24  ;;  %v7580_v37 = vsub.f32 1.0, %v7556_v55  ;;  %9244 = vrcp.f32 %v7183_v18  ;;  %v7415_v38 = vadd.f32 0.2548296, %v7391_v29 }
 0xc06   :  { %v7589_v35 = vsub.f32 1.0, %v7565_v4  ;;  %v14777_v6 = vadd.f32 %v14614_v3, %v14500_v47  ;;  %v14781_v26 = vadd.f32 %v14634_v34, %v14502_v23  ;;  %v14784_v11 = vmul.f32 %v15661_v32, %v7646_v36 }
 0xc07   :  { %v7302_v21 = vadd.f32 1.4214138, %v7278_v57  ;;  %v7649_v50 = vmul.f32 %v7625_v16, %v14561_v30  ;;  %v14790_v17 = vsel %vm7086_vm10, 1.0, %v15440_v27  ;;  %v7161_v52 = vmul.f32 0.3275911, %v14772_v42 }
 0xc08   :  { %v14794_v5 = vmul.f32 %v15661_v32, %v7640_v20  ;;  %v7610_v47 = vmul.f32 %v7586_v60, %v14711_v44  ;;  %v7604_v3 = vmul.f32 %v7580_v37, %v14716_v51  ;;  %v14799_v34 = vmul.f32 0.70710677, %v14777_v6 }
 0xc09   :  { %v7326_v46 = vmul.f32 %v14738_v54, %v7302_v21  ;;  %v7643_v15 = vmul.f32 %v7619_v53, %v14569_v49  ;;  %v7613_v30 = vmul.f32 %v7589_v35, %v14725_v62  ;;  %v7185_v58 = vadd.f32 1.0, %v7161_v52 }
 0xc0a   :  { %v7439_v55 = vmul.f32 %v14684_v7, %v7415_v38  ;;  %v7494_v24 = vmul.f32 1.442695, %v7470_v56  ;;  %v14805_v4 = vand.u32 2147483647, %v14799_v34  ;;  %v14808_v43 = vmul.f32 0.70710677, %v14781_v26  ;;  %v9243_v62 = vpop.eup %9242 }
 0xc0b   :  { %v7350_v9 = vadd.f32 -0.28449672, %v7326_v46  ;;  %v14811_v44 = vmul.f32 %v15661_v32, %v7649_v50  ;;  %v14814_v51 = vmul.f32 0.5, %v14696_v25  ;;  %v7447_v49 = vsub.f32 0.0, %v14757_v33 }
 0xc0c   :  { %9246 = vrcp.f32 %v7185_v58  ;;  %v7634_v48 = vadd.f32 1.0, %v7610_v47  ;;  %v7628_v29 = vadd.f32 1.0, %v7604_v3  ;;  %vm7087_vm11 = vcmp.ge.f32.partialorder %v14731_v2, 0.0 }
 0xc0d   :  { %v7162_v7 = vmul.f32 0.3275911, %v14805_v4  ;;  %v14820_v57 = vmul.f32 %v15661_v32, %v7643_v15  ;;  %v7637_v36 = vadd.f32 1.0, %v7613_v30  ;;  %v7374_v20 = vmul.f32 %v14738_v54, %v7350_v9 }
 0xc0e   :  { %v14824_v16 = vand.u32 2147483647, %v14808_v43  ;;  %v7559_v25 = vmul.f32 %v9243_v62, %v7439_v55  ;;  %9248 = vpow2.f32 %v7494_v24  ;;  %v14828_v53 = vadd.f32 %v14641_v59, %v14502_v23 }
 0xc0f   :  { %v7186_v18 = vadd.f32 1.0, %v7162_v7  ;;  %v14830_v60 = vpop.eup %9244  ;;  %v14833_v2 = vsel %vm7087_vm11, 1.0, %v15440_v27  ;;  %v7471_v37 = vmul.f32 %v7447_v49, %v14757_v33  ;;  %v14839_v35 = vadd.f32 %v14651_v10, %v14505_v28 }
 0xc10   :  { %v7164_v21 = vmul.f32 0.3275911, %v14824_v16  ;;  %v7658_v56 = vmul.f32 %v7634_v48, %v14618_v19  ;;  %v7652_v38 = vmul.f32 %v7628_v29, %v14656_v14  ;;  %v7231_v23 = vmul.f32 1.0614054, %v14830_v60 }
 0xc11   :  { %9250 = vrcp.f32 %v7186_v18  ;;  %v7661_v59 = vmul.f32 %v7637_v36, %v14704_v40  ;;  %v7398_v46 = vadd.f32 0.2548296, %v7374_v20  ;;  %vm7089_vm13 = vcmp.ge.f32.partialorder %v14763_v8, 0.0 }
 0xc12   :  { %v7188_v50 = vadd.f32 1.0, %v7164_v21  ;;  %v7583_v33 = vsub.f32 1.0, %v7559_v25  ;;  %v7255_v52 = vadd.f32 -1.4531521, %v7231_v23  ;;  %v7449_v47 = vsub.f32 0.0, %v14772_v42 }
 0xc13   :  { %v14848_v10 = vmul.f32 0.70710677, %v14828_v53  ;;  %v7496_v3 = vmul.f32 1.442695, %v7471_v37  ;;  %v14851_v19 = vmul.f32 0.5, %v14747_v0  ;;  %v14857_v40 = vmul.f32 %v15661_v32, %v7658_v56 }
 0xc14   :  { %9252 = vrcp.f32 %v7188_v50  ;;  %v14854_v14 = vmul.f32 0.70710677, %v14839_v35  ;;  %v14860_v15 = vmul.f32 %v15661_v32, %v7652_v38  ;;  %v7279_v30 = vmul.f32 %v14830_v60, %v7255_v52 }
 0xc15   :  { %v14864_v9 = vand.u32 2147483647, %v14848_v10  ;;  %v14869_v0 = vmul.f32 %v15661_v32, %v7661_v59  ;;  %v7422_v55 = vmul.f32 %v14738_v54, %v7398_v46  ;;  %v14875_v24 = vsel %vm7089_vm13, 1.0, %v15440_v27 }
 0xc16   :  { %v14866_v58 = vpop.eup %9246  ;;  %v14878_v49 = vand.u32 2147483647, %v14854_v14  ;;  %v7607_v62 = vmul.f32 %v7583_v33, %v14752_v41  ;;  %v7303_v48 = vadd.f32 1.4214138, %v7279_v30  ;;  %v7473_v7 = vmul.f32 %v7449_v47, %v14772_v42  ;;  %v15698_v42 = vld [vmem:[#allocation21_spill] sm:$0xff] }
 0xc17   :  { %15697 = vst [vmem:[#allocation7_spill] sm:$0xff] %v14869_v0  ;;  %v7233_v29 = vmul.f32 1.0614054, %v14866_v58  ;;  %9254 = vpow2.f32 %v7496_v3  ;;  %v14884_v36 = vmul.f32 0.5, %v14777_v6  ;;  %v7165_v54 = vmul.f32 0.3275911, %v14864_v9 }
 0xc18   :  { %v7167_v8 = vmul.f32 0.3275911, %v14878_v49  ;;  %v9249_v20 = vpop.eup %9248  ;;  %v7327_v25 = vmul.f32 %v14830_v60, %v7303_v48  ;;  %vm7090_vm15 = vcmp.ge.f32.partialorder %v14799_v34, 0.0  ;;  %v7450_v41 = vsub.f32 0.0, %v14805_v4 }
 0xc19   :  { %v7257_v18 = vadd.f32 -1.4531521, %v7233_v29  ;;  %v7542_v37 = vmul.f32 %v9249_v20, %v7422_v55  ;;  %v7189_v21 = vadd.f32 1.0, %v7165_v54  ;;  %v14893_v38 = vadd.f32 %v15698_v42, %v14505_v28  ;;  %v15699_v20 = vld [vmem:[#allocation32_spill] sm:$0xff] }
 0xc1a   :  { %v7191_v56 = vadd.f32 1.0, %v7167_v8  ;;  %v7631_v23 = vadd.f32 1.0, %v7607_v62  ;;  %v7500_v46 = vmul.f32 1.442695, %v7473_v7  ;;  %v14899_v50 = vmul.f32 0.5, %v14781_v26 }
 0xc1b   :  { %v14895_v6 = vpop.eup %9250  ;;  %v7281_v59 = vmul.f32 %v14866_v58, %v7257_v18  ;;  %v7351_v33 = vadd.f32 -0.28449672, %v7327_v25  ;;  %v14902_v34 = vsel %vm7090_vm15, 1.0, %v15440_v27  ;;  %9256 = vrcp.f32 %v7189_v21 }
 0xc1c   :  { %v7234_v52 = vmul.f32 1.0614054, %v14895_v6  ;;  %v7474_v28 = vmul.f32 %v7450_v41, %v14805_v4  ;;  %v7452_v3 = vsub.f32 0.0, %v14824_v16  ;;  %v14908_v30 = vmul.f32 0.70710677, %v14893_v38 }
 0xc1d   :  { %v7305_v47 = vadd.f32 1.4214138, %v7281_v59  ;;  %v7566_v62 = vsub.f32 1.0, %v7542_v37  ;;  %vm7092_vm1 = vcmp.ge.f32.partialorder %v14808_v43, 0.0  ;;  %9258 = vrcp.f32 %v7191_v56 }
 0xc1e   :  { %v14910_v55 = vpop.eup %9252  ;;  %v7258_v26 = vadd.f32 -1.4531521, %v7234_v52  ;;  %v7655_v48 = vmul.f32 %v7631_v23, %v14736_v45  ;;  %9260 = vpow2.f32 %v7500_v46  ;;  %v7375_v4 = vmul.f32 %v14830_v60, %v7351_v33 }
 0xc1f   :  { %v7329_v29 = vmul.f32 %v14866_v58, %v7305_v47  ;;  %v7236_v7 = vmul.f32 1.0614054, %v14910_v55  ;;  %v14919_v8 = vand.u32 2147483647, %v14908_v30  ;;  %v14923_v25 = vadd.f32 %v14670_v39, %v15699_v20 }
 0xc20   :  { %v7282_v54 = vmul.f32 %v14895_v6, %v7258_v26  ;;  %v7502_v41 = vmul.f32 1.442695, %v7474_v28  ;;  %v7476_v45 = vmul.f32 %v7452_v3, %v14824_v16  ;;  %v7590_v56 = vmul.f32 %v7566_v62, %v14790_v17 }
 0xc21   :  { %v7353_v18 = vadd.f32 -0.28449672, %v7329_v29  ;;  %v7260_v37 = vadd.f32 -1.4531521, %v7236_v7  ;;  %v9255_v21 = vpop.eup %9254  ;;  %v14930_v23 = vsel %vm7092_vm1, 1.0, %v15440_v27  ;;  %v14934_v46 = vmul.f32 %v15661_v32, %v7655_v48  ;;  %v15703_v32 = vld [vmem:[#allocation5_spill] sm:$0xff] }
 0xc22   :  { %v7306_v42 = vadd.f32 1.4214138, %v7282_v54  ;;  %v7168_v59 = vmul.f32 0.3275911, %v14919_v8  ;;  %v7453_v33 = vsub.f32 0.0, %v14864_v9  ;;  %v7455_v16 = vsub.f32 0.0, %v14878_v49 }
 0xc23   :  { %v7284_v39 = vmul.f32 %v14910_v55, %v7260_v37  ;;  %v7399_v52 = vadd.f32 0.2548296, %v7375_v4  ;;  %v7377_v17 = vmul.f32 %v14866_v58, %v7353_v18  ;;  %v14941_v28 = vmul.f32 0.70710677, %v14923_v25 }
 0xc24   :  { %v7192_v47 = vadd.f32 1.0, %v7168_v59  ;;  %v7330_v43 = vmul.f32 %v14895_v6, %v7306_v42  ;;  %9262 = vpow2.f32 %v7502_v41  ;;  %v7506_v62 = vmul.f32 1.442695, %v7476_v45  ;;  %v15700_v41 = vld [vmem:[#allocation9_spill] sm:$0xff] }
 0xc25   :  { %v7308_v3 = vadd.f32 1.4214138, %v7284_v39  ;;  %v14944_v26 = vpop.eup %9256  ;;  %v7614_v48 = vadd.f32 1.0, %v7590_v56  ;;  %v14947_v29 = vmul.f32 0.5, %v14828_v53  ;;  %v14950_v7 = vmul.f32 0.5, %v14839_v35 }
 0xc26   :  { %9264 = vrcp.f32 %v7192_v47  ;;  %v7237_v4 = vmul.f32 1.0614054, %v14944_v26  ;;  %v7477_v54 = vmul.f32 %v7453_v33, %v14864_v9  ;;  %v7479_v18 = vmul.f32 %v7455_v16, %v14878_v49 }
 0xc27   :  { %v14957_v37 = vadd.f32 %v15700_v41, %v15699_v20  ;;  %v14959_v45 = vpop.eup %9258  ;;  %v7423_v56 = vmul.f32 %v14830_v60, %v7399_v52  ;;  %v7401_v53 = vadd.f32 0.2548296, %v7377_v17  ;;  %vm7093_vm2 = vcmp.ge.f32.partialorder %v14848_v10, 0.0 }
 0xc28   :  { %v14964_v35 = vand.u32 2147483647, %v14941_v28  ;;  %v9261_v42 = vpop.eup %9260  ;;  %v7354_v59 = vadd.f32 -0.28449672, %v7330_v43  ;;  %v7332_v9 = vmul.f32 %v14910_v55, %v7308_v3  ;;  %9266 = vpow2.f32 %v7506_v62 }
 0xc29   :  { %v7261_v49 = vadd.f32 -1.4531521, %v7237_v4  ;;  %v7638_v39 = vmul.f32 %v7614_v48, %v14743_v63  ;;  %vm7095_vm3 = vcmp.ge.f32.partialorder %v14854_v14, 0.0  ;;  %v7239_v20 = vmul.f32 1.0614054, %v14959_v45 }
 0xc2a   :  { %v7170_v60 = vmul.f32 0.3275911, %v14964_v35  ;;  %v7508_v16 = vmul.f32 1.442695, %v7477_v54  ;;  %v7512_v52 = vmul.f32 1.442695, %v7479_v18  ;;  %v7543_v47 = vmul.f32 %v9255_v21, %v7423_v56 }
 0xc2b   :  { %v7285_v33 = vmul.f32 %v14944_v26, %v7261_v49  ;;  %v14973_v17 = vmul.f32 0.70710677, %v14957_v37  ;;  %v7425_v43 = vmul.f32 %v14866_v58, %v7401_v53  ;;  %v7263_v3 = vadd.f32 -1.4531521, %v7239_v20  ;;  %v15701_v56 = vld [vmem:[#allocation24_spill] sm:$0xff] }
 0xc2c   :  { %v7194_v62 = vadd.f32 1.0, %v7170_v60  ;;  %v7378_v63 = vmul.f32 %v14895_v6, %v7354_v59  ;;  %v7356_v48 = vadd.f32 -0.28449672, %v7332_v9  ;;  %v14980_v4 = vsel %vm7093_vm2, 1.0, %v15440_v27 }
 0xc2d   :  { %v7456_v41 = vsub.f32 0.0, %v14919_v8  ;;  %v7309_v54 = vadd.f32 1.4214138, %v7285_v33  ;;  %v14986_v18 = vsel %vm7095_vm3, 1.0, %v15440_v27  ;;  %v7287_v58 = vmul.f32 %v14959_v45, %v7263_v3 }
 0xc2e   :  { %9268 = vrcp.f32 %v7194_v62  ;;  %v9263_v21 = vpop.eup %9262  ;;  %v14990_v53 = vmul.f32 %v15701_v56, %v7638_v39  ;;  %v14993_v10 = vmul.f32 0.5, %v14893_v38  ;;  %v14996_v59 = vand.u32 2147483647, %v14973_v17 }
 0xc2f   :  { %9270 = vpow2.f32 %v7508_v16  ;;  %v7567_v49 = vsub.f32 1.0, %v7543_v47  ;;  %v7545_v14 = vmul.f32 %v9261_v42, %v7425_v43  ;;  %v7311_v20 = vadd.f32 1.4214138, %v7287_v58 }
 0xc30   :  { %15702 = vst [vmem:[#allocation13_spill] sm:$0xff] %v14990_v53  ;;  %v14998_v9 = vpop.eup %9264  ;;  %9272 = vpow2.f32 %v7512_v52  ;;  %v7402_v60 = vadd.f32 0.2548296, %v7378_v63  ;;  %v7380_v33 = vmul.f32 %v14910_v55, %v7356_v48  ;;  %v7480_v39 = vmul.f32 %v7456_v41, %v14919_v8 }
 0xc31   :  { %v7240_v3 = vmul.f32 1.0614054, %v14998_v9  ;;  %v7333_v16 = vmul.f32 %v14944_v26, %v7309_v54  ;;  %v7335_v38 = vmul.f32 %v14959_v45, %v7311_v20  ;;  %v7171_v62 = vmul.f32 0.3275911, %v14996_v59 }
 0xc32   :  { %v6959_v53 = vadd.f32 %v14679_v61, %v15703_v32  ;;  %v9267_v47 = vpop.eup %9266  ;;  %vm7096_vm4 = vcmp.ge.f32.partialorder %v14908_v30, 0.0  ;;  %v15010_v52 = vmul.f32 0.5, %v14923_v25  ;;  %vm7098_vm0 = vcmp.ge.f32.partialorder %v14941_v28, 0.0 }
 0xc33   :  { %v7264_v42 = vadd.f32 -1.4531521, %v7240_v3  ;;  %v7591_v8 = vmul.f32 %v7567_v49, %v14833_v2  ;;  %v7569_v43 = vsub.f32 1.0, %v7545_v14  ;;  %v7359_v63 = vadd.f32 -0.28449672, %v7335_v38 }
 0xc34   :  { %v7195_v48 = vadd.f32 1.0, %v7171_v62  ;;  %v7426_v41 = vmul.f32 %v14895_v6, %v7402_v60  ;;  %v7404_v54 = vadd.f32 0.2548296, %v7380_v33  ;;  %v7514_v61 = vmul.f32 1.442695, %v7480_v39 }
 0xc35   :  { %v7288_v58 = vmul.f32 %v14998_v9, %v7264_v42  ;;  %v7357_v20 = vadd.f32 -0.28449672, %v7333_v16  ;;  %v7383_v0 = vmul.f32 %v14959_v45, %v7359_v63  ;;  %v15017_v3 = vmul.f32 0.70710677, %v6959_v53 }
 0xc36   :  { %9274 = vrcp.f32 %v7195_v48  ;;  %v15022_v25 = vsel %vm7096_vm4, 1.0, %v15440_v27  ;;  %v7458_v49 = vsub.f32 0.0, %v14964_v35  ;;  %v15026_v6 = vmul.f32 0.5, %v14957_v37 }
 0xc37   :  { %v7312_v2 = vadd.f32 1.4214138, %v7288_v58  ;;  %v7615_v60 = vadd.f32 1.0, %v7591_v8  ;;  %v7593_v33 = vmul.f32 %v7569_v43, %v14875_v24  ;;  %v15034_v39 = vsel %vm7098_vm0, 1.0, %v15440_v27 }
 0xc38   :  { %v15028_v14 = vpop.eup %9268  ;;  %v15038_v30 = vadd.f32 %v14681_v22, %v15703_v32  ;;  %v7428_v38 = vmul.f32 %v14910_v55, %v7404_v54  ;;  %9276 = vpow2.f32 %v7514_v61  ;;  %v7546_v8 = vmul.f32 %v9263_v21, %v7426_v41 }
 0xc39   :  { %v9271_v16 = vpop.eup %9270  ;;  %v7336_v37 = vmul.f32 %v14998_v9, %v7312_v2  ;;  %v7242_v62 = vmul.f32 1.0614054, %v15028_v14  ;;  %v7381_v24 = vmul.f32 %v14944_v26, %v7357_v20  ;;  %v7407_v43 = vadd.f32 0.2548296, %v7383_v0 }
 0xc3a   :  { %v9273_v42 = vpop.eup %9272  ;;  %v7149_v28 = vand.u32 2147483647, %v15017_v3  ;;  %v7482_v32 = vmul.f32 %v7458_v49, %v14964_v35  ;;  %vm7099_vm5 = vcmp.ge.f32.partialorder %v14973_v17, 0.0  ;;  %v15048_v22 = vmul.f32 %v7615_v60, %v14814_v51 }
 0xc3b   :  { %v7360_v63 = vadd.f32 -0.28449672, %v7336_v37  ;;  %v7266_v48 = vadd.f32 -1.4531521, %v7242_v62  ;;  %v7617_v55 = vadd.f32 1.0, %v7593_v33  ;;  %v7548_v21 = vmul.f32 %v9267_v47, %v7428_v38 }
 0xc3c   :  { %v7173_v54 = vmul.f32 0.3275911, %v7149_v28  ;;  %v15051_v58 = vmul.f32 0.70710677, %v15038_v30  ;;  %v7690_v61 = vpack.c.bf16 %v14820_v57, %v14794_v5  ;;  %v7570_v20 = vsub.f32 1.0, %v7546_v8 }
 0xc3d   :  { %v7384_v41 = vmul.f32 %v14998_v9, %v7360_v63  ;;  %v7290_v0 = vmul.f32 %v15028_v14, %v7266_v48  ;;  %v7405_v35 = vadd.f32 0.2548296, %v7381_v24  ;;  %v7431_v17 = vmul.f32 %v14959_v45, %v7407_v43 }
 0xc3e   :  { %v7197_v2 = vadd.f32 1.0, %v7173_v54  ;;  %v7518_v49 = vmul.f32 1.442695, %v7482_v32  ;;  %v15059_v60 = vsel %vm7099_vm5, 1.0, %v15440_v27  ;;  %v15061_v33 = vmul.f32 0.5, %v6959_v53  ;;  %8459 = vmatpush3.bf16.msra.mxu1 %v7690_v61 }
 0xc3f   :  { %v7314_v51 = vadd.f32 1.4214138, %v7290_v0  ;;  %v7641_v38 = vmul.f32 %v7617_v55, %v14851_v19  ;;  %v7408_v37 = vadd.f32 0.2548296, %v7384_v41  ;;  %v7150_v5 = vand.u32 2147483647, %v15051_v58 }
 0xc40   :  { %v15063_v47 = vpop.eup %9274  ;;  %9278 = vrcp.f32 %v7197_v2  ;;  %v15704_v57 = vmov 0.0   ;;  %v7572_v45 = vsub.f32 1.0, %v7548_v21  ;;  %v7459_v24 = vsub.f32 0.0, %v14996_v59  ;;  %v15705_v41 = vld [vmem:[#allocation14_spill] sm:$0xff] }
 0xc41   :  { %8460 = vmatprep.subr.bf16.mxu1 %v15704_v57  ;;  %v7338_v62 = vmul.f32 %v15028_v14, %v7314_v51  ;;  %v7243_v8 = vmul.f32 1.0614054, %v15063_v47  ;;  %v7594_v53 = vmul.f32 %v7570_v20, %v14902_v34  ;;  %v7429_v43 = vmul.f32 %v14944_v26, %v7405_v35 }
 0xc42   :  { %v7551_v63 = vmul.f32 %v9273_v42, %v7431_v17  ;;  %v7174_v48 = vmul.f32 0.3275911, %v7150_v5  ;;  %v9277_v19 = vpop.eup %9276  ;;  %v7461_v54 = vsub.f32 0.0, %v7149_v28  ;;  %v15075_v0 = vadd.f32 %v14698_v1, %v15705_v41 }
 0xc43   :  { %v7362_v32 = vadd.f32 -0.28449672, %v7338_v62  ;;  %v7267_v55 = vadd.f32 -1.4531521, %v7243_v8  ;;  %v7432_v21 = vmul.f32 %v14998_v9, %v7408_v37  ;;  %9280 = vpow2.f32 %v7518_v49 }
 0xc44   :  { %v7198_v61 = vadd.f32 1.0, %v7174_v48  ;;  %v15080_v2 = vadd.f32 %v14701_v31, %v15705_v41  ;;  %v7596_v34 = vmul.f32 %v7572_v45, %v14930_v23  ;;  %v7483_v20 = vmul.f32 %v7459_v24, %v14996_v59 }
 0xc45   :  { %v7386_v26 = vmul.f32 %v15028_v14, %v7362_v32  ;;  %v7291_v42 = vmul.f32 %v15063_v47, %v7267_v55  ;;  %v7618_v35 = vadd.f32 1.0, %v7594_v53  ;;  %v7549_v17 = vmul.f32 %v9271_v16, %v7429_v43 }
 0xc46   :  { %9282 = vrcp.f32 %v7198_v61  ;;  %v15087_v1 = vmul.f32 0.70710677, %v15075_v0  ;;  %v15090_v9 = vmul.f32 %v15701_v56, %v7641_v38  ;;  %v7575_v51 = vsub.f32 1.0, %v7551_v63 }
 0xc47   :  { %v7315_v31 = vadd.f32 1.4214138, %v7291_v42  ;;  %v7485_v49 = vmul.f32 %v7461_v54, %v7149_v28  ;;  %v7552_v37 = vmul.f32 %v9277_v19, %v7432_v21  ;;  %v7462_v23 = vsub.f32 0.0, %v7150_v5 }
 0xc48   :  { %v7152_v45 = vand.u32 2147483647, %v15087_v1  ;;  %v15094_v62 = vmul.f32 0.70710677, %v15080_v2  ;;  %v7620_v59 = vadd.f32 1.0, %v7596_v34  ;;  %v15100_v38 = vmul.f32 %v7618_v35, %v14884_v36  ;;  %v15706_v35 = vld [vmem:[#allocation15_spill] sm:$0xff] }
 0xc49   :  { %v7410_v8 = vadd.f32 0.2548296, %v7386_v26  ;;  %v7339_v16 = vmul.f32 %v15063_v47, %v7315_v31  ;;  %v7520_v24 = vmul.f32 1.442695, %v7483_v20  ;;  %v7573_v43 = vsub.f32 1.0, %v7549_v17 }
 0xc4a   :  { %v15097_v53 = vpop.eup %9278  ;;  %v7176_v63 = vmul.f32 0.3275911, %v7152_v45  ;;  %v15103_v28 = vand.u32 2147483647, %v15094_v62  ;;  %v7599_v48 = vmul.f32 %v7575_v51, %v14986_v18  ;;  %v7524_v55 = vmul.f32 1.442695, %v7485_v49 }
 0xc4b   :  { %v7363_v19 = vadd.f32 -0.28449672, %v7339_v16  ;;  %v7245_v32 = vmul.f32 1.0614054, %v15097_v53  ;;  %v7576_v54 = vsub.f32 1.0, %v7552_v37  ;;  %v7486_v41 = vmul.f32 %v7462_v23, %v7150_v5 }
 0xc4c   :  { %v7200_v21 = vadd.f32 1.0, %v7176_v63  ;;  %v7177_v61 = vmul.f32 0.3275911, %v15103_v28  ;;  %v7644_v34 = vmul.f32 %v7620_v59, %v14899_v50  ;;  %v7434_v36 = vmul.f32 %v15028_v14, %v7410_v8 }
 0xc4d   :  { %vm7101_vm6 = vcmp.ge.f32.partialorder %v15017_v3, 0.0  ;;  %v7269_v26 = vadd.f32 -1.4531521, %v7245_v32  ;;  %v9281_v42 = vpop.eup %9280  ;;  %v7387_v20 = vmul.f32 %v15063_v47, %v7363_v19  ;;  %v15114_v17 = vadd.f32 %v14706_v13, %v15706_v35 }
 0xc4e   :  { %9284 = vrcp.f32 %v7200_v21  ;;  %v7201_v18 = vadd.f32 1.0, %v7177_v61  ;;  %v7597_v5 = vmul.f32 %v7573_v43, %v14980_v4  ;;  %v7623_v51 = vadd.f32 1.0, %v7599_v48 }
 0xc4f   :  { %9286 = vpow2.f32 %v7520_v24  ;;  %v7293_v50 = vmul.f32 %v15097_v53, %v7269_v26  ;;  %v7600_v14 = vmul.f32 %v7576_v54, %v15022_v25  ;;  %v7526_v49 = vmul.f32 1.442695, %v7486_v41 }
 0xc50   :  { %v15118_v31 = vpop.eup %9282  ;;  %9288 = vpow2.f32 %v7524_v55  ;;  %v15122_v37 = vmul.f32 0.70710677, %v15114_v17  ;;  %v7554_v23 = vmul.f32 %v9281_v42, %v7434_v36  ;;  %v7464_v8 = vsub.f32 0.0, %v7152_v45 }
 0xc51   :  { %v7317_v59 = vadd.f32 1.4214138, %v7293_v50  ;;  %v7246_v13 = vmul.f32 1.0614054, %v15118_v31  ;;  %v7411_v16 = vadd.f32 0.2548296, %v7387_v20  ;;  %9290 = vrcp.f32 %v7201_v18 }
 0xc52   :  { %v15126_v4 = vand.u32 2147483647, %v15122_v37  ;;  %v15130_v24 = vadd.f32 %v14719_v12, %v15706_v35  ;;  %v15133_v25 = vmul.f32 %v15701_v56, %v7644_v34  ;;  %v15138_v43 = vsel %vm7101_vm6, 1.0, %v15440_v27 }
 0xc53   :  { %v7341_v63 = vmul.f32 %v15097_v53, %v7317_v59  ;;  %v7270_v48 = vadd.f32 -1.4531521, %v7246_v13  ;;  %v7621_v19 = vadd.f32 1.0, %v7597_v5  ;;  %v7647_v32 = vmul.f32 %v7623_v51, %v14950_v7 }
 0xc54   :  { %9292 = vpow2.f32 %v7526_v49  ;;  %v7179_v55 = vmul.f32 0.3275911, %v15126_v4  ;;  %v7624_v54 = vadd.f32 1.0, %v7600_v14  ;;  %v7488_v21 = vmul.f32 %v7464_v8, %v7152_v45 }
 0xc55   :  { %v7365_v12 = vadd.f32 -0.28449672, %v7341_v63  ;;  %v7294_v41 = vmul.f32 %v15118_v31, %v7270_v48  ;;  %v7578_v61 = vsub.f32 1.0, %v7554_v23  ;;  %v7435_v34 = vmul.f32 %v15063_v47, %v7411_v16 }
 0xc56   :  { %v7203_v3 = vadd.f32 1.0, %v7179_v55  ;;  %v15146_v36 = vmul.f32 0.70710677, %v15130_v24  ;;  %v7465_v7 = vsub.f32 0.0, %v15103_v28  ;;  %v7693_v20 = vpack.c.bf16 %v14811_v44, %v14784_v11 }
 0xc57   :  { %v7389_v26 = vmul.f32 %v15097_v53, %v7365_v12  ;;  %v7318_v42 = vadd.f32 1.4214138, %v7294_v41  ;;  %v7645_v35 = vmul.f32 %v7621_v19, %v14947_v29  ;;  %v15156_v45 = vmul.f32 %v15701_v56, %v7647_v32  ;;  %v15707_v32 = vld [vmem:[#allocation7_spill] sm:$0xff] }
 0xc58   :  { %v15152_v18 = vpop.eup %9284  ;;  %9294 = vrcp.f32 %v7203_v3  ;;  %v15159_v47 = vand.u32 2147483647, %v15146_v36  ;;  %v7648_v51 = vmul.f32 %v7624_v54, %v14993_v10  ;;  %8461 = vmatpush3.bf16.msra.mxu1 %v7693_v20  ;;  %v7602_v44 = vmul.f32 %v7578_v61, %v15034_v39 }
 0xc59   :  { %v9287_v5 = vpop.eup %9286  ;;  %v7413_v50 = vadd.f32 0.2548296, %v7389_v26  ;;  %v7342_v14 = vmul.f32 %v15118_v31, %v7318_v42  ;;  %v7248_v49 = vmul.f32 1.0614054, %v15152_v18  ;;  %v7530_v23 = vmul.f32 1.442695, %v7488_v21  ;;  %8462 = vmatprep.subr.bf16.mxu1 %v15704_v57 }
 0xc5a   :  { %v9289_v11 = vpop.eup %9288  ;;  %v7555_v29 = vmul.f32 %v9287_v5, %v7435_v34  ;;  %v7180_v59 = vmul.f32 0.3275911, %v15159_v47  ;;  %v7489_v10 = vmul.f32 %v7465_v7, %v15103_v28  ;;  %v7467_v48 = vsub.f32 0.0, %v15126_v4  ;;  %v15708_v34 = vld [vmem:[#allocation13_spill] sm:$0xff] }
 0xc5b   :  { %v7437_v13 = vmul.f32 %v15097_v53, %v7413_v50  ;;  %v7366_v8 = vadd.f32 -0.28449672, %v7342_v14  ;;  %v7272_v16 = vadd.f32 -1.4531521, %v7248_v49  ;;  %v15169_v63 = vpop.eup %9290  ;;  %v7696_v39 = vpack.c.bf16 %v14934_v46, %v14860_v15  ;;  %v15193_v50 = vld [vmem:[%s15350_s18] sm:$0xff]  }
 0xc5c   :  { %v7204_v19 = vadd.f32 1.0, %v7180_v59  ;;  %v7699_v55 = vpack.c.bf16 %v15707_v32, %v14857_v40  ;;  %v7249_v41 = vmul.f32 1.0614054, %v15169_v63  ;;  %v7579_v28 = vsub.f32 1.0, %v7555_v29 }
 0xc5d   :  { %v7557_v54 = vmul.f32 %v9289_v11, %v7437_v13  ;;  %v7390_v12 = vmul.f32 %v15118_v31, %v7366_v8  ;;  %v7296_v53 = vmul.f32 %v15152_v18, %v7272_v16  ;;  %8463 = vmatpush3.bf16.msra.mxu1 %v7696_v39  ;;  %v7689_v61 = vpack.c.bf16 %v15100_v38, %v15048_v22 }
 0xc5e   :  { %v9293_v21 = vpop.eup %9292  ;;  %9296 = vrcp.f32 %v7204_v19  ;;  %v7688_v15 = vpack.c.bf16 %v15090_v9, %v15708_v34  ;;  %8464 = vmatprep.subr.bf16.mxu1 %v15704_v57  ;;  %v7692_v26 = vpack.c.bf16 %v7648_v51, %v7645_v35  ;;  %v7626_v42 = vadd.f32 1.0, %v7602_v44 }
 0xc5f   :  { %v7581_v46 = vsub.f32 1.0, %v7557_v54  ;;  %v7414_v3 = vadd.f32 0.2548296, %v7390_v12  ;;  %v7320_v40 = vadd.f32 1.4214138, %v7296_v53  ;;  %9298 = vpow2.f32 %v7530_v23  ;;  %7720 = vmatprep.subr.bf16.mxu0 %v7689_v61 }
 0xc60   :  { %v7273_v7 = vadd.f32 -1.4531521, %v7249_v41  ;;  %v7691_v20 = vpack.c.bf16 %v15156_v45, %v15133_v25  ;;  %v7054_v22 = vmul.f32 0.5, %v15038_v30  ;;  %7721 = vmatpush1.bf16.msra.mxu0 %v7688_v15  ;;  %v7603_v51 = vmul.f32 %v7579_v28, %v15059_v60 }
 0xc61   :  { %v7605_v5 = vmul.f32 %v7581_v46, %v15138_v43  ;;  %v7438_v38 = vmul.f32 %v15118_v31, %v7414_v3  ;;  %v7344_v9 = vmul.f32 %v15152_v18, %v7320_v40  ;;  %vm7102_vm7 = vcmp.ge.f32.partialorder %v15051_v58, 0.0  ;;  %8465 = vmatpush3.bf16.msra.mxu1 %v7699_v55  ;;  %7722 = vmatprep.subr.bf16.mxu0 %v7692_v26 }
 0xc62   :  { %v15195_v35 = vpop.eup %9294  ;;  %v7297_v25 = vmul.f32 %v15169_v63, %v7273_v7  ;;  %v7491_v30 = vmul.f32 %v7467_v48, %v15126_v4  ;;  %v7650_v49 = vmul.f32 %v7626_v42, %v15010_v52  ;;  %v7532_v44 = vmul.f32 1.442695, %v7489_v10 }
 0xc63   :  { %v7629_v31 = vadd.f32 1.0, %v7605_v5  ;;  %v7558_v43 = vmul.f32 %v9293_v21, %v7438_v38  ;;  %v7368_v45 = vadd.f32 -0.28449672, %v7344_v9  ;;  %v7251_v14 = vmul.f32 1.0614054, %v15195_v35 }
 0xc64   :  { %v7321_v11 = vadd.f32 1.4214138, %v7297_v25  ;;  %v7468_v29 = vsub.f32 0.0, %v15159_v47  ;;  %8467 = vmatmul.mubr.msk.bf16.vlgmr.msra.gmra.mrb[104].mxu1 %vm5250_vm14, %v15193_v50  ;;  %7723 = vmatpush1.bf16.msra.mxu0 %v7691_v20  ;;  %v7627_v4 = vadd.f32 1.0, %v7603_v51  ;;  %v7126_v8 = vsel %vm7102_vm7, 1.0, %v15440_v27 }
 0xc65   :  { %v7653_v60 = vmul.f32 %v7629_v31, %v15061_v33  ;;  %v7582_v23 = vsub.f32 1.0, %v7558_v43  ;;  %v7392_v59 = vmul.f32 %v15152_v18, %v7368_v45  ;;  %v7275_v13 = vadd.f32 -1.4531521, %v7251_v14 }
 0xc66   :  { %v7345_v52 = vmul.f32 %v15169_v63, %v7321_v11  ;;  %v7536_v16 = vmul.f32 1.442695, %v7491_v30  ;;  %v7674_v32 = vmul.f32 %v15701_v56, %v7650_v49  ;;  %9300 = vpow2.f32 %v7532_v44 }
 0xc67   :  { %v7677_v10 = vmul.f32 %v15701_v56, %v7653_v60  ;;  %v7606_v48 = vmul.f32 %v7582_v23, %v7126_v8  ;;  %v7416_v33 = vadd.f32 0.2548296, %v7392_v59  ;;  %v7299_v19 = vmul.f32 %v15195_v35, %v7275_v13 }
 0xc68   :  { %v9297_v39 = vpop.eup %9296  ;;  %v7369_v55 = vadd.f32 -0.28449672, %v7345_v52  ;;  %v7492_v54 = vmul.f32 %v7468_v29, %v15159_v47  ;;  %v7651_v28 = vmul.f32 %v7627_v4, %v15026_v6  ;;  %9302 = vpow2.f32 %v7536_v16 }
 0xc69   :  { %v7630_v12 = vadd.f32 1.0, %v7606_v48  ;;  %v7440_v58 = vmul.f32 %v15152_v18, %v7416_v33  ;;  %v7323_v53 = vadd.f32 1.4214138, %v7299_v19  ;;  %v7252_v41 = vmul.f32 1.0614054, %v9297_v39  ;;  %v9299_v21 = vpop.eup %9298 }
 0xc6a   :  { %v7393_v61 = vmul.f32 %v15169_v63, %v7369_v55  ;;  %v7694_v34 = vpack.c.bf16 %v7677_v10, %v7674_v32  ;;  %v7538_v42 = vmul.f32 1.442695, %v7492_v54  ;;  %vm7104_vm9 = vcmp.ge.f32.partialorder %v15087_v1, 0.0 }
 0xc6b   :  { %v7654_v15 = vmul.f32 %v7630_v12, %v7054_v22  ;;  %v7560_v46 = vmul.f32 %v9299_v21, %v7440_v58  ;;  %v7347_v3 = vmul.f32 %v15195_v35, %v7323_v53  ;;  %v7276_v40 = vadd.f32 -1.4531521, %v7252_v41  ;;  %v7705_v21 = vpop.permute.xlu1 %7704 }
 0xc6c   :  { %v7417_v26 = vadd.f32 0.2548296, %v7393_v61  ;;  %9304 = vpow2.f32 %v7538_v42  ;;  %v7128_v25 = vsel %vm7104_vm9, 1.0, %v15440_v27  ;;  %vm7107_vm10 = vcmp.ge.f32.partialorder %v15122_v37, 0.0 }
 0xc6d   :  { %v7371_v47 = vadd.f32 -0.28449672, %v7347_v3  ;;  %v7300_v7 = vmul.f32 %v9297_v39, %v7276_v40  ;;  %v7695_v20 = vpack.c.bf16 %v7654_v15, %v7651_v28  ;;  %v7584_v18 = vsub.f32 1.0, %v7560_v46 }
 0xc6e   :  { %v7441_v5 = vmul.f32 %v15169_v63, %v7417_v26  ;;  %vm7105_vm11 = vcmp.ge.f32.partialorder %v15094_v62, 0.0  ;;  %v7131_v60 = vsel %vm7107_vm10, 1.0, %v15440_v27  ;;  %v7056_v23 = vmul.f32 0.5, %v15075_v0 }
 0xc6f   :  { %v7395_v6 = vmul.f32 %v15195_v35, %v7371_v47  ;;  %v7324_v38 = vadd.f32 1.4214138, %v7300_v7  ;;  %7724 = vmatprep.subr.bf16.mxu0 %v7695_v20  ;;  %v7608_v30 = vmul.f32 %v7584_v18, %v7128_v25  ;;  %v7059_v8 = vmul.f32 0.5, %v15114_v17 }
 0xc70   :  { %7725 = vmatpush1.bf16.msra.mxu0 %v7694_v34  ;;  %v9301_v51 = vpop.eup %9300  ;;  %vm7108_vm13 = vcmp.ge.f32.partialorder %v15146_v36, 0.0  ;;  %v7057_v55 = vmul.f32 0.5, %v15080_v2  ;;  %v7060_v17 = vmul.f32 0.5, %v15130_v24  ;;  %v15709_v41 = vmov 0   ;;  %v15242_v2 = vpop.permute.xlu0 %7709 }
 0xc71   :  { %v7419_v22 = vadd.f32 0.2548296, %v7395_v6  ;;  %v7348_v9 = vmul.f32 %v9297_v39, %v7324_v38  ;;  %v7561_v31 = vmul.f32 %v9301_v51, %v7441_v5  ;;  %v7632_v49 = vadd.f32 1.0, %v7608_v30 }
 0xc72   :  { %v9303_v1 = vpop.eup %9302  ;;  %v7132_v33 = vsel %vm7108_vm13, 1.0, %v15440_v27 }
 0xc73   :  { %v7443_v43 = vmul.f32 %v15195_v35, %v7419_v22  ;;  %v7372_v45 = vadd.f32 -0.28449672, %v7348_v9  ;;  %v7585_v11 = vsub.f32 1.0, %v7561_v31  ;;  %v7129_v35 = vsel %vm7105_vm11, 1.0, %v15440_v27 }
 0xc74   :  { %v7656_v37 = vmul.f32 %v7632_v49, %v7056_v23 }
 0xc75   :  { %v7563_v63 = vmul.f32 %v9303_v1, %v7443_v43  ;;  %v7396_v14 = vmul.f32 %v9297_v39, %v7372_v45  ;;  %v7609_v52 = vmul.f32 %v7585_v11, %v7129_v35 }
 0xc76   :  { %v9305_v4 = vpop.eup %9304  ;;  %v7680_v19 = vmul.f32 %v15701_v56, %v7656_v37 }
 0xc77   :  { %v7587_v44 = vsub.f32 1.0, %v7563_v63  ;;  %v7420_v29 = vadd.f32 0.2548296, %v7396_v14  ;;  %v7633_v0 = vadd.f32 1.0, %v7609_v52 }
 0xc79   :  { %v7611_v59 = vmul.f32 %v7587_v44, %v7131_v60  ;;  %v7444_v13 = vmul.f32 %v9297_v39, %v7420_v29  ;;  %v7657_v12 = vmul.f32 %v7633_v0, %v7057_v55 }
 0xc7b   :  { %v7635_v62 = vadd.f32 1.0, %v7611_v59  ;;  %v7564_v16 = vmul.f32 %v9305_v4, %v7444_v13 }
 0xc7d   :  { %v7659_v10 = vmul.f32 %v7635_v62, %v7059_v8  ;;  %v7588_v48 = vsub.f32 1.0, %v7564_v16 }
 0xc7f   :  { %v7683_v39 = vmul.f32 %v15701_v56, %v7659_v10  ;;  %v7612_v32 = vmul.f32 %v7588_v48, %v7132_v33 }
 0xc81   :  { %v7636_v54 = vadd.f32 1.0, %v7612_v32  ;;  %v7697_v36 = vpack.c.bf16 %v7683_v39, %v7680_v19 }
 0xc83   :  { %v7660_v58 = vmul.f32 %v7636_v54, %v7060_v17 }
 0xc85   :  { %v7698_v53 = vpack.c.bf16 %v7660_v58, %v7657_v12 }
 0xc87   :  { %7726 = vmatprep.subr.bf16.mxu0 %v7698_v53 }
 0xc88   :  { %7727 = vmatpush1.bf16.msra.mxu0 %v7697_v36 }
 0xc8b   :  { %8208 = vmatmul.mubr.msk.bf16.vlgmr.msra.gmra.mrb[80].mxu0 %vm5250_vm14, %v15193_v50 }
 0xc8c   :  { %8023 = vmatprep.mubr.bf16.mxu0 %v15709_v41 }
 0xd37   :  { %v7797_v28 = vpop.f32.mrb[104].mxu1 }
 0xd38   :  { %v15240_v61 = vadd.f32 %v7797_v28, %v7705_v21  ;;  %v8468_v34 = vpop.f32.mrb[105].mxu1 }
 0xd39   :  { %v7800_v24 = vpop.f32.mrb[106].mxu1 }
 0xd3a   :  { %v7812_v15 = vmul.f32 0.70710677, %v15240_v61  ;;  %v15246_v46 = vadd.f32 %v7800_v24, %v15242_v2  ;;  %v8469_v3 = vpop.f32.mrb[107].mxu1 }
 0xd3b   :  { %v7806_v3 = vmul.f32 0.5, %v15240_v61  ;;  %v15710_v61 = vld [vmem:[#allocation26_spill] sm:$0xff] }
 0xd3c   :  { %v7830_v40 = vand.u32 2147483647, %v7812_v15  ;;  %v7815_v26 = vmul.f32 0.70710677, %v15246_v46  ;;  %vm7818_vm14 = vcmp.ge.f32.partialorder %v7812_v15, 0.0 }
 0xd3d   :  { %v7824_v54 = vsel %vm7818_vm14, 1.0, %v15440_v27 }
 0xd3e   :  { %v7836_v50 = vmul.f32 0.3275911, %v7830_v40  ;;  %v7833_v42 = vand.u32 2147483647, %v7815_v26  ;;  %v7908_v18 = vsub.f32 0.0, %v7830_v40  ;;  %vm7821_vm15 = vcmp.ge.f32.partialorder %v7815_v26, 0.0 }
 0xd3f   :  { %v7827_v34 = vsel %vm7821_vm15, 1.0, %v15440_v27 }
 0xd40   :  { %v7842_v47 = vadd.f32 1.0, %v7836_v50  ;;  %v7839_v7 = vmul.f32 0.3275911, %v7833_v42  ;;  %v7911_v5 = vsub.f32 0.0, %v7833_v42  ;;  %v7914_v38 = vmul.f32 %v7908_v18, %v7830_v40 }
 0xd42   :  { %9306 = vrcp.f32 %v7842_v47  ;;  %v7845_v20 = vadd.f32 1.0, %v7839_v7  ;;  %v7917_v25 = vmul.f32 %v7911_v5, %v7833_v42  ;;  %v7922_v30 = vmul.f32 1.442695, %v7914_v38 }
 0xd43   :  { %v7809_v7 = vmul.f32 0.5, %v15246_v46 }
 0xd44   :  { %9308 = vrcp.f32 %v7845_v20  ;;  %v7928_v63 = vmul.f32 1.442695, %v7917_v25 }
 0xd45   :  { %9310 = vpow2.f32 %v7922_v30 }
 0xd46   :  { %9312 = vpow2.f32 %v7928_v63 }
 0xd4c   :  { %v9307_v6 = vpop.eup %9306 }
 0xd4d   :  { %v7854_v22 = vmul.f32 1.0614054, %v9307_v6 }
 0xd4e   :  { %v9309_v9 = vpop.eup %9308 }
 0xd4f   :  { %v7860_v51 = vadd.f32 -1.4531521, %v7854_v22  ;;  %v7857_v31 = vmul.f32 1.0614054, %v9309_v9  ;;  %v9311_v8 = vpop.eup %9310 }
 0xd50   :  { %v9313_v39 = vpop.eup %9312 }
 0xd51   :  { %v7866_v43 = vmul.f32 %v9307_v6, %v7860_v51  ;;  %v7863_v45 = vadd.f32 -1.4531521, %v7857_v31 }
 0xd53   :  { %v7872_v1 = vadd.f32 1.4214138, %v7866_v43  ;;  %v7869_v14 = vmul.f32 %v9309_v9, %v7863_v45 }
 0xd55   :  { %v7878_v49 = vmul.f32 %v9307_v6, %v7872_v1  ;;  %v7875_v11 = vadd.f32 1.4214138, %v7869_v14 }
 0xd57   :  { %v7884_v44 = vadd.f32 -0.28449672, %v7878_v49  ;;  %v7881_v29 = vmul.f32 %v9309_v9, %v7875_v11 }
 0xd59   :  { %v7890_v60 = vmul.f32 %v9307_v6, %v7884_v44  ;;  %v7887_v23 = vadd.f32 -0.28449672, %v7881_v29 }
 0xd5b   :  { %v7896_v59 = vadd.f32 0.2548296, %v7890_v60  ;;  %v7893_v13 = vmul.f32 %v9309_v9, %v7887_v23 }
 0xd5d   :  { %v7902_v4 = vmul.f32 %v9307_v6, %v7896_v59  ;;  %v7899_v37 = vadd.f32 0.2548296, %v7893_v13 }
 0xd5e   :  { %v7754_v35 = vpop.f32.mrb[80].mxu0 }
 0xd5f   :  { %v15249_v52 = vadd.f32 %v7754_v35, %v7705_v21  ;;  %v7756_v62 = vpop.f32.mrb[81].mxu0  ;;  %v7932_v16 = vmul.f32 %v9311_v8, %v7902_v4  ;;  %v7905_v33 = vmul.f32 %v9309_v9, %v7899_v37 }
 0xd60   :  { %v15251_v10 = vadd.f32 %v7756_v62, %v7705_v21  ;;  %v7758_v48 = vpop.f32.mrb[82].mxu0 }
 0xd61   :  { %v15254_v19 = vmul.f32 0.70710677, %v15249_v52  ;;  %v7760_v0 = vpop.f32.mrb[83].mxu0  ;;  %v7938_v32 = vsub.f32 1.0, %v7932_v16  ;;  %v15260_v17 = vadd.f32 %v7758_v48, %v15242_v2  ;;  %v7935_v36 = vmul.f32 %v9313_v39, %v7905_v33 }
 0xd62   :  { %v15257_v55 = vmul.f32 0.70710677, %v15251_v10  ;;  %v15271_v26 = vadd.f32 %v7760_v0, %v15242_v2 }
 0xd63   :  { %v7828_v12 = vand.u32 2147483647, %v15254_v19  ;;  %v7944_v58 = vmul.f32 %v7938_v32, %v7824_v54  ;;  %v7941_v41 = vsub.f32 1.0, %v7935_v36  ;;  %v15267_v15 = vmul.f32 0.70710677, %v15260_v17 }
 0xd64   :  { %v7829_v53 = vand.u32 2147483647, %v15257_v55  ;;  %v15276_v6 = vmul.f32 0.70710677, %v15271_v26  ;;  %vm7816_vm1 = vcmp.ge.f32.partialorder %v15254_v19, 0.0  ;;  %vm7817_vm2 = vcmp.ge.f32.partialorder %v15257_v55, 0.0 }
 0xd65   :  { %v7834_v21 = vmul.f32 0.3275911, %v7828_v12  ;;  %v7950_v28 = vadd.f32 1.0, %v7944_v58  ;;  %v7947_v40 = vmul.f32 %v7941_v41, %v7827_v34  ;;  %v7831_v18 = vand.u32 2147483647, %v15267_v15 }
 0xd66   :  { %v7835_v24 = vmul.f32 0.3275911, %v7829_v53  ;;  %v7832_v9 = vand.u32 2147483647, %v15276_v6  ;;  %v7906_v46 = vsub.f32 0.0, %v7828_v12  ;;  %v7907_v31 = vsub.f32 0.0, %v7829_v53 }
 0xd67   :  { %v7840_v50 = vadd.f32 1.0, %v7834_v21  ;;  %v7956_v47 = vmul.f32 %v7950_v28, %v7806_v3  ;;  %v7953_v20 = vadd.f32 1.0, %v7947_v40  ;;  %v7837_v38 = vmul.f32 0.3275911, %v7831_v18 }
 0xd68   :  { %v7841_v42 = vadd.f32 1.0, %v7835_v24  ;;  %v7838_v25 = vmul.f32 0.3275911, %v7832_v9  ;;  %v7912_v1 = vmul.f32 %v7906_v46, %v7828_v12  ;;  %v7913_v11 = vmul.f32 %v7907_v31, %v7829_v53 }
 0xd69   :  { %9314 = vrcp.f32 %v7840_v50  ;;  %v7959_v5 = vmul.f32 %v7953_v20, %v7809_v7  ;;  %v15279_v22 = vmul.f32 %v15710_v61, %v7956_v47  ;;  %v7843_v51 = vadd.f32 1.0, %v7837_v38 }
 0xd6a   :  { %9316 = vrcp.f32 %v7841_v42  ;;  %v7844_v43 = vadd.f32 1.0, %v7838_v25  ;;  %v7909_v29 = vsub.f32 0.0, %v7831_v18  ;;  %v7918_v60 = vmul.f32 1.442695, %v7912_v1 }
 0xd6b   :  { %v15282_v2 = vmul.f32 %v15710_v61, %v7959_v5  ;;  %9318 = vrcp.f32 %v7843_v51  ;;  %v7920_v4 = vmul.f32 1.442695, %v7913_v11  ;;  %v7910_v35 = vsub.f32 0.0, %v7832_v9 }
 0xd6c   :  { %9320 = vrcp.f32 %v7844_v43  ;;  %v7915_v62 = vmul.f32 %v7909_v29, %v7831_v18  ;;  %vm7819_vm3 = vcmp.ge.f32.partialorder %v15267_v15, 0.0  ;;  %vm7820_vm4 = vcmp.ge.f32.partialorder %v15276_v6, 0.0 }
 0xd6d   :  { %v7970_v30 = vpack.c.bf16 %v15282_v2, %v15279_v22  ;;  %9322 = vpow2.f32 %v7918_v60  ;;  %v7916_v54 = vmul.f32 %v7910_v35, %v7832_v9  ;;  %v7807_v15 = vmul.f32 0.5, %v15260_v17 }
 0xd6e   :  { %9324 = vpow2.f32 %v7920_v4  ;;  %v7924_v12 = vmul.f32 1.442695, %v7915_v62  ;;  %v7804_v62 = vmul.f32 0.5, %v15249_v52 }
 0xd6f   :  { %v7926_v3 = vmul.f32 1.442695, %v7916_v54 }
 0xd70   :  { %9326 = vpow2.f32 %v7924_v12  ;;  %v7808_v12 = vmul.f32 0.5, %v15271_v26 }
 0xd71   :  { %9328 = vpow2.f32 %v7926_v3 }
 0xd73   :  { %v9315_v45 = vpop.eup %9314 }
 0xd74   :  { %v9317_v63 = vpop.eup %9316  ;;  %v7852_v14 = vmul.f32 1.0614054, %v9315_v45 }
 0xd75   :  { %v7853_v49 = vmul.f32 1.0614054, %v9317_v63  ;;  %v9319_v8 = vpop.eup %9318 }
 0xd76   :  { %v7858_v44 = vadd.f32 -1.4531521, %v7852_v14  ;;  %v7855_v48 = vmul.f32 1.0614054, %v9319_v8  ;;  %v9321_v0 = vpop.eup %9320  ;;  %v7822_v14 = vsel %vm7816_vm1, 1.0, %v15440_v27 }
 0xd77   :  { %v7859_v23 = vadd.f32 -1.4531521, %v7853_v49  ;;  %v7856_v58 = vmul.f32 1.0614054, %v9321_v0  ;;  %v9323_v18 = vpop.eup %9322 }
 0xd78   :  { %v7864_v59 = vmul.f32 %v9315_v45, %v7858_v44  ;;  %v7861_v32 = vadd.f32 -1.4531521, %v7855_v48  ;;  %v9325_v51 = vpop.eup %9324 }
 0xd79   :  { %v7865_v13 = vmul.f32 %v9317_v63, %v7859_v23  ;;  %v7862_v28 = vadd.f32 -1.4531521, %v7856_v58 }
 0xd7a   :  { %v7870_v37 = vadd.f32 1.4214138, %v7864_v59  ;;  %v7867_v41 = vmul.f32 %v9319_v8, %v7861_v32  ;;  %v9327_v44 = vpop.eup %9326 }
 0xd7b   :  { %v7871_v16 = vadd.f32 1.4214138, %v7865_v13  ;;  %v7868_v50 = vmul.f32 %v9321_v0, %v7862_v28  ;;  %v9329_v19 = vpop.eup %9328  ;;  %v7823_v13 = vsel %vm7817_vm2, 1.0, %v15440_v27 }
 0xd7c   :  { %v7876_v33 = vmul.f32 %v9315_v45, %v7870_v37  ;;  %v7873_v24 = vadd.f32 1.4214138, %v7867_v41  ;;  %v7825_v37 = vsel %vm7819_vm3, 1.0, %v15440_v27 }
 0xd7d   :  { %v7877_v39 = vmul.f32 %v9317_v63, %v7871_v16  ;;  %v7874_v20 = vadd.f32 1.4214138, %v7868_v50 }
 0xd7e   :  { %v7882_v36 = vadd.f32 -0.28449672, %v7876_v33  ;;  %v7879_v47 = vmul.f32 %v9319_v8, %v7873_v24 }
 0xd7f   :  { %v7883_v53 = vadd.f32 -0.28449672, %v7877_v39  ;;  %v7880_v9 = vmul.f32 %v9321_v0, %v7874_v20 }
 0xd80   :  { %v7888_v21 = vmul.f32 %v9315_v45, %v7882_v36  ;;  %v7885_v38 = vadd.f32 -0.28449672, %v7879_v47  ;;  %v7805_v36 = vmul.f32 0.5, %v15251_v10 }
 0xd81   :  { %v7889_v34 = vmul.f32 %v9317_v63, %v7883_v53  ;;  %v7886_v43 = vadd.f32 -0.28449672, %v7880_v9 }
 0xd82   :  { %v7894_v40 = vadd.f32 0.2548296, %v7888_v21  ;;  %v7891_v46 = vmul.f32 %v9319_v8, %v7885_v38 }
 0xd83   :  { %v7895_v42 = vadd.f32 0.2548296, %v7889_v34  ;;  %v7892_v49 = vmul.f32 %v9321_v0, %v7886_v43  ;;  %v7981_v34 = vpop.permute.xlu0 %7980 }
 0xd84   :  { %v7900_v7 = vmul.f32 %v9315_v45, %v7894_v40  ;;  %v7897_v1 = vadd.f32 0.2548296, %v7891_v46 }
 0xd85   :  { %v7901_v5 = vmul.f32 %v9317_v63, %v7895_v42  ;;  %v7898_v29 = vadd.f32 0.2548296, %v7892_v49 }
 0xd86   :  { %v7930_v61 = vmul.f32 %v9323_v18, %v7900_v7  ;;  %v7903_v45 = vmul.f32 %v9319_v8, %v7897_v1 }
 0xd87   :  { %v7931_v31 = vmul.f32 %v9325_v51, %v7901_v5  ;;  %v7904_v23 = vmul.f32 %v9321_v0, %v7898_v29  ;;  %v7826_v0 = vsel %vm7820_vm4, 1.0, %v15440_v27  ;;  %v8585_v27 = vld [vmem:[%s15351_s20] sm:$0xff]  }
 0xd88   :  { %v7936_v25 = vsub.f32 1.0, %v7930_v61  ;;  %v7933_v60 = vmul.f32 %v9327_v44, %v7903_v45 }
 0xd89   :  { %v7937_v63 = vsub.f32 1.0, %v7931_v31  ;;  %v7934_v8 = vmul.f32 %v9329_v19, %v7904_v23 }
 0xd8a   :  { %v7942_v11 = vmul.f32 %v7936_v25, %v7822_v14  ;;  %v7939_v4 = vsub.f32 1.0, %v7933_v60 }
 0xd8b   :  { %v7943_v35 = vmul.f32 %v7937_v63, %v7823_v13  ;;  %v7940_v16 = vsub.f32 1.0, %v7934_v8 }
 0xd8c   :  { %v7948_v59 = vadd.f32 1.0, %v7942_v11  ;;  %v7945_v55 = vmul.f32 %v7939_v4, %v7825_v37 }
 0xd8d   :  { %v7949_v39 = vadd.f32 1.0, %v7943_v35  ;;  %v7946_v32 = vmul.f32 %v7940_v16, %v7826_v0 }
 0xd8e   :  { %v7954_v48 = vmul.f32 %v7948_v59, %v7804_v62  ;;  %v7951_v33 = vadd.f32 1.0, %v7945_v55 }
 0xd8f   :  { %v7952_v58 = vadd.f32 1.0, %v7946_v32  ;;  %v7955_v53 = vmul.f32 %v7949_v39, %v7805_v36 }
 0xd90   :  { %v7957_v54 = vmul.f32 %v7951_v33, %v7807_v15  ;;  %v7960_v6 = vmul.f32 %v15701_v56, %v7954_v48 }
 0xd91   :  { %v7958_v41 = vmul.f32 %v7952_v58, %v7808_v12 }
 0xd92   :  { %v7963_v52 = vmul.f32 %v15701_v56, %v7957_v54  ;;  %v7976_v56 = vpop.permute.xlu1 %7975 }
 0xd93   :  { %v7969_v28 = vpack.c.bf16 %v7958_v41, %v7955_v53 }
 0xd94   :  { %v7968_v21 = vpack.c.bf16 %v7963_v52, %v7960_v6 }
 0xd95   :  { %7991 = vmatprep.subr.bf16.mxu0 %v7969_v28 }
 0xd96   :  { %7992 = vmatpush1.bf16.msra.mxu0 %v7968_v21 }
 0xd97   :  { %8470 = vmatprep.subr.bf16.mxu0 %v15704_v57 }
 0xd99   :  { %8211 = vmatmul.mubr.msk.bf16.vlgmr.msra.gmra.mrb[84].mxu0 %vm1721_vm8, %v8585_v27 }
 0xd9a   :  { %8471 = vmatpush3.bf16.msra.mxu0 %v7970_v30  ;;  %8472 = vmatprep.mubr.msk.bf16.mxu0 %vm9337_vm12, %v15704_v57 }
 0xda1   :  { %8473 = vmatmul.mubr.msk.bf16.vlgmr.msra.gmra.mrb[88].mxu0 %vm1721_vm8, %v8585_v27 }
 0xe6c   :  { %v8025_v10 = vpop.f32.mrb[84].mxu0 }
 0xe6d   :  { %v8026_v17 = vadd.f32 %v8025_v10, %v7976_v56  ;;  %v8027_v26 = vpop.f32.mrb[85].mxu0 }
 0xe6e   :  { %v8028_v24 = vadd.f32 %v8027_v26, %v7976_v56  ;;  %v8029_v3 = vpop.f32.mrb[86].mxu0 }
 0xe6f   :  { %8075 = vst [vmem:[%s15352_s22] sm:$0xff] %v8026_v17  ;;  %v8030_v40 = vadd.f32 %v8029_v3, %v7981_v34  ;;  %v8031_v50 = vpop.f32.mrb[87].mxu0 }
 0xe70   :  { %8076 = vst [vmem:[%s15352_s22 + $0x8] sm:$0xff] %v8028_v24  ;;  %v8032_v57 = vadd.f32 %v8031_v50, %v7981_v34 }
 0xe71   :  { %8078 = vst [vmem:[%s15352_s22 + $0x18] sm:$0xff] %v8030_v40 }
 0xe72   :  { %8079 = vst [vmem:[%s15352_s22 + $0x20] sm:$0xff] %v8032_v57 }
 0xe74   :  { %v8068_v22 = vpop.f32.mrb[88].mxu0 }
 0xe75   :  { %v8069_v2 = vadd.f32 %v8068_v22, %v7976_v56  ;;  %v8474_v30 = vpop.f32.mrb[89].mxu0 }
 0xe76   :  { %v8071_v42 = vpop.f32.mrb[90].mxu0 }
 0xe77   :  { %8077 = vst [vmem:[%s15352_s22 + $0x10] sm:$0xff] %v8069_v2  ;;  %v8072_v47 = vadd.f32 %v8071_v42, %v7981_v34  ;;  %v8475_v7 = vpop.f32.mrb[91].mxu0 }
 0xe79   :  { %8080 = vst [vmem:[%s15352_s22 + $0x28] sm:$0xff] %v8072_v47 }

</bundles_post_ra>
